<compile_context>
chip_gen: v5e
topology: v5e:2x2
jax: 0.10.0
libtpu: 0.0.40
codegen_flags: <defaults>
</compile_context>

<pallas_src>
import functools

import jax
import jax.numpy as jnp
import numpy as np
from jax.experimental import pallas as pl
from jax.experimental.pallas import tpu as pltpu

EPS = 1e-5


def residual_block_kernel(x_ref, w1_ref, w2_ref, o_ref, pad_ref, *,
                          C, H, W, compute_dtype):
    HW = H * W
    inv_n = 1.0 / float(HW)

    x = x_ref[0].astype(jnp.float32)                       # (C, H*W), lane-dense

    def reflect_pad(img_flat):
        # ReflectionPad2d(1) into the (C, H+2, W+2) compute_dtype scratch via
        # slice stores (interior + 2 border rows + 2 border cols).  The single
        # cast to the MXU operand dtype happens here.
        img = img_flat.astype(compute_dtype).reshape(C, H, W)
        pad_ref[:, 1:H + 1, 1:W + 1] = img
        pad_ref[:, 0:1, 1:W + 1] = img[:, 1:2, :]                  # top    <- row 1
        pad_ref[:, H + 1:H + 2, 1:W + 1] = img[:, H - 2:H - 1, :]  # bottom <- row H-2
        # Columns copied from the already row-padded buffer -> corners correct.
        pad_ref[:, :, 0:1] = pad_ref[:, :, 2:3]
        pad_ref[:, :, W + 1:W + 2] = pad_ref[:, :, W - 1:W]

    def conv3x3(w_ref):
        # 9 accumulating per-tap matmuls; w_ref is (9, C_out, C_in) with tap
        # index di*3 + dj, matching the wrapper's weight restack.  Each tap's
        # slice relayout (ld/st/XLU slots) overlaps the previous tap's MXU work.
        acc = None
        for di in range(3):
            for dj in range(3):
                tap = pad_ref[:, di:di + H, dj:dj + W].reshape(C, HW)
                part = jnp.dot(w_ref[di * 3 + dj], tap,
                               preferred_element_type=jnp.float32)
                acc = part if acc is None else acc + part
        return acc                                          # (C, H*W) f32

    def instance_norm(y):
        # Two-pass (centered) biased variance: robust when |mean| >> std.
        mean = jnp.sum(y, axis=1, keepdims=True) * inv_n
        yc = y - mean
        var = jnp.sum(yc * yc, axis=1, keepdims=True) * inv_n
        return yc * jax.lax.rsqrt(var + EPS)

    # Branch 1: RefPad -> Conv -> IN -> ReLU
    reflect_pad(x)
    y = jnp.maximum(instance_norm(conv3x3(w1_ref)), 0.0)
    # Branch 2: RefPad -> Conv -> IN
    reflect_pad(y)
    y = instance_norm(conv3x3(w2_ref))
    # Residual add (lane-dense output store).
    o_ref[0] = (x + y).astype(o_ref.dtype)


def _tile_padded_bytes(shape, dtype):
    """Bytes of `shape` resident in VMEM after (sublane, lane) tile padding."""
    itemsize = np.dtype(dtype).itemsize
    pack = max(1, 4 // itemsize)          # sub-32-bit dtypes pack along sublanes
    dims = [int(d) for d in shape]
    if len(dims) < 2:
        dims = [1] * (2 - len(dims)) + dims
    lanes = -(-dims[-1] // 128) * 128
    subl = -(-dims[-2] // (8 * pack)) * (8 * pack)
    lead = 1
    for d in dims[:-2]:
        lead *= d
    return lead * subl * lanes * itemsize


def residual_block(x, w1, b1, w2, b2, *, compute_dtype=jnp.float32):
    """Pallas TPU forward of ResidualBlock.

    b1/b2 are accepted to mirror the PyTorch module but are unused: the
    non-affine InstanceNorm subtracts the per-channel mean, exactly cancelling
    a per-channel conv bias.  compute_dtype controls the MXU operand dtype
    (float32 = PyTorch numerics; bfloat16 = native MXU rate with f32
    accumulation -- recommended default on v5e).
    """
    del b1, b2
    B, C, H, W = x.shape
    HW = H * W

    # Per-tap weight stack: (C_out, C_in, 3, 3) -> (9, C_out, C_in),
    # tap index k = di*3 + dj.  Grid-resident (constant index_map).
    w1s = jnp.transpose(w1, (2, 3, 0, 1)).reshape(9, C, C).astype(compute_dtype)
    w2s = jnp.transpose(w2, (2, 3, 0, 1)).reshape(9, C, C).astype(compute_dtype)

    # Lane-dense activations: last dim H*W maps to lanes (unmasked stores).
    x_flat = x.reshape(B, C, HW)

    # VMEM residency with physical tile padding; cap at 7/8 of per-core VMEM
    # (v7x has only 64 MiB physical; v5e/v6e have 128 MiB).
    try:
        vmem_cap = int(pltpu.get_tpu_info().vmem_capacity_bytes)
    except Exception:  # conservative default (v7x-sized)
        vmem_cap = 64 * 1024 * 1024
    act_f32 = _tile_padded_bytes((C, HW), jnp.float32)
    est = (
        2 * act_f32                                              # x block (double-buffered)
        + 2 * _tile_padded_bytes((C, HW), x.dtype)               # out block (double-buffered)
        + 2 * _tile_padded_bytes((9, C, C), compute_dtype)       # w1 + w2 (single-buffered)
        + _tile_padded_bytes((C, H + 2, W + 2), compute_dtype)   # reflection-pad scratch
        + _tile_padded_bytes((C, HW), compute_dtype)             # per-tap slice operand
        + 5 * act_f32                                            # conv acc / IN / residual f32 live
    )
    vmem_limit = int(min(max(est + 8 * 1024 * 1024, 32 * 1024 * 1024),
                         (vmem_cap * 7) // 8))

    kernel = functools.partial(residual_block_kernel, C=C, H=H, W=W,
                               compute_dtype=compute_dtype)

    def build_call(single_buffer_weights):
        def w_spec():
            if single_buffer_weights:
                # Constant index_map -> double-buffering buys nothing; save VMEM.
                return pl.BlockSpec((9, C, C), lambda b: (0, 0, 0),
                                    pipeline_mode=pl.Buffered(1))
            return pl.BlockSpec((9, C, C), lambda b: (0, 0, 0))

        return pl.pallas_call(
            kernel,
            out_shape=jax.ShapeDtypeStruct((B, C, HW), x.dtype),
            grid_spec=pltpu.PrefetchScalarGridSpec(
                num_scalar_prefetch=0,
                grid=(B,),
                in_specs=[
                    pl.BlockSpec((1, C, HW), lambda b: (b, 0, 0)),  # x (lane-dense)
                    w_spec(),                                       # w1 (resident)
                    w_spec(),                                       # w2 (resident)
                ],
                out_specs=pl.BlockSpec((1, C, HW), lambda b: (b, 0, 0)),
                scratch_shapes=[pltpu.VMEM((C, H + 2, W + 2), compute_dtype)],
            ),
            compiler_params=pltpu.CompilerParams(
                dimension_semantics=("parallel",),
                vmem_limit_bytes=vmem_limit,
            ),
        )

    try:
        out_flat = build_call(True)(x_flat, w1s, w2s)
    except Exception:
        # Fallback if this JAX build rejects single-buffered pipeline_mode on a
        # top-level pallas_call BlockSpec (harmless: weights double-buffer).
        out_flat = build_call(False)(x_flat, w1s, w2s)
    return out_flat.reshape(B, C, H, W)


def residual_block_ref(x, w1, b1, w2, b2):
    # Pure-JAX reference mirroring the PyTorch module (biases included here to
    # validate that dropping them in the kernel is exact).
    def refpad(t):
        return jnp.pad(t, ((0, 0), (0, 0), (1, 1), (1, 1)), mode="reflect")

    def conv(t, w, b):
        y = jax.lax.conv_general_dilated(
            t, w, (1, 1), "VALID",
            dimension_numbers=("NCHW", "OIHW", "NCHW"))
        return y + b[None, :, None, None]

    def inorm(t):
        m = jnp.mean(t, axis=(2, 3), keepdims=True)
        v = jnp.mean((t - m) ** 2, axis=(2, 3), keepdims=True)
        return (t - m) / jnp.sqrt(v + EPS)

    y = jnp.maximum(inorm(conv(refpad(x), w1, b1)), 0.0)
    y = inorm(conv(refpad(y), w2, b2))
    return x + y


if __name__ == "__main__":
    B, C, H, W = 2, 4, 16, 16
    key = jax.random.PRNGKey(0)
    kx, kw1, kb1, kw2, kb2 = jax.random.split(key, 5)

    x = jax.random.normal(kx, (B, C, H, W), jnp.float32)

    # Deterministic Conv2d(C, C, 3) parameter init.
    fan_in = C * 3 * 3
    bound = 1.0 / np.sqrt(fan_in)
    w1 = jax.random.uniform(kw1, (C, C, 3, 3), jnp.float32, -bound, bound)
    b1 = jax.random.uniform(kb1, (C,), jnp.float32, -bound, bound)
    w2 = jax.random.uniform(kw2, (C, C, 3, 3), jnp.float32, -bound, bound)
    b2 = jax.random.uniform(kb2, (C,), jnp.float32, -bound, bound)

    ref = jax.block_until_ready(residual_block_ref(x, w1, b1, w2, b2))

    # f32 matmul path: matches the PyTorch module numerics.
    out = jax.block_until_ready(residual_block(x, w1, b1, w2, b2))
    assert out.shape == (B, C, H, W) and out.dtype == jnp.float32
    np.testing.assert_allclose(np.asarray(out), np.asarray(ref),
                               rtol=1e-4, atol=1e-4)

    # bf16 MXU-operand path (f32 accumulation): looser tolerance by design.
    out_bf16 = jax.block_until_ready(
        residual_block(x, w1, b1, w2, b2, compute_dtype=jnp.bfloat16))
    np.testing.assert_allclose(np.asarray(out_bf16), np.asarray(ref),
                               rtol=5e-2, atol=5e-2)

    print("KERNEL_OK")
</pallas_src>

<mosaic_0001>
module attributes {stable_mosaic.version = 11 : i64} {
  func.func @residual_block_kernel(%arg0: i32, %arg1: memref<1x4x256xf32, #tpu.memory_space<vmem>>, %arg2: memref<9x4x4xf32, #tpu.memory_space<vmem>>, %arg3: memref<9x4x4xf32, #tpu.memory_space<vmem>>, %arg4: memref<1x4x256xf32, #tpu.memory_space<vmem>>, %arg5: memref<4x18x18xf32, #tpu.memory_space<vmem>>) attributes {dimension_semantics = [#tpu.dimension_semantics<parallel>], iteration_bounds = array<i64: 2>, scalar_prefetch = 0 : i64, scratch_operands = 1 : i64, tpu.core_type = #tpu.core_type<tc>, window_params = [{transform_indices = @transform_0, window_bounds = array<i64: 1, 4, 256>}, {pipeline_mode = #tpu.pipeline_mode<synchronous>, transform_indices = @transform_1, window_bounds = array<i64: 9, 4, 4>}, {pipeline_mode = #tpu.pipeline_mode<synchronous>, transform_indices = @transform_2, window_bounds = array<i64: 9, 4, 4>}, {transform_indices = @transform_3, window_bounds = array<i64: 1, 4, 256>}]} {
    %c0 = arith.constant 0 : index
    %c0_0 = arith.constant 0 : index
    %c0_1 = arith.constant 0 : index
    %0 = vector.load %arg1[%c0, %c0_0, %c0_1] : memref<1x4x256xf32, #tpu.memory_space<vmem>>, vector<1x4x256xf32>
    %1 = vector.shape_cast %0 : vector<1x4x256xf32> to vector<4x256xf32>
    %2 = vector.shape_cast %1 : vector<4x256xf32> to vector<4x16x16xf32>
    %c0_2 = arith.constant 0 : index
    %c1 = arith.constant 1 : index
    %c1_3 = arith.constant 1 : index
    %3 = vector.load %arg5[%c0_2, %c1, %c1_3] : memref<4x18x18xf32, #tpu.memory_space<vmem>>, vector<4x16x16xf32>
    tpu.vector_store %arg5[%c0_2, %c1, %c1_3], %2 {strides = array<i32>} : memref<4x18x18xf32, #tpu.memory_space<vmem>>, vector<4x16x16xf32>,
    %4 = vector.extract_strided_slice %2 {offsets = [0, 1, 0], sizes = [4, 1, 16], strides = [1, 1, 1]} : vector<4x16x16xf32> to vector<4x1x16xf32>
    %c0_4 = arith.constant 0 : index
    %c0_5 = arith.constant 0 : index
    %c1_6 = arith.constant 1 : index
    %5 = vector.load %arg5[%c0_4, %c0_5, %c1_6] : memref<4x18x18xf32, #tpu.memory_space<vmem>>, vector<4x1x16xf32>
    tpu.vector_store %arg5[%c0_4, %c0_5, %c1_6], %4 {strides = array<i32>} : memref<4x18x18xf32, #tpu.memory_space<vmem>>, vector<4x1x16xf32>,
    %6 = vector.extract_strided_slice %2 {offsets = [0, 14, 0], sizes = [4, 1, 16], strides = [1, 1, 1]} : vector<4x16x16xf32> to vector<4x1x16xf32>
    %c0_7 = arith.constant 0 : index
    %c17 = arith.constant 17 : index
    %c1_8 = arith.constant 1 : index
    %7 = vector.load %arg5[%c0_7, %c17, %c1_8] : memref<4x18x18xf32, #tpu.memory_space<vmem>>, vector<4x1x16xf32>
    tpu.vector_store %arg5[%c0_7, %c17, %c1_8], %6 {strides = array<i32>} : memref<4x18x18xf32, #tpu.memory_space<vmem>>, vector<4x1x16xf32>,
    %c0_9 = arith.constant 0 : index
    %c0_10 = arith.constant 0 : index
    %c2 = arith.constant 2 : index
    %8 = vector.load %arg5[%c0_9, %c0_10, %c2] : memref<4x18x18xf32, #tpu.memory_space<vmem>>, vector<4x18x1xf32>
    %c0_11 = arith.constant 0 : index
    %c0_12 = arith.constant 0 : index
    %c0_13 = arith.constant 0 : index
    %9 = vector.load %arg5[%c0_11, %c0_12, %c0_13] : memref<4x18x18xf32, #tpu.memory_space<vmem>>, vector<4x18x1xf32>
    tpu.vector_store %arg5[%c0_11, %c0_12, %c0_13], %8 {strides = array<i32>} : memref<4x18x18xf32, #tpu.memory_space<vmem>>, vector<4x18x1xf32>,
    %c0_14 = arith.constant 0 : index
    %c0_15 = arith.constant 0 : index
    %c15 = arith.constant 15 : index
    %10 = vector.load %arg5[%c0_14, %c0_15, %c15] : memref<4x18x18xf32, #tpu.memory_space<vmem>>, vector<4x18x1xf32>
    %c0_16 = arith.constant 0 : index
    %c0_17 = arith.constant 0 : index
    %c17_18 = arith.constant 17 : index
    %11 = vector.load %arg5[%c0_16, %c0_17, %c17_18] : memref<4x18x18xf32, #tpu.memory_space<vmem>>, vector<4x18x1xf32>
    tpu.vector_store %arg5[%c0_16, %c0_17, %c17_18], %10 {strides = array<i32>} : memref<4x18x18xf32, #tpu.memory_space<vmem>>, vector<4x18x1xf32>,
    %c0_19 = arith.constant 0 : index
    %c0_20 = arith.constant 0 : index
    %c0_21 = arith.constant 0 : index
    %12 = vector.load %arg5[%c0_19, %c0_20, %c0_21] : memref<4x18x18xf32, #tpu.memory_space<vmem>>, vector<4x16x16xf32>
    %13 = vector.shape_cast %12 : vector<4x16x16xf32> to vector<4x256xf32>
    %c0_22 = arith.constant 0 : index
    %c0_23 = arith.constant 0 : index
    %c0_24 = arith.constant 0 : index
    %14 = vector.load %arg2[%c0_22, %c0_23, %c0_24] : memref<9x4x4xf32, #tpu.memory_space<vmem>>, vector<1x4x4xf32>
    %15 = vector.shape_cast %14 : vector<1x4x4xf32> to vector<4x4xf32>
    %cst = arith.constant dense<0.000000e+00> : vector<4x256xf32>
    %16 = tpu.matmul %15, %13, %cst {dimension_numbers = #tpu.dot_dimension_numbers<[1], [0], [0], [1], [0, 0, 1, 1], [], []>} : vector<4x4xf32>, vector<4x256xf32>, vector<4x256xf32> -> vector<4x256xf32>
    %c0_25 = arith.constant 0 : index
    %c0_26 = arith.constant 0 : index
    %c1_27 = arith.constant 1 : index
    %17 = vector.load %arg5[%c0_25, %c0_26, %c1_27] : memref<4x18x18xf32, #tpu.memory_space<vmem>>, vector<4x16x16xf32>
    %18 = vector.shape_cast %17 : vector<4x16x16xf32> to vector<4x256xf32>
    %c1_28 = arith.constant 1 : index
    %c0_29 = arith.constant 0 : index
    %c0_30 = arith.constant 0 : index
    %19 = vector.load %arg2[%c1_28, %c0_29, %c0_30] : memref<9x4x4xf32, #tpu.memory_space<vmem>>, vector<1x4x4xf32>
    %20 = vector.shape_cast %19 : vector<1x4x4xf32> to vector<4x4xf32>
    %cst_31 = arith.constant dense<0.000000e+00> : vector<4x256xf32>
    %21 = tpu.matmul %20, %18, %cst_31 {dimension_numbers = #tpu.dot_dimension_numbers<[1], [0], [0], [1], [0, 0, 1, 1], [], []>} : vector<4x4xf32>, vector<4x256xf32>, vector<4x256xf32> -> vector<4x256xf32>
    %22 = arith.addf %16, %21 : vector<4x256xf32>
    %c0_32 = arith.constant 0 : index
    %c0_33 = arith.constant 0 : index
    %c2_34 = arith.constant 2 : index
    %23 = vector.load %arg5[%c0_32, %c0_33, %c2_34] : memref<4x18x18xf32, #tpu.memory_space<vmem>>, vector<4x16x16xf32>
    %24 = vector.shape_cast %23 : vector<4x16x16xf32> to vector<4x256xf32>
    %c2_35 = arith.constant 2 : index
    %c0_36 = arith.constant 0 : index
    %c0_37 = arith.constant 0 : index
    %25 = vector.load %arg2[%c2_35, %c0_36, %c0_37] : memref<9x4x4xf32, #tpu.memory_space<vmem>>, vector<1x4x4xf32>
    %26 = vector.shape_cast %25 : vector<1x4x4xf32> to vector<4x4xf32>
    %cst_38 = arith.constant dense<0.000000e+00> : vector<4x256xf32>
    %27 = tpu.matmul %26, %24, %cst_38 {dimension_numbers = #tpu.dot_dimension_numbers<[1], [0], [0], [1], [0, 0, 1, 1], [], []>} : vector<4x4xf32>, vector<4x256xf32>, vector<4x256xf32> -> vector<4x256xf32>
    %28 = arith.addf %22, %27 : vector<4x256xf32>
    %c0_39 = arith.constant 0 : index
    %c1_40 = arith.constant 1 : index
    %c0_41 = arith.constant 0 : index
    %29 = vector.load %arg5[%c0_39, %c1_40, %c0_41] : memref<4x18x18xf32, #tpu.memory_space<vmem>>, vector<4x16x16xf32>
    %30 = vector.shape_cast %29 : vector<4x16x16xf32> to vector<4x256xf32>
    %c3 = arith.constant 3 : index
    %c0_42 = arith.constant 0 : index
    %c0_43 = arith.constant 0 : index
    %31 = vector.load %arg2[%c3, %c0_42, %c0_43] : memref<9x4x4xf32, #tpu.memory_space<vmem>>, vector<1x4x4xf32>
    %32 = vector.shape_cast %31 : vector<1x4x4xf32> to vector<4x4xf32>
    %cst_44 = arith.constant dense<0.000000e+00> : vector<4x256xf32>
    %33 = tpu.matmul %32, %30, %cst_44 {dimension_numbers = #tpu.dot_dimension_numbers<[1], [0], [0], [1], [0, 0, 1, 1], [], []>} : vector<4x4xf32>, vector<4x256xf32>, vector<4x256xf32> -> vector<4x256xf32>
    %34 = arith.addf %28, %33 : vector<4x256xf32>
    %c0_45 = arith.constant 0 : index
    %c1_46 = arith.constant 1 : index
    %c1_47 = arith.constant 1 : index
    %35 = vector.load %arg5[%c0_45, %c1_46, %c1_47] : memref<4x18x18xf32, #tpu.memory_space<vmem>>, vector<4x16x16xf32>
    %36 = vector.shape_cast %35 : vector<4x16x16xf32> to vector<4x256xf32>
    %c4 = arith.constant 4 : index
    %c0_48 = arith.constant 0 : index
    %c0_49 = arith.constant 0 : index
    %37 = vector.load %arg2[%c4, %c0_48, %c0_49] : memref<9x4x4xf32, #tpu.memory_space<vmem>>, vector<1x4x4xf32>
    %38 = vector.shape_cast %37 : vector<1x4x4xf32> to vector<4x4xf32>
    %cst_50 = arith.constant dense<0.000000e+00> : vector<4x256xf32>
    %39 = tpu.matmul %38, %36, %cst_50 {dimension_numbers = #tpu.dot_dimension_numbers<[1], [0], [0], [1], [0, 0, 1, 1], [], []>} : vector<4x4xf32>, vector<4x256xf32>, vector<4x256xf32> -> vector<4x256xf32>
    %40 = arith.addf %34, %39 : vector<4x256xf32>
    %c0_51 = arith.constant 0 : index
    %c1_52 = arith.constant 1 : index
    %c2_53 = arith.constant 2 : index
    %41 = vector.load %arg5[%c0_51, %c1_52, %c2_53] : memref<4x18x18xf32, #tpu.memory_space<vmem>>, vector<4x16x16xf32>
    %42 = vector.shape_cast %41 : vector<4x16x16xf32> to vector<4x256xf32>
    %c5 = arith.constant 5 : index
    %c0_54 = arith.constant 0 : index
    %c0_55 = arith.constant 0 : index
    %43 = vector.load %arg2[%c5, %c0_54, %c0_55] : memref<9x4x4xf32, #tpu.memory_space<vmem>>, vector<1x4x4xf32>
    %44 = vector.shape_cast %43 : vector<1x4x4xf32> to vector<4x4xf32>
    %cst_56 = arith.constant dense<0.000000e+00> : vector<4x256xf32>
    %45 = tpu.matmul %44, %42, %cst_56 {dimension_numbers = #tpu.dot_dimension_numbers<[1], [0], [0], [1], [0, 0, 1, 1], [], []>} : vector<4x4xf32>, vector<4x256xf32>, vector<4x256xf32> -> vector<4x256xf32>
    %46 = arith.addf %40, %45 : vector<4x256xf32>
    %c0_57 = arith.constant 0 : index
    %c2_58 = arith.constant 2 : index
    %c0_59 = arith.constant 0 : index
    %47 = vector.load %arg5[%c0_57, %c2_58, %c0_59] : memref<4x18x18xf32, #tpu.memory_space<vmem>>, vector<4x16x16xf32>
    %48 = vector.shape_cast %47 : vector<4x16x16xf32> to vector<4x256xf32>
    %c6 = arith.constant 6 : index
    %c0_60 = arith.constant 0 : index
    %c0_61 = arith.constant 0 : index
    %49 = vector.load %arg2[%c6, %c0_60, %c0_61] : memref<9x4x4xf32, #tpu.memory_space<vmem>>, vector<1x4x4xf32>
    %50 = vector.shape_cast %49 : vector<1x4x4xf32> to vector<4x4xf32>
    %cst_62 = arith.constant dense<0.000000e+00> : vector<4x256xf32>
    %51 = tpu.matmul %50, %48, %cst_62 {dimension_numbers = #tpu.dot_dimension_numbers<[1], [0], [0], [1], [0, 0, 1, 1], [], []>} : vector<4x4xf32>, vector<4x256xf32>, vector<4x256xf32> -> vector<4x256xf32>
    %52 = arith.addf %46, %51 : vector<4x256xf32>
    %c0_63 = arith.constant 0 : index
    %c2_64 = arith.constant 2 : index
    %c1_65 = arith.constant 1 : index
    %53 = vector.load %arg5[%c0_63, %c2_64, %c1_65] : memref<4x18x18xf32, #tpu.memory_space<vmem>>, vector<4x16x16xf32>
    %54 = vector.shape_cast %53 : vector<4x16x16xf32> to vector<4x256xf32>
    %c7 = arith.constant 7 : index
    %c0_66 = arith.constant 0 : index
    %c0_67 = arith.constant 0 : index
    %55 = vector.load %arg2[%c7, %c0_66, %c0_67] : memref<9x4x4xf32, #tpu.memory_space<vmem>>, vector<1x4x4xf32>
    %56 = vector.shape_cast %55 : vector<1x4x4xf32> to vector<4x4xf32>
    %cst_68 = arith.constant dense<0.000000e+00> : vector<4x256xf32>
    %57 = tpu.matmul %56, %54, %cst_68 {dimension_numbers = #tpu.dot_dimension_numbers<[1], [0], [0], [1], [0, 0, 1, 1], [], []>} : vector<4x4xf32>, vector<4x256xf32>, vector<4x256xf32> -> vector<4x256xf32>
    %58 = arith.addf %52, %57 : vector<4x256xf32>
    %c0_69 = arith.constant 0 : index
    %c2_70 = arith.constant 2 : index
    %c2_71 = arith.constant 2 : index
    %59 = vector.load %arg5[%c0_69, %c2_70, %c2_71] : memref<4x18x18xf32, #tpu.memory_space<vmem>>, vector<4x16x16xf32>
    %60 = vector.shape_cast %59 : vector<4x16x16xf32> to vector<4x256xf32>
    %c8 = arith.constant 8 : index
    %c0_72 = arith.constant 0 : index
    %c0_73 = arith.constant 0 : index
    %61 = vector.load %arg2[%c8, %c0_72, %c0_73] : memref<9x4x4xf32, #tpu.memory_space<vmem>>, vector<1x4x4xf32>
    %62 = vector.shape_cast %61 : vector<1x4x4xf32> to vector<4x4xf32>
    %cst_74 = arith.constant dense<0.000000e+00> : vector<4x256xf32>
    %63 = tpu.matmul %62, %60, %cst_74 {dimension_numbers = #tpu.dot_dimension_numbers<[1], [0], [0], [1], [0, 0, 1, 1], [], []>} : vector<4x4xf32>, vector<4x256xf32>, vector<4x256xf32> -> vector<4x256xf32>
    %64 = arith.addf %58, %63 : vector<4x256xf32>
    %cst_75 = arith.constant dense<0.000000e+00> : vector<4xf32>
    %65 = vector.multi_reduction <add>, %64, %cst_75 [1] : vector<4x256xf32> to vector<4xf32>
    %66 = vector.shape_cast %65 : vector<4xf32> to vector<4x1xf32>
    %cst_76 = arith.constant 3.906250e-03 : f32
    %67 = vector.broadcast %cst_76 : f32 to vector<4x1xf32>
    %68 = arith.mulf %66, %67 : vector<4x1xf32>
    %69 = vector.broadcast %68 : vector<4x1xf32> to vector<4x256xf32>
    %70 = arith.subf %64, %69 : vector<4x256xf32>
    %71 = arith.mulf %70, %70 : vector<4x256xf32>
    %cst_77 = arith.constant dense<0.000000e+00> : vector<4xf32>
    %72 = vector.multi_reduction <add>, %71, %cst_77 [1] : vector<4x256xf32> to vector<4xf32>
    %73 = vector.shape_cast %72 : vector<4xf32> to vector<4x1xf32>
    %cst_78 = arith.constant 3.906250e-03 : f32
    %74 = vector.broadcast %cst_78 : f32 to vector<4x1xf32>
    %75 = arith.mulf %73, %74 : vector<4x1xf32>
    %cst_79 = arith.constant 9.99999974E-6 : f32
    %76 = vector.broadcast %cst_79 : f32 to vector<4x1xf32>
    %77 = arith.addf %75, %76 : vector<4x1xf32>
    %78 = math.rsqrt %77 : vector<4x1xf32>
    %79 = vector.broadcast %78 : vector<4x1xf32> to vector<4x256xf32>
    %80 = arith.mulf %70, %79 : vector<4x256xf32>
    %cst_80 = arith.constant 0.000000e+00 : f32
    %81 = vector.broadcast %cst_80 : f32 to vector<4x256xf32>
    %82 = arith.maximumf %80, %81 : vector<4x256xf32>
    %83 = vector.shape_cast %82 : vector<4x256xf32> to vector<4x16x16xf32>
    %c0_81 = arith.constant 0 : index
    %c1_82 = arith.constant 1 : index
    %c1_83 = arith.constant 1 : index
    %84 = vector.load %arg5[%c0_81, %c1_82, %c1_83] : memref<4x18x18xf32, #tpu.memory_space<vmem>>, vector<4x16x16xf32>
    tpu.vector_store %arg5[%c0_81, %c1_82, %c1_83], %83 {strides = array<i32>} : memref<4x18x18xf32, #tpu.memory_space<vmem>>, vector<4x16x16xf32>,
    %85 = vector.extract_strided_slice %83 {offsets = [0, 1, 0], sizes = [4, 1, 16], strides = [1, 1, 1]} : vector<4x16x16xf32> to vector<4x1x16xf32>
    %c0_84 = arith.constant 0 : index
    %c0_85 = arith.constant 0 : index
    %c1_86 = arith.constant 1 : index
    %86 = vector.load %arg5[%c0_84, %c0_85, %c1_86] : memref<4x18x18xf32, #tpu.memory_space<vmem>>, vector<4x1x16xf32>
    tpu.vector_store %arg5[%c0_84, %c0_85, %c1_86], %85 {strides = array<i32>} : memref<4x18x18xf32, #tpu.memory_space<vmem>>, vector<4x1x16xf32>,
    %87 = vector.extract_strided_slice %83 {offsets = [0, 14, 0], sizes = [4, 1, 16], strides = [1, 1, 1]} : vector<4x16x16xf32> to vector<4x1x16xf32>
    %c0_87 = arith.constant 0 : index
    %c17_88 = arith.constant 17 : index
    %c1_89 = arith.constant 1 : index
    %88 = vector.load %arg5[%c0_87, %c17_88, %c1_89] : memref<4x18x18xf32, #tpu.memory_space<vmem>>, vector<4x1x16xf32>
    tpu.vector_store %arg5[%c0_87, %c17_88, %c1_89], %87 {strides = array<i32>} : memref<4x18x18xf32, #tpu.memory_space<vmem>>, vector<4x1x16xf32>,
    %c0_90 = arith.constant 0 : index
    %c0_91 = arith.constant 0 : index
    %c2_92 = arith.constant 2 : index
    %89 = vector.load %arg5[%c0_90, %c0_91, %c2_92] : memref<4x18x18xf32, #tpu.memory_space<vmem>>, vector<4x18x1xf32>
    %c0_93 = arith.constant 0 : index
    %c0_94 = arith.constant 0 : index
    %c0_95 = arith.constant 0 : index
    %90 = vector.load %arg5[%c0_93, %c0_94, %c0_95] : memref<4x18x18xf32, #tpu.memory_space<vmem>>, vector<4x18x1xf32>
    tpu.vector_store %arg5[%c0_93, %c0_94, %c0_95], %89 {strides = array<i32>} : memref<4x18x18xf32, #tpu.memory_space<vmem>>, vector<4x18x1xf32>,
    %c0_96 = arith.constant 0 : index
    %c0_97 = arith.constant 0 : index
    %c15_98 = arith.constant 15 : index
    %91 = vector.load %arg5[%c0_96, %c0_97, %c15_98] : memref<4x18x18xf32, #tpu.memory_space<vmem>>, vector<4x18x1xf32>
    %c0_99 = arith.constant 0 : index
    %c0_100 = arith.constant 0 : index
    %c17_101 = arith.constant 17 : index
    %92 = vector.load %arg5[%c0_99, %c0_100, %c17_101] : memref<4x18x18xf32, #tpu.memory_space<vmem>>, vector<4x18x1xf32>
    tpu.vector_store %arg5[%c0_99, %c0_100, %c17_101], %91 {strides = array<i32>} : memref<4x18x18xf32, #tpu.memory_space<vmem>>, vector<4x18x1xf32>,
    %c0_102 = arith.constant 0 : index
    %c0_103 = arith.constant 0 : index
    %c0_104 = arith.constant 0 : index
    %93 = vector.load %arg5[%c0_102, %c0_103, %c0_104] : memref<4x18x18xf32, #tpu.memory_space<vmem>>, vector<4x16x16xf32>
    %94 = vector.shape_cast %93 : vector<4x16x16xf32> to vector<4x256xf32>
    %c0_105 = arith.constant 0 : index
    %c0_106 = arith.constant 0 : index
    %c0_107 = arith.constant 0 : index
    %95 = vector.load %arg3[%c0_105, %c0_106, %c0_107] : memref<9x4x4xf32, #tpu.memory_space<vmem>>, vector<1x4x4xf32>
    %96 = vector.shape_cast %95 : vector<1x4x4xf32> to vector<4x4xf32>
    %cst_108 = arith.constant dense<0.000000e+00> : vector<4x256xf32>
    %97 = tpu.matmul %96, %94, %cst_108 {dimension_numbers = #tpu.dot_dimension_numbers<[1], [0], [0], [1], [0, 0, 1, 1], [], []>} : vector<4x4xf32>, vector<4x256xf32>, vector<4x256xf32> -> vector<4x256xf32>
    %c0_109 = arith.constant 0 : index
    %c0_110 = arith.constant 0 : index
    %c1_111 = arith.constant 1 : index
    %98 = vector.load %arg5[%c0_109, %c0_110, %c1_111] : memref<4x18x18xf32, #tpu.memory_space<vmem>>, vector<4x16x16xf32>
    %99 = vector.shape_cast %98 : vector<4x16x16xf32> to vector<4x256xf32>
    %c1_112 = arith.constant 1 : index
    %c0_113 = arith.constant 0 : index
    %c0_114 = arith.constant 0 : index
    %100 = vector.load %arg3[%c1_112, %c0_113, %c0_114] : memref<9x4x4xf32, #tpu.memory_space<vmem>>, vector<1x4x4xf32>
    %101 = vector.shape_cast %100 : vector<1x4x4xf32> to vector<4x4xf32>
    %cst_115 = arith.constant dense<0.000000e+00> : vector<4x256xf32>
    %102 = tpu.matmul %101, %99, %cst_115 {dimension_numbers = #tpu.dot_dimension_numbers<[1], [0], [0], [1], [0, 0, 1, 1], [], []>} : vector<4x4xf32>, vector<4x256xf32>, vector<4x256xf32> -> vector<4x256xf32>
    %103 = arith.addf %97, %102 : vector<4x256xf32>
    %c0_116 = arith.constant 0 : index
    %c0_117 = arith.constant 0 : index
    %c2_118 = arith.constant 2 : index
    %104 = vector.load %arg5[%c0_116, %c0_117, %c2_118] : memref<4x18x18xf32, #tpu.memory_space<vmem>>, vector<4x16x16xf32>
    %105 = vector.shape_cast %104 : vector<4x16x16xf32> to vector<4x256xf32>
    %c2_119 = arith.constant 2 : index
    %c0_120 = arith.constant 0 : index
    %c0_121 = arith.constant 0 : index
    %106 = vector.load %arg3[%c2_119, %c0_120, %c0_121] : memref<9x4x4xf32, #tpu.memory_space<vmem>>, vector<1x4x4xf32>
    %107 = vector.shape_cast %106 : vector<1x4x4xf32> to vector<4x4xf32>
    %cst_122 = arith.constant dense<0.000000e+00> : vector<4x256xf32>
    %108 = tpu.matmul %107, %105, %cst_122 {dimension_numbers = #tpu.dot_dimension_numbers<[1], [0], [0], [1], [0, 0, 1, 1], [], []>} : vector<4x4xf32>, vector<4x256xf32>, vector<4x256xf32> -> vector<4x256xf32>
    %109 = arith.addf %103, %108 : vector<4x256xf32>
    %c0_123 = arith.constant 0 : index
    %c1_124 = arith.constant 1 : index
    %c0_125 = arith.constant 0 : index
    %110 = vector.load %arg5[%c0_123, %c1_124, %c0_125] : memref<4x18x18xf32, #tpu.memory_space<vmem>>, vector<4x16x16xf32>
    %111 = vector.shape_cast %110 : vector<4x16x16xf32> to vector<4x256xf32>
    %c3_126 = arith.constant 3 : index
    %c0_127 = arith.constant 0 : index
    %c0_128 = arith.constant 0 : index
    %112 = vector.load %arg3[%c3_126, %c0_127, %c0_128] : memref<9x4x4xf32, #tpu.memory_space<vmem>>, vector<1x4x4xf32>
    %113 = vector.shape_cast %112 : vector<1x4x4xf32> to vector<4x4xf32>
    %cst_129 = arith.constant dense<0.000000e+00> : vector<4x256xf32>
    %114 = tpu.matmul %113, %111, %cst_129 {dimension_numbers = #tpu.dot_dimension_numbers<[1], [0], [0], [1], [0, 0, 1, 1], [], []>} : vector<4x4xf32>, vector<4x256xf32>, vector<4x256xf32> -> vector<4x256xf32>
    %115 = arith.addf %109, %114 : vector<4x256xf32>
    %c0_130 = arith.constant 0 : index
    %c1_131 = arith.constant 1 : index
    %c1_132 = arith.constant 1 : index
    %116 = vector.load %arg5[%c0_130, %c1_131, %c1_132] : memref<4x18x18xf32, #tpu.memory_space<vmem>>, vector<4x16x16xf32>
    %117 = vector.shape_cast %116 : vector<4x16x16xf32> to vector<4x256xf32>
    %c4_133 = arith.constant 4 : index
    %c0_134 = arith.constant 0 : index
    %c0_135 = arith.constant 0 : index
    %118 = vector.load %arg3[%c4_133, %c0_134, %c0_135] : memref<9x4x4xf32, #tpu.memory_space<vmem>>, vector<1x4x4xf32>
    %119 = vector.shape_cast %118 : vector<1x4x4xf32> to vector<4x4xf32>
    %cst_136 = arith.constant dense<0.000000e+00> : vector<4x256xf32>
    %120 = tpu.matmul %119, %117, %cst_136 {dimension_numbers = #tpu.dot_dimension_numbers<[1], [0], [0], [1], [0, 0, 1, 1], [], []>} : vector<4x4xf32>, vector<4x256xf32>, vector<4x256xf32> -> vector<4x256xf32>
    %121 = arith.addf %115, %120 : vector<4x256xf32>
    %c0_137 = arith.constant 0 : index
    %c1_138 = arith.constant 1 : index
    %c2_139 = arith.constant 2 : index
    %122 = vector.load %arg5[%c0_137, %c1_138, %c2_139] : memref<4x18x18xf32, #tpu.memory_space<vmem>>, vector<4x16x16xf32>
    %123 = vector.shape_cast %122 : vector<4x16x16xf32> to vector<4x256xf32>
    %c5_140 = arith.constant 5 : index
    %c0_141 = arith.constant 0 : index
    %c0_142 = arith.constant 0 : index
    %124 = vector.load %arg3[%c5_140, %c0_141, %c0_142] : memref<9x4x4xf32, #tpu.memory_space<vmem>>, vector<1x4x4xf32>
    %125 = vector.shape_cast %124 : vector<1x4x4xf32> to vector<4x4xf32>
    %cst_143 = arith.constant dense<0.000000e+00> : vector<4x256xf32>
    %126 = tpu.matmul %125, %123, %cst_143 {dimension_numbers = #tpu.dot_dimension_numbers<[1], [0], [0], [1], [0, 0, 1, 1], [], []>} : vector<4x4xf32>, vector<4x256xf32>, vector<4x256xf32> -> vector<4x256xf32>
    %127 = arith.addf %121, %126 : vector<4x256xf32>
    %c0_144 = arith.constant 0 : index
    %c2_145 = arith.constant 2 : index
    %c0_146 = arith.constant 0 : index
    %128 = vector.load %arg5[%c0_144, %c2_145, %c0_146] : memref<4x18x18xf32, #tpu.memory_space<vmem>>, vector<4x16x16xf32>
    %129 = vector.shape_cast %128 : vector<4x16x16xf32> to vector<4x256xf32>
    %c6_147 = arith.constant 6 : index
    %c0_148 = arith.constant 0 : index
    %c0_149 = arith.constant 0 : index
    %130 = vector.load %arg3[%c6_147, %c0_148, %c0_149] : memref<9x4x4xf32, #tpu.memory_space<vmem>>, vector<1x4x4xf32>
    %131 = vector.shape_cast %130 : vector<1x4x4xf32> to vector<4x4xf32>
    %cst_150 = arith.constant dense<0.000000e+00> : vector<4x256xf32>
    %132 = tpu.matmul %131, %129, %cst_150 {dimension_numbers = #tpu.dot_dimension_numbers<[1], [0], [0], [1], [0, 0, 1, 1], [], []>} : vector<4x4xf32>, vector<4x256xf32>, vector<4x256xf32> -> vector<4x256xf32>
    %133 = arith.addf %127, %132 : vector<4x256xf32>
    %c0_151 = arith.constant 0 : index
    %c2_152 = arith.constant 2 : index
    %c1_153 = arith.constant 1 : index
    %134 = vector.load %arg5[%c0_151, %c2_152, %c1_153] : memref<4x18x18xf32, #tpu.memory_space<vmem>>, vector<4x16x16xf32>
    %135 = vector.shape_cast %134 : vector<4x16x16xf32> to vector<4x256xf32>
    %c7_154 = arith.constant 7 : index
    %c0_155 = arith.constant 0 : index
    %c0_156 = arith.constant 0 : index
    %136 = vector.load %arg3[%c7_154, %c0_155, %c0_156] : memref<9x4x4xf32, #tpu.memory_space<vmem>>, vector<1x4x4xf32>
    %137 = vector.shape_cast %136 : vector<1x4x4xf32> to vector<4x4xf32>
    %cst_157 = arith.constant dense<0.000000e+00> : vector<4x256xf32>
    %138 = tpu.matmul %137, %135, %cst_157 {dimension_numbers = #tpu.dot_dimension_numbers<[1], [0], [0], [1], [0, 0, 1, 1], [], []>} : vector<4x4xf32>, vector<4x256xf32>, vector<4x256xf32> -> vector<4x256xf32>
    %139 = arith.addf %133, %138 : vector<4x256xf32>
    %c0_158 = arith.constant 0 : index
    %c2_159 = arith.constant 2 : index
    %c2_160 = arith.constant 2 : index
    %140 = vector.load %arg5[%c0_158, %c2_159, %c2_160] : memref<4x18x18xf32, #tpu.memory_space<vmem>>, vector<4x16x16xf32>
    %141 = vector.shape_cast %140 : vector<4x16x16xf32> to vector<4x256xf32>
    %c8_161 = arith.constant 8 : index
    %c0_162 = arith.constant 0 : index
    %c0_163 = arith.constant 0 : index
    %142 = vector.load %arg3[%c8_161, %c0_162, %c0_163] : memref<9x4x4xf32, #tpu.memory_space<vmem>>, vector<1x4x4xf32>
    %143 = vector.shape_cast %142 : vector<1x4x4xf32> to vector<4x4xf32>
    %cst_164 = arith.constant dense<0.000000e+00> : vector<4x256xf32>
    %144 = tpu.matmul %143, %141, %cst_164 {dimension_numbers = #tpu.dot_dimension_numbers<[1], [0], [0], [1], [0, 0, 1, 1], [], []>} : vector<4x4xf32>, vector<4x256xf32>, vector<4x256xf32> -> vector<4x256xf32>
    %145 = arith.addf %139, %144 : vector<4x256xf32>
    %cst_165 = arith.constant dense<0.000000e+00> : vector<4xf32>
    %146 = vector.multi_reduction <add>, %145, %cst_165 [1] : vector<4x256xf32> to vector<4xf32>
    %147 = vector.shape_cast %146 : vector<4xf32> to vector<4x1xf32>
    %cst_166 = arith.constant 3.906250e-03 : f32
    %148 = vector.broadcast %cst_166 : f32 to vector<4x1xf32>
    %149 = arith.mulf %147, %148 : vector<4x1xf32>
    %150 = vector.broadcast %149 : vector<4x1xf32> to vector<4x256xf32>
    %151 = arith.subf %145, %150 : vector<4x256xf32>
    %152 = arith.mulf %151, %151 : vector<4x256xf32>
    %cst_167 = arith.constant dense<0.000000e+00> : vector<4xf32>
    %153 = vector.multi_reduction <add>, %152, %cst_167 [1] : vector<4x256xf32> to vector<4xf32>
    %154 = vector.shape_cast %153 : vector<4xf32> to vector<4x1xf32>
    %cst_168 = arith.constant 3.906250e-03 : f32
    %155 = vector.broadcast %cst_168 : f32 to vector<4x1xf32>
    %156 = arith.mulf %154, %155 : vector<4x1xf32>
    %cst_169 = arith.constant 9.99999974E-6 : f32
    %157 = vector.broadcast %cst_169 : f32 to vector<4x1xf32>
    %158 = arith.addf %156, %157 : vector<4x1xf32>
    %159 = math.rsqrt %158 : vector<4x1xf32>
    %160 = vector.broadcast %159 : vector<4x1xf32> to vector<4x256xf32>
    %161 = arith.mulf %151, %160 : vector<4x256xf32>
    %162 = arith.addf %1, %161 : vector<4x256xf32>
    %c0_170 = arith.constant 0 : index
    %c0_171 = arith.constant 0 : index
    %c0_172 = arith.constant 0 : index
    %163 = vector.load %arg4[%c0_170, %c0_171, %c0_172] : memref<1x4x256xf32, #tpu.memory_space<vmem>>, vector<1x4x256xf32>
    %164 = vector.shape_cast %163 : vector<1x4x256xf32> to vector<4x256xf32>
    %165 = vector.shape_cast %162 : vector<4x256xf32> to vector<1x4x256xf32>
    tpu.vector_store %arg4[%c0_170, %c0_171, %c0_172], %165 {strides = array<i32>} : memref<1x4x256xf32, #tpu.memory_space<vmem>>, vector<1x4x256xf32>,
    return
  }
  func.func @transform_0(%arg0: i32) -> (i32, i32, i32) {
    %c0_i32 = arith.constant 0 : i32
    %c0_i32_0 = arith.constant 0 : i32
    %c0_i32_1 = arith.constant 0 : i32
    return %arg0, %c0_i32, %c0_i32_0 : i32, i32, i32
  }
  func.func @transform_1(%arg0: i32) -> (i32, i32, i32) {
    %c0_i32 = arith.constant 0 : i32
    %c0_i32_0 = arith.constant 0 : i32
    %c0_i32_1 = arith.constant 0 : i32
    %c0_i32_2 = arith.constant 0 : i32
    return %c0_i32, %c0_i32_0, %c0_i32_1 : i32, i32, i32
  }
  func.func @transform_2(%arg0: i32) -> (i32, i32, i32) {
    %c0_i32 = arith.constant 0 : i32
    %c0_i32_0 = arith.constant 0 : i32
    %c0_i32_1 = arith.constant 0 : i32
    %c0_i32_2 = arith.constant 0 : i32
    return %c0_i32, %c0_i32_0, %c0_i32_1 : i32, i32, i32
  }
  func.func @transform_3(%arg0: i32) -> (i32, i32, i32) {
    %c0_i32 = arith.constant 0 : i32
    %c0_i32_0 = arith.constant 0 : i32
    %c0_i32_1 = arith.constant 0 : i32
    return %arg0, %c0_i32, %c0_i32_0 : i32, i32, i32
  }
}

module attributes {stable_mosaic.version = 11 : i64} {
  func.func @residual_block_kernel(%arg0: i32, %arg1: memref<1x4x256xf32, #tpu.memory_space<vmem>>, %arg2: memref<9x4x4xf32, #tpu.memory_space<vmem>>, %arg3: memref<9x4x4xf32, #tpu.memory_space<vmem>>, %arg4: memref<1x4x256xf32, #tpu.memory_space<vmem>>, %arg5: memref<4x18x18xf32, #tpu.memory_space<vmem>>) attributes {dimension_semantics = [#tpu.dimension_semantics<parallel>], iteration_bounds = array<i64: 2>, scalar_prefetch = 0 : i64, scratch_operands = 1 : i64, tpu.core_type = #tpu.core_type<tc>, window_params = [{transform_indices = @transform_0, window_bounds = array<i64: 1, 4, 256>}, {pipeline_mode = #tpu.pipeline_mode<synchronous>, transform_indices = @transform_1, window_bounds = array<i64: 9, 4, 4>}, {pipeline_mode = #tpu.pipeline_mode<synchronous>, transform_indices = @transform_2, window_bounds = array<i64: 9, 4, 4>}, {transform_indices = @transform_3, window_bounds = array<i64: 1, 4, 256>}]} {
    %c0 = arith.constant 0 : index
    %c0_0 = arith.constant 0 : index
    %c0_1 = arith.constant 0 : index
    %0 = vector.load %arg1[%c0, %c0_0, %c0_1] : memref<1x4x256xf32, #tpu.memory_space<vmem>>, vector<1x4x256xf32>
    %1 = vector.shape_cast %0 : vector<1x4x256xf32> to vector<4x256xf32>
    %2 = vector.shape_cast %1 : vector<4x256xf32> to vector<4x16x16xf32>
    %c0_2 = arith.constant 0 : index
    %c1 = arith.constant 1 : index
    %c1_3 = arith.constant 1 : index
    %3 = vector.load %arg5[%c0_2, %c1, %c1_3] : memref<4x18x18xf32, #tpu.memory_space<vmem>>, vector<4x16x16xf32>
    tpu.vector_store %arg5[%c0_2, %c1, %c1_3], %2 {strides = array<i32>} : memref<4x18x18xf32, #tpu.memory_space<vmem>>, vector<4x16x16xf32>,
    %4 = vector.extract_strided_slice %2 {offsets = [0, 1, 0], sizes = [4, 1, 16], strides = [1, 1, 1]} : vector<4x16x16xf32> to vector<4x1x16xf32>
    %c0_4 = arith.constant 0 : index
    %c0_5 = arith.constant 0 : index
    %c1_6 = arith.constant 1 : index
    %5 = vector.load %arg5[%c0_4, %c0_5, %c1_6] : memref<4x18x18xf32, #tpu.memory_space<vmem>>, vector<4x1x16xf32>
    tpu.vector_store %arg5[%c0_4, %c0_5, %c1_6], %4 {strides = array<i32>} : memref<4x18x18xf32, #tpu.memory_space<vmem>>, vector<4x1x16xf32>,
    %6 = vector.extract_strided_slice %2 {offsets = [0, 14, 0], sizes = [4, 1, 16], strides = [1, 1, 1]} : vector<4x16x16xf32> to vector<4x1x16xf32>
    %c0_7 = arith.constant 0 : index
    %c17 = arith.constant 17 : index
    %c1_8 = arith.constant 1 : index
    %7 = vector.load %arg5[%c0_7, %c17, %c1_8] : memref<4x18x18xf32, #tpu.memory_space<vmem>>, vector<4x1x16xf32>
    tpu.vector_store %arg5[%c0_7, %c17, %c1_8], %6 {strides = array<i32>} : memref<4x18x18xf32, #tpu.memory_space<vmem>>, vector<4x1x16xf32>,
    %c0_9 = arith.constant 0 : index
    %c0_10 = arith.constant 0 : index
    %c2 = arith.constant 2 : index
    %8 = vector.load %arg5[%c0_9, %c0_10, %c2] : memref<4x18x18xf32, #tpu.memory_space<vmem>>, vector<4x18x1xf32>
    %c0_11 = arith.constant 0 : index
    %c0_12 = arith.constant 0 : index
    %c0_13 = arith.constant 0 : index
    %9 = vector.load %arg5[%c0_11, %c0_12, %c0_13] : memref<4x18x18xf32, #tpu.memory_space<vmem>>, vector<4x18x1xf32>
    tpu.vector_store %arg5[%c0_11, %c0_12, %c0_13], %8 {strides = array<i32>} : memref<4x18x18xf32, #tpu.memory_space<vmem>>, vector<4x18x1xf32>,
    %c0_14 = arith.constant 0 : index
    %c0_15 = arith.constant 0 : index
    %c15 = arith.constant 15 : index
    %10 = vector.load %arg5[%c0_14, %c0_15, %c15] : memref<4x18x18xf32, #tpu.memory_space<vmem>>, vector<4x18x1xf32>
    %c0_16 = arith.constant 0 : index
    %c0_17 = arith.constant 0 : index
    %c17_18 = arith.constant 17 : index
    %11 = vector.load %arg5[%c0_16, %c0_17, %c17_18] : memref<4x18x18xf32, #tpu.memory_space<vmem>>, vector<4x18x1xf32>
    tpu.vector_store %arg5[%c0_16, %c0_17, %c17_18], %10 {strides = array<i32>} : memref<4x18x18xf32, #tpu.memory_space<vmem>>, vector<4x18x1xf32>,
    %c0_19 = arith.constant 0 : index
    %c0_20 = arith.constant 0 : index
    %c0_21 = arith.constant 0 : index
    %12 = vector.load %arg5[%c0_19, %c0_20, %c0_21] : memref<4x18x18xf32, #tpu.memory_space<vmem>>, vector<4x16x16xf32>
    %13 = vector.shape_cast %12 : vector<4x16x16xf32> to vector<4x256xf32>
    %c0_22 = arith.constant 0 : index
    %c0_23 = arith.constant 0 : index
    %c0_24 = arith.constant 0 : index
    %14 = vector.load %arg2[%c0_22, %c0_23, %c0_24] : memref<9x4x4xf32, #tpu.memory_space<vmem>>, vector<1x4x4xf32>
    %15 = vector.shape_cast %14 : vector<1x4x4xf32> to vector<4x4xf32>
    %cst = arith.constant dense<0.000000e+00> : vector<4x256xf32>
    %16 = tpu.matmul %15, %13, %cst {dimension_numbers = #tpu.dot_dimension_numbers<[1], [0], [0], [1], [0, 0, 1, 1], [], []>} : vector<4x4xf32>, vector<4x256xf32>, vector<4x256xf32> -> vector<4x256xf32>
    %c0_25 = arith.constant 0 : index
    %c0_26 = arith.constant 0 : index
    %c1_27 = arith.constant 1 : index
    %17 = vector.load %arg5[%c0_25, %c0_26, %c1_27] : memref<4x18x18xf32, #tpu.memory_space<vmem>>, vector<4x16x16xf32>
    %18 = vector.shape_cast %17 : vector<4x16x16xf32> to vector<4x256xf32>
    %c1_28 = arith.constant 1 : index
    %c0_29 = arith.constant 0 : index
    %c0_30 = arith.constant 0 : index
    %19 = vector.load %arg2[%c1_28, %c0_29, %c0_30] : memref<9x4x4xf32, #tpu.memory_space<vmem>>, vector<1x4x4xf32>
    %20 = vector.shape_cast %19 : vector<1x4x4xf32> to vector<4x4xf32>
    %cst_31 = arith.constant dense<0.000000e+00> : vector<4x256xf32>
    %21 = tpu.matmul %20, %18, %cst_31 {dimension_numbers = #tpu.dot_dimension_numbers<[1], [0], [0], [1], [0, 0, 1, 1], [], []>} : vector<4x4xf32>, vector<4x256xf32>, vector<4x256xf32> -> vector<4x256xf32>
    %22 = arith.addf %16, %21 : vector<4x256xf32>
    %c0_32 = arith.constant 0 : index
    %c0_33 = arith.constant 0 : index
    %c2_34 = arith.constant 2 : index
    %23 = vector.load %arg5[%c0_32, %c0_33, %c2_34] : memref<4x18x18xf32, #tpu.memory_space<vmem>>, vector<4x16x16xf32>
    %24 = vector.shape_cast %23 : vector<4x16x16xf32> to vector<4x256xf32>
    %c2_35 = arith.constant 2 : index
    %c0_36 = arith.constant 0 : index
    %c0_37 = arith.constant 0 : index
    %25 = vector.load %arg2[%c2_35, %c0_36, %c0_37] : memref<9x4x4xf32, #tpu.memory_space<vmem>>, vector<1x4x4xf32>
    %26 = vector.shape_cast %25 : vector<1x4x4xf32> to vector<4x4xf32>
    %cst_38 = arith.constant dense<0.000000e+00> : vector<4x256xf32>
    %27 = tpu.matmul %26, %24, %cst_38 {dimension_numbers = #tpu.dot_dimension_numbers<[1], [0], [0], [1], [0, 0, 1, 1], [], []>} : vector<4x4xf32>, vector<4x256xf32>, vector<4x256xf32> -> vector<4x256xf32>
    %28 = arith.addf %22, %27 : vector<4x256xf32>
    %c0_39 = arith.constant 0 : index
    %c1_40 = arith.constant 1 : index
    %c0_41 = arith.constant 0 : index
    %29 = vector.load %arg5[%c0_39, %c1_40, %c0_41] : memref<4x18x18xf32, #tpu.memory_space<vmem>>, vector<4x16x16xf32>
    %30 = vector.shape_cast %29 : vector<4x16x16xf32> to vector<4x256xf32>
    %c3 = arith.constant 3 : index
    %c0_42 = arith.constant 0 : index
    %c0_43 = arith.constant 0 : index
    %31 = vector.load %arg2[%c3, %c0_42, %c0_43] : memref<9x4x4xf32, #tpu.memory_space<vmem>>, vector<1x4x4xf32>
    %32 = vector.shape_cast %31 : vector<1x4x4xf32> to vector<4x4xf32>
    %cst_44 = arith.constant dense<0.000000e+00> : vector<4x256xf32>
    %33 = tpu.matmul %32, %30, %cst_44 {dimension_numbers = #tpu.dot_dimension_numbers<[1], [0], [0], [1], [0, 0, 1, 1], [], []>} : vector<4x4xf32>, vector<4x256xf32>, vector<4x256xf32> -> vector<4x256xf32>
    %34 = arith.addf %28, %33 : vector<4x256xf32>
    %c0_45 = arith.constant 0 : index
    %c1_46 = arith.constant 1 : index
    %c1_47 = arith.constant 1 : index
    %35 = vector.load %arg5[%c0_45, %c1_46, %c1_47] : memref<4x18x18xf32, #tpu.memory_space<vmem>>, vector<4x16x16xf32>
    %36 = vector.shape_cast %35 : vector<4x16x16xf32> to vector<4x256xf32>
    %c4 = arith.constant 4 : index
    %c0_48 = arith.constant 0 : index
    %c0_49 = arith.constant 0 : index
    %37 = vector.load %arg2[%c4, %c0_48, %c0_49] : memref<9x4x4xf32, #tpu.memory_space<vmem>>, vector<1x4x4xf32>
    %38 = vector.shape_cast %37 : vector<1x4x4xf32> to vector<4x4xf32>
    %cst_50 = arith.constant dense<0.000000e+00> : vector<4x256xf32>
    %39 = tpu.matmul %38, %36, %cst_50 {dimension_numbers = #tpu.dot_dimension_numbers<[1], [0], [0], [1], [0, 0, 1, 1], [], []>} : vector<4x4xf32>, vector<4x256xf32>, vector<4x256xf32> -> vector<4x256xf32>
    %40 = arith.addf %34, %39 : vector<4x256xf32>
    %c0_51 = arith.constant 0 : index
    %c1_52 = arith.constant 1 : index
    %c2_53 = arith.constant 2 : index
    %41 = vector.load %arg5[%c0_51, %c1_52, %c2_53] : memref<4x18x18xf32, #tpu.memory_space<vmem>>, vector<4x16x16xf32>
    %42 = vector.shape_cast %41 : vector<4x16x16xf32> to vector<4x256xf32>
    %c5 = arith.constant 5 : index
    %c0_54 = arith.constant 0 : index
    %c0_55 = arith.constant 0 : index
    %43 = vector.load %arg2[%c5, %c0_54, %c0_55] : memref<9x4x4xf32, #tpu.memory_space<vmem>>, vector<1x4x4xf32>
    %44 = vector.shape_cast %43 : vector<1x4x4xf32> to vector<4x4xf32>
    %cst_56 = arith.constant dense<0.000000e+00> : vector<4x256xf32>
    %45 = tpu.matmul %44, %42, %cst_56 {dimension_numbers = #tpu.dot_dimension_numbers<[1], [0], [0], [1], [0, 0, 1, 1], [], []>} : vector<4x4xf32>, vector<4x256xf32>, vector<4x256xf32> -> vector<4x256xf32>
    %46 = arith.addf %40, %45 : vector<4x256xf32>
    %c0_57 = arith.constant 0 : index
    %c2_58 = arith.constant 2 : index
    %c0_59 = arith.constant 0 : index
    %47 = vector.load %arg5[%c0_57, %c2_58, %c0_59] : memref<4x18x18xf32, #tpu.memory_space<vmem>>, vector<4x16x16xf32>
    %48 = vector.shape_cast %47 : vector<4x16x16xf32> to vector<4x256xf32>
    %c6 = arith.constant 6 : index
    %c0_60 = arith.constant 0 : index
    %c0_61 = arith.constant 0 : index
    %49 = vector.load %arg2[%c6, %c0_60, %c0_61] : memref<9x4x4xf32, #tpu.memory_space<vmem>>, vector<1x4x4xf32>
    %50 = vector.shape_cast %49 : vector<1x4x4xf32> to vector<4x4xf32>
    %cst_62 = arith.constant dense<0.000000e+00> : vector<4x256xf32>
    %51 = tpu.matmul %50, %48, %cst_62 {dimension_numbers = #tpu.dot_dimension_numbers<[1], [0], [0], [1], [0, 0, 1, 1], [], []>} : vector<4x4xf32>, vector<4x256xf32>, vector<4x256xf32> -> vector<4x256xf32>
    %52 = arith.addf %46, %51 : vector<4x256xf32>
    %c0_63 = arith.constant 0 : index
    %c2_64 = arith.constant 2 : index
    %c1_65 = arith.constant 1 : index
    %53 = vector.load %arg5[%c0_63, %c2_64, %c1_65] : memref<4x18x18xf32, #tpu.memory_space<vmem>>, vector<4x16x16xf32>
    %54 = vector.shape_cast %53 : vector<4x16x16xf32> to vector<4x256xf32>
    %c7 = arith.constant 7 : index
    %c0_66 = arith.constant 0 : index
    %c0_67 = arith.constant 0 : index
    %55 = vector.load %arg2[%c7, %c0_66, %c0_67] : memref<9x4x4xf32, #tpu.memory_space<vmem>>, vector<1x4x4xf32>
    %56 = vector.shape_cast %55 : vector<1x4x4xf32> to vector<4x4xf32>
    %cst_68 = arith.constant dense<0.000000e+00> : vector<4x256xf32>
    %57 = tpu.matmul %56, %54, %cst_68 {dimension_numbers = #tpu.dot_dimension_numbers<[1], [0], [0], [1], [0, 0, 1, 1], [], []>} : vector<4x4xf32>, vector<4x256xf32>, vector<4x256xf32> -> vector<4x256xf32>
    %58 = arith.addf %52, %57 : vector<4x256xf32>
    %c0_69 = arith.constant 0 : index
    %c2_70 = arith.constant 2 : index
    %c2_71 = arith.constant 2 : index
    %59 = vector.load %arg5[%c0_69, %c2_70, %c2_71] : memref<4x18x18xf32, #tpu.memory_space<vmem>>, vector<4x16x16xf32>
    %60 = vector.shape_cast %59 : vector<4x16x16xf32> to vector<4x256xf32>
    %c8 = arith.constant 8 : index
    %c0_72 = arith.constant 0 : index
    %c0_73 = arith.constant 0 : index
    %61 = vector.load %arg2[%c8, %c0_72, %c0_73] : memref<9x4x4xf32, #tpu.memory_space<vmem>>, vector<1x4x4xf32>
    %62 = vector.shape_cast %61 : vector<1x4x4xf32> to vector<4x4xf32>
    %cst_74 = arith.constant dense<0.000000e+00> : vector<4x256xf32>
    %63 = tpu.matmul %62, %60, %cst_74 {dimension_numbers = #tpu.dot_dimension_numbers<[1], [0], [0], [1], [0, 0, 1, 1], [], []>} : vector<4x4xf32>, vector<4x256xf32>, vector<4x256xf32> -> vector<4x256xf32>
    %64 = arith.addf %58, %63 : vector<4x256xf32>
    %cst_75 = arith.constant dense<0.000000e+00> : vector<4xf32>
    %65 = vector.multi_reduction <add>, %64, %cst_75 [1] : vector<4x256xf32> to vector<4xf32>
    %66 = vector.shape_cast %65 : vector<4xf32> to vector<4x1xf32>
    %cst_76 = arith.constant 3.906250e-03 : f32
    %67 = vector.broadcast %cst_76 : f32 to vector<4x1xf32>
    %68 = arith.mulf %66, %67 : vector<4x1xf32>
    %69 = vector.broadcast %68 : vector<4x1xf32> to vector<4x256xf32>
    %70 = arith.subf %64, %69 : vector<4x256xf32>
    %71 = arith.mulf %70, %70 : vector<4x256xf32>
    %cst_77 = arith.constant dense<0.000000e+00> : vector<4xf32>
    %72 = vector.multi_reduction <add>, %71, %cst_77 [1] : vector<4x256xf32> to vector<4xf32>
    %73 = vector.shape_cast %72 : vector<4xf32> to vector<4x1xf32>
    %cst_78 = arith.constant 3.906250e-03 : f32
    %74 = vector.broadcast %cst_78 : f32 to vector<4x1xf32>
    %75 = arith.mulf %73, %74 : vector<4x1xf32>
    %cst_79 = arith.constant 9.99999974E-6 : f32
    %76 = vector.broadcast %cst_79 : f32 to vector<4x1xf32>
    %77 = arith.addf %75, %76 : vector<4x1xf32>
    %78 = math.rsqrt %77 : vector<4x1xf32>
    %79 = vector.broadcast %78 : vector<4x1xf32> to vector<4x256xf32>
    %80 = arith.mulf %70, %79 : vector<4x256xf32>
    %cst_80 = arith.constant 0.000000e+00 : f32
    %81 = vector.broadcast %cst_80 : f32 to vector<4x256xf32>
    %82 = arith.maximumf %80, %81 : vector<4x256xf32>
    %83 = vector.shape_cast %82 : vector<4x256xf32> to vector<4x16x16xf32>
    %c0_81 = arith.constant 0 : index
    %c1_82 = arith.constant 1 : index
    %c1_83 = arith.constant 1 : index
    %84 = vector.load %arg5[%c0_81, %c1_82, %c1_83] : memref<4x18x18xf32, #tpu.memory_space<vmem>>, vector<4x16x16xf32>
    tpu.vector_store %arg5[%c0_81, %c1_82, %c1_83], %83 {strides = array<i32>} : memref<4x18x18xf32, #tpu.memory_space<vmem>>, vector<4x16x16xf32>,
    %85 = vector.extract_strided_slice %83 {offsets = [0, 1, 0], sizes = [4, 1, 16], strides = [1, 1, 1]} : vector<4x16x16xf32> to vector<4x1x16xf32>
    %c0_84 = arith.constant 0 : index
    %c0_85 = arith.constant 0 : index
    %c1_86 = arith.constant 1 : index
    %86 = vector.load %arg5[%c0_84, %c0_85, %c1_86] : memref<4x18x18xf32, #tpu.memory_space<vmem>>, vector<4x1x16xf32>
    tpu.vector_store %arg5[%c0_84, %c0_85, %c1_86], %85 {strides = array<i32>} : memref<4x18x18xf32, #tpu.memory_space<vmem>>, vector<4x1x16xf32>,
    %87 = vector.extract_strided_slice %83 {offsets = [0, 14, 0], sizes = [4, 1, 16], strides = [1, 1, 1]} : vector<4x16x16xf32> to vector<4x1x16xf32>
    %c0_87 = arith.constant 0 : index
    %c17_88 = arith.constant 17 : index
    %c1_89 = arith.constant 1 : index
    %88 = vector.load %arg5[%c0_87, %c17_88, %c1_89] : memref<4x18x18xf32, #tpu.memory_space<vmem>>, vector<4x1x16xf32>
    tpu.vector_store %arg5[%c0_87, %c17_88, %c1_89], %87 {strides = array<i32>} : memref<4x18x18xf32, #tpu.memory_space<vmem>>, vector<4x1x16xf32>,
    %c0_90 = arith.constant 0 : index
    %c0_91 = arith.constant 0 : index
    %c2_92 = arith.constant 2 : index
    %89 = vector.load %arg5[%c0_90, %c0_91, %c2_92] : memref<4x18x18xf32, #tpu.memory_space<vmem>>, vector<4x18x1xf32>
    %c0_93 = arith.constant 0 : index
    %c0_94 = arith.constant 0 : index
    %c0_95 = arith.constant 0 : index
    %90 = vector.load %arg5[%c0_93, %c0_94, %c0_95] : memref<4x18x18xf32, #tpu.memory_space<vmem>>, vector<4x18x1xf32>
    tpu.vector_store %arg5[%c0_93, %c0_94, %c0_95], %89 {strides = array<i32>} : memref<4x18x18xf32, #tpu.memory_space<vmem>>, vector<4x18x1xf32>,
    %c0_96 = arith.constant 0 : index
    %c0_97 = arith.constant 0 : index
    %c15_98 = arith.constant 15 : index
    %91 = vector.load %arg5[%c0_96, %c0_97, %c15_98] : memref<4x18x18xf32, #tpu.memory_space<vmem>>, vector<4x18x1xf32>
    %c0_99 = arith.constant 0 : index
    %c0_100 = arith.constant 0 : index
    %c17_101 = arith.constant 17 : index
    %92 = vector.load %arg5[%c0_99, %c0_100, %c17_101] : memref<4x18x18xf32, #tpu.memory_space<vmem>>, vector<4x18x1xf32>
    tpu.vector_store %arg5[%c0_99, %c0_100, %c17_101], %91 {strides = array<i32>} : memref<4x18x18xf32, #tpu.memory_space<vmem>>, vector<4x18x1xf32>,
    %c0_102 = arith.constant 0 : index
    %c0_103 = arith.constant 0 : index
    %c0_104 = arith.constant 0 : index
    %93 = vector.load %arg5[%c0_102, %c0_103, %c0_104] : memref<4x18x18xf32, #tpu.memory_space<vmem>>, vector<4x16x16xf32>
    %94 = vector.shape_cast %93 : vector<4x16x16xf32> to vector<4x256xf32>
    %c0_105 = arith.constant 0 : index
    %c0_106 = arith.constant 0 : index
    %c0_107 = arith.constant 0 : index
    %95 = vector.load %arg3[%c0_105, %c0_106, %c0_107] : memref<9x4x4xf32, #tpu.memory_space<vmem>>, vector<1x4x4xf32>
    %96 = vector.shape_cast %95 : vector<1x4x4xf32> to vector<4x4xf32>
    %cst_108 = arith.constant dense<0.000000e+00> : vector<4x256xf32>
    %97 = tpu.matmul %96, %94, %cst_108 {dimension_numbers = #tpu.dot_dimension_numbers<[1], [0], [0], [1], [0, 0, 1, 1], [], []>} : vector<4x4xf32>, vector<4x256xf32>, vector<4x256xf32> -> vector<4x256xf32>
    %c0_109 = arith.constant 0 : index
    %c0_110 = arith.constant 0 : index
    %c1_111 = arith.constant 1 : index
    %98 = vector.load %arg5[%c0_109, %c0_110, %c1_111] : memref<4x18x18xf32, #tpu.memory_space<vmem>>, vector<4x16x16xf32>
    %99 = vector.shape_cast %98 : vector<4x16x16xf32> to vector<4x256xf32>
    %c1_112 = arith.constant 1 : index
    %c0_113 = arith.constant 0 : index
    %c0_114 = arith.constant 0 : index
    %100 = vector.load %arg3[%c1_112, %c0_113, %c0_114] : memref<9x4x4xf32, #tpu.memory_space<vmem>>, vector<1x4x4xf32>
    %101 = vector.shape_cast %100 : vector<1x4x4xf32> to vector<4x4xf32>
    %cst_115 = arith.constant dense<0.000000e+00> : vector<4x256xf32>
    %102 = tpu.matmul %101, %99, %cst_115 {dimension_numbers = #tpu.dot_dimension_numbers<[1], [0], [0], [1], [0, 0, 1, 1], [], []>} : vector<4x4xf32>, vector<4x256xf32>, vector<4x256xf32> -> vector<4x256xf32>
    %103 = arith.addf %97, %102 : vector<4x256xf32>
    %c0_116 = arith.constant 0 : index
    %c0_117 = arith.constant 0 : index
    %c2_118 = arith.constant 2 : index
    %104 = vector.load %arg5[%c0_116, %c0_117, %c2_118] : memref<4x18x18xf32, #tpu.memory_space<vmem>>, vector<4x16x16xf32>
    %105 = vector.shape_cast %104 : vector<4x16x16xf32> to vector<4x256xf32>
    %c2_119 = arith.constant 2 : index
    %c0_120 = arith.constant 0 : index
    %c0_121 = arith.constant 0 : index
    %106 = vector.load %arg3[%c2_119, %c0_120, %c0_121] : memref<9x4x4xf32, #tpu.memory_space<vmem>>, vector<1x4x4xf32>
    %107 = vector.shape_cast %106 : vector<1x4x4xf32> to vector<4x4xf32>
    %cst_122 = arith.constant dense<0.000000e+00> : vector<4x256xf32>
    %108 = tpu.matmul %107, %105, %cst_122 {dimension_numbers = #tpu.dot_dimension_numbers<[1], [0], [0], [1], [0, 0, 1, 1], [], []>} : vector<4x4xf32>, vector<4x256xf32>, vector<4x256xf32> -> vector<4x256xf32>
    %109 = arith.addf %103, %108 : vector<4x256xf32>
    %c0_123 = arith.constant 0 : index
    %c1_124 = arith.constant 1 : index
    %c0_125 = arith.constant 0 : index
    %110 = vector.load %arg5[%c0_123, %c1_124, %c0_125] : memref<4x18x18xf32, #tpu.memory_space<vmem>>, vector<4x16x16xf32>
    %111 = vector.shape_cast %110 : vector<4x16x16xf32> to vector<4x256xf32>
    %c3_126 = arith.constant 3 : index
    %c0_127 = arith.constant 0 : index
    %c0_128 = arith.constant 0 : index
    %112 = vector.load %arg3[%c3_126, %c0_127, %c0_128] : memref<9x4x4xf32, #tpu.memory_space<vmem>>, vector<1x4x4xf32>
    %113 = vector.shape_cast %112 : vector<1x4x4xf32> to vector<4x4xf32>
    %cst_129 = arith.constant dense<0.000000e+00> : vector<4x256xf32>
    %114 = tpu.matmul %113, %111, %cst_129 {dimension_numbers = #tpu.dot_dimension_numbers<[1], [0], [0], [1], [0, 0, 1, 1], [], []>} : vector<4x4xf32>, vector<4x256xf32>, vector<4x256xf32> -> vector<4x256xf32>
    %115 = arith.addf %109, %114 : vector<4x256xf32>
    %c0_130 = arith.constant 0 : index
    %c1_131 = arith.constant 1 : index
    %c1_132 = arith.constant 1 : index
    %116 = vector.load %arg5[%c0_130, %c1_131, %c1_132] : memref<4x18x18xf32, #tpu.memory_space<vmem>>, vector<4x16x16xf32>
    %117 = vector.shape_cast %116 : vector<4x16x16xf32> to vector<4x256xf32>
    %c4_133 = arith.constant 4 : index
    %c0_134 = arith.constant 0 : index
    %c0_135 = arith.constant 0 : index
    %118 = vector.load %arg3[%c4_133, %c0_134, %c0_135] : memref<9x4x4xf32, #tpu.memory_space<vmem>>, vector<1x4x4xf32>
    %119 = vector.shape_cast %118 : vector<1x4x4xf32> to vector<4x4xf32>
    %cst_136 = arith.constant dense<0.000000e+00> : vector<4x256xf32>
    %120 = tpu.matmul %119, %117, %cst_136 {dimension_numbers = #tpu.dot_dimension_numbers<[1], [0], [0], [1], [0, 0, 1, 1], [], []>} : vector<4x4xf32>, vector<4x256xf32>, vector<4x256xf32> -> vector<4x256xf32>
    %121 = arith.addf %115, %120 : vector<4x256xf32>
    %c0_137 = arith.constant 0 : index
    %c1_138 = arith.constant 1 : index
    %c2_139 = arith.constant 2 : index
    %122 = vector.load %arg5[%c0_137, %c1_138, %c2_139] : memref<4x18x18xf32, #tpu.memory_space<vmem>>, vector<4x16x16xf32>
    %123 = vector.shape_cast %122 : vector<4x16x16xf32> to vector<4x256xf32>
    %c5_140 = arith.constant 5 : index
    %c0_141 = arith.constant 0 : index
    %c0_142 = arith.constant 0 : index
    %124 = vector.load %arg3[%c5_140, %c0_141, %c0_142] : memref<9x4x4xf32, #tpu.memory_space<vmem>>, vector<1x4x4xf32>
    %125 = vector.shape_cast %124 : vector<1x4x4xf32> to vector<4x4xf32>
    %cst_143 = arith.constant dense<0.000000e+00> : vector<4x256xf32>
    %126 = tpu.matmul %125, %123, %cst_143 {dimension_numbers = #tpu.dot_dimension_numbers<[1], [0], [0], [1], [0, 0, 1, 1], [], []>} : vector<4x4xf32>, vector<4x256xf32>, vector<4x256xf32> -> vector<4x256xf32>
    %127 = arith.addf %121, %126 : vector<4x256xf32>
    %c0_144 = arith.constant 0 : index
    %c2_145 = arith.constant 2 : index
    %c0_146 = arith.constant 0 : index
    %128 = vector.load %arg5[%c0_144, %c2_145, %c0_146] : memref<4x18x18xf32, #tpu.memory_space<vmem>>, vector<4x16x16xf32>
    %129 = vector.shape_cast %128 : vector<4x16x16xf32> to vector<4x256xf32>
    %c6_147 = arith.constant 6 : index
    %c0_148 = arith.constant 0 : index
    %c0_149 = arith.constant 0 : index
    %130 = vector.load %arg3[%c6_147, %c0_148, %c0_149] : memref<9x4x4xf32, #tpu.memory_space<vmem>>, vector<1x4x4xf32>
    %131 = vector.shape_cast %130 : vector<1x4x4xf32> to vector<4x4xf32>
    %cst_150 = arith.constant dense<0.000000e+00> : vector<4x256xf32>
    %132 = tpu.matmul %131, %129, %cst_150 {dimension_numbers = #tpu.dot_dimension_numbers<[1], [0], [0], [1], [0, 0, 1, 1], [], []>} : vector<4x4xf32>, vector<4x256xf32>, vector<4x256xf32> -> vector<4x256xf32>
    %133 = arith.addf %127, %132 : vector<4x256xf32>
    %c0_151 = arith.constant 0 : index
    %c2_152 = arith.constant 2 : index
    %c1_153 = arith.constant 1 : index
    %134 = vector.load %arg5[%c0_151, %c2_152, %c1_153] : memref<4x18x18xf32, #tpu.memory_space<vmem>>, vector<4x16x16xf32>
    %135 = vector.shape_cast %134 : vector<4x16x16xf32> to vector<4x256xf32>
    %c7_154 = arith.constant 7 : index
    %c0_155 = arith.constant 0 : index
    %c0_156 = arith.constant 0 : index
    %136 = vector.load %arg3[%c7_154, %c0_155, %c0_156] : memref<9x4x4xf32, #tpu.memory_space<vmem>>, vector<1x4x4xf32>
    %137 = vector.shape_cast %136 : vector<1x4x4xf32> to vector<4x4xf32>
    %cst_157 = arith.constant dense<0.000000e+00> : vector<4x256xf32>
    %138 = tpu.matmul %137, %135, %cst_157 {dimension_numbers = #tpu.dot_dimension_numbers<[1], [0], [0], [1], [0, 0, 1, 1], [], []>} : vector<4x4xf32>, vector<4x256xf32>, vector<4x256xf32> -> vector<4x256xf32>
    %139 = arith.addf %133, %138 : vector<4x256xf32>
    %c0_158 = arith.constant 0 : index
    %c2_159 = arith.constant 2 : index
    %c2_160 = arith.constant 2 : index
    %140 = vector.load %arg5[%c0_158, %c2_159, %c2_160] : memref<4x18x18xf32, #tpu.memory_space<vmem>>, vector<4x16x16xf32>
    %141 = vector.shape_cast %140 : vector<4x16x16xf32> to vector<4x256xf32>
    %c8_161 = arith.constant 8 : index
    %c0_162 = arith.constant 0 : index
    %c0_163 = arith.constant 0 : index
    %142 = vector.load %arg3[%c8_161, %c0_162, %c0_163] : memref<9x4x4xf32, #tpu.memory_space<vmem>>, vector<1x4x4xf32>
    %143 = vector.shape_cast %142 : vector<1x4x4xf32> to vector<4x4xf32>
    %cst_164 = arith.constant dense<0.000000e+00> : vector<4x256xf32>
    %144 = tpu.matmul %143, %141, %cst_164 {dimension_numbers = #tpu.dot_dimension_numbers<[1], [0], [0], [1], [0, 0, 1, 1], [], []>} : vector<4x4xf32>, vector<4x256xf32>, vector<4x256xf32> -> vector<4x256xf32>
    %145 = arith.addf %139, %144 : vector<4x256xf32>
    %cst_165 = arith.constant dense<0.000000e+00> : vector<4xf32>
    %146 = vector.multi_reduction <add>, %145, %cst_165 [1] : vector<4x256xf32> to vector<4xf32>
    %147 = vector.shape_cast %146 : vector<4xf32> to vector<4x1xf32>
    %cst_166 = arith.constant 3.906250e-03 : f32
    %148 = vector.broadcast %cst_166 : f32 to vector<4x1xf32>
    %149 = arith.mulf %147, %148 : vector<4x1xf32>
    %150 = vector.broadcast %149 : vector<4x1xf32> to vector<4x256xf32>
    %151 = arith.subf %145, %150 : vector<4x256xf32>
    %152 = arith.mulf %151, %151 : vector<4x256xf32>
    %cst_167 = arith.constant dense<0.000000e+00> : vector<4xf32>
    %153 = vector.multi_reduction <add>, %152, %cst_167 [1] : vector<4x256xf32> to vector<4xf32>
    %154 = vector.shape_cast %153 : vector<4xf32> to vector<4x1xf32>
    %cst_168 = arith.constant 3.906250e-03 : f32
    %155 = vector.broadcast %cst_168 : f32 to vector<4x1xf32>
    %156 = arith.mulf %154, %155 : vector<4x1xf32>
    %cst_169 = arith.constant 9.99999974E-6 : f32
    %157 = vector.broadcast %cst_169 : f32 to vector<4x1xf32>
    %158 = arith.addf %156, %157 : vector<4x1xf32>
    %159 = math.rsqrt %158 : vector<4x1xf32>
    %160 = vector.broadcast %159 : vector<4x1xf32> to vector<4x256xf32>
    %161 = arith.mulf %151, %160 : vector<4x256xf32>
    %162 = arith.addf %1, %161 : vector<4x256xf32>
    %c0_170 = arith.constant 0 : index
    %c0_171 = arith.constant 0 : index
    %c0_172 = arith.constant 0 : index
    %163 = vector.load %arg4[%c0_170, %c0_171, %c0_172] : memref<1x4x256xf32, #tpu.memory_space<vmem>>, vector<1x4x256xf32>
    %164 = vector.shape_cast %163 : vector<1x4x256xf32> to vector<4x256xf32>
    %165 = vector.shape_cast %162 : vector<4x256xf32> to vector<1x4x256xf32>
    tpu.vector_store %arg4[%c0_170, %c0_171, %c0_172], %165 {strides = array<i32>} : memref<1x4x256xf32, #tpu.memory_space<vmem>>, vector<1x4x256xf32>,
    return
  }
  func.func @transform_0(%arg0: i32) -> (i32, i32, i32) {
    %c0_i32 = arith.constant 0 : i32
    %c0_i32_0 = arith.constant 0 : i32
    %c0_i32_1 = arith.constant 0 : i32
    return %arg0, %c0_i32, %c0_i32_0 : i32, i32, i32
  }
  func.func @transform_1(%arg0: i32) -> (i32, i32, i32) {
    %c0_i32 = arith.constant 0 : i32
    %c0_i32_0 = arith.constant 0 : i32
    %c0_i32_1 = arith.constant 0 : i32
    %c0_i32_2 = arith.constant 0 : i32
    return %c0_i32, %c0_i32_0, %c0_i32_1 : i32, i32, i32
  }
  func.func @transform_2(%arg0: i32) -> (i32, i32, i32) {
    %c0_i32 = arith.constant 0 : i32
    %c0_i32_0 = arith.constant 0 : i32
    %c0_i32_1 = arith.constant 0 : i32
    %c0_i32_2 = arith.constant 0 : i32
    return %c0_i32, %c0_i32_0, %c0_i32_1 : i32, i32, i32
  }
  func.func @transform_3(%arg0: i32) -> (i32, i32, i32) {
    %c0_i32 = arith.constant 0 : i32
    %c0_i32_0 = arith.constant 0 : i32
    %c0_i32_1 = arith.constant 0 : i32
    return %arg0, %c0_i32, %c0_i32_0 : i32, i32, i32
  }
}

</mosaic_0001>

<bundles_post_ra>
// kernel: tpu_custom_call.1
= control target key start
LH: loop header
LB: loop body
LE: loop exit
PB: predicated region body
PF: predicated region fallthrough
CT: control target
= control target key end

     0   :  { %8 = vsyncpa [#allocation4], 0  ;;  %s10044_s0 = inlined_call_operand.vmem [shape: f32[2,4,256], index: 0, kind: input, shape index: {}]   ;;  %s10045_s1 = inlined_call_operand.vmem [shape: f32[9,4,4], index: 1, kind: input, shape index: {}]   ;;  %s10046_s2 = inlined_call_operand.vmem [shape: f32[9,4,4], index: 2, kind: input, shape index: {}]   ;;  %s10047_s3 = inlined_call_operand.hbm [shape: f32[2,4,256], index: 3, kind: output, shape index: {}]  }
   0x1   :  { %10 = vsyncpa [#allocation4 + $0x1], 0  ;;  %s6084_s12 = smov 0   ;;  %s6086_s13 = smov 0  }
   0x2   :  { %s6088_s14 = smov 0   ;;  %s6090_s15 = smov 0  }
   0x3 LB: > { %s6105_s16 = sadd.s32 4294967295, %s6049_s15   ;;  %s5824_s17 = sadd.s32 4294967294, %s6049_s15   ;;  %s6049_s15 = sphi %s6090_s15, %s10442_s15   ;;  %s6045_s14 = sphi %s6088_s14, %s10441_s14   ;;  %s6041_s13 = sphi %s6086_s13, %s10440_s13   ;;  %s6037_s12 = sphi %s6084_s12, %s10439_s12  }
   0x4   : > { %s6109_s18 = sadd.s32 1, %s6049_s15   ;;  %s91_s19 = sadd.s32 1, %s6045_s14 }
   0x5   : > { %s88_s20 = ssub.s32 %s6049_s15, %s6109_s18  ;;  %p101_p0 = scmp.ne.s32.totalorder %s6045_s14, %s6041_s13 }
   0x6   : > { %p89_p1 = scmp.eq.s32.totalorder %s88_s20, 0  ;;  %p102_p2 = scmp.eq.s32.totalorder %s6105_s16, 1 }
   0x7   : > { %p107_p3 = scmp.ne.s32.totalorder %s6041_s13, %s6037_s12  ;;  %p108_p4 = scmp.eq.s32.totalorder %s5824_s17, 1 }
   0x8   : > { %s6120_s21 = scalar_select %p89_p1, %s6045_s14, %s91_s19  }
   0x9   : > { %p6122_p5 = por %p102_p2, %p101_p0  ;;  %p6126_p6 = por %p108_p4, %p107_p3 }
   0xa   : > { %p5827_p7 = scmp.ge.s32.totalorder %s6049_s15, 1  ;;  %p140_p8 = scmp.lt.s32.totalorder %s6049_s15, 3 }
   0xc   : > { %p141_p9 = pnand %p5827_p7, %p140_p8 }
   0xe   : > { %144 = sbr.rel (%p141_p9) target bundleno = 3101 (0xc1d), region = 32 }
  0x13   : > { %p164_p10 = scmp.lt.s32.totalorder %s6105_s16, 1  ;;  %s6051_s29 = smov 80   ;;  %v6058_v2 = vmov 1983009808   ;;  %vm209_vm0 = vcmask 1047556   ;;  %vm417_vm1 = vcmask 132105  }
  0x14   : > { %s6052_s30 = smov 112   ;;  %s6053_s4 = smov 48   ;;  %v212_v3 = vunpack.c.l.s4 %v6058_v2  ;;  %v6059_v12 = vmov 1934713408   ;;  %vm438_vm2 = vcmask 133130   ;;  %vm392_vm3 = vcmask 138248  }
  0x15   : > { %s165_s24 = scalar_select %p164_p10, %s6105_s16, 1  ;;  %v226_v13 = vunpack.c.l.s4 %v6059_v12  ;;  %vm506_vm4 = vcmask 1024   ;;  %vm503_vm5 = vcmask 7168   ;;  %vm577_vm6 = vcmask 146568  }
  0x16   : > { %s6054_s5 = smov 96   ;;  %s6055_s6 = smov 64   ;;  %v6147_v8 = vunpack.c.0.s8 %v212_v3  ;;  %vm580_vm7 = vcmask 140424   ;;  %vm767_vm8 = vcmask 130048   ;;  %vm769_vm9 = vcmask 261120  }
  0x17   : > { %s5928_s25 = sshll.u32 %s165_s24, 3  ;;  %s6056_s7 = smov 32   ;;  %v6154_v22 = vunpack.c.0.s8 %v226_v13  ;;  %vm771_vm10 = vcmask 392192   ;;  %vm773_vm11 = vcmask 523264   ;;  %vm775_vm12 = vcmask 654336  }
  0x18   : > { %s6137_s28 = scalar_lea.vmem %s10044_s0, %s5928_s25  ;;  %s6057_s8 = smov 16   ;;  %10122 = vst [vmem:[#allocation6_spill] sm:$0xff] %v6147_v8  ;;  %vm10092_vm13 = vcmask 785408   ;;  %vm10091_vm14 = vcmask 916480   ;;  %vm1009_vm15 = vcmask 1043456  }
  0x19   : > { %v169_v0 = vld [vmem:[%s6137_s28] sm:$0xff]  ;;  %10123 = vst [vmem:[#allocation7_spill] sm:$0xff] %v6154_v22  ;;  %s6060_s9 = smov 1   ;;  %s6061_s10 = smov 126  }
  0x1a   : > { %181 = vrot.lane.b32.xlu1 %v169_v0, %s6051_s29  ;;  %173 = vrot.lane.b32.xlu0 %v169_v0, %s6052_s30  ;;  %v171_v11 = vrot.slane %v169_v0, 4  ;;  %s6062_s11 = smov 2   ;;  %s6063_s17 = smov 127  }
  0x1b   : > { %189 = vrot.lane.b32.xlu2 %v169_v0, %s6053_s4  ;;  %s6007_s25 = scalar_lea.hbm %s10047_s3, 16 }
  0x22   : > { %177 = vrot.lane.b32.xlu0 %v169_v0, %s6054_s5  ;;  %185 = vrot.lane.b32.xlu1 %v169_v0, %s6055_s6 }
  0x23   : > { %193 = vrot.lane.b32.xlu2 %v169_v0, %s6056_s7 }
  0x2a   : > { %197 = vrot.lane.b32.xlu0 %v169_v0, %s6057_s8 }
  0x75   : > { %v190_v1 = vpop.permute.xlu2 %189 }
  0x76   : > { %v191_v35 = vrot.slane %v190_v1, 4 }
  0x7d   : > { %v194_v15 = vpop.permute.xlu2 %193 }
  0x7e   : > { %v237_v30 = vrot.slane %v194_v15, 4 }
  0x8c   : > { %v182_v4 = vpop.permute.xlu1 %181  ;;  %v174_v5 = vpop.permute.xlu0 %173 }
  0x8d   : > { %v215_v6 = vrot.slane %v182_v4, 4  ;;  %v175_v7 = vrot.slane %v174_v5, 4 }
  0x8f   : > { %v272_v9 = vsel %vm209_vm0, %v182_v4, %v175_v7  ;;  %v216_v10 = vsel %vm209_vm0, %v215_v6, %v174_v5 }
  0x90   : > { %v276_v14 = vperm.slane %v272_v9, %v6147_v8  ;;  %v220_v16 = vperm.slane %v216_v10, %v6147_v8 }
  0x92   : > { %v277_v23 = vrot.slane %v276_v14, 4  ;;  %v221_v27 = vrot.slane %v220_v16, 4 }
  0x94   : > { %v178_v17 = vpop.permute.xlu0 %177  ;;  %v186_v18 = vpop.permute.xlu1 %185 }
  0x95   : > { %v208_v19 = vrot.slane %v178_v17, 4  ;;  %v266_v20 = vsel %vm209_vm0, %v178_v17, %v171_v11  ;;  %v187_v21 = vrot.slane %v186_v18, 4  ;;  %v238_v38 = vsel %vm209_vm0, %v237_v30, %v186_v18 }
  0x96   : > { %v270_v24 = vperm.slane %v266_v20, %v6147_v8  ;;  %v242_v50 = vperm.slane %v238_v38, %v6147_v8 }
  0x97   : > { %v210_v25 = vsel %vm209_vm0, %v208_v19, %v169_v0  ;;  %v294_v26 = vsel %vm209_vm0, %v194_v15, %v187_v21 }
  0x98   : > { %v214_v28 = vperm.slane %v210_v25, %v6147_v8  ;;  %v278_v29 = vsel %vm209_vm0, %v277_v23, %v270_v24  ;;  %v298_v31 = vperm.slane %v294_v26, %v6147_v8  ;;  %v279_v49 = vrot.slane %v270_v24, 4 }
  0x99   : > { %v284_v32 = vperm.slane %v278_v29, %v6154_v22  ;;  %v251_v60 = vrot.slane %v242_v50, 4 }
  0x9a   : > { %v223_v33 = vrot.slane %v214_v28, 4  ;;  %v222_v34 = vsel %vm209_vm0, %v221_v27, %v214_v28  ;;  %v307_v39 = vrot.slane %v298_v31, 4  ;;  %v280_v62 = vsel %vm209_vm0, %v276_v14, %v279_v49 }
  0x9b   : > { %v228_v36 = vperm.slane %v222_v34, %v6154_v22  ;;  %341 = vst [vmem:[#allocation1 + $0x10] ss:$2 sm:$0xff] %v284_v32  ;;  %v289_v37 = vrot.slane %v284_v32, 4  ;;  %v288_v6 = vperm.slane %v280_v62, %v6154_v22 }
  0x9c   : > { %v198_v40 = vpop.permute.xlu0 %197  ;;  %v224_v41 = vsel %vm209_vm0, %v220_v16, %v223_v33 }
  0x9d   : > { %v243_v42 = vrot.slane %v198_v40, 4  ;;  %v300_v43 = vsel %vm209_vm0, %v198_v40, %v191_v35  ;;  %v401_v44 = vperm.slane %v228_v36, 1  ;;  %337 = vst [vmem:[#allocation1] ss:$2 sm:$0xff] %v228_v36  ;;  %v6169_v45 = vperm.slane %v224_v41, %v6154_v22 }
  0x9e   : > { %v304_v46 = vperm.slane %v300_v43, %v6147_v8  ;;  %v233_v47 = vrot.slane %v228_v36, 4  ;;  %v290_v48 = vsel %vm209_vm0, 0.0, %v289_v37  ;;  %v291_v14 = vrot.slane %v288_v6, 4 }
  0x9f   : > { %v244_v51 = vsel %vm209_vm0, %v243_v42, %v190_v1  ;;  %405 = vrot.lane.b32.xlu0 %v401_v44, %s6060_s9  ;;  %v403_v52 = vperm.slane %v6169_v45, 1  ;;  %351 = vst [vmem:[#allocation1 + $0x30] ss:$2 sm:$0xff] %v290_v48  ;;  %v235_v4 = vrot.slane %v6169_v45, 4 }
  0xa0   : > { %v248_v53 = vperm.slane %v244_v51, %v6147_v8  ;;  %v305_v54 = vrot.slane %v304_v46, 4  ;;  %v308_v55 = vsel %vm209_vm0, %v304_v46, %v307_v39  ;;  %v234_v56 = vsel %vm209_vm0, 0.0, %v233_v47 }
  0xa1   : > { %409 = vrot.lane.b32.xlu2 %v403_v52, %s6060_s9  ;;  %v316_v57 = vperm.slane %v308_v55, %v6154_v22  ;;  %347 = vst [vmem:[#allocation1 + $0x20] ss:$2 sm:$0xff] %v234_v56  ;;  %v236_v12 = vsel %vm209_vm0, 0.0, %v235_v4  ;;  %v402_v18 = vperm.slane %v234_v56, 1  ;;  %v292_v21 = vsel %vm209_vm0, 0.0, %v291_v14 }
  0xa2   : > { %v249_v58 = vrot.slane %v248_v53, 4  ;;  %v306_v59 = vsel %vm209_vm0, %v305_v54, %v298_v31  ;;  %v252_v7 = vsel %vm209_vm0, %v248_v53, %v251_v60  ;;  %v404_v17 = vperm.slane %v236_v12, 1 }
  0xa3   : > { %v312_v61 = vperm.slane %v306_v59, %v6154_v22  ;;  %v424_v0 = vperm.slane %v316_v57, 2  ;;  %v260_v13 = vperm.slane %v252_v7, %v6154_v22  ;;  %v319_v16 = vrot.slane %v316_v57, 4 }
  0xa4   : > { %v250_v63 = vsel %vm209_vm0, %v249_v58, %v242_v50 }
  0xa5   : > { %v422_v1 = vperm.slane %v312_v61, 2  ;;  %343 = vst [vmem:[#allocation1 + $0x11] ss:$2 sm:$0xff] %v312_v61  ;;  %v317_v2 = vrot.slane %v312_v61, 4  ;;  %v256_v3 = vperm.slane %v250_v63, %v6154_v22  ;;  %v263_v19 = vrot.slane %v260_v13, 4 }
  0xa6   : > { %v320_v24 = vsel %vm209_vm0, 0.0, %v319_v16 }
  0xa7   : > { %430 = vrot.lane.b32.xlu0 %v424_v0, %s6060_s9  ;;  %426 = vrot.lane.b32.xlu1 %v422_v1, %s6060_s9  ;;  %v318_v5 = vsel %vm209_vm0, 0.0, %v317_v2  ;;  %v261_v9 = vrot.slane %v256_v3, 4  ;;  %339 = vst [vmem:[#allocation1 + $0x1] ss:$2 sm:$0xff] %v256_v3  ;;  %v264_v26 = vsel %vm209_vm0, 0.0, %v263_v19  ;;  %v425_v27 = vperm.slane %v320_v24, 2 }
  0xa8   : > { %v423_v10 = vperm.slane %v318_v5, 2  ;;  %353 = vst [vmem:[#allocation1 + $0x31] ss:$2 sm:$0xff] %v318_v5 }
  0xa9   : > { %v262_v11 = vsel %vm209_vm0, 0.0, %v261_v9 }
  0xaa   : > { %428 = vrot.lane.b32.xlu2 %v423_v10, %s6060_s9  ;;  %349 = vst [vmem:[#allocation1 + $0x21] ss:$2 sm:$0xff] %v262_v11 }
  0xac   : > { %v345_v15 = vld.sshfl [vmem:[#allocation1 + $0x10] sm:$0xff pattern:$0x75316420] }
  0xad   : > { %358 = vst [vmem:[#allocation1 + $0x10] ss:$2 sm:$0xff] %v288_v6 }
  0xae   : > { %359 = vst [vmem:[#allocation1 + $0x11] ss:$2 sm:$0xff] %v316_v57  ;;  %v344_v20 = vld.sshfl [vmem:[#allocation1] sm:$0xff pattern:$0x75316420] }
  0xaf   : > { %411 = vrot.lane.b32.xlu0 %v404_v17, %s6060_s9  ;;  %407 = vrot.lane.b32.xlu1 %v402_v18, %s6060_s9  ;;  %v355_v23 = vld.sshfl [vmem:[#allocation1 + $0x30] sm:$0xff pattern:$0x75316420]  ;;  %357 = vst [vmem:[#allocation1 + $0x1] ss:$2 sm:$0xff] %v260_v13 }
  0xb0   : > { %364 = vst [vmem:[#allocation1 + $0x30] ss:$2 sm:$0xff] %v292_v21 }
  0xb1   : > { %365 = vst [vmem:[#allocation1 + $0x31] ss:$2 sm:$0xff] %v320_v24  ;;  %v354_v25 = vld.sshfl [vmem:[#allocation1 + $0x20] sm:$0xff pattern:$0x75316420] }
  0xb2   : > { %370 = vrot.lane.b32.xlu2 %v345_v15, %s6060_s9  ;;  %362 = vst [vmem:[#allocation1 + $0x20] ss:$2 sm:$0xff] %v236_v12 }
  0xb3   : > { %363 = vst [vmem:[#allocation1 + $0x21] ss:$2 sm:$0xff] %v264_v26 }
  0xb4   : > { %356 = vst [vmem:[#allocation1] ss:$2 sm:$0xff] %v6169_v45 }
  0xb5   : > { %v361_v29 = vld.sshfl [vmem:[#allocation1 + $0x10] sm:$0xff pattern:$0x75316420] }
  0xb7   : > { %432 = vrot.lane.b32.xlu1 %v425_v27, %s6060_s9  ;;  %372 = vrot.lane.b32.xlu0 %v354_v25, %s6060_s9 }
  0xb8   : > { %v367_v30 = vld.sshfl [vmem:[#allocation1 + $0x30] sm:$0xff pattern:$0x75316420] }
  0xba   : > { %v366_v31 = vld.sshfl [vmem:[#allocation1 + $0x20] sm:$0xff pattern:$0x75316420] }
  0xbb   : > { %v360_v28 = vld.sshfl [vmem:[#allocation1] sm:$0xff pattern:$0x75316420] }
  0xbc   : > { %376 = vrot.lane.b32.xlu2 %v360_v28, %s6060_s9 }
  0xbf   : > { %368 = vrot.lane.b32.xlu1 %v344_v20, %s6060_s9  ;;  %378 = vrot.lane.b32.xlu0 %v361_v29, %s6060_s9 }
  0xc4   : > { %382 = vrot.lane.b32.xlu2 %v367_v30, %s6060_s9 }
  0xc7   : > { %374 = vrot.lane.b32.xlu1 %v355_v23, %s6060_s9 }
  0xcf   : > { %380 = vrot.lane.b32.xlu1 %v366_v31, %s6060_s9 }
  0xfb   : > { %v410_v32 = vpop.permute.xlu2 %409 }
  0xfc   : > { %420 = vst.msk [vmem:[#allocation2 + $0x2f] sm:$0x2] %vm417_vm1, %v410_v32 }
 0x104   : > { %v429_v33 = vpop.permute.xlu2 %428 }
 0x105   : > { %440 = vst.msk [vmem:[#allocation2 + $0x27] sm:$0x4] %vm438_vm2, %v429_v33 }
 0x10c   : > { %v371_v34 = vpop.permute.xlu2 %370 }
 0x10d   : > { %394 = vst.msk [vmem:[#allocation2 + $0x9] sm:$0xff] %vm392_vm3, %v371_v34 }
 0x111   : > { %v406_v35 = vpop.permute.xlu0 %405 }
 0x112   : > { %418 = vst.msk [vmem:[#allocation2 - $0x1] sm:$0x2] %vm417_vm1, %v406_v35 }
 0x116   : > { %v377_v36 = vpop.permute.xlu2 %376 }
 0x117   : > { %397 = vst.msk [vmem:[#allocation2 + $0x31] sm:$0xff] %vm392_vm3, %v377_v36 }
 0x119   : > { %v427_v37 = vpop.permute.xlu1 %426  ;;  %v431_v38 = vpop.permute.xlu0 %430 }
 0x11a   : > { %439 = vst.msk [vmem:[#allocation2 + $0xf] sm:$0x4] %vm438_vm2, %v427_v37 }
 0x11b   : > { %441 = vst.msk [vmem:[#allocation2 + $0x3f] sm:$0x4] %vm438_vm2, %v431_v38 }
 0x11e   : > { %v383_v39 = vpop.permute.xlu2 %382  ;;  %v449_v56 = vld [vmem:[#allocation2 + $0x30] sm:$0xff] }
 0x11f   : > { %400 = vst.msk [vmem:[#allocation2 + $0x51] sm:$0xff] %vm392_vm3, %v383_v39 }
 0x121   : > { %v408_v40 = vpop.permute.xlu1 %407  ;;  %v412_v41 = vpop.permute.xlu0 %411  ;;  %v445_v42 = vld [vmem:[#allocation2 + $0x10] sm:$0x3] }
 0x122   : > { %419 = vst.msk [vmem:[#allocation2 + $0x17] sm:$0x2] %vm417_vm1, %v408_v40  ;;  %471 = vrot.lane.b32.xlu1 %v445_v42, %s6061_s10 }
 0x123   : > { %421 = vst.msk [vmem:[#allocation2 + $0x47] sm:$0x2] %vm417_vm1, %v412_v41 }
 0x129   : > { %v433_v43 = vpop.permute.xlu1 %432  ;;  %v373_v44 = vpop.permute.xlu0 %372 }
 0x12a   : > { %442 = vst.msk [vmem:[#allocation2 + $0x57] sm:$0x4] %vm438_vm2, %v433_v43  ;;  %vm10090_vm2 = vcmask 31744  }
 0x12b   : > { %395 = vst.msk [vmem:[#allocation2 + $0x19] sm:$0xff] %vm392_vm3, %v373_v44 }
 0x131   : > { %v369_v45 = vpop.permute.xlu1 %368  ;;  %v379_v46 = vpop.permute.xlu0 %378  ;;  %v454_v57 = vld [vmem:[#allocation2 + $0x58] sm:$0x3] }
 0x132   : > { %393 = vst.msk [vmem:[#allocation2 + $0x1] sm:$0xff] %vm392_vm3, %v369_v45  ;;  %v446_v53 = vld [vmem:[#allocation2 + $0x18] sm:$0xff] }
 0x133   : > { %398 = vst.msk [vmem:[#allocation2 + $0x39] sm:$0xff] %vm392_vm3, %v379_v46 }
 0x139   : > { %v375_v47 = vpop.permute.xlu1 %374  ;;  %v444_v48 = vld [vmem:[#allocation2 + $0x8] sm:$0xff]  ;;  %v443_v49 = vld [vmem:[#allocation2] sm:$0xff] }
 0x13a   : > { %396 = vst.msk [vmem:[#allocation2 + $0x21] sm:$0xff] %vm392_vm3, %v375_v47  ;;  %469 = vrot.lane.b32.xlu0 %v444_v48, %s6061_s10  ;;  %467 = vrot.lane.b32.xlu2 %v443_v49, %s6061_s10  ;;  %v451_v54 = vld [vmem:[#allocation2 + $0x40] sm:$0x3]  ;;  %v450_v55 = vld [vmem:[#allocation2 + $0x38] sm:$0xff] }
 0x141   : > { %v381_v50 = vpop.permute.xlu1 %380  ;;  %v448_v51 = vld [vmem:[#allocation2 + $0x28] sm:$0x3]  ;;  %v447_v52 = vld [vmem:[#allocation2 + $0x20] sm:$0xff] }
 0x142   : > { %399 = vst.msk [vmem:[#allocation2 + $0x49] sm:$0xff] %vm392_vm3, %v381_v50  ;;  %477 = vrot.lane.b32.xlu1 %v448_v51, %s6061_s10  ;;  %475 = vrot.lane.b32.xlu0 %v447_v52, %s6061_s10 }
 0x143   : > { %473 = vrot.lane.b32.xlu2 %v446_v53, %s6061_s10 }
 0x149   : > { %v453_v58 = vld [vmem:[#allocation2 + $0x50] sm:$0xff]  ;;  %v452_v59 = vld [vmem:[#allocation2 + $0x48] sm:$0xff] }
 0x14a   : > { %483 = vrot.lane.b32.xlu1 %v451_v54, %s6061_s10  ;;  %481 = vrot.lane.b32.xlu0 %v450_v55, %s6061_s10 }
 0x14b   : > { %479 = vrot.lane.b32.xlu2 %v449_v56, %s6061_s10 }
 0x152   : > { %489 = vrot.lane.b32.xlu1 %v454_v57, %s6061_s10  ;;  %487 = vrot.lane.b32.xlu0 %v453_v58, %s6061_s10 }
 0x153   : > { %485 = vrot.lane.b32.xlu2 %v452_v59, %s6061_s10 }
 0x194   : > { %v472_v60 = vpop.permute.xlu1 %471  ;;  %v468_v61 = vpop.permute.xlu2 %467 }
 0x195   : > { %507 = vst.msk [vmem:[#allocation2 + $0x10] sm:$0x3] %vm506_vm4, %v472_v60 }
 0x196   : > { %504 = vst.msk [vmem:[#allocation2] sm:$0xff] %vm503_vm5, %v468_v61 }
 0x19c   : > { %v519_v62 = vld [vmem:[#allocation2 + $0x10] sm:$0x3] }
 0x19d   : > { %v474_v63 = vpop.permute.xlu2 %473  ;;  %545 = vrot.lane.b32.xlu1 %v519_v62, %s6062_s11  ;;  %v517_v0 = vld [vmem:[#allocation2] sm:$0xff] }
 0x19e   : > { %508 = vst.msk [vmem:[#allocation2 + $0x18] sm:$0xff] %vm503_vm5, %v474_v63  ;;  %541 = vrot.lane.b32.xlu2 %v517_v0, %s6062_s11 }
 0x1a5   : > { %v480_v1 = vpop.permute.xlu2 %479  ;;  %v520_v2 = vld [vmem:[#allocation2 + $0x18] sm:$0xff] }
 0x1a6   : > { %511 = vst.msk [vmem:[#allocation2 + $0x30] sm:$0xff] %vm503_vm5, %v480_v1  ;;  %547 = vrot.lane.b32.xlu2 %v520_v2, %s6062_s11 }
 0x1ac   : > { %v470_v3 = vpop.permute.xlu0 %469 }
 0x1ad   : > { %505 = vst.msk [vmem:[#allocation2 + $0x8] sm:$0xff] %vm503_vm5, %v470_v3  ;;  %v486_v4 = vpop.permute.xlu2 %485  ;;  %v523_v5 = vld [vmem:[#allocation2 + $0x30] sm:$0xff] }
 0x1ae   : > { %514 = vst.msk [vmem:[#allocation2 + $0x48] sm:$0xff] %vm503_vm5, %v486_v4  ;;  %553 = vrot.lane.b32.xlu2 %v523_v5, %s6062_s11 }
 0x1b4   : > { %v476_v6 = vpop.permute.xlu0 %475  ;;  %v478_v7 = vpop.permute.xlu1 %477  ;;  %v518_v9 = vld [vmem:[#allocation2 + $0x8] sm:$0xff] }
 0x1b5   : > { %509 = vst.msk [vmem:[#allocation2 + $0x20] sm:$0xff] %vm503_vm5, %v476_v6  ;;  %543 = vrot.lane.b32.xlu0 %v518_v9, %s6062_s11  ;;  %v526_v10 = vld [vmem:[#allocation2 + $0x48] sm:$0xff] }
 0x1b6   : > { %510 = vst.msk [vmem:[#allocation2 + $0x28] sm:$0x3] %vm506_vm4, %v478_v7  ;;  %559 = vrot.lane.b32.xlu2 %v526_v10, %s6062_s11 }
 0x1bc   : > { %v482_v11 = vpop.permute.xlu0 %481  ;;  %v484_v12 = vpop.permute.xlu1 %483  ;;  %v521_v13 = vld [vmem:[#allocation2 + $0x20] sm:$0xff] }
 0x1bd   : > { %512 = vst.msk [vmem:[#allocation2 + $0x38] sm:$0xff] %vm503_vm5, %v482_v11  ;;  %v522_v14 = vld [vmem:[#allocation2 + $0x28] sm:$0x3]  ;;  %549 = vrot.lane.b32.xlu0 %v521_v13, %s6062_s11 }
 0x1be   : > { %513 = vst.msk [vmem:[#allocation2 + $0x40] sm:$0x3] %vm506_vm4, %v484_v12  ;;  %551 = vrot.lane.b32.xlu1 %v522_v14, %s6062_s11 }
 0x1c4   : > { %v490_v15 = vpop.permute.xlu1 %489  ;;  %v488_v16 = vpop.permute.xlu0 %487  ;;  %v524_v17 = vld [vmem:[#allocation2 + $0x38] sm:$0xff] }
 0x1c5   : > { %516 = vst.msk [vmem:[#allocation2 + $0x58] sm:$0x3] %vm506_vm4, %v490_v15  ;;  %v525_v18 = vld [vmem:[#allocation2 + $0x40] sm:$0x3]  ;;  %555 = vrot.lane.b32.xlu0 %v524_v17, %s6062_s11 }
 0x1c6   : > { %515 = vst.msk [vmem:[#allocation2 + $0x50] sm:$0xff] %vm503_vm5, %v488_v16  ;;  %557 = vrot.lane.b32.xlu1 %v525_v18, %s6062_s11 }
 0x1cc   : > { %v528_v19 = vld [vmem:[#allocation2 + $0x58] sm:$0x3] }
 0x1cd   : > { %v527_v20 = vld [vmem:[#allocation2 + $0x50] sm:$0xff] }
 0x1ce   : > { %563 = vrot.lane.b32.xlu1 %v528_v19, %s6062_s11  ;;  %561 = vrot.lane.b32.xlu0 %v527_v20, %s6062_s11 }
 0x1f8   : > { %v542_v21 = vpop.permute.xlu2 %541 }
 0x1f9   : > { %578 = vst.msk [vmem:[#allocation2] sm:$0xff] %vm577_vm6, %v542_v21 }
 0x200   : > { %v548_v23 = vpop.permute.xlu2 %547  ;;  %v6265_v24 = vld [vmem:[#allocation2] sm:$0xff] }
 0x201   : > { %582 = vst.msk [vmem:[#allocation2 + $0x18] sm:$0xff] %vm577_vm6, %v548_v23  ;;  %797 = vrot.lane.b32.xlu1 %v6265_v24, %s6063_s17 }
 0x208   : > { %v554_v25 = vpop.permute.xlu2 %553  ;;  %v6279_v32 = vld [vmem:[#allocation2 + $0x18] sm:$0xff] }
 0x209   : > { %585 = vst.msk [vmem:[#allocation2 + $0x30] sm:$0xff] %vm577_vm6, %v554_v25 }
 0x20f   : > { %v546_v26 = vpop.permute.xlu1 %545 }
 0x210   : > { %581 = vst.msk [vmem:[#allocation2 + $0x10] sm:$0x3] %vm580_vm7, %v546_v26  ;;  %v560_v27 = vpop.permute.xlu2 %559  ;;  %v6273_v28 = vld [vmem:[#allocation2 + $0x30] sm:$0xff] }
 0x211   : > { %588 = vst.msk [vmem:[#allocation2 + $0x48] sm:$0xff] %vm577_vm6, %v560_v27  ;;  %v599_v29 = vrot.slane %v6273_v28, 4 }
 0x213   : > { %v600_v33 = vsel %vm209_vm0, %v599_v29, %v6265_v24 }
 0x214   : > { %v6289_v36 = vperm.slane %v600_v33, %v6147_v8 }
 0x218   : > { %v6276_v30 = vld [vmem:[#allocation2 + $0x48] sm:$0xff] }
 0x219   : > { %v611_v31 = vrot.slane %v6276_v30, 4 }
 0x21b   : > { %v612_v34 = vsel %vm209_vm0, %v611_v31, %v6279_v32 }
 0x21c   : > { %v6286_v35 = vperm.slane %v612_v34, %v6147_v8 }
 0x21e   : > { %v623_v37 = vrot.slane %v6286_v35, 4 }
 0x220   : > { %v6294_v38 = vsel %vm209_vm0, %v623_v37, %v6289_v36 }
 0x227   : > { %v544_v39 = vpop.permute.xlu0 %543 }
 0x228   : > { %579 = vst.msk [vmem:[#allocation2 + $0x8] sm:$0xff] %vm577_vm6, %v544_v39 }
 0x22f   : > { %v550_v40 = vpop.permute.xlu0 %549  ;;  %v6297_v41 = vld [vmem:[#allocation2 + $0x8] sm:$0xff] }
 0x230   : > { %v6299_v42 = vld [vmem:[#allocation2 + $0x2] sm:$0xff]  ;;  %v552_v43 = vpop.permute.xlu1 %551  ;;  %583 = vst.msk [vmem:[#allocation2 + $0x20] sm:$0xff] %vm577_vm6, %v550_v40  ;;  %1123 = vrot.lane.b32.xlu0 %v6297_v41, %s6061_s10  ;;  %799 = vrot.lane.b32.xlu2 %v6297_v41, %s6063_s17  ;;  %v6316_v47 = vld [vmem:[#allocation2 + $0xa] sm:$0xff] }
 0x231   : > { %584 = vst.msk [vmem:[#allocation2 + $0x28] sm:$0x3] %vm580_vm7, %v552_v43  ;;  %2432 = vrot.lane.b32.xlu1 %v6299_v42, %s6063_s17  ;;  %v6309_v45 = vld [vmem:[#allocation2 + $0x9] sm:$0xff]  ;;  %v6321_v48 = vld [vmem:[#allocation2 + $0x1] sm:$0xff] }
 0x237   : > { %v556_v44 = vpop.permute.xlu0 %555  ;;  %v6327_v51 = vld [vmem:[#allocation2 + $0x20] sm:$0xff] }
 0x238   : > { %v558_v46 = vpop.permute.xlu1 %557  ;;  %586 = vst.msk [vmem:[#allocation2 + $0x38] sm:$0xff] %vm577_vm6, %v556_v44  ;;  %1641 = vrot.lane.b32.xlu0 %v6309_v45, %s6063_s17  ;;  %1121 = vrot.lane.b32.xlu2 %v6265_v24, %s6061_s10  ;;  %v6341_v52 = vld [vmem:[#allocation2 + $0x19] sm:$0xff]  ;;  %v6375_v2 = vld [vmem:[#allocation2 + $0x22] sm:$0xff] }
 0x239   : > { %587 = vst.msk [vmem:[#allocation2 + $0x40] sm:$0x3] %vm580_vm7, %v558_v46  ;;  %2709 = vrot.lane.b32.xlu1 %v6316_v47, %s6061_s10  ;;  %v6363_v63 = vld [vmem:[#allocation2 + $0x1a] sm:$0xff]  ;;  %v601_v46 = vrot.slane %v6265_v24, 4 }
 0x23a   : > { %v6409_v20 = vld [vmem:[#allocation2 + $0x21] sm:$0xff] }
 0x23f   : > { %v6357_v59 = vld [vmem:[#allocation2 + $0x38] sm:$0xff] }
 0x240   : > { %v564_v49 = vpop.permute.xlu1 %563  ;;  %v562_v50 = vpop.permute.xlu0 %561  ;;  %1916 = vrot.lane.b32.xlu0 %v6309_v45, %s6061_s10  ;;  %1639 = vrot.lane.b32.xlu2 %v6321_v48, %s6063_s17  ;;  %v6359_v60 = vld [vmem:[#allocation2 + $0x31] sm:$0xff]  ;;  %v6367_v1 = vld [vmem:[#allocation2 + $0x3a] sm:$0xff]  ;;  %v655_v3 = vrot.slane %v6357_v59, 4 }
 0x241   : > { %590 = vst.msk [vmem:[#allocation2 + $0x58] sm:$0x3] %vm580_vm7, %v564_v49  ;;  %803 = vrot.lane.b32.xlu1 %v6327_v51, %s6063_s17  ;;  %v6365_v0 = vld [vmem:[#allocation2 + $0x32] sm:$0xff]  ;;  %v1388_v5 = vrot.slane %v6359_v60, 4  ;;  %v2237_v7 = vrot.slane %v6367_v1, 4 }
 0x242   : > { %589 = vst.msk [vmem:[#allocation2 + $0x50] sm:$0xff] %vm577_vm6, %v562_v50  ;;  %v2181_v10 = vrot.slane %v6365_v0, 4  ;;  %v656_v14 = vsel %vm209_vm0, %v655_v3, %v6297_v41  ;;  %v6457_v43 = vld [vmem:[#allocation2 + $0x39] sm:$0xff]  ;;  %v602_v50 = vsel %vm209_vm0, %v6273_v28, %v601_v46 }
 0x243   : > { %v1389_v15 = vsel %vm209_vm0, %v1388_v5, %v6321_v48  ;;  %v2238_v18 = vsel %vm209_vm0, %v2237_v7, %v6316_v47  ;;  %v6416_v21 = vperm.slane %v656_v14, %v6147_v8 }
 0x244   : > { %v2182_v19 = vsel %vm209_vm0, %v2181_v10, %v6299_v42  ;;  %v6419_v23 = vperm.slane %v1389_v15, %v6147_v8  ;;  %v6426_v27 = vperm.slane %v2238_v18, %v6147_v8  ;;  %v1458_v18 = vrot.slane %v6409_v20, 4 }
 0x245   : > { %v6429_v29 = vperm.slane %v2182_v19, %v6147_v8 }
 0x248   : > { %2707 = vrot.lane.b32.xlu0 %v6299_v42, %s6061_s10  ;;  %1914 = vrot.lane.b32.xlu2 %v6321_v48, %s6061_s10 }
 0x249   : > { %1125 = vrot.lane.b32.xlu1 %v6279_v32, %s6061_s10  ;;  %v6347_v53 = vld [vmem:[#allocation2 + $0x50] sm:$0xff] }
 0x24a   : > { %v6349_v54 = vld [vmem:[#allocation2 + $0x49] sm:$0xff]  ;;  %v6353_v56 = vld [vmem:[#allocation2 + $0x52] sm:$0xff]  ;;  %v667_v57 = vrot.slane %v6347_v53, 4 }
 0x24b   : > { %v6351_v55 = vld [vmem:[#allocation2 + $0x4a] sm:$0xff]  ;;  %v1400_v58 = vrot.slane %v6349_v54, 4  ;;  %v2249_v61 = vrot.slane %v6353_v56, 4 }
 0x24c   : > { %v2193_v62 = vrot.slane %v6351_v55, 4  ;;  %v668_v4 = vsel %vm209_vm0, %v667_v57, %v6327_v51  ;;  %v613_v57 = vrot.slane %v6279_v32, 4 }
 0x24d   : > { %v1401_v6 = vsel %vm209_vm0, %v1400_v58, %v6341_v52  ;;  %v2250_v9 = vsel %vm209_vm0, %v2249_v61, %v6375_v2  ;;  %v6390_v12 = vperm.slane %v668_v4, %v6147_v8  ;;  %v6498_v61 = vperm.slane %v602_v50, %v6147_v8 }
 0x24e   : > { %v2194_v11 = vsel %vm209_vm0, %v2193_v62, %v6363_v63  ;;  %v6393_v13 = vperm.slane %v1401_v6, %v6147_v8  ;;  %v6400_v16 = vperm.slane %v2250_v9, %v6147_v8  ;;  %v614_v58 = vsel %vm209_vm0, %v6276_v30, %v613_v57  ;;  %v6500_v62 = vld [vmem:[#allocation2 + $0x51] sm:$0xff] }
 0x24f   : > { %v6403_v17 = vperm.slane %v2194_v11, %v6147_v8  ;;  %v679_v25 = vrot.slane %v6390_v12, 4  ;;  %v6507_v24 = vperm.slane %v614_v58, %v6147_v8  ;;  %v637_v3 = vrot.slane %v6498_v61, 4 }
 0x250   : > { %2434 = vrot.lane.b32.xlu2 %v6316_v47, %s6063_s17  ;;  %801 = vrot.lane.b32.xlu0 %v6279_v32, %s6063_s17  ;;  %v1412_v26 = vrot.slane %v6393_v13, 4  ;;  %v2261_v31 = vrot.slane %v6400_v16, 4  ;;  %v2195_v6 = vrot.slane %v6363_v63, 4  ;;  %v657_v50 = vrot.slane %v6297_v41, 4 }
 0x251   : > { %1643 = vrot.lane.b32.xlu1 %v6341_v52, %s6063_s17  ;;  %v2205_v33 = vrot.slane %v6403_v17, 4  ;;  %v6435_v34 = vsel %vm209_vm0, %v679_v25, %v6416_v21 }
 0x252   : > { %v6439_v37 = vsel %vm209_vm0, %v1412_v26, %v6419_v23  ;;  %v6443_v39 = vsel %vm209_vm0, %v2261_v31, %v6426_v27  ;;  %v2196_v7 = vsel %vm209_vm0, %v6351_v55, %v2195_v6  ;;  %v1459_v26 = vsel %vm209_vm0, %v6500_v62, %v1458_v18 }
 0x253   : > { %v6447_v40 = vsel %vm209_vm0, %v2205_v33, %v6429_v29  ;;  %v1467_v46 = vperm.slane %v1459_v26, %v6147_v8 }
 0x258   : > { %1127 = vrot.lane.b32.xlu2 %v6327_v51, %s6061_s10  ;;  %2436 = vrot.lane.b32.xlu0 %v6363_v63, %s6063_s17 }
 0x259   : > { %1918 = vrot.lane.b32.xlu1 %v6341_v52, %s6061_s10 }
 0x260   : > { %1645 = vrot.lane.b32.xlu2 %v6409_v20, %s6063_s17  ;;  %2713 = vrot.lane.b32.xlu0 %v6375_v2, %s6061_s10 }
 0x261   : > { %2438 = vrot.lane.b32.xlu1 %v6375_v2, %s6063_s17 }
 0x268   : > { %1920 = vrot.lane.b32.xlu2 %v6409_v20, %s6061_s10  ;;  %807 = vrot.lane.b32.xlu0 %v6357_v59, %s6063_s17 }
 0x269   : > { %1131 = vrot.lane.b32.xlu1 %v6357_v59, %s6061_s10 }
 0x270   : > { %2711 = vrot.lane.b32.xlu2 %v6363_v63, %s6061_s10  ;;  %1129 = vrot.lane.b32.xlu0 %v6273_v28, %s6061_s10  ;;  %v6535_v63 = vperm.slane %v2196_v7, %v6147_v8 }
 0x271   : > { %1649 = vrot.lane.b32.xlu1 %v6457_v43, %s6063_s17 }
 0x273   : > { %v6515_v4 = vpop.permute.xlu1 %797 }
 0x278   : > { %1647 = vrot.lane.b32.xlu0 %v6359_v60, %s6063_s17  ;;  %805 = vrot.lane.b32.xlu2 %v6273_v28, %s6063_s17  ;;  %v2183_v28 = vrot.slane %v6299_v42, 4 }
 0x279   : > { %1924 = vrot.lane.b32.xlu1 %v6457_v43, %s6061_s10 }
 0x27a   : > { %v2184_v5 = vsel %vm209_vm0, %v6365_v0, %v2183_v28 }
 0x27b   : > { %v6525_v9 = vperm.slane %v2184_v5, %v6147_v8  ;;  %v658_v5 = vsel %vm209_vm0, %v6357_v59, %v657_v50  ;;  %v1390_v59 = vrot.slane %v6321_v48, 4  ;;  %v1402_v50 = vrot.slane %v6341_v52, 4 }
 0x27d   : > { %v2219_v14 = vrot.slane %v6525_v9, 4  ;;  %v1391_v26 = vsel %vm209_vm0, %v6359_v60, %v1390_v59 }
 0x27f   : > { %v2220_v25 = vsel %vm209_vm0, %v6535_v63, %v2219_v14 }
 0x280   : > { %1922 = vrot.lane.b32.xlu0 %v6359_v60, %s6061_s10  ;;  %2440 = vrot.lane.b32.xlu2 %v6365_v0, %s6063_s17  ;;  %v6556_v33 = vperm.slane %v2220_v25, %v6154_v22  ;;  %v1414_v25 = vrot.slane %v6419_v23, 4  ;;  %v1399_v23 = vperm.slane %v1391_v26, %v6147_v8 }
 0x281   : > { %2715 = vrot.lane.b32.xlu1 %v6365_v0, %s6061_s10  ;;  %v1446_v0 = vrot.slane %v6309_v45, 4 }
 0x283   : > { %v1447_v15 = vsel %vm209_vm0, %v6457_v43, %v1446_v0  ;;  %v666_v0 = vperm.slane %v658_v5, %v6147_v8  ;;  %v1403_v5 = vsel %vm209_vm0, %v6349_v54, %v1402_v50 }
 0x284   : > { %v1455_v31 = vperm.slane %v1447_v15, %v6147_v8 }
 0x286   : > { %v1482_v57 = vrot.slane %v1455_v31, 4 }
 0x288   : > { %2442 = vrot.lane.b32.xlu0 %v6367_v1, %s6063_s17  ;;  %2717 = vrot.lane.b32.xlu2 %v6367_v1, %s6061_s10 }
 0x289   : > { %809 = vrot.lane.b32.xlu1 %v6276_v30, %s6063_s17 }
 0x28a   : > { %v6481_v44 = vpop.permute.xlu2 %799 }
 0x290   : > { %1135 = vrot.lane.b32.xlu0 %v6347_v53, %s6061_s10  ;;  %811 = vrot.lane.b32.xlu2 %v6347_v53, %s6063_s17 }
 0x291   : > { %2444 = vrot.lane.b32.xlu1 %v6351_v55, %s6063_s17 }
 0x292   : > { %v6490_v49 = vpop.permute.xlu2 %1121 }
 0x298   : > { %1653 = vrot.lane.b32.xlu0 %v6500_v62, %s6063_s17  ;;  %1133 = vrot.lane.b32.xlu2 %v6276_v30, %s6061_s10  ;;  %v638_v30 = vsel %vm209_vm0, %v6507_v24, %v637_v3  ;;  %v681_v3 = vrot.slane %v6416_v21, 4 }
 0x299   : > { %2721 = vrot.lane.b32.xlu1 %v6353_v56, %s6061_s10  ;;  %v6528_v42 = vperm.slane %v638_v30, %v6154_v22  ;;  %v1483_v30 = vsel %vm209_vm0, %v1467_v46, %v1482_v57 }
 0x29a   : > { %v6512_v32 = vpop.permute.xlu2 %1639  ;;  %v682_v41 = vsel %vm209_vm0, %v6390_v12, %v681_v3  ;;  %v6583_v14 = vperm.slane %v1483_v30, %v6154_v22  ;;  %v625_v12 = vrot.slane %v6289_v36, 4  ;;  %v1415_v36 = vsel %vm209_vm0, %v6393_v13, %v1414_v25 }
 0x29b   : > { %v6586_v21 = vperm.slane %v682_v41, %v6154_v22  ;;  %v6622_v60 = vperm.slane %v1415_v36, %v6154_v22  ;;  %v1411_v30 = vperm.slane %v1403_v5, %v6147_v8  ;;  %v2239_v13 = vrot.slane %v6316_v47, 4 }
 0x29c   : > { %v626_v3 = vsel %vm209_vm0, %v6286_v35, %v625_v12  ;;  %v1426_v41 = vrot.slane %v1399_v23, 4  ;;  %v2263_v5 = vrot.slane %v6426_v27, 4  ;;  %v635_v27 = vrot.slane %v6507_v24, 4 }
 0x29d   : > { %v6619_v52 = vperm.slane %v626_v3, %v6154_v22  ;;  %v1424_v36 = vrot.slane %v1411_v30, 4 }
 0x29e   : > { %v1427_v25 = vsel %vm209_vm0, %v1411_v30, %v1426_v41 }
 0x2a0   : > { %1928 = vrot.lane.b32.xlu0 %v6500_v62, %s6061_s10  ;;  %1651 = vrot.lane.b32.xlu2 %v6349_v54, %s6063_s17 }
 0x2a1   : > { %732 = vrot.lane.b32.xlu1 %v6528_v42, %s6054_s5 }
 0x2a2   : > { %v6540_v10 = vpop.permute.xlu0 %1123  ;;  %v6542_v11 = vpop.permute.xlu2 %1914 }
 0x2a3   : > { %v6548_v19 = vpop.permute.xlu1 %2432 }
 0x2a8   : > { %2719 = vrot.lane.b32.xlu0 %v6351_v55, %s6061_s10  ;;  %1926 = vrot.lane.b32.xlu2 %v6349_v54, %s6061_s10  ;;  %v669_v55 = vrot.slane %v6327_v51, 4  ;;  %v1480_v54 = vrot.slane %v1467_v46, 4 }
 0x2a9   : > { %2314 = vrot.lane.b32.xlu1 %v6556_v33, %s6054_s5 }
 0x2aa   : > { %v6566_v58 = vpop.permute.xlu0 %1641  ;;  %v6568_v28 = vpop.permute.xlu2 %2434  ;;  %v670_v7 = vsel %vm209_vm0, %v6347_v53, %v669_v55  ;;  %v693_v53 = vrot.slane %v666_v0, 4  ;;  %v1481_v47 = vsel %vm209_vm0, %v1480_v54, %v1455_v31  ;;  %v1425_v54 = vsel %vm209_vm0, %v1424_v36, %v1399_v23 }
 0x2ab   : > { %10124 = vst [vmem:[#allocation8_spill] sm:$0xff] %v6566_v58  ;;  %v6574_v6 = vpop.permute.xlu1 %2709  ;;  %v678_v51 = vperm.slane %v670_v7, %v6147_v8  ;;  %v2207_v23 = vrot.slane %v6429_v29, 4  ;;  %v1498_v36 = vrot.slane %v6583_v14, 4 }
 0x2ad   : > { %v694_v48 = vsel %vm209_vm0, %v678_v51, %v693_v53  ;;  %v691_v35 = vrot.slane %v678_v51, 4  ;;  %v2240_v51 = vsel %vm209_vm0, %v6367_v1, %v2239_v13  ;;  %v2251_v53 = vrot.slane %v6375_v2, 4 }
 0x2ae   : > { %v6616_v55 = vperm.slane %v694_v48, %v6154_v22  ;;  %v2248_v50 = vperm.slane %v2240_v51, %v6147_v8  ;;  %v6648_v48 = vperm.slane %v1427_v25, %v6154_v22  ;;  %v6654_v2 = vperm.slane %v1481_v47, %v6154_v22 }
 0x2af   : > { %v692_v46 = vsel %vm209_vm0, %v691_v35, %v666_v0  ;;  %v2252_v26 = vsel %vm209_vm0, %v6353_v56, %v2251_v53  ;;  %v2264_v13 = vsel %vm209_vm0, %v6400_v16, %v2263_v5  ;;  %v6678_v51 = vperm.slane %v1425_v54, %v6154_v22 }
 0x2b0   : > { %1549 = vrot.lane.b32.xlu0 %v6583_v14, %s6054_s5  ;;  %2446 = vrot.lane.b32.xlu2 %v6353_v56, %s6063_s17  ;;  %v6651_v1 = vperm.slane %v692_v46, %v6154_v22  ;;  %v2260_v3 = vperm.slane %v2252_v26, %v6147_v8  ;;  %v2275_v56 = vrot.slane %v2248_v50, 4  ;;  %v1444_v53 = vrot.slane %v6457_v43, 4 }
 0x2b1   : > { %744 = vrot.lane.b32.xlu1 %v6586_v21, %s6056_s7  ;;  %v6682_v25 = vperm.slane %v2264_v13, %v6154_v22  ;;  %v1456_v16 = vrot.slane %v6500_v62, 4  ;;  %v636_v26 = vsel %vm209_vm0, %v635_v27, %v6498_v61  ;;  %v2208_v62 = vsel %vm209_vm0, %v6403_v17, %v2207_v23 }
 0x2b2   : > { %v6597_v15 = vpop.permute.xlu0 %1916  ;;  %v6599_v18 = vpop.permute.xlu2 %1127  ;;  %v2276_v30 = vsel %vm209_vm0, %v2260_v3, %v2275_v56  ;;  %v1445_v24 = vsel %vm209_vm0, %v1444_v53, %v6309_v45  ;;  %v6712_v5 = vperm.slane %v636_v26, %v6154_v22  ;;  %v2216_v45 = vperm.slane %v2208_v62, %v6154_v22 }
 0x2b3   : > { %10125 = vst [vmem:[#allocation9_spill] sm:$0xff] %v6597_v15  ;;  %v6605_v57 = vpop.permute.xlu1 %803  ;;  %v6675_v41 = vperm.slane %v2276_v30, %v6154_v22  ;;  %v1457_v29 = vsel %vm209_vm0, %v1456_v16, %v6409_v20  ;;  %v6709_v56 = vperm.slane %v1445_v24, %v6147_v8  ;;  %v2273_v61 = vrot.slane %v2260_v3, 4 }
 0x2b4   : > { %10126 = vst [vmem:[#allocation10_spill] sm:$0xff] %v6599_v18  ;;  %v6716_v30 = vperm.slane %v1457_v29, %v6147_v8  ;;  %v1499_v54 = vsel %vm209_vm0, 0.0, %v1498_v36  ;;  %v649_v27 = vrot.slane %v6619_v52, 4  ;;  %v2217_v24 = vrot.slane %v6535_v63, 4 }
 0x2b5   : > { %v1470_v17 = vrot.slane %v6709_v56, 4  ;;  %v2274_v53 = vsel %vm209_vm0, %v2273_v61, %v2248_v50  ;;  %v709_v63 = vrot.slane %v6616_v55, 4  ;;  %v707_v29 = vrot.slane %v6651_v1, 4 }
 0x2b6   : > { %v2280_v23 = vperm.slane %v2274_v53, %v6154_v22  ;;  %v650_v26 = vsel %vm209_vm0, 0.0, %v649_v27  ;;  %v2218_v36 = vsel %vm209_vm0, %v2217_v24, %v6525_v9  ;;  %v1442_v53 = vrot.slane %v6648_v48, 4 }
 0x2b7   : > { %v1471_v3 = vsel %vm209_vm0, %v6716_v30, %v1470_v17  ;;  %v6755_v61 = vperm.slane %v2218_v36, %v6154_v22  ;;  %v708_v17 = vsel %vm209_vm0, 0.0, %v707_v29  ;;  %v1440_v27 = vrot.slane %v6678_v51, 4 }
 0x2b8   : > { %760 = vrot.lane.b32.xlu2 %v6616_v55, %s6054_s5  ;;  %716 = vrot.lane.b32.xlu0 %v6619_v52, %s6056_s7  ;;  %v6735_v16 = vperm.slane %v1471_v3, %v6154_v22 }
 0x2b9   : > { %1505 = vrot.lane.b32.xlu1 %v6622_v60, %s6056_s7  ;;  %v1441_v36 = vsel %vm209_vm0, 0.0, %v1440_v27  ;;  %v1468_v27 = vrot.slane %v6716_v30, 4 }
 0x2ba   : > { %v6632_v7 = vpop.permute.xlu0 %2707  ;;  %v6634_v59 = vpop.permute.xlu2 %1645 }
 0x2bb   : > { %10127 = vst [vmem:[#allocation11_spill] sm:$0xff] %v6632_v7  ;;  %v6639_v12 = vpop.permute.xlu1 %1125 }
 0x2bc   : > { %10128 = vst [vmem:[#allocation12_spill] sm:$0xff] %v6634_v59 }
 0x2c0   : > { %1521 = vrot.lane.b32.xlu2 %v6648_v48, %s6054_s5  ;;  %752 = vrot.lane.b32.xlu0 %v6651_v1, %s6055_s6  ;;  %v653_v1 = vrot.slane %v6528_v42, 4  ;;  %v2235_v48 = vrot.slane %v6556_v33, 4 }
 0x2c1   : > { %1541 = vrot.lane.b32.xlu1 %v6654_v2, %s6055_s6 }
 0x2c2   : > { %v6663_v31 = vpop.permute.xlu0 %801  ;;  %v6665_v0 = vpop.permute.xlu2 %1920  ;;  %v654_v24 = vsel %vm209_vm0, 0.0, %v653_v1 }
 0x2c3   : > { %10129 = vst [vmem:[#allocation13_spill] sm:$0xff] %v6665_v0  ;;  %v6668_v35 = vpop.permute.xlu1 %1643 }
 0x2c8   : > { %2342 = vrot.lane.b32.xlu2 %v6675_v41, %s6054_s5  ;;  %1513 = vrot.lane.b32.xlu0 %v6678_v51, %s6055_s6  ;;  %v2291_v51 = vrot.slane %v6675_v41, 4 }
 0x2c9   : > { %2326 = vrot.lane.b32.xlu1 %v6682_v25, %s6056_s7 }
 0x2ca   : > { %v6693_v46 = vpop.permute.xlu0 %2436  ;;  %v6695_v43 = vpop.permute.xlu2 %2711  ;;  %v2292_v1 = vsel %vm209_vm0, 0.0, %v2291_v51 }
 0x2cb   : > { %10130 = vst [vmem:[#allocation14_spill] sm:$0xff] %v6695_v43  ;;  %v6699_v47 = vpop.permute.xlu1 %1918 }
 0x2d0   : > { %724 = vrot.lane.b32.xlu2 %v6712_v5, %s6055_s6  ;;  %2298 = vrot.lane.b32.xlu0 %v2216_v45, %s6056_s7 }
 0x2d1   : > { %1553 = vrot.lane.b32.xlu1 %v1499_v54, %s6052_s30  ;;  %v710_v54 = vsel %vm209_vm0, 0.0, %v709_v63 }
 0x2d2   : > { %v6724_v20 = vpop.permute.xlu0 %2713  ;;  %v6726_v14 = vpop.permute.xlu2 %805 }
 0x2d3   : > { %10131 = vst [vmem:[#allocation15_spill] sm:$0xff] %v6724_v20  ;;  %v6728_v13 = vpop.permute.xlu1 %2438 }
 0x2d8   : > { %1533 = vrot.lane.b32.xlu2 %v6735_v16, %s6056_s7  ;;  %2334 = vrot.lane.b32.xlu0 %v2280_v23, %s6055_s6 }
 0x2d9   : > { %720 = vrot.lane.b32.xlu1 %v650_v26, %s6053_s4  ;;  %v1443_v26 = vsel %vm209_vm0, 0.0, %v1442_v53 }
 0x2da   : > { %v6744_v62 = vpop.permute.xlu0 %807  ;;  %v6746_v50 = vpop.permute.xlu2 %2440 }
 0x2db   : > { %v6748_v52 = vpop.permute.xlu1 %1131 }
 0x2e0   : > { %2306 = vrot.lane.b32.xlu2 %v6755_v61, %s6055_s6  ;;  %764 = vrot.lane.b32.xlu0 %v710_v54, %s6052_s30  ;;  %v2231_v54 = vrot.slane %v2216_v45, 4  ;;  %v705_v45 = vrot.slane %v6586_v21, 4 }
 0x2e1   : > { %756 = vrot.lane.b32.xlu1 %v708_v17, %s6051_s29  ;;  %v2236_v17 = vsel %vm209_vm0, 0.0, %v2235_v48  ;;  %v1469_v48 = vsel %vm209_vm0, %v1468_v27, %v6709_v56 }
 0x2e2   : > { %v6763_v3 = vpop.permute.xlu0 %1129  ;;  %v6765_v9 = vpop.permute.xlu2 %2717  ;;  %v2232_v53 = vsel %vm209_vm0, 0.0, %v2231_v54  ;;  %v706_v51 = vsel %vm209_vm0, 0.0, %v705_v45 }
 0x2e3   : > { %v6767_v55 = vpop.permute.xlu1 %1649 }
 0x2e4   : > { %10132 = vst [vmem:[#allocation16_spill] sm:$0xff] %v6767_v55 }
 0x2e8   : > { %736 = vrot.lane.b32.xlu2 %v654_v24, %s6052_s30  ;;  %1525 = vrot.lane.b32.xlu0 %v1443_v26, %s6052_s30  ;;  %v651_v26 = vrot.slane %v6712_v5, 4 }
 0x2e9   : > { %1517 = vrot.lane.b32.xlu1 %v1441_v36, %s6051_s29  ;;  %v2289_v36 = vrot.slane %v2280_v23, 4  ;;  %v1438_v23 = vrot.slane %v6622_v60, 4  ;;  %v1215_v60 = vrot.slane %v6599_v18, 4 }
 0x2ea   : > { %v6778_v63 = vpop.permute.xlu0 %1647  ;;  %v6780_v29 = vpop.permute.xlu2 %811  ;;  %v652_v54 = vsel %vm209_vm0, 0.0, %v651_v26 }
 0x2eb   : > { %v6782_v42 = vpop.permute.xlu1 %1924  ;;  %v2290_v30 = vsel %vm209_vm0, 0.0, %v2289_v36  ;;  %v1439_v26 = vsel %vm209_vm0, 0.0, %v1438_v23 }
 0x2f0   : > { %2318 = vrot.lane.b32.xlu2 %v2236_v17, %s6052_s30  ;;  %2346 = vrot.lane.b32.xlu0 %v2292_v1, %s6052_s30  ;;  %v6809_v17 = vperm.slane %v1469_v48, %v6154_v22  ;;  %v1494_v1 = vrot.slane %v6735_v16, 4 }
 0x2f1   : > { %2302 = vrot.lane.b32.xlu1 %v2232_v53, %s6053_s4  ;;  %v1203_v53 = vrot.slane %v6540_v10, 4 }
 0x2f2   : > { %v6793_v24 = vpop.permute.xlu0 %1922  ;;  %v6795_v33 = vpop.permute.xlu2 %1133  ;;  %10134 = vst [vmem:[#allocation18_spill] sm:$0xff] %v6809_v17  ;;  %v1492_v27 = vrot.slane %v6809_v17, 4  ;;  %v1495_v36 = vsel %vm209_vm0, 0.0, %v1494_v1  ;;  %v1496_v1 = vrot.slane %v6654_v2, 4  ;;  %v6857_v2 = vperm.slane %v6435_v34, %v6154_v22 }
 0x2f3   : > { %v6797_v41 = vpop.permute.xlu1 %2715  ;;  %v1204_v45 = vsel %vm209_vm0, %v6748_v52, %v1203_v53  ;;  %v2233_v53 = vrot.slane %v6755_v61, 4 }
 0x2f4   : > { %10133 = vst [vmem:[#allocation17_spill] sm:$0xff] %v6797_v41  ;;  %v1493_v48 = vsel %vm209_vm0, 0.0, %v1492_v27  ;;  %v6831_v16 = vperm.slane %v1204_v45, %v6147_v8  ;;  %v1721_v27 = vrot.slane %v6566_v58, 4 }
 0x2f5   : > { %10135 = vst [vmem:[#allocation19_spill] sm:$0xff] %v6857_v2 }
 0x2f8   : > { %748 = vrot.lane.b32.xlu2 %v706_v51, %s6053_s4  ;;  %728 = vrot.lane.b32.xlu0 %v652_v54, %s6051_s29 }
 0x2f9   : > { %2338 = vrot.lane.b32.xlu1 %v2290_v30, %s6051_s29 }
 0x2fa   : > { %v6812_v21 = vpop.permute.xlu0 %2442  ;;  %v6814_v5 = vpop.permute.xlu2 %1651 }
 0x2fb   : > { %v6816_v56 = vpop.permute.xlu1 %809 }
 0x300   : > { %1509 = vrot.lane.b32.xlu2 %v1439_v26, %s6053_s4  ;;  %1537 = vrot.lane.b32.xlu0 %v1495_v36, %s6053_s4  ;;  %v1239_v26 = vrot.slane %v6831_v16, 4  ;;  %v1722_v36 = vsel %vm209_vm0, %v6767_v55, %v1721_v27 }
 0x301   : > { %1529 = vrot.lane.b32.xlu1 %v1493_v48, %s6057_s8  ;;  %v1497_v48 = vsel %vm209_vm0, 0.0, %v1496_v1  ;;  %v1730_v1 = vperm.slane %v1722_v36, %v6147_v8  ;;  %v703_v36 = vrot.slane %v6857_v2, 4 }
 0x302   : > { %v6834_v51 = vpop.permute.xlu0 %1135  ;;  %v6836_v54 = vpop.permute.xlu2 %1926 }
 0x303   : > { %v1216_v30 = vsel %vm209_vm0, %v6834_v51, %v1215_v60  ;;  %v6840_v23 = vpop.permute.xlu1 %2444  ;;  %v2234_v60 = vsel %vm209_vm0, 0.0, %v2233_v53  ;;  %v2526_v53 = vrot.slane %v6728_v13, 4  ;;  %v1757_v58 = vrot.slane %v1730_v1, 4 }
 0x304   : > { %v6846_v45 = vperm.slane %v1216_v30, %v6147_v8  ;;  %v1733_v30 = vrot.slane %v6634_v59, 4  ;;  %v704_v2 = vsel %vm209_vm0, 0.0, %v703_v36 }
 0x306   : > { %v1240_v17 = vsel %vm209_vm0, %v6846_v45, %v1239_v26  ;;  %v2287_v26 = vrot.slane %v6682_v25, 4 }
 0x307   : > { %v6862_v61 = vperm.slane %v1240_v17, %v6154_v22 }
 0x308   : > { %1545 = vrot.lane.b32.xlu2 %v1497_v48, %s6051_s29  ;;  %2310 = vrot.lane.b32.xlu0 %v2234_v60, %s6051_s29  ;;  %v1996_v48 = vrot.slane %v6597_v15, 4  ;;  %v2288_v25 = vsel %vm209_vm0, 0.0, %v2287_v26  ;;  %v6888_v15 = vperm.slane %v6294_v38, %v6154_v22 }
 0x309   : > { %10136 = vst [vmem:[#allocation20_spill] sm:$0xff] %v6862_v61  ;;  %1306 = vrot.lane.b32.xlu1 %v6862_v61, %s6054_s5 }
 0x30a   : > { %v6869_v27 = vpop.permute.xlu0 %1653  ;;  %v6871_v34 = vpop.permute.xlu2 %2446  ;;  %v1997_v55 = vsel %vm209_vm0, %v6782_v42, %v1996_v48  ;;  %10138 = vst [vmem:[#allocation22_spill] sm:$0xff] %v6888_v15 }
 0x30b   : > { %10137 = vst [vmem:[#allocation21_spill] sm:$0xff] %v6869_v27  ;;  %v1734_v17 = vsel %vm209_vm0, %v6869_v27, %v1733_v30  ;;  %v6877_v60 = vpop.permute.xlu1 %2721  ;;  %v2527_v61 = vsel %vm209_vm0, %v6871_v34, %v2526_v53  ;;  %v6895_v53 = vperm.slane %v6439_v37, %v6154_v22  ;;  %v2514_v27 = vrot.slane %v6568_v28, 4 }
 0x30c   : > { %v1742_v59 = vperm.slane %v1734_v17, %v6147_v8  ;;  %v2535_v30 = vperm.slane %v2527_v61, %v6147_v8  ;;  %v2005_v48 = vperm.slane %v1997_v55, %v6147_v8  ;;  %v2008_v61 = vrot.slane %v6665_v0, 4 }
 0x30d   : > { %10139 = vst [vmem:[#allocation23_spill] sm:$0xff] %v6895_v53  ;;  %v2515_v37 = vsel %vm209_vm0, %v6812_v21, %v2514_v27  ;;  %v647_v55 = vrot.slane %v6888_v15, 4  ;;  %v1436_v27 = vrot.slane %v6895_v53, 4 }
 0x30e   : > { %v1755_v18 = vrot.slane %v1742_v59, 4  ;;  %v1758_v17 = vsel %vm209_vm0, %v1742_v59, %v1757_v58  ;;  %v2548_v36 = vrot.slane %v2535_v30, 4 }
 0x30f   : > { %v6902_v38 = vperm.slane %v1758_v17, %v6154_v22  ;;  %v1437_v53 = vsel %vm209_vm0, 0.0, %v1436_v27  ;;  %v2733_v27 = vrot.slane %v6632_v7, 4 }
 0x310   : > { %2330 = vrot.lane.b32.xlu2 %v2288_v25, %s6053_s4  ;;  %740 = vrot.lane.b32.xlu0 %v704_v2, %s6057_s8  ;;  %v6906_v26 = vsel %vm209_vm0, %v1755_v18, %v1730_v1  ;;  %v6919_v2 = vperm.slane %v6443_v39, %v6154_v22  ;;  %v2032_v25 = vrot.slane %v2005_v48, 4  ;;  %v648_v39 = vsel %vm209_vm0, 0.0, %v647_v55 }
 0x311   : > { %10140 = vst [vmem:[#allocation24_spill] sm:$0xff] %v6902_v38  ;;  %1824 = vrot.lane.b32.xlu1 %v6902_v38, %s6054_s5  ;;  %v6929_v38 = vperm.slane %v6447_v40, %v6154_v22  ;;  %v823_v40 = vrot.slane %v6515_v4, 4 }
 0x312   : > { %10141 = vst [vmem:[#allocation25_spill] sm:$0xff] %v6906_v26  ;;  %v6912_v58 = vpop.permute.xlu0 %1928  ;;  %v6914_v59 = vpop.permute.xlu2 %760 }
 0x313   : > { %10142 = vst [vmem:[#allocation26_spill] sm:$0xff] %v6914_v59  ;;  %v2009_v18 = vsel %vm209_vm0, %v6912_v58, %v2008_v61  ;;  %v6923_v1 = vpop.permute.xlu1 %732  ;;  %v2523_v59 = vperm.slane %v2515_v37, %v6147_v8  ;;  %v2285_v61 = vrot.slane %v6919_v2, 4  ;;  %v2229_v37 = vrot.slane %v6929_v38, 4 }
 0x314   : > { %10143 = vst [vmem:[#allocation27_spill] sm:$0xff] %v6919_v2  ;;  %v2017_v17 = vperm.slane %v2009_v18, %v6147_v8 }
 0x315   : > { %10144 = vst [vmem:[#allocation28_spill] sm:$0xff] %v6923_v1  ;;  %v879_v1 = vrot.slane %v6481_v44, 4  ;;  %v6941_v18 = vsel %vm209_vm0, %v2548_v36, %v2523_v59  ;;  %v2550_v2 = vrot.slane %v2523_v59, 4 }
 0x316   : > { %10145 = vst [vmem:[#allocation29_spill] sm:$0xff] %v6929_v38  ;;  %v2030_v15 = vrot.slane %v2017_v17, 4  ;;  %v2033_v26 = vsel %vm209_vm0, %v2017_v17, %v2032_v25  ;;  %v891_v25 = vrot.slane %v6605_v57, 4  ;;  %v835_v17 = vrot.slane %v6663_v31, 4 }
 0x317   : > { %v6938_v0 = vperm.slane %v2033_v26, %v6154_v22  ;;  %10147 = vst [vmem:[#allocation31_spill] sm:$0xff] %v6941_v18  ;;  %v2745_v26 = vrot.slane %v6695_v43, 4  ;;  %v880_v36 = vsel %vm209_vm0, %v6744_v62, %v879_v1  ;;  %v2734_v1 = vsel %vm209_vm0, %v6797_v41, %v2733_v27 }
 0x318   : > { %1501 = vrot.lane.b32.xlu0 %v1437_v53, %s6057_s8  ;;  %712 = vrot.lane.b32.xlu2 %v648_v39, %s6057_s8  ;;  %v6948_v55 = vsel %vm209_vm0, %v2030_v15, %v2005_v48  ;;  %v824_v53 = vsel %vm209_vm0, %v6726_v14, %v823_v40  ;;  %v2286_v48 = vsel %vm209_vm0, 0.0, %v2285_v61  ;;  %v892_v38 = vsel %vm209_vm0, %v6780_v29, %v891_v25 }
 0x319   : > { %10146 = vst [vmem:[#allocation30_spill] sm:$0xff] %v6938_v0  ;;  %2099 = vrot.lane.b32.xlu1 %v6938_v0, %s6054_s5  ;;  %v6974_v0 = vperm.slane %v880_v36, %v6147_v8  ;;  %v2230_v43 = vsel %vm209_vm0, 0.0, %v2229_v37  ;;  %v1147_v25 = vrot.slane %v6490_v49, 4  ;;  %v821_v27 = vrot.slane %v6726_v14, 4 }
 0x31a   : > { %v6960_v39 = vpop.permute.xlu0 %2719  ;;  %v6962_v15 = vpop.permute.xlu2 %1521  ;;  %v6983_v59 = vperm.slane %v824_v53, %v6147_v8  ;;  %v6988_v36 = vperm.slane %v892_v38, %v6147_v8  ;;  %v1159_v37 = vrot.slane %v6639_v12, 4  ;;  %v1675_v14 = vrot.slane %v6814_v5, 4 }
 0x31b   : > { %10148 = vst [vmem:[#allocation32_spill] sm:$0xff] %v6960_v39  ;;  %v2746_v18 = vsel %vm209_vm0, %v6960_v39, %v2745_v26  ;;  %v6971_v40 = vpop.permute.xlu1 %2314  ;;  %v2551_v26 = vsel %vm209_vm0, %v2535_v30, %v2550_v2  ;;  %v915_v30 = vrot.slane %v6974_v0, 4  ;;  %v1148_v53 = vsel %vm209_vm0, %v6763_v3, %v1147_v25 }
 0x31c   : > { %10149 = vst [vmem:[#allocation33_spill] sm:$0xff] %v6962_v15  ;;  %v836_v15 = vsel %vm209_vm0, %v6816_v56, %v835_v17  ;;  %v2754_v61 = vperm.slane %v2746_v18, %v6147_v8  ;;  %v2742_v17 = vperm.slane %v2734_v1, %v6147_v8  ;;  %v2789_v18 = vrot.slane %v6574_v6, 4 }
 0x31d   : > { %10150 = vst [vmem:[#allocation34_spill] sm:$0xff] %v6971_v40  ;;  %v1665_v40 = vrot.slane %v6512_v32, 4  ;;  %v6994_v39 = vperm.slane %v836_v15, %v6147_v8  ;;  %v7002_v38 = vperm.slane %v2551_v26, %v6154_v22  ;;  %v2801_v1 = vrot.slane %v6724_v20, 4 }
 0x31e   : > { %v2767_v7 = vrot.slane %v2754_v61, 4  ;;  %v822_v15 = vsel %vm209_vm0, %v821_v27, %v6515_v4  ;;  %v859_v41 = vrot.slane %v6983_v59, 4  ;;  %v1950_v26 = vrot.slane %v6836_v54, 4 }
 0x31f   : > { %10151 = vst [vmem:[#allocation35_spill] sm:$0xff] %v7002_v38  ;;  %v916_v4 = vsel %vm209_vm0, %v6988_v36, %v915_v30  ;;  %v877_v27 = vrot.slane %v6744_v62, 4  ;;  %v2769_v25 = vrot.slane %v2742_v17, 4  ;;  %v1160_v30 = vsel %vm209_vm0, %v6795_v33, %v1159_v37 }
 0x320   : > { %2322 = vrot.lane.b32.xlu0 %v2286_v48, %s6057_s8  ;;  %2294 = vrot.lane.b32.xlu2 %v2230_v43, %s6057_s8  ;;  %v7005_v2 = vsel %vm209_vm0, %v2767_v7, %v2742_v17  ;;  %v2790_v48 = vsel %vm209_vm0, %v6765_v9, %v2789_v18  ;;  %v833_v43 = vrot.slane %v6816_v56, 4  ;;  %v1676_v18 = vsel %vm209_vm0, %v1675_v14, %v6668_v35 }
 0x321   : > { %10152 = vst [vmem:[#allocation36_spill] sm:$0xff] %v7005_v2  ;;  %2617 = vrot.lane.b32.xlu1 %v7002_v38, %s6054_s5  ;;  %v860_v56 = vsel %vm209_vm0, %v6994_v39, %v859_v41  ;;  %v7033_v38 = vperm.slane %v822_v15, %v6147_v8  ;;  %v2802_v62 = vsel %vm209_vm0, %v6877_v60, %v2801_v1  ;;  %v1663_v14 = vrot.slane %v6778_v63, 4 }
 0x322   : > { %v7019_v7 = vpop.permute.xlu0 %1549  ;;  %v7021_v2 = vpop.permute.xlu2 %2342  ;;  %v7043_v17 = vperm.slane %v2790_v48, %v6147_v8  ;;  %v2770_v41 = vsel %vm209_vm0, %v2754_v61, %v2769_v25  ;;  %v7053_v15 = vperm.slane %v1676_v18, %v6147_v8  ;;  %v1951_v37 = vsel %vm209_vm0, %v1950_v26, %v6699_v47 }
 0x323   : > { %10153 = vst [vmem:[#allocation37_spill] sm:$0xff] %v7019_v7  ;;  %v7028_v20 = vpop.permute.xlu1 %744  ;;  %v7036_v7 = vperm.slane %v1148_v53, %v6147_v8  ;;  %v834_v53 = vsel %vm209_vm0, %v833_v43, %v6663_v31  ;;  %v7058_v1 = vperm.slane %v860_v56, %v6154_v22  ;;  %v878_v48 = vsel %vm209_vm0, %v877_v27, %v6481_v44 }
 0x324   : > { %10154 = vst [vmem:[#allocation38_spill] sm:$0xff] %v7021_v2  ;;  %v7047_v2 = vperm.slane %v916_v4, %v6154_v22  ;;  %v7063_v4 = vperm.slane %v1160_v30, %v6147_v8  ;;  %v7066_v61 = vperm.slane %v2802_v62, %v6147_v8  ;;  %v2524_v31 = vrot.slane %v6871_v34, 4 }
 0x325   : > { %10155 = vst [vmem:[#allocation39_spill] sm:$0xff] %v7028_v20  ;;  %v1183_v43 = vrot.slane %v7036_v7, 4  ;;  %v889_v25 = vrot.slane %v6780_v29, 4  ;;  %v1938_v26 = vrot.slane %v6793_v24, 4  ;;  %v7077_v44 = vperm.slane %v2770_v41, %v6154_v22 }
 0x326   : > { %10156 = vst [vmem:[#allocation40_spill] sm:$0xff] %v7033_v38  ;;  %v2825_v27 = vrot.slane %v7043_v17, 4  ;;  %v1664_v34 = vsel %vm209_vm0, %v1663_v14, %v6512_v32  ;;  %v7083_v18 = vperm.slane %v834_v53, %v6147_v8  ;;  %v7086_v29 = vperm.slane %v1951_v37, %v6147_v8 }
 0x327   : > { %10157 = vst [vmem:[#allocation41_spill] sm:$0xff] %v7077_v44  ;;  %v847_v56 = vrot.slane %v7033_v38, 4  ;;  %v7090_v30 = vperm.slane %v878_v48, %v6147_v8  ;;  %v1666_v62 = vsel %vm209_vm0, %v6778_v63, %v1665_v40  ;;  %v1687_v41 = vrot.slane %v7053_v15, 4 }
 0x328   : > { %954 = vrot.lane.b32.xlu2 %v7058_v1, %s6054_s5  ;;  %982 = vrot.lane.b32.xlu0 %v7047_v2, %s6054_s5  ;;  %10158 = vst [vmem:[#allocation42_spill] sm:$0xff] %v7083_v18  ;;  %v1145_v53 = vrot.slane %v6763_v3, 4  ;;  %v2525_v37 = vsel %vm209_vm0, %v2524_v31, %v6728_v13  ;;  %v2826_v48 = vsel %vm209_vm0, %v7066_v61, %v2825_v27  ;;  %v10160_v20 = vrot.slane %v6668_v35, 4 }
 0x329   : > { %10159 = vst [vmem:[#allocation43_spill] sm:$0xff] %v7090_v30  ;;  %2864 = vrot.lane.b32.xlu1 %v7077_v44, %s6054_s5  ;;  %v1184_v63 = vsel %vm209_vm0, %v7063_v4, %v1183_v43  ;;  %v7111_v40 = vperm.slane %v1664_v34, %v6147_v8  ;;  %v890_v44 = vsel %vm209_vm0, %v889_v25, %v6605_v57  ;;  %v2512_v27 = vrot.slane %v6812_v21, 4 }
 0x32a   : > { %v7097_v32 = vpop.permute.xlu0 %716  ;;  %v7099_v14 = vpop.permute.xlu2 %724  ;;  %v1939_v3 = vsel %vm209_vm0, %v1938_v26, %v6542_v11  ;;  %v1678_v13 = vsel %vm209_vm0, %v6814_v5, %v10160_v20  ;;  %v7122_v31 = vperm.slane %v1666_v62, %v6147_v8  ;;  %v1962_v43 = vrot.slane %v7086_v29, 4 }
 0x32b   : > { %v7104_v38 = vpop.permute.xlu1 %1505  ;;  %v848_v34 = vsel %vm209_vm0, %v7083_v18, %v847_v56  ;;  %v7129_v57 = vperm.slane %v2525_v37, %v6147_v8  ;;  %v7132_v25 = vperm.slane %v2826_v48, %v6154_v22  ;;  %v7135_v35 = vperm.slane %v1184_v63, %v6154_v22 }
 0x32c   : > { %v7139_v20 = vsel %vm209_vm0, %v1687_v41, %v7111_v40  ;;  %v7142_v21 = vperm.slane %v890_v44, %v6147_v8  ;;  %v7145_v5 = vperm.slane %v1939_v3, %v6147_v8  ;;  %v7148_v26 = vperm.slane %v1678_v13, %v6147_v8 }
 0x32d   : > { %10161 = vst [vmem:[#allocation44_spill] sm:$0xff] %v7139_v20  ;;  %v1940_v56 = vrot.slane %v6542_v11, 4  ;;  %v1157_v62 = vrot.slane %v6795_v33, 4  ;;  %v7157_v41 = vperm.slane %v848_v34, %v6154_v22  ;;  %v903_v44 = vrot.slane %v7090_v30, 4  ;;  %v10183_v30 = vld [vmem:[#allocation25_spill] sm:$0xff] }
 0x32e   : > { %v1701_v37 = vrot.slane %v7122_v31, 4  ;;  %v913_v48 = vrot.slane %v6988_v36, 4  ;;  %v2513_v11 = vsel %vm209_vm0, %v2512_v27, %v6568_v28  ;;  %v7166_v33 = vsel %vm209_vm0, %v1962_v43, %v7145_v5 }
 0x32f   : > { %10162 = vst [vmem:[#allocation45_spill] sm:$0xff] %v7166_v33  ;;  %v1952_v63 = vrot.slane %v6699_v47, 4  ;;  %v1146_v3 = vsel %vm209_vm0, %v1145_v53, %v6490_v49  ;;  %v1941_v13 = vsel %vm209_vm0, %v6793_v24, %v1940_v56  ;;  %v2536_v34 = vrot.slane %v7129_v57, 4 }
 0x330   : > { %2892 = vrot.lane.b32.xlu2 %v7132_v25, %s6054_s5  ;;  %1278 = vrot.lane.b32.xlu0 %v7135_v35, %s6054_s5  ;;  %v904_v47 = vsel %vm209_vm0, %v7142_v21, %v903_v44  ;;  %v1702_v49 = vsel %vm209_vm0, %v7148_v26, %v1701_v37  ;;  %v1158_v24 = vsel %vm209_vm0, %v1157_v62, %v6639_v12 }
 0x331   : > { %938 = vrot.lane.b32.xlu1 %v7157_v41, %s6056_s7  ;;  %v7189_v53 = vperm.slane %v2513_v11, %v6147_v8  ;;  %v1953_v43 = vsel %vm209_vm0, %v6836_v54, %v1952_v63  ;;  %v7194_v56 = vperm.slane %v1146_v3, %v6147_v8  ;;  %v7197_v33 = vperm.slane %v1941_v13, %v6147_v8 }
 0x332   : > { %v7176_v36 = vpop.permute.xlu0 %752  ;;  %v7178_v28 = vpop.permute.xlu2 %1533  ;;  %v914_v44 = vsel %vm209_vm0, %v913_v48, %v6974_v0  ;;  %v7202_v37 = vperm.slane %v904_v47, %v6154_v22  ;;  %v7205_v12 = vperm.slane %v1702_v49, %v6154_v22  ;;  %v7212_v54 = vperm.slane %v1158_v24, %v6147_v8 }
 0x333   : > { %v7180_v27 = vpop.permute.xlu1 %1541  ;;  %10163 = vst [vmem:[#allocation46_spill] sm:$0xff] %v7194_v56  ;;  %v7209_v62 = vsel %vm209_vm0, %v2536_v34, %v7189_v53  ;;  %v7215_v11 = vperm.slane %v1953_v43, %v6147_v8  ;;  %v2458_v63 = vrot.slane %v6548_v19, 4  ;;  %v7223_v0 = vperm.slane %v914_v44, %v6154_v22 }
 0x334   : > { %10164 = vst [vmem:[#allocation47_spill] sm:$0xff] %v7209_v62  ;;  %v1171_v48 = vrot.slane %v7194_v56, 4  ;;  %v1976_v3 = vrot.slane %v7197_v33, 4  ;;  %v1181_v13 = vrot.slane %v7063_v4, 4  ;;  %v2470_v34 = vrot.slane %v6693_v46, 4 }
 0x335   : > { %10165 = vst [vmem:[#allocation48_spill] sm:$0xff] %v7212_v54  ;;  %v2459_v47 = vsel %vm209_vm0, %v6746_v50, %v2458_v63 }
 0x336   : > { %v1172_v44 = vsel %vm209_vm0, %v7212_v54, %v1171_v48  ;;  %v1977_v4 = vsel %vm209_vm0, %v7215_v11, %v1976_v3  ;;  %v2471_v62 = vsel %vm209_vm0, %v6840_v23, %v2470_v34  ;;  %v2467_v63 = vperm.slane %v2459_v47, %v6147_v8 }
 0x337   : > { %v1182_v20 = vsel %vm209_vm0, %v1181_v13, %v7036_v7  ;;  %v7249_v18 = vperm.slane %v1172_v44, %v6154_v22  ;;  %v2479_v48 = vperm.slane %v2471_v62, %v6147_v8  ;;  %v1699_v13 = vrot.slane %v7148_v26, 4 }
 0x338   : > { %966 = vrot.lane.b32.xlu2 %v7202_v37, %s6056_s7  ;;  %1796 = vrot.lane.b32.xlu0 %v7205_v12, %s6054_s5  ;;  %v7261_v3 = vperm.slane %v1182_v20, %v6154_v22  ;;  %v2494_v7 = vrot.slane %v2467_v63, 4  ;;  %v1213_v54 = vrot.slane %v6834_v51, 4 }
 0x339   : > { %974 = vrot.lane.b32.xlu1 %v7223_v0, %s6055_s6  ;;  %v1700_v20 = vsel %vm209_vm0, %v1699_v13, %v7122_v31 }
 0x33a   : > { %v7233_v49 = vpop.permute.xlu0 %1513  ;;  %v7235_v24 = vpop.permute.xlu2 %2306  ;;  %v2495_v44 = vsel %vm209_vm0, %v2479_v48, %v2494_v7 }
 0x33b   : > { %10166 = vst [vmem:[#allocation49_spill] sm:$0xff] %v7235_v24  ;;  %v7237_v43 = vpop.permute.xlu1 %2326  ;;  %v7252_v24 = vperm.slane %v1977_v4, %v6154_v22  ;;  %v1201_v4 = vrot.slane %v6748_v52, 4  ;;  %v7282_v56 = vperm.slane %v2495_v44, %v6154_v22  ;;  %v1689_v52 = vrot.slane %v7111_v40, 4 }
 0x33c   : > { %10167 = vst [vmem:[#allocation50_spill] sm:$0xff] %v7237_v43  ;;  %v1237_v43 = vrot.slane %v6846_v45, 4 }
 0x33d   : > { %v1202_v31 = vsel %vm209_vm0, %v1201_v4, %v6540_v10  ;;  %v1690_v13 = vsel %vm209_vm0, %v7053_v15, %v1689_v52  ;;  %v10173_v4 = vld [vmem:[#allocation16_spill] sm:$0xff]  ;;  %v2006_v52 = vrot.slane %v6912_v58, 4 }
 0x33e   : > { %v1238_v47 = vsel %vm209_vm0, %v1237_v43, %v6831_v16  ;;  %v7291_v16 = vperm.slane %v1700_v20, %v6154_v22  ;;  %v1964_v43 = vrot.slane %v7145_v5, 4  ;;  %v7312_v44 = vperm.slane %v1202_v31, %v6147_v8 }
 0x33f   : > { %v7279_v26 = vperm.slane %v1238_v47, %v6154_v22  ;;  %v10171_v47 = vld [vmem:[#allocation10_spill] sm:$0xff]  ;;  %v1994_v5 = vrot.slane %v6782_v42, 4  ;;  %v2492_v31 = vrot.slane %v2479_v48, 4 }
 0x340   : > { %1262 = vrot.lane.b32.xlu2 %v7249_v18, %s6056_s7  ;;  %2071 = vrot.lane.b32.xlu0 %v7252_v24, %s6054_s5  ;;  %v1214_v10 = vsel %vm209_vm0, %v1213_v54, %v10171_v47  ;;  %10172 = vst [vmem:[#allocation10_spill] sm:$0xff] %v7312_v44  ;;  %v1965_v20 = vsel %vm209_vm0, %v7086_v29, %v1964_v43  ;;  %v10175_v54 = vld [vmem:[#allocation21_spill] sm:$0xff]  ;;  %v1227_v29 = vrot.slane %v7312_v44, 4  ;;  %v10177_v43 = vld [vmem:[#allocation8_spill] sm:$0xff] }
 0x341   : > { %1270 = vrot.lane.b32.xlu1 %v7261_v3, %s6055_s6  ;;  %v7334_v42 = vperm.slane %v1965_v20, %v6154_v22  ;;  %v10180_v44 = vld [vmem:[#allocation13_spill] sm:$0xff] }
 0x342   : > { %v7266_v34 = vpop.permute.xlu0 %2298  ;;  %v7268_v45 = vpop.permute.xlu2 %736 }
 0x343   : > { %10168 = vst [vmem:[#allocation51_spill] sm:$0xff] %v7266_v34  ;;  %v7270_v62 = vpop.permute.xlu1 %1553  ;;  %v857_v34 = vrot.slane %v6994_v39, 4 }
 0x344   : > { %10176 = vst [vmem:[#allocation21_spill] sm:$0xff] %v7334_v42 }
 0x345   : > { %v858_v40 = vsel %vm209_vm0, %v857_v34, %v6983_v59  ;;  %v7325_v59 = vperm.slane %v1214_v10, %v6147_v8  ;;  %v1731_v34 = vrot.slane %v10175_v54, 4  ;;  %v10179_v54 = vld [vmem:[#allocation12_spill] sm:$0xff] }
 0x346   : > { %v7322_v15 = vperm.slane %v858_v40, %v6154_v22  ;;  %v10178_v40 = vld [vmem:[#allocation9_spill] sm:$0xff] }
 0x347   : > { %10174 = vst [vmem:[#allocation16_spill] sm:$0xff] %v7325_v59  ;;  %v1995_v47 = vsel %vm209_vm0, %v1994_v5, %v10178_v40  ;;  %v1228_v20 = vsel %vm209_vm0, %v7325_v59, %v1227_v29  ;;  %v1732_v48 = vsel %vm209_vm0, %v1731_v34, %v10179_v54  ;;  %v2493_v40 = vsel %vm209_vm0, %v2492_v31, %v2467_v63 }
 0x348   : > { %1298 = vrot.lane.b32.xlu2 %v7279_v26, %s6055_s6  ;;  %2589 = vrot.lane.b32.xlu0 %v7282_v56, %s6054_s5  ;;  %v7367_v29 = vperm.slane %v1228_v20, %v6154_v22  ;;  %v7370_v34 = vperm.slane %v1732_v48, %v6147_v8  ;;  %v7380_v63 = vperm.slane %v2493_v40, %v6154_v22  ;;  %v2823_v31 = vrot.slane %v7066_v61, 4 }
 0x349   : > { %1788 = vrot.lane.b32.xlu1 %v7291_v16, %s6055_s6  ;;  %v2456_v61 = vrot.slane %v6746_v50, 4  ;;  %v2468_v59 = vrot.slane %v6840_v23, 4 }
 0x34a   : > { %v7298_v39 = vpop.permute.xlu0 %2334  ;;  %v7300_v51 = vpop.permute.xlu2 %2318 }
 0x34b   : > { %10169 = vst [vmem:[#allocation52_spill] sm:$0xff] %v7298_v39  ;;  %v7303_v7 = vpop.permute.xlu1 %720  ;;  %v7319_v39 = vperm.slane %v1690_v13, %v6154_v22  ;;  %v2457_v50 = vsel %vm209_vm0, %v2456_v61, %v6548_v19  ;;  %v931_v19 = vrot.slane %v7047_v2, 4 }
 0x34c   : > { %10170 = vst [vmem:[#allocation53_spill] sm:$0xff] %v7300_v51  ;;  %v1719_v51 = vrot.slane %v10173_v4, 4 }
 0x34e   : > { %v1720_v13 = vsel %vm209_vm0, %v1719_v51, %v10177_v43  ;;  %v2007_v51 = vsel %vm209_vm0, %v2006_v52, %v10180_v44  ;;  %v7359_v43 = vperm.slane %v1995_v47, %v6147_v8 }
 0x34f   : > { %v7356_v5 = vperm.slane %v1720_v13, %v6147_v8  ;;  %v7373_v44 = vperm.slane %v2007_v51, %v6147_v8  ;;  %v2824_v51 = vsel %vm209_vm0, %v2823_v31, %v7043_v17  ;;  %v2469_v31 = vsel %vm209_vm0, %v2468_v59, %v6693_v46 }
 0x350   : > { %1780 = vrot.lane.b32.xlu2 %v7319_v39, %s6056_s7  ;;  %946 = vrot.lane.b32.xlu0 %v7322_v15, %s6055_s6  ;;  %10182 = vst [vmem:[#allocation9_spill] sm:$0xff] %v7359_v43  ;;  %v2020_v52 = vrot.slane %v7359_v43, 4  ;;  %v7413_v17 = vperm.slane %v2824_v51, %v6154_v22  ;;  %v7436_v51 = vperm.slane %v6948_v55, %v6154_v22  ;;  %v932_v55 = vsel %vm209_vm0, 0.0, %v931_v19 }
 0x351   : > { %2055 = vrot.lane.b32.xlu1 %v7334_v42, %s6056_s7  ;;  %10181 = vst [vmem:[#allocation8_spill] sm:$0xff] %v7356_v5  ;;  %v7364_v42 = vperm.slane %v10183_v30, %v6154_v22  ;;  %v1745_v30 = vrot.slane %v7356_v5, 4  ;;  %v1974_v5 = vrot.slane %v7215_v11, 4 }
 0x352   : > { %v7343_v58 = vpop.permute.xlu0 %764  ;;  %v7345_v10 = vpop.permute.xlu2 %748  ;;  %10184 = vst [vmem:[#allocation12_spill] sm:$0xff] %v7373_v44  ;;  %v2021_v54 = vsel %vm209_vm0, %v7373_v44, %v2020_v52 }
 0x353   : > { %v7347_v4 = vpop.permute.xlu1 %756  ;;  %v1746_v48 = vsel %vm209_vm0, %v7370_v34, %v1745_v30  ;;  %v7401_v40 = vperm.slane %v2021_v54, %v6154_v22  ;;  %v1975_v52 = vsel %vm209_vm0, %v1974_v5, %v7197_v33  ;;  %v7430_v54 = vperm.slane %v2457_v50, %v6147_v8 }
 0x354   : > { %v7404_v43 = vperm.slane %v1746_v48, %v6154_v22  ;;  %v2787_v48 = vrot.slane %v6765_v9, 4  ;;  %v7439_v61 = vperm.slane %v1975_v52, %v6154_v22  ;;  %v2799_v33 = vrot.slane %v6877_v60, 4 }
 0x355   : > { %v2482_v46 = vrot.slane %v7430_v54, 4  ;;  %v2538_v9 = vrot.slane %v7189_v53, 4 }
 0x356   : > { %v2788_v2 = vsel %vm209_vm0, %v2787_v48, %v6574_v6  ;;  %v1199_v6 = vrot.slane %v7135_v35, 4  ;;  %v10191_v48 = vld [vmem:[#allocation17_spill] sm:$0xff] }
 0x357   : > { %v2539_v52 = vsel %vm209_vm0, %v7129_v57, %v2538_v9  ;;  %v7466_v19 = vperm.slane %v2788_v2, %v6147_v8  ;;  %v10192_v57 = vld [vmem:[#allocation32_spill] sm:$0xff]  ;;  %v10193_v2 = vld [vmem:[#allocation11_spill] sm:$0xff] }
 0x358   : > { %1816 = vrot.lane.b32.xlu2 %v7364_v42, %s6055_s6  ;;  %1290 = vrot.lane.b32.xlu0 %v7367_v29, %s6056_s7  ;;  %v2743_v9 = vrot.slane %v10192_v57, 4 }
 0x359   : > { %2581 = vrot.lane.b32.xlu1 %v7380_v63, %s6055_s6  ;;  %v2813_v35 = vrot.slane %v7466_v19, 4 }
 0x35a   : > { %v7387_v13 = vpop.permute.xlu0 %1525  ;;  %v7389_v47 = vpop.permute.xlu2 %1509 }
 0x35b   : > { %v7391_v20 = vpop.permute.xlu1 %1517 }
 0x360   : > { %2083 = vrot.lane.b32.xlu2 %v7401_v40, %s6056_s7  ;;  %1808 = vrot.lane.b32.xlu0 %v7404_v43, %s6056_s7 }
 0x361   : > { %2884 = vrot.lane.b32.xlu1 %v7413_v17, %s6055_s6 }
 0x362   : > { %v7419_v30 = vpop.permute.xlu0 %2346  ;;  %v7421_v11 = vpop.permute.xlu2 %1545 }
 0x363   : > { %10185 = vst [vmem:[#allocation13_spill] sm:$0xff] %v7419_v30  ;;  %v7423_v23 = vpop.permute.xlu1 %2302 }
 0x364   : > { %10186 = vst [vmem:[#allocation25_spill] sm:$0xff] %v7423_v23  ;;  %v7442_v23 = vperm.slane %v2469_v31, %v6147_v8  ;;  %v10189_v31 = vld [vmem:[#allocation15_spill] sm:$0xff] }
 0x365   : > { %v2800_v53 = vsel %vm209_vm0, %v2799_v33, %v10189_v31  ;;  %10190 = vst [vmem:[#allocation15_spill] sm:$0xff] %v7466_v19  ;;  %v1200_v33 = vsel %vm209_vm0, 0.0, %v1199_v6  ;;  %v10195_v19 = vld [vmem:[#allocation14_spill] sm:$0xff] }
 0x366   : > { %v2483_v50 = vsel %vm209_vm0, %v7442_v23, %v2482_v46  ;;  %v7477_v46 = vperm.slane %v2800_v53, %v6147_v8  ;;  %v2744_v6 = vsel %vm209_vm0, %v2743_v9, %v10195_v19 }
 0x367   : > { %v7471_v30 = vperm.slane %v2483_v50, %v6154_v22  ;;  %v7513_v19 = vperm.slane %v2744_v6, %v6147_v8 }
 0x368   : > { %2091 = vrot.lane.b32.xlu0 %v7436_v51, %s6055_s6  ;;  %2063 = vrot.lane.b32.xlu2 %v7439_v61, %s6055_s6 }
 0x369   : > { %986 = vrot.lane.b32.xlu1 %v932_v55, %s6052_s30  ;;  %v2731_v55 = vrot.slane %v10191_v48, 4  ;;  %v10194_v48 = vld [vmem:[#allocation22_spill] sm:$0xff] }
 0x36a   : > { %v729_v59 = vpop.permute.xlu0 %728  ;;  %v7455_v5 = vpop.permute.xlu2 %2330 }
 0x36b   : > { %10187 = vst [vmem:[#allocation54_spill] sm:$0xff] %v7455_v5  ;;  %v7457_v60 = vpop.permute.xlu1 %2338  ;;  %v2732_v50 = vsel %vm209_vm0, %v2731_v55, %v10193_v2  ;;  %v2814_v5 = vsel %vm209_vm0, %v7477_v46, %v2813_v35  ;;  %v1717_v2 = vrot.slane %v7205_v12, 4 }
 0x36c   : > { %10188 = vst [vmem:[#allocation55_spill] sm:$0xff] %v7457_v60  ;;  %v7474_v60 = vperm.slane %v2539_v52, %v6154_v22  ;;  %v7498_v55 = vperm.slane %v2732_v50, %v6147_v8 }
 0x36d   : > { %v1718_v50 = vsel %vm209_vm0, 0.0, %v1717_v2  ;;  %v10200_v2 = vld [vmem:[#allocation30_spill] sm:$0xff] }
 0x370   : > { %2573 = vrot.lane.b32.xlu2 %v7471_v30, %s6056_s7  ;;  %2601 = vrot.lane.b32.xlu0 %v7474_v60, %s6056_s7 }
 0x371   : > { %1282 = vrot.lane.b32.xlu1 %v1200_v33, %s6052_s30 }
 0x372   : > { %v1538_v52 = vpop.permute.xlu0 %1537  ;;  %v713_v31 = vpop.permute.xlu2 %712 }
 0x373   : > { %v1530_v53 = vpop.permute.xlu1 %1529  ;;  %v768_v57 = vsel %vm767_vm8, %v10194_v48, %v713_v31  ;;  %v10196_v31 = vld [vmem:[#allocation31_spill] sm:$0xff]  ;;  %v7508_v48 = vperm.slane %v2814_v5, %v6154_v22 }
 0x374   : > { %v770_v44 = vsel %vm769_vm9, %v768_v57, %v7097_v32  ;;  %v7505_v35 = vperm.slane %v10196_v31, %v6154_v22 }
 0x375   : > { %v772_v33 = vsel %vm771_vm10, %v770_v44, %v7303_v7  ;;  %v10197_v7 = vld [vmem:[#allocation18_spill] sm:$0xff]  ;;  %v10198_v44 = vld [vmem:[#allocation28_spill] sm:$0xff] }
 0x376   : > { %v774_v32 = vsel %vm773_vm11, %v772_v33, %v7099_v14  ;;  %v1563_v12 = vsel %vm767_vm8, %v10197_v7, %v1530_v53  ;;  %v2757_v14 = vrot.slane %v7498_v55, 4  ;;  %v10201_v7 = vld [vmem:[#allocation36_spill] sm:$0xff] }
 0x377   : > { %v776_v9 = vsel %vm775_vm12, %v774_v32, %v729_v59  ;;  %v1564_v6 = vsel %vm769_vm9, %v1563_v12, %v7178_v28  ;;  %v2048_v32 = vrot.slane %v10200_v2, 4  ;;  %v10204_v2 = vld [vmem:[#allocation39_spill] sm:$0xff] }
 0x378   : > { %2609 = vrot.lane.b32.xlu2 %v7505_v35, %s6055_s6  ;;  %2876 = vrot.lane.b32.xlu0 %v7508_v48, %s6056_s7  ;;  %v778_v5 = vsel %vm10092_vm13, %v776_v9, %v10198_v44  ;;  %v2758_v33 = vsel %vm209_vm0, %v7513_v19, %v2757_v14  ;;  %v7547_v44 = vperm.slane %v10201_v7, %v6154_v22  ;;  %v10202_v14 = vld [vmem:[#allocation19_spill] sm:$0xff] }
 0x379   : > { %v780_v59 = vsel %vm10091_vm14, %v778_v5, %v7268_v45  ;;  %1800 = vrot.lane.b32.xlu1 %v1718_v50, %s6052_s30  ;;  %v1565_v45 = vsel %vm771_vm10, %v1564_v6, %v1538_v52  ;;  %v7543_v9 = vperm.slane %v2758_v33, %v6154_v22  ;;  %v2049_v28 = vsel %vm209_vm0, 0.0, %v2048_v32 }
 0x37a   : > { %v7529_v57 = vpop.permute.xlu0 %2310  ;;  %5840 = vmatpush.msk.msra.mxu2 %vm1009_vm15, %v780_v59  ;;  %v7532_v53 = vpop.permute.xlu2 %2294  ;;  %v1566_v12 = vsel %vm773_vm11, %v1565_v45, %v7180_v27  ;;  %v10203_v59 = vld [vmem:[#allocation20_spill] sm:$0xff]  ;;  %v875_v33 = vrot.slane %v7058_v1, 4  ;;  %v2510_v45 = vrot.slane %v7282_v56, 4 }
 0x37b   : > { %10199 = vst [vmem:[#allocation17_spill] sm:$0xff] %v7529_v57  ;;  %v7538_v31 = vpop.permute.xlu1 %1306  ;;  %v1255_v6 = vrot.slane %v10203_v59, 4  ;;  %v1567_v27 = vsel %vm775_vm12, %v1566_v12, %v7421_v11 }
 0x37c   : > { %v876_v1 = vsel %vm209_vm0, 0.0, %v875_v33  ;;  %v2511_v11 = vsel %vm209_vm0, 0.0, %v2510_v45  ;;  %v10208_v33 = vld [vmem:[#allocation23_spill] sm:$0xff] }
 0x380   : > { %2848 = vrot.lane.b32.xlu2 %v7543_v9, %s6056_s7  ;;  %2856 = vrot.lane.b32.xlu0 %v7547_v44, %s6055_s6 }
 0x381   : > { %2103 = vrot.lane.b32.xlu1 %v2049_v28, %s6052_s30 }
 0x382   : > { %v741_v52 = vpop.permute.xlu0 %740  ;;  %v7557_v5 = vpop.permute.xlu2 %954 }
 0x383   : > { %v781_v50 = vsel %vm767_vm8, %v10202_v14, %v741_v52  ;;  %v7565_v8 = vpop.permute.xlu1 %1824  ;;  %v1256_v52 = vsel %vm209_vm0, 0.0, %v1255_v6 }
 0x384   : > { %v782_v7 = vsel %vm769_vm9, %v781_v50, %v10204_v2  ;;  %v10205_v50 = vld [vmem:[#allocation37_spill] sm:$0xff] }
 0x385   : > { %v783_v32 = vsel %vm771_vm10, %v782_v7, %v7345_v10  ;;  %v1568_v59 = vsel %vm10092_vm13, %v1567_v27, %v10205_v50  ;;  %v10206_v10 = vld [vmem:[#allocation26_spill] sm:$0xff]  ;;  %v10209_v7 = vld [vmem:[#allocation24_spill] sm:$0xff] }
 0x386   : > { %v784_v28 = vsel %vm773_vm11, %v783_v32, %v7176_v36  ;;  %v1569_v6 = vsel %vm10091_vm14, %v1568_v59, %v7270_v62  ;;  %v1773_v27 = vrot.slane %v10209_v7, 4  ;;  %v1992_v32 = vrot.slane %v7252_v24, 4 }
 0x387   : > { %v785_v14 = vsel %vm775_vm12, %v784_v28, %v7347_v4 }
 0x388   : > { %1310 = vrot.lane.b32.xlu2 %v1256_v52, %s6052_s30  ;;  %958 = vrot.lane.b32.xlu0 %v876_v1, %s6052_s30  ;;  %v786_v56 = vsel %vm10092_vm13, %v785_v14, %v10206_v10  ;;  %v2841_v52 = vrot.slane %v7132_v25, 4  ;;  %v1774_v1 = vsel %vm209_vm0, 0.0, %v1773_v27  ;;  %v1993_v14 = vsel %vm209_vm0, 0.0, %v1992_v32 }
 0x389   : > { %v787_v36 = vsel %vm10091_vm14, %v786_v56, %v7343_v58  ;;  %2593 = vrot.lane.b32.xlu1 %v2511_v11, %s6052_s30  ;;  %v10213_v56 = vld [vmem:[#allocation41_spill] sm:$0xff]  ;;  %v871_v27 = vrot.slane %v7157_v41, 4 }
 0x38a   : > { %v1502_v12 = vpop.permute.xlu0 %1501  ;;  %5842 = vmatpush.msk.msra.mxu3 %vm1009_vm15, %v787_v36  ;;  %v7589_v4 = vpop.permute.xlu2 %2892  ;;  %v2785_v11 = vrot.slane %v10213_v56, 4 }
 0x38b   : > { %10207 = vst [vmem:[#allocation32_spill] sm:$0xff] %v7589_v4  ;;  %v1556_v2 = vsel %vm767_vm8, %v10208_v33, %v1502_v12  ;;  %v7600_v45 = vpop.permute.xlu1 %2099  ;;  %v873_v12 = vrot.slane %v7322_v15, 4  ;;  %v927_v15 = vrot.slane %v7202_v37, 4  ;;  %v929_v37 = vrot.slane %v7223_v0, 4 }
 0x38c   : > { %5852 = vmatpush.msk.msrb.mxu3 %vm1009_vm15, %v1569_v6  ;;  %v1557_v58 = vsel %vm769_vm9, %v1556_v2, %v7104_v38  ;;  %10210 = vst [vmem:[#allocation11_spill] sm:$0xff] %v7600_v45  ;;  %v10211_v38 = vld [vmem:[#allocation33_spill] sm:$0xff] }
 0x38d   : > { %v1558_v28 = vsel %vm771_vm10, %v1557_v58, %v7389_v47  ;;  %v2842_v47 = vsel %vm209_vm0, 0.0, %v2841_v52  ;;  %v874_v33 = vsel %vm209_vm0, 0.0, %v873_v12  ;;  %v1251_v58 = vrot.slane %v7367_v29, 4 }
 0x38e   : > { %v1559_v62 = vsel %vm773_vm11, %v1558_v28, %v7233_v49  ;;  %v872_v28 = vsel %vm209_vm0, 0.0, %v871_v27  ;;  %v928_v52 = vsel %vm209_vm0, 0.0, %v927_v15  ;;  %v1195_v29 = vrot.slane %v7249_v18, 4 }
 0x38f   : > { %v1560_v24 = vsel %vm775_vm12, %v1559_v62, %v7391_v20  ;;  %v10212_v20 = vld [vmem:[#allocation35_spill] sm:$0xff]  ;;  %v1252_v62 = vsel %vm209_vm0, 0.0, %v1251_v58  ;;  %v1197_v18 = vrot.slane %v7261_v3, 4 }
 0x390   : > { %1828 = vrot.lane.b32.xlu2 %v1774_v1, %s6052_s30  ;;  %2075 = vrot.lane.b32.xlu0 %v1993_v14, %s6052_s30  ;;  %v1561_v50 = vsel %vm10092_vm13, %v1560_v24, %v10211_v38  ;;  %v2566_v10 = vrot.slane %v10212_v20, 4  ;;  %v1769_v24 = vrot.slane %v7404_v43, 4  ;;  %v930_v38 = vsel %vm209_vm0, 0.0, %v929_v37 }
 0x391   : > { %v1562_v25 = vsel %vm10091_vm14, %v1561_v50, %v7387_v13  ;;  %2896 = vrot.lane.b32.xlu1 %v2842_v47, %s6052_s30  ;;  %v2786_v13 = vsel %vm209_vm0, 0.0, %v2785_v11  ;;  %v1196_v50 = vsel %vm209_vm0, 0.0, %v1195_v29  ;;  %v1253_v43 = vrot.slane %v7279_v26, 4 }
 0x392   : > { %v7619_v49 = vpop.permute.xlu0 %2322  ;;  %5850 = vmatpush.msk.msrb.mxu2 %vm1009_vm15, %v1562_v25  ;;  %v7622_v59 = vpop.permute.xlu2 %966  ;;  %v2567_v6 = vsel %vm209_vm0, 0.0, %v2566_v10  ;;  %v1770_v47 = vsel %vm209_vm0, 0.0, %v1769_v24  ;;  %v2044_v10 = vrot.slane %v7401_v40, 4  ;;  %v1198_v56 = vsel %vm209_vm0, 0.0, %v1197_v18 }
 0x393   : > { %v7626_v36 = vpop.permute.xlu1 %2617  ;;  %v1254_v11 = vsel %vm209_vm0, 0.0, %v1253_v43  ;;  %v1715_v26 = vrot.slane %v7291_v16, 4  ;;  %v1713_v40 = vrot.slane %v7319_v39, 4  ;;  %v2046_v39 = vrot.slane %v7436_v51, 4 }
 0x394   : > { %10214 = vst [vmem:[#allocation22_spill] sm:$0xff] %v7626_v36  ;;  %v2045_v12 = vsel %vm209_vm0, 0.0, %v2044_v10  ;;  %v2781_v43 = vrot.slane %v7543_v9, 4  ;;  %v10220_v10 = vld [vmem:[#allocation43_spill] sm:$0xff] }
 0x395   : > { %v1716_v27 = vsel %vm209_vm0, 0.0, %v1715_v26  ;;  %v1714_v15 = vsel %vm209_vm0, 0.0, %v1713_v40  ;;  %v2047_v37 = vsel %vm209_vm0, 0.0, %v2046_v39  ;;  %v10221_v26 = vld [vmem:[#allocation48_spill] sm:$0xff] }
 0x396   : > { %v1169_v40 = vrot.slane %v10221_v26, 4 }
 0x398   : > { %2621 = vrot.lane.b32.xlu2 %v2567_v6, %s6052_s30  ;;  %2868 = vrot.lane.b32.xlu0 %v2786_v13, %s6052_s30 }
 0x399   : > { %950 = vrot.lane.b32.xlu1 %v874_v33, %s6051_s29  ;;  %v1990_v33 = vrot.slane %v7439_v61, 4  ;;  %v1771_v61 = vrot.slane %v7364_v42, 4 }
 0x39a   : > { %v7635_v2 = vpop.permute.xlu0 %982  ;;  %v7637_v7 = vpop.permute.xlu2 %1262 }
 0x39b   : > { %v7641_v32 = vpop.permute.xlu1 %2864  ;;  %v1991_v58 = vsel %vm209_vm0, 0.0, %v1990_v33  ;;  %v1772_v29 = vsel %vm209_vm0, 0.0, %v1771_v61  ;;  %v10222_v61 = vld [vmem:[#allocation46_spill] sm:$0xff] }
 0x39c   : > { %10215 = vst [vmem:[#allocation14_spill] sm:$0xff] %v7641_v32  ;;  %v2755_v32 = vrot.slane %v7513_v19, 4 }
 0x3a0   : > { %942 = vrot.lane.b32.xlu2 %v872_v28, %s6053_s4  ;;  %970 = vrot.lane.b32.xlu0 %v928_v52, %s6053_s4 }
 0x3a1   : > { %1294 = vrot.lane.b32.xlu1 %v1252_v62, %s6053_s4  ;;  %v2562_v62 = vrot.slane %v7474_v60, 4  ;;  %v2508_v60 = vrot.slane %v7380_v63, 4 }
 0x3a2   : > { %v7650_v1 = vpop.permute.xlu0 %1278  ;;  %v7652_v41 = vpop.permute.xlu2 %1298 }
 0x3a3   : > { %v7656_v14 = vpop.permute.xlu1 %938  ;;  %v2563_v24 = vsel %vm209_vm0, 0.0, %v2562_v62  ;;  %v1170_v62 = vsel %vm209_vm0, %v1169_v40, %v10222_v61 }
 0x3a8   : > { %978 = vrot.lane.b32.xlu2 %v930_v38, %s6051_s29  ;;  %1266 = vrot.lane.b32.xlu0 %v1196_v50, %s6053_s4  ;;  %v901_v38 = vrot.slane %v7142_v21, 4  ;;  %v10219_v50 = vld [vmem:[#allocation21_spill] sm:$0xff] }
 0x3a9   : > { %1812 = vrot.lane.b32.xlu1 %v1770_v47, %s6053_s4  ;;  %v1988_v47 = vrot.slane %v10219_v50, 4 }
 0x3aa   : > { %v7665_v25 = vpop.permute.xlu0 %1796  ;;  %v7667_v0 = vpop.permute.xlu2 %1780 }
 0x3ab   : > { %10216 = vst [vmem:[#allocation31_spill] sm:$0xff] %v7665_v25  ;;  %v7671_v20 = vpop.permute.xlu1 %974  ;;  %v1989_v21 = vsel %vm209_vm0, 0.0, %v1988_v47  ;;  %v2783_v47 = vrot.slane %v7547_v44, 4  ;;  %v1743_v44 = vrot.slane %v7370_v34, 4  ;;  %v10257_v25 = vld [vmem:[#allocation50_spill] sm:$0xff] }
 0x3b0   : > { %1274 = vrot.lane.b32.xlu2 %v1198_v56, %s6051_s29  ;;  %1302 = vrot.lane.b32.xlu0 %v1254_v11, %s6051_s29  ;;  %v902_v56 = vsel %vm209_vm0, %v901_v38, %v10220_v10  ;;  %v2509_v11 = vsel %vm209_vm0, 0.0, %v2508_v60 }
 0x3b1   : > { %2087 = vrot.lane.b32.xlu1 %v2045_v12, %s6053_s4  ;;  %v2782_v12 = vsel %vm209_vm0, 0.0, %v2781_v43  ;;  %v7728_v63 = vperm.slane %v902_v56, %v6154_v22  ;;  %v2564_v43 = vrot.slane %v7505_v35, 4  ;;  %v10226_v56 = vld [vmem:[#allocation10_spill] sm:$0xff] }
 0x3b2   : > { %v7680_v6 = vpop.permute.xlu0 %2071  ;;  %v7682_v3 = vpop.permute.xlu2 %1816 }
 0x3b3   : > { %v7686_v13 = vpop.permute.xlu1 %1270  ;;  %v925_v39 = vrot.slane %v7728_v63, 4  ;;  %v2565_v26 = vsel %vm209_vm0, 0.0, %v2564_v43  ;;  %v10232_v43 = vld [vmem:[#allocation40_spill] sm:$0xff] }
 0x3b8   : > { %1792 = vrot.lane.b32.xlu2 %v1716_v27, %s6051_s29  ;;  %1784 = vrot.lane.b32.xlu0 %v1714_v15, %s6053_s4  ;;  %v2837_v27 = vrot.slane %v7508_v48, 4  ;;  %v2506_v15 = vrot.slane %v7471_v30, 4  ;;  %v926_v48 = vsel %vm209_vm0, 0.0, %v925_v39  ;;  %v7750_v30 = vperm.slane %v1170_v62, %v6154_v22  ;;  %v10228_v39 = vld [vmem:[#allocation44_spill] sm:$0xff] }
 0x3b9   : > { %2067 = vrot.lane.b32.xlu1 %v1991_v58, %s6051_s29  ;;  %v7776_v61 = vperm.slane %v10228_v39, %v6154_v22  ;;  %v2480_v62 = vrot.slane %v7442_v23, 4 }
 0x3ba   : > { %v7695_v28 = vpop.permute.xlu0 %2589  ;;  %v7697_v16 = vpop.permute.xlu2 %2083 }
 0x3bb   : > { %10217 = vst [vmem:[#allocation18_spill] sm:$0xff] %v7695_v28  ;;  %v7701_v52 = vpop.permute.xlu1 %1788  ;;  %v1711_v23 = vrot.slane %v7776_v61, 4 }
 0x3bc   : > { %10218 = vst [vmem:[#allocation28_spill] sm:$0xff] %v7697_v16  ;;  %v788_v16 = vld [vmem:[%s10045_s1] sm:$0xf] }
 0x3bd   : > { %5841 = vmatmul.msk.f32.vlgmr.msra.gmra.mxu2 %vm10090_vm2, %v788_v16  ;;  %5843 = vmatmul.msk.f32.vlgmr.msra.gmra.mxu3 %vm10090_vm2, %v788_v16 }
 0x3c0   : > { %2095 = vrot.lane.b32.xlu2 %v2047_v37, %s6051_s29  ;;  %1820 = vrot.lane.b32.xlu0 %v1772_v29, %s6051_s29  ;;  %v2838_v37 = vsel %vm209_vm0, 0.0, %v2837_v27  ;;  %v2507_v29 = vsel %vm209_vm0, 0.0, %v2506_v15  ;;  %v10227_v27 = vld [vmem:[#allocation42_spill] sm:$0xff] }
 0x3c1   : > { %2605 = vrot.lane.b32.xlu1 %v2563_v24, %s6053_s4  ;;  %v10223_v24 = vld [vmem:[#allocation16_spill] sm:$0xff]  ;;  %v845_v15 = vrot.slane %v10227_v27, 4 }
 0x3c2   : > { %v7711_v51 = vpop.permute.xlu0 %946  ;;  %v7713_v42 = vpop.permute.xlu2 %2063  ;;  %v1225_v38 = vrot.slane %v10223_v24, 4  ;;  %v2839_v24 = vrot.slane %v7413_v17, 4  ;;  %v10233_v27 = vld [vmem:[#allocation12_spill] sm:$0xff] }
 0x3c3   : > { %v7717_v18 = vpop.permute.xlu1 %2055 }
 0x3c8   : > { %2585 = vrot.lane.b32.xlu2 %v2509_v11, %s6051_s29  ;;  %2059 = vrot.lane.b32.xlu0 %v1989_v21, %s6053_s4  ;;  %v1226_v11 = vsel %vm209_vm0, %v1225_v38, %v10226_v56  ;;  %v1193_v21 = vrot.slane %v7750_v30, 4  ;;  %v846_v56 = vsel %vm209_vm0, %v845_v15, %v10232_v43  ;;  %v1712_v15 = vsel %vm209_vm0, 0.0, %v1711_v23  ;;  %v10236_v23 = vld [vmem:[#allocation15_spill] sm:$0xff] }
 0x3c9   : > { %2852 = vrot.lane.b32.xlu1 %v2782_v12, %s6053_s4  ;;  %v2784_v12 = vsel %vm209_vm0, 0.0, %v2783_v47  ;;  %v7767_v40 = vperm.slane %v1226_v11, %v6154_v22  ;;  %v2481_v11 = vsel %vm209_vm0, %v2480_v62, %v7430_v54  ;;  %v7801_v17 = vperm.slane %v846_v56, %v6154_v22 }
 0x3ca   : > { %v7732_v9 = vpop.permute.xlu0 %1290  ;;  %v7734_v33 = vpop.permute.xlu2 %2573  ;;  %v1194_v35 = vsel %vm209_vm0, 0.0, %v1193_v21  ;;  %v7808_v54 = vperm.slane %v2481_v11, %v6154_v22 }
 0x3cb   : > { %v7738_v58 = vpop.permute.xlu1 %2581  ;;  %v1249_v34 = vrot.slane %v7767_v40, 4 }
 0x3cc   : > { %v2504_v56 = vrot.slane %v7808_v54, 4 }
 0x3cd   : > { %v1250_v21 = vsel %vm209_vm0, 0.0, %v1249_v34 }
 0x3d0   : > { %2880 = vrot.lane.b32.xlu2 %v2838_v37, %s6053_s4  ;;  %2577 = vrot.lane.b32.xlu0 %v2507_v29, %s6053_s4 }
 0x3d1   : > { %962 = vrot.lane.b32.xlu1 %v926_v48, %s6057_s8  ;;  %v10231_v48 = vld [vmem:[#allocation8_spill] sm:$0xff] }
 0x3d2   : > { %v7753_v60 = vpop.permute.xlu0 %1808  ;;  %v7755_v50 = vpop.permute.xlu2 %2609  ;;  %v1744_v47 = vsel %vm209_vm0, %v1743_v44, %v10231_v48  ;;  %v2018_v44 = vrot.slane %v10233_v27, 4 }
 0x3d3   : > { %10224 = vst [vmem:[#allocation30_spill] sm:$0xff] %v7755_v50  ;;  %v7759_v10 = vpop.permute.xlu1 %2884 }
 0x3d4   : > { %10225 = vst [vmem:[#allocation36_spill] sm:$0xff] %v7759_v10 }
 0x3d8   : > { %2860 = vrot.lane.b32.xlu2 %v2784_v12, %s6051_s29  ;;  %2613 = vrot.lane.b32.xlu0 %v2565_v26, %s6051_s29  ;;  %v2840_v12 = vsel %vm209_vm0, 0.0, %v2839_v24  ;;  %v7798_v26 = vperm.slane %v1744_v47, %v6154_v22  ;;  %v869_v24 = vrot.slane %v7801_v17, 4  ;;  %v10235_v47 = vld [vmem:[#allocation9_spill] sm:$0xff] }
 0x3d9   : > { %1258 = vrot.lane.b32.xlu1 %v1194_v35, %s6057_s8  ;;  %v2811_v35 = vrot.slane %v7477_v46, 4  ;;  %v2019_v43 = vsel %vm209_vm0, %v2018_v44, %v10235_v47  ;;  %v2505_v44 = vsel %vm209_vm0, 0.0, %v2504_v56 }
 0x3da   : > { %v7780_v37 = vpop.permute.xlu0 %2091  ;;  %v7782_v29 = vpop.permute.xlu2 %2848  ;;  %v1767_v34 = vrot.slane %v7798_v26, 4 }
 0x3db   : > { %10229 = vst [vmem:[#allocation19_spill] sm:$0xff] %v7780_v37  ;;  %v7786_v38 = vpop.permute.xlu1 %986  ;;  %v2812_v46 = vsel %vm209_vm0, %v2811_v35, %v10236_v23  ;;  %v2756_v23 = vsel %vm209_vm0, %v2755_v32, %v7498_v55 }
 0x3dc   : > { %10230 = vst [vmem:[#allocation20_spill] sm:$0xff] %v7782_v29  ;;  %v1768_v11 = vsel %vm209_vm0, 0.0, %v1767_v34  ;;  %v7839_v35 = vperm.slane %v2812_v46, %v6154_v22 }
 0x3de   : > { %10239 = vst [vmem:[#allocation26_spill] sm:$0xff] %v7839_v35  ;;  %v2835_v56 = vrot.slane %v7839_v35, 4 }
 0x3e0   : > { %1286 = vrot.lane.b32.xlu2 %v1250_v21, %s6057_s8  ;;  %2888 = vrot.lane.b32.xlu0 %v2840_v12, %s6051_s29  ;;  %v870_v21 = vsel %vm209_vm0, 0.0, %v869_v24  ;;  %v10237_v12 = vld [vmem:[#allocation45_spill] sm:$0xff]  ;;  %v2836_v29 = vsel %vm209_vm0, 0.0, %v2835_v56 }
 0x3e1   : > { %1776 = vrot.lane.b32.xlu1 %v1712_v15, %s6057_s8  ;;  %v7829_v27 = vperm.slane %v10237_v12, %v6154_v22  ;;  %v7832_v15 = vperm.slane %v2019_v43, %v6154_v22  ;;  %v10243_v12 = vld [vmem:[#allocation47_spill] sm:$0xff] }
 0x3e2   : > { %v7812_v39 = vpop.permute.xlu0 %2601  ;;  %v7814_v62 = vpop.permute.xlu2 %1310 }
 0x3e3   : > { %v7818_v48 = vpop.permute.xlu1 %1282  ;;  %10238 = vst [vmem:[#allocation37_spill] sm:$0xff] %v7832_v15  ;;  %v1986_v47 = vrot.slane %v7829_v27, 4  ;;  %v2042_v43 = vrot.slane %v7832_v15, 4  ;;  %v5849_v15 = vld [vmem:[%s10045_s1 + $0xc] sm:$0xf] }
 0x3e4   : > { %10234 = vst [vmem:[#allocation39_spill] sm:$0xff] %v7818_v48  ;;  %5853 = vmatmul.msk.f32.vlgmr.msrb.gmra.mxu3 %vm10090_vm2, %v5849_v15  ;;  %5851 = vmatmul.msk.f32.vlgmr.msrb.gmra.mxu2 %vm10090_vm2, %v5849_v15 }
 0x3e5   : > { %v1987_v46 = vsel %vm209_vm0, 0.0, %v1986_v47 }
 0x3e8   : > { %1804 = vrot.lane.b32.xlu2 %v1768_v11, %s6057_s8  ;;  %934 = vrot.lane.b32.xlu0 %v870_v21, %s6057_s8  ;;  %v2043_v11 = vsel %vm209_vm0, 0.0, %v2042_v43  ;;  %v7856_v21 = vperm.slane %v2756_v23, %v6154_v22 }
 0x3e9   : > { %2569 = vrot.lane.b32.xlu1 %v2505_v44, %s6057_s8  ;;  %v7860_v44 = vperm.slane %v10243_v12, %v6154_v22 }
 0x3ea   : > { %v7842_v34 = vpop.permute.xlu0 %2876  ;;  %v7844_v24 = vpop.permute.xlu2 %1828  ;;  %10242 = vst [vmem:[#allocation33_spill] sm:$0xff] %v7856_v21  ;;  %v2779_v47 = vrot.slane %v7856_v21, 4 }
 0x3eb   : > { %10240 = vst [vmem:[#allocation23_spill] sm:$0xff] %v7842_v34  ;;  %v7848_v19 = vpop.permute.xlu1 %1800  ;;  %v2560_v43 = vrot.slane %v7860_v44, 4 }
 0x3ec   : > { %10241 = vst [vmem:[#allocation24_spill] sm:$0xff] %v7848_v19  ;;  %v2780_v12 = vsel %vm209_vm0, 0.0, %v2779_v47 }
 0x3f0   : > { %2051 = vrot.lane.b32.xlu2 %v1987_v46, %s6057_s8  ;;  %2079 = vrot.lane.b32.xlu0 %v2043_v11, %s6057_s8  ;;  %v2561_v46 = vsel %vm209_vm0, 0.0, %v2560_v43 }
 0x3f1   : > { %2872 = vrot.lane.b32.xlu1 %v2836_v29, %s6057_s8 }
 0x3f2   : > { %v7866_v55 = vpop.permute.xlu0 %2856  ;;  %v7868_v32 = vpop.permute.xlu2 %2621 }
 0x3f3   : > { %10244 = vst [vmem:[#allocation35_spill] sm:$0xff] %v7866_v55  ;;  %v7872_v23 = vpop.permute.xlu1 %2103 }
 0x3f4   : > { %10245 = vst [vmem:[#allocation41_spill] sm:$0xff] %v7868_v32 }
 0x3f5   : > { %10246 = vst [vmem:[#allocation21_spill] sm:$0xff] %v7872_v23 }
 0x3f8   : > { %2844 = vrot.lane.b32.xlu0 %v2780_v12, %s6057_s8  ;;  %2597 = vrot.lane.b32.xlu2 %v2561_v46, %s6057_s8 }
 0x3fa   : > { %v7878_v56 = vpop.permute.xlu0 %958  ;;  %v7880_v29 = vpop.permute.xlu2 %942 }
 0x3fb   : > { %v7882_v11 = vpop.permute.xlu1 %2593 }
 0x3fc   : > { %10247 = vst [vmem:[#allocation43_spill] sm:$0xff] %v7882_v11 }
 0x402   : > { %v7884_v22 = vpop.permute.xlu0 %2075  ;;  %v979_v55 = vpop.permute.xlu2 %978 }
 0x403   : > { %v7886_v32 = vpop.permute.xlu1 %2896 }
 0x404   : > { %10248 = vst [vmem:[#allocation48_spill] sm:$0xff] %v7886_v32 }
 0x40a   : > { %v7888_v21 = vpop.permute.xlu0 %2868  ;;  %v7890_v47 = vpop.permute.xlu2 %1274 }
 0x40b   : > { %10249 = vst [vmem:[#allocation46_spill] sm:$0xff] %v7888_v21  ;;  %v7892_v43 = vpop.permute.xlu1 %950 }
 0x412   : > { %v971_v12 = vpop.permute.xlu0 %970  ;;  %v7894_v4 = vpop.permute.xlu2 %1792 }
 0x413   : > { %v1295_v46 = vpop.permute.xlu1 %1294 }
 0x41a   : > { %v7896_v23 = vpop.permute.xlu0 %1266  ;;  %v7898_v36 = vpop.permute.xlu2 %2095 }
 0x41b   : > { %10250 = vst [vmem:[#allocation16_spill] sm:$0xff] %v7898_v36  ;;  %v1813_v45 = vpop.permute.xlu1 %1812 }
 0x422   : > { %v1303_v10 = vpop.permute.xlu0 %1302  ;;  %v7900_v34 = vpop.permute.xlu2 %2585 }
 0x423   : > { %10251 = vst [vmem:[#allocation10_spill] sm:$0xff] %v7900_v34  ;;  %v7902_v37 = vpop.permute.xlu1 %2087 }
 0x424   : > { %10252 = vst [vmem:[#allocation42_spill] sm:$0xff] %v7902_v37 }
 0x42a   : > { %v7904_v32 = vpop.permute.xlu0 %1784  ;;  %v7906_v21 = vpop.permute.xlu2 %2880 }
 0x42b   : > { %10253 = vst [vmem:[#allocation44_spill] sm:$0xff] %v7906_v21  ;;  %v2068_v35 = vpop.permute.xlu1 %2067 }
 0x432   : > { %v1821_v57 = vpop.permute.xlu0 %1820  ;;  %v7908_v19 = vpop.permute.xlu2 %2860 }
 0x433   : > { %10254 = vst [vmem:[#allocation8_spill] sm:$0xff] %v7908_v19  ;;  %v7915_v36 = vpop.permute.xlu1 %2605 }
 0x43a   : > { %v2060_v37 = vpop.permute.xlu0 %2059  ;;  %v1287_v11 = vpop.permute.xlu2 %1286 }
 0x43b   : > { %v1320_v21 = vsel %vm767_vm8, %v7767_v40, %v1287_v11  ;;  %v7919_v48 = vpop.permute.xlu1 %2852  ;;  %v10256_v40 = vld [vmem:[#allocation27_spill] sm:$0xff] }
 0x43c   : > { %10255 = vst [vmem:[#allocation40_spill] sm:$0xff] %v7919_v48  ;;  %v1321_v19 = vsel %vm769_vm9, %v1320_v21, %v7732_v9  ;;  %v2356_v11 = vsel %vm767_vm8, %v10256_v40, %v7619_v49 }
 0x43d   : > { %v1322_v28 = vsel %vm771_vm10, %v1321_v19, %v1295_v46  ;;  %v2357_v34 = vsel %vm769_vm9, %v2356_v11, %v10257_v25 }
 0x43e   : > { %v1323_v19 = vsel %vm773_vm11, %v1322_v28, %v7652_v41  ;;  %v10258_v28 = vld [vmem:[#allocation54_spill] sm:$0xff] }
 0x442   : > { %v7929_v16 = vpop.permute.xlu0 %2577  ;;  %v1805_v50 = vpop.permute.xlu2 %1804 }
 0x443   : > { %v1838_v9 = vsel %vm767_vm8, %v7798_v26, %v1805_v50  ;;  %v963_v48 = vpop.permute.xlu1 %962  ;;  %v1324_v26 = vsel %vm775_vm12, %v1323_v19, %v1303_v10  ;;  %v7964_v10 = vld [vmem:[%s10045_s1 + $0x4] sm:$0xf] }
 0x444   : > { %v1839_v21 = vsel %vm769_vm9, %v1838_v9, %v7753_v60  ;;  %v996_v15 = vsel %vm767_vm8, %v7728_v63, %v963_v48  ;;  %v2358_v63 = vsel %vm771_vm10, %v2357_v34, %v10258_v28  ;;  %v10260_v9 = vld [vmem:[#allocation55_spill] sm:$0xff] }
 0x445   : > { %v1840_v46 = vsel %vm771_vm10, %v1839_v21, %v1813_v45  ;;  %v997_v50 = vsel %vm769_vm9, %v996_v15, %v7622_v59 }
 0x446   : > { %v1841_v49 = vsel %vm773_vm11, %v1840_v46, %v7682_v3  ;;  %v998_v60 = vsel %vm771_vm10, %v997_v50, %v971_v12  ;;  %v10259_v12 = vld [vmem:[#allocation52_spill] sm:$0xff] }
 0x447   : > { %v999_v41 = vsel %vm773_vm11, %v998_v60, %v7671_v20  ;;  %v1842_v45 = vsel %vm775_vm12, %v1841_v49, %v1821_v57  ;;  %v1325_v20 = vsel %vm10092_vm13, %v1324_v26, %v7538_v31  ;;  %v10262_v49 = vld [vmem:[#allocation13_spill] sm:$0xff] }
 0x448   : > { %v1000_v25 = vsel %vm775_vm12, %v999_v41, %v979_v55  ;;  %v1843_v55 = vsel %vm10092_vm13, %v1842_v45, %v7565_v8 }
 0x449   : > { %v1001_v59 = vsel %vm10092_vm13, %v1000_v25, %v7635_v2  ;;  %v2359_v2 = vsel %vm773_vm11, %v2358_v63, %v10259_v12 }
 0x44a   : > { %v7957_v48 = vpop.permute.xlu0 %2613  ;;  %v2052_v3 = vpop.permute.xlu2 %2051  ;;  %v1002_v34 = vsel %vm10091_vm14, %v1001_v59, %v7786_v38  ;;  %v1326_v38 = vsel %vm10091_vm14, %v1325_v20, %v7814_v62 }
 0x44b   : > { %v2106_v57 = vsel %vm767_vm8, %v7829_v27, %v2052_v3  ;;  %v1259_v11 = vpop.permute.xlu1 %1258  ;;  %5838 = vmatpush.msk.msra.mxu1 %vm1009_vm15, %v1002_v34  ;;  %v1844_v27 = vsel %vm10091_vm14, %v1843_v55, %v7844_v24  ;;  %v10261_v24 = vld [vmem:[#allocation38_spill] sm:$0xff] }
 0x44c   : > { %v2107_v40 = vsel %vm769_vm9, %v2106_v57, %v7717_v18  ;;  %5839 = vmatmul.msk.f32.vlgmr.msra.gmra.mxu1 %vm10090_vm2, %v7964_v10  ;;  %v1313_v62 = vsel %vm767_vm8, %v7750_v30, %v1259_v11  ;;  %v10268_v11 = vld [vmem:[#allocation31_spill] sm:$0xff] }
 0x44d   : > { %v2108_v31 = vsel %vm771_vm10, %v2107_v40, %v2060_v37  ;;  %5847 = vmatpush.msk.msrb.mxu1 %vm1009_vm15, %v1326_v38  ;;  %v2360_v37 = vsel %vm775_vm12, %v2359_v2, %v10260_v9  ;;  %v10266_v2 = vld [vmem:[#allocation49_spill] sm:$0xff]  ;;  %v10267_v40 = vld [vmem:[#allocation10_spill] sm:$0xff] }
 0x44e   : > { %v2109_v8 = vsel %vm773_vm11, %v2108_v31, %v7713_v42  ;;  %v2361_v46 = vsel %vm10092_vm13, %v2360_v37, %v10261_v24  ;;  %v10269_v31 = vld [vmem:[#allocation30_spill] sm:$0xff]  ;;  %v10273_v37 = vld [vmem:[#allocation43_spill] sm:$0xff] }
 0x44f   : > { %5857 = vmatpush.msk.msra.mxu1 %vm1009_vm15, %v1844_v27  ;;  %v2110_v18 = vsel %vm775_vm12, %v2109_v8, %v2068_v35  ;;  %v8005_v35 = vld [vmem:[%s10045_s1 + $0x8] sm:$0xf]  ;;  %v2362_v50 = vsel %vm10091_vm14, %v2361_v46, %v10262_v49  ;;  %v5864_v8 = vld [vmem:[%s10045_s1 + $0x18] sm:$0xf] }
 0x450   : > { %v2111_v21 = vsel %vm10092_vm13, %v2110_v18, %v7680_v6  ;;  %v8012_v6 = vld [vmem:[%s10045_s1 + $0x14] sm:$0xf]  ;;  %v10272_v18 = vld [vmem:[#allocation39_spill] sm:$0xff]  ;;  %v10275_v46 = vld [vmem:[#allocation24_spill] sm:$0xff] }
 0x451   : > { %v2112_v42 = vsel %vm10091_vm14, %v2111_v21, %v7884_v22  ;;  %v1314_v22 = vsel %vm769_vm9, %v1313_v62, %v7637_v7  ;;  %v10263_v7 = vld [vmem:[#allocation29_spill] sm:$0xff]  ;;  %v10274_v62 = vld [vmem:[#allocation28_spill] sm:$0xff] }
 0x452   : > { %v7999_v19 = vpop.permute.xlu0 %2888  ;;  %5860 = vmatpush.msk.msra.mxu2 %vm1009_vm15, %v2112_v42  ;;  %v2598_v60 = vpop.permute.xlu2 %2597  ;;  %v1315_v41 = vsel %vm771_vm10, %v1314_v22, %v7896_v23  ;;  %v2349_v45 = vsel %vm767_vm8, %v10263_v7, %v7532_v53  ;;  %v10264_v23 = vld [vmem:[#allocation51_spill] sm:$0xff] }
 0x453   : > { %5861 = vmatmul.msk.f32.vlgmr.msra.gmra.mxu2 %vm10090_vm2, %v8012_v6  ;;  %v1777_v30 = vpop.permute.xlu1 %1776  ;;  %v2631_v28 = vsel %vm767_vm8, %v7860_v44, %v2598_v60  ;;  %v1316_v25 = vsel %vm773_vm11, %v1315_v41, %v7686_v13  ;;  %v2350_v3 = vsel %vm769_vm9, %v2349_v45, %v10264_v23  ;;  %v5869_v41 = vld [vmem:[%s10045_s1 + $0x1c] sm:$0xf]  ;;  %v10279_v7 = vld [vmem:[#allocation19_spill] sm:$0xff]  ;;  %v10282_v23 = vld [vmem:[#allocation16_spill] sm:$0xff] }
 0x454   : > { %v1831_v15 = vsel %vm767_vm8, %v7776_v61, %v1777_v30  ;;  %5848 = vmatmul.msk.f32.vlgmr.msrb.gmra.mxu1 %vm10090_vm2, %v8005_v35  ;;  %v2632_v44 = vsel %vm769_vm9, %v2631_v28, %v7812_v39  ;;  %v1317_v34 = vsel %vm775_vm12, %v1316_v25, %v7890_v47  ;;  %v10276_v30 = vld [vmem:[#allocation17_spill] sm:$0xff] }
 0x455   : > { %v1832_v26 = vsel %vm769_vm9, %v1831_v15, %v7667_v0  ;;  %5867 = vmatpush.msk.msrb.mxu1 %vm1009_vm15, %v2362_v50  ;;  %v8041_v0 = vld [vmem:[%s10045_s1 + $0x10] sm:$0xf]  ;;  %v10277_v15 = vld [vmem:[#allocation42_spill] sm:$0xff] }
 0x456   : > { %v1833_v61 = vsel %vm771_vm10, %v1832_v26, %v7904_v32  ;;  %v10278_v50 = vld [vmem:[#allocation26_spill] sm:$0xff] }
 0x457   : > { %v1834_v53 = vsel %vm773_vm11, %v1833_v61, %v7701_v52  ;;  %v10265_v52 = vld [vmem:[#allocation25_spill] sm:$0xff]  ;;  %v10280_v61 = vld [vmem:[#allocation23_spill] sm:$0xff] }
 0x45a   : > { %v935_v63 = vpop.permute.xlu0 %934 }
 0x45b   : > { %v989_v32 = vsel %vm767_vm8, %v7801_v17, %v935_v63  ;;  %v2570_v59 = vpop.permute.xlu1 %2569  ;;  %v2351_v17 = vsel %vm771_vm10, %v2350_v3, %v10265_v52  ;;  %v10281_v63 = vld [vmem:[#allocation44_spill] sm:$0xff]  ;;  %v10283_v3 = vld [vmem:[#allocation34_spill] sm:$0xff] }
 0x45c   : > { %v990_v13 = vsel %vm769_vm9, %v989_v32, %v7656_v14  ;;  %v2624_v57 = vsel %vm767_vm8, %v7808_v54, %v2570_v59  ;;  %5858 = vmatmul.msk.f32.vlgmr.msra.gmra.mxu1 %vm10090_vm2, %v8041_v0  ;;  %v2633_v54 = vsel %vm771_vm10, %v2632_v44, %v7915_v36  ;;  %v10284_v32 = vld [vmem:[#allocation36_spill] sm:$0xff] }
 0x45d   : > { %v991_v20 = vsel %vm771_vm10, %v990_v13, %v7880_v29  ;;  %v2625_v39 = vsel %vm769_vm9, %v2624_v57, %v7734_v33  ;;  %v1835_v29 = vsel %vm775_vm12, %v1834_v53, %v7894_v4  ;;  %v2352_v4 = vsel %vm773_vm11, %v2351_v17, %v10266_v2  ;;  %v10285_v13 = vld [vmem:[#allocation11_spill] sm:$0xff] }
 0x45e   : > { %v992_v14 = vsel %vm773_vm11, %v991_v20, %v7711_v51  ;;  %v2626_v47 = vsel %vm771_vm10, %v2625_v39, %v7929_v16  ;;  %v1318_v51 = vsel %vm10092_vm13, %v1317_v34, %v7650_v1  ;;  %v10286_v20 = vld [vmem:[#allocation22_spill] sm:$0xff]  ;;  %v10287_v34 = vld [vmem:[#allocation21_spill] sm:$0xff] }
 0x45f   : > { %v993_v55 = vsel %vm775_vm12, %v992_v14, %v7892_v43  ;;  %v2627_v12 = vsel %vm773_vm11, %v2626_v47, %v7738_v58  ;;  %v1836_v43 = vsel %vm10092_vm13, %v1835_v29, %v10268_v11  ;;  %v2634_v58 = vsel %vm773_vm11, %v2633_v54, %v10269_v31  ;;  %v10288_v14 = vld [vmem:[#allocation53_spill] sm:$0xff]  ;;  %v10289_v54 = vld [vmem:[#allocation32_spill] sm:$0xff] }
 0x460   : > { %v994_v33 = vsel %vm10092_vm13, %v993_v55, %v7557_v5  ;;  %v2628_v16 = vsel %vm775_vm12, %v2627_v12, %v10267_v40  ;;  %v10270_v5 = vld [vmem:[#allocation18_spill] sm:$0xff]  ;;  %v1319_v9 = vsel %vm10091_vm14, %v1318_v51, %v10272_v18  ;;  %v1837_v22 = vsel %vm10091_vm14, %v1836_v43, %v10275_v46  ;;  %v10290_v55 = vld [vmem:[#allocation33_spill] sm:$0xff]  ;;  %v10292_v51 = vld [vmem:[#allocation48_spill] sm:$0xff]  ;;  %v1082_v18 = vpop.f32.mrf.mxu2 }
 0x461   : > { %v995_v36 = vsel %vm10091_vm14, %v994_v33, %v7878_v56  ;;  %v2629_v1 = vsel %vm10092_vm13, %v2628_v16, %v10270_v5  ;;  %v10271_v56 = vld [vmem:[#allocation37_spill] sm:$0xff]  ;;  %v2635_v26 = vsel %vm775_vm12, %v2634_v58, %v7957_v48  ;;  %v10295_v16 = vld [vmem:[#allocation35_spill] sm:$0xff]  ;;  %v10296_v43 = vld [vmem:[#allocation8_spill] sm:$0xff] }
 0x462   : > { %v2080_v38 = vpop.permute.xlu0 %2079  ;;  %5836 = vmatpush.msk.msra.mxu0 %vm1009_vm15, %v995_v36  ;;  %v2630_v21 = vsel %vm10091_vm14, %v2629_v1, %v10273_v37  ;;  %v2636_v57 = vsel %vm10092_vm13, %v2635_v26, %v10286_v20  ;;  %v10291_v33 = vld [vmem:[#allocation41_spill] sm:$0xff]  ;;  %v10293_v36 = vld [vmem:[#allocation20_spill] sm:$0xff]  ;;  %v10297_v58 = vld [vmem:[#allocation14_spill] sm:$0xff] }
 0x463   : > { %v2113_v27 = vsel %vm767_vm8, %v10271_v56, %v2080_v38  ;;  %5837 = vmatmul.msk.f32.vlgmr.msra.gmra.mxu0 %vm10090_vm2, %v7964_v10  ;;  %v2873_v24 = vpop.permute.xlu1 %2872  ;;  %5870 = vmatpush.msk.msrb.mxu2 %vm1009_vm15, %v2630_v21  ;;  %v2353_v10 = vsel %vm775_vm12, %v2352_v4, %v10276_v30  ;;  %v5874_v4 = vld [vmem:[%s10045_s1 + $0x20] sm:$0xf]  ;;  %v10298_v5 = vld [vmem:[#allocation46_spill] sm:$0xff] }
 0x464   : > { %v2114_v42 = vsel %vm769_vm9, %v2113_v27, %v10274_v62  ;;  %5845 = vmatpush.msk.msrb.mxu0 %vm1009_vm15, %v1319_v9  ;;  %v2906_v60 = vsel %vm767_vm8, %v10278_v50, %v2873_v24  ;;  %5868 = vmatmul.msk.f32.vlgmr.msrb.gmra.mxu1 %vm10090_vm2, %v5864_v8  ;;  %v2354_v53 = vsel %vm10092_vm13, %v2353_v10, %v10283_v3  ;;  %v1102_v27 = vpop.f32.mrf.mxu3 }
 0x465   : > { %v2115_v49 = vsel %vm771_vm10, %v2114_v42, %v10277_v15  ;;  %v2907_v28 = vsel %vm769_vm9, %v2906_v60, %v10280_v61  ;;  %5871 = vmatmul.msk.f32.vlgmr.msrb.gmra.mxu2 %vm10090_vm2, %v5869_v41  ;;  %v2355_v29 = vsel %vm10091_vm14, %v2354_v53, %v10288_v14 }
 0x466   : > { %5855 = vmatpush.msk.msra.mxu0 %vm1009_vm15, %v1837_v22  ;;  %v2116_v45 = vsel %vm773_vm11, %v2115_v49, %v10279_v7  ;;  %v2908_v25 = vsel %vm771_vm10, %v2907_v28, %v10281_v63 }
 0x467   : > { %v2117_v48 = vsel %vm775_vm12, %v2116_v45, %v10282_v23  ;;  %v2909_v44 = vsel %vm773_vm11, %v2908_v25, %v10284_v32 }
 0x468   : > { %v2118_v59 = vsel %vm10092_vm13, %v2117_v48, %v10285_v13  ;;  %v2910_v17 = vsel %vm775_vm12, %v2909_v44, %v7999_v19  ;;  %v2637_v19 = vsel %vm10091_vm14, %v2636_v57, %v10291_v33  ;;  %v1598_v24 = vpop.f32.mrf.mxu2 }
 0x469   : > { %v2119_v52 = vsel %vm10091_vm14, %v2118_v59, %v10287_v34  ;;  %v2911_v47 = vsel %vm10092_vm13, %v2910_v17, %v10289_v54 }
 0x46a   : > { %v2845_v39 = vpop.permute.xlu0 %2844  ;;  %5862 = vmatpush.msk.msra.mxu3 %vm1009_vm15, %v2119_v52  ;;  %v2912_v2 = vsel %vm10091_vm14, %v2911_v47, %v10292_v51 }
 0x46b   : > { %v2899_v12 = vsel %vm767_vm8, %v10290_v55, %v2845_v39  ;;  %5846 = vmatmul.msk.f32.vlgmr.msrb.gmra.mxu0 %vm10090_vm2, %v8005_v35  ;;  %5863 = vmatmul.msk.f32.vlgmr.msra.gmra.mxu3 %vm10090_vm2, %v8012_v6  ;;  %v10294_v35 = vld [vmem:[#allocation40_spill] sm:$0xff] }
 0x46c   : > { %v2900_v40 = vsel %vm769_vm9, %v2899_v12, %v10293_v36  ;;  %5865 = vmatpush.msk.msrb.mxu0 %vm1009_vm15, %v2355_v29  ;;  %5872 = vmatpush.msk.msrb.mxu3 %vm1009_vm15, %v2637_v19  ;;  %v1618_v21 = vpop.f32.mrf.mxu3 }
 0x46d   : > { %v2901_v6 = vsel %vm771_vm10, %v2900_v40, %v10294_v35  ;;  %5877 = vmatpush.msk.msra.mxu1 %vm1009_vm15, %v2912_v2 }
 0x46e   : > { %v2902_v11 = vsel %vm773_vm11, %v2901_v6, %v10295_v16  ;;  %5878 = vmatmul.msk.f32.vlgmr.msra.gmra.mxu1 %vm10090_vm2, %v5874_v4 }
 0x46f   : > { %v2903_v31 = vsel %vm775_vm12, %v2902_v11, %v10296_v43 }
 0x470   : > { %v2904_v38 = vsel %vm10092_vm13, %v2903_v31, %v10297_v58 }
 0x471   : > { %v2905_v1 = vsel %vm10091_vm14, %v2904_v38, %v10298_v5 }
 0x473   : > { %5856 = vmatmul.msk.f32.vlgmr.msra.gmra.mxu0 %vm10090_vm2, %v8041_v0  ;;  %5873 = vmatmul.msk.f32.vlgmr.msrb.gmra.mxu3 %vm10090_vm2, %v5869_v41 }
 0x474   : > { %5875 = vmatpush.msk.msra.mxu0 %vm1009_vm15, %v2905_v1 }
 0x47b   : > { %5866 = vmatmul.msk.f32.vlgmr.msrb.gmra.mxu0 %vm10090_vm2, %v5864_v8 }
 0x483   : > { %5876 = vmatmul.msk.f32.vlgmr.msra.gmra.mxu0 %vm10090_vm2, %v5874_v4 }
 0x4c9   : > { %v1053_v56 = vpop.f32.mrf.mxu1 }
 0x4ca   : > { %v1103_v62 = vadd.f32 %v1102_v27, %v1053_v56 }
 0x4d1   : > { %v1375_v9 = vpop.f32.mrf.mxu1 }
 0x4d2   : > { %v1379_v22 = vadd.f32 %v1375_v9, %v1103_v62 }
 0x4d4   : > { %v1622_v10 = vadd.f32 %v1618_v21, %v1379_v22 }
 0x4d6   : > { %v2148_v8 = vpop.f32.mrf.mxu2 }
 0x4d9   : > { %v1893_v46 = vpop.f32.mrf.mxu1 }
 0x4da   : > { %v1897_v60 = vadd.f32 %v1893_v46, %v1622_v10 }
 0x4e0   : > { %v1033_v37 = vpop.f32.mrf.mxu0 }
 0x4e1   : > { %v1083_v0 = vadd.f32 %v1082_v18, %v1033_v37  ;;  %v2411_v50 = vpop.f32.mrf.mxu1  ;;  %v10299_v37 = vld [vmem:[#allocation6_spill] sm:$0xff] }
 0x4e8   : > { %v1355_v42 = vpop.f32.mrf.mxu0  ;;  %v2666_v3 = vpop.f32.mrf.mxu2 }
 0x4e9   : > { %v1378_v15 = vadd.f32 %v1355_v42, %v1083_v0 }
 0x4eb   : > { %v1621_v26 = vadd.f32 %v1598_v24, %v1378_v15  ;;  %v2961_v48 = vpop.f32.mrf.mxu1 }
 0x4ee   : > { %v2168_v30 = vpop.f32.mrf.mxu3 }
 0x4ef   : > { %v2172_v41 = vadd.f32 %v2168_v30, %v1897_v60 }
 0x4f0   : > { %v1873_v49 = vpop.f32.mrf.mxu0 }
 0x4f1   : > { %v1896_v7 = vadd.f32 %v1873_v49, %v1621_v26  ;;  %v2415_v28 = vadd.f32 %v2411_v50, %v2172_v41 }
 0x4f3   : > { %v2171_v63 = vadd.f32 %v2148_v8, %v1896_v7  ;;  %v10300_v8 = vld [vmem:[#allocation7_spill] sm:$0xff] }
 0x4f6   : > { %v2686_v45 = vpop.f32.mrf.mxu3 }
 0x4f7   : > { %v2690_v25 = vadd.f32 %v2686_v45, %v2415_v28 }
 0x4f8   : > { %v2391_v61 = vpop.f32.mrf.mxu0 }
 0x4f9   : > { %v2414_v23 = vadd.f32 %v2391_v61, %v2171_v63  ;;  %v2965_v53 = vadd.f32 %v2961_v48, %v2690_v25 }
 0x4fb   : > { %v2689_v32 = vadd.f32 %v2666_v3, %v2414_v23  ;;  %v2967_v59 = vsel %vm1009_vm15, %v2965_v53, 0.0 }
 0x500   : > { %v2941_v44 = vpop.f32.mrf.mxu0 }
 0x501   : > { %v2964_v13 = vadd.f32 %v2941_v44, %v2689_v32 }
 0x503   : > { %v2966_v20 = vsel %vm1009_vm15, %v2964_v13, 0.0 }
 0x504   : > { %v2968_v57 = vadd.f32 %v2967_v59, %v2966_v20 }
 0x506   : > { %2969 = vadd.xlane.f32.xlu2 %v2968_v57 }
 0x579   : > { %v2970_v34 = vpop.xlane.xlu2 %2969 }
 0x57a   : > { %v2971_v52 = vmul.f32 0.00390625, %v2970_v34 }
 0x57c   : > { %v2972_v17 = vsub.f32 %v2964_v13, %v2971_v52  ;;  %v2973_v39 = vsub.f32 %v2965_v53, %v2971_v52 }
 0x57e   : > { %v2974_v14 = vmul.f32 %v2972_v17, %v2972_v17  ;;  %v2975_v29 = vmul.f32 %v2973_v39, %v2973_v39 }
 0x580   : > { %v2976_v54 = vsel %vm1009_vm15, %v2974_v14, 0.0  ;;  %v2977_v47 = vsel %vm1009_vm15, %v2975_v29, 0.0 }
 0x581   : > { %v2978_v55 = vadd.f32 %v2977_v47, %v2976_v54 }
 0x583   : > { %2979 = vadd.xlane.f32.xlu0 %v2978_v55 }
 0x5f6   : > { %v2980_v12 = vpop.xlane.xlu0 %2979 }
 0x5f7   : > { %v2981_v33 = vmul.f32 0.00390625, %v2980_v12 }
 0x5f9   : > { %v2982_v19 = vadd.f32 1e-05, %v2981_v33 }
 0x5fb   : > { %5982 = vrsqrt.f32 %v2982_v19  ;;  %vm2989_vm14 = vweird.f32 %v2982_v19 }
 0x601   : > { %v5983_v51 = vpop.eup %5982 }
 0x602   : > { %v2984_v2 = vmul.f32 %v5983_v51, %v2982_v19  ;;  %vm2990_vm2 = vweird.f32 %v5983_v51 }
 0x603   : > { %vm2991_vm13 = vmor %vm2989_vm14, %vm2990_vm2 }
 0x604   : > { %v2985_v4 = vmul.f32 %v5983_v51, %v2984_v2 }
 0x606   : > { %v2986_v36 = vmul.f32 0.5, %v2985_v4 }
 0x608   : > { %v2987_v40 = vsub.f32 1.5, %v2986_v36 }
 0x60a   : > { %v2988_v35 = vmul.f32 %v5983_v51, %v2987_v40 }
 0x60c   : > { %v2992_v6 = vsel %vm2991_vm13, %v5983_v51, %v2988_v35  ;;  %vm3197_vm13 = vcmask 137230  }
 0x60d   : > { %v2993_v16 = vmul.f32 %v2992_v6, %v2972_v17  ;;  %v2994_v11 = vmul.f32 %v2992_v6, %v2973_v39 }
 0x60f   : > { %v2995_v43 = vmax.f32 %v2993_v16, 0.0  ;;  %v2996_v31 = vmax.f32 %v2994_v11, 0.0 }
 0x611   : > { %3020 = vrot.lane.b32.xlu0 %v2996_v31, %s6052_s30  ;;  %3013 = vrot.lane.b32.xlu2 %v2995_v43, %s6056_s7 }
 0x612   : > { %2998 = vrot.lane.b32.xlu1 %v2995_v43, %s6052_s30 }
 0x619   : > { %3032 = vrot.lane.b32.xlu0 %v2996_v31, %s6053_s4  ;;  %3029 = vrot.lane.b32.xlu2 %v2996_v31, %s6055_s6 }
 0x61a   : > { %3001 = vrot.lane.b32.xlu1 %v2995_v43, %s6054_s5 }
 0x621   : > { %3038 = vrot.lane.b32.xlu2 %v2996_v31, %s6057_s8 }
 0x622   : > { %3004 = vrot.lane.b32.xlu1 %v2995_v43, %s6051_s29 }
 0x62a   : > { %3007 = vrot.lane.b32.xlu1 %v2995_v43, %s6055_s6 }
 0x632   : > { %3010 = vrot.lane.b32.xlu1 %v2995_v43, %s6053_s4 }
 0x63a   : > { %3016 = vrot.lane.b32.xlu1 %v2995_v43, %s6057_s8 }
 0x642   : > { %3023 = vrot.lane.b32.xlu1 %v2996_v31, %s6054_s5 }
 0x64a   : > { %3026 = vrot.lane.b32.xlu1 %v2996_v31, %s6051_s29 }
 0x652   : > { %3035 = vrot.lane.b32.xlu1 %v2996_v31, %s6056_s7 }
 0x66b   : > { %v3014_v62 = vpop.permute.xlu2 %3013 }
 0x66c   : > { %v3053_v0 = vrot.slane %v3014_v62, 4 }
 0x673   : > { %v3030_v26 = vpop.permute.xlu2 %3029 }
 0x67b   : > { %v3039_v32 = vpop.permute.xlu2 %3038 }
 0x67c   : > { %v3115_v20 = vrot.slane %v3039_v32, 4 }
 0x683   : > { %v3021_v45 = vpop.permute.xlu0 %3020 }
 0x684   : > { %v2999_v58 = vpop.permute.xlu1 %2998 }
 0x68b   : > { %v3033_v59 = vpop.permute.xlu0 %3032 }
 0x68c   : > { %v3002_v38 = vpop.permute.xlu1 %3001  ;;  %v3116_v17 = vsel %vm209_vm0, %v3115_v20, %v3033_v59 }
 0x68d   : > { %v3041_v9 = vrot.slane %v3002_v38, 4  ;;  %v3120_v29 = vperm.slane %v3116_v17, %v10299_v37 }
 0x68f   : > { %v3042_v42 = vsel %vm209_vm0, %v3041_v9, %v2995_v43  ;;  %v3133_v19 = vrot.slane %v3120_v29, 4 }
 0x690   : > { %v3046_v46 = vperm.slane %v3042_v42, %v10299_v37 }
 0x692   : > { %v3067_v2 = vrot.slane %v3046_v46, 4 }
 0x694   : > { %v3005_v5 = vpop.permute.xlu1 %3004 }
 0x695   : > { %v3047_v56 = vrot.slane %v3005_v5, 4 }
 0x697   : > { %v3048_v27 = vsel %vm209_vm0, %v3047_v56, %v2999_v58 }
 0x698   : > { %v3052_v21 = vperm.slane %v3048_v27, %v10299_v37 }
 0x69a   : > { %v3065_v24 = vrot.slane %v3052_v21, 4  ;;  %v3068_v11 = vsel %vm209_vm0, %v3052_v21, %v3067_v2 }
 0x69b   : > { %v3076_v56 = vperm.slane %v3068_v11, %v10300_v8 }
 0x69c   : > { %v3008_v1 = vpop.permute.xlu1 %3007  ;;  %v3066_v10 = vsel %vm209_vm0, %v3065_v24, %v3046_v46 }
 0x69d   : > { %v3054_v15 = vsel %vm209_vm0, %v3053_v0, %v3008_v1  ;;  %v3072_v60 = vperm.slane %v3066_v10, %v10300_v8  ;;  %v3095_v42 = vrot.slane %v3076_v56, 4 }
 0x69e   : > { %v3058_v41 = vperm.slane %v3054_v15, %v10299_v37 }
 0x69f   : > { %v3091_v25 = vrot.slane %v3072_v60, 4 }
 0x6a0   : > { %v3079_v4 = vrot.slane %v3058_v41, 4 }
 0x6a4   : > { %v3011_v18 = vpop.permute.xlu1 %3010 }
 0x6ac   : > { %v3017_v22 = vpop.permute.xlu1 %3016 }
 0x6ad   : > { %v3059_v30 = vrot.slane %v3017_v22, 4 }
 0x6af   : > { %v3060_v49 = vsel %vm209_vm0, %v3059_v30, %v3011_v18 }
 0x6b0   : > { %v3064_v50 = vperm.slane %v3060_v49, %v10299_v37 }
 0x6b2   : > { %v3077_v7 = vrot.slane %v3064_v50, 4  ;;  %v3080_v58 = vsel %vm209_vm0, %v3064_v50, %v3079_v4 }
 0x6b3   : > { %v3088_v21 = vperm.slane %v3080_v58, %v10300_v8 }
 0x6b4   : > { %v3024_v61 = vpop.permute.xlu1 %3023  ;;  %v3078_v28 = vsel %vm209_vm0, %v3077_v7, %v3058_v41 }
 0x6b5   : > { %v3084_v63 = vperm.slane %v3078_v28, %v10300_v8  ;;  %v3097_v53 = vrot.slane %v3024_v61, 4  ;;  %v3093_v24 = vrot.slane %v3088_v21, 4  ;;  %v3096_v46 = vsel %vm209_vm0, %v3088_v21, %v3095_v42 }
 0x6b7   : > { %v3092_v23 = vsel %vm209_vm0, %v3084_v63, %v3091_v25  ;;  %v3089_v48 = vrot.slane %v3084_v63, 4  ;;  %v3098_v57 = vsel %vm209_vm0, %v3097_v53, %v2996_v31  ;;  %v3094_v22 = vsel %vm209_vm0, %v3093_v24, %v3076_v56 }
 0x6b8   : > { %3165 = vrot.lane.b32.xlu2 %v3092_v23, %s6060_s9  ;;  %v3102_v39 = vperm.slane %v3098_v57, %v10299_v37 }
 0x6b9   : > { %v3090_v3 = vsel %vm209_vm0, %v3089_v48, %v3072_v60 }
 0x6ba   : > { %3161 = vrot.lane.b32.xlu0 %v3090_v3, %s6060_s9  ;;  %v3123_v36 = vrot.slane %v3102_v39, 4 }
 0x6bc   : > { %v3027_v44 = vpop.permute.xlu1 %3026 }
 0x6bd   : > { %v3103_v13 = vrot.slane %v3027_v44, 4 }
 0x6bf   : > { %v3104_v34 = vsel %vm209_vm0, %v3103_v13, %v3021_v45 }
 0x6c0   : > { %v3108_v52 = vperm.slane %v3104_v34, %v10299_v37 }
 0x6c2   : > { %v3121_v14 = vrot.slane %v3108_v52, 4  ;;  %v3124_v43 = vsel %vm209_vm0, %v3108_v52, %v3123_v36 }
 0x6c3   : > { %v3132_v18 = vperm.slane %v3124_v43, %v10300_v8 }
 0x6c4   : > { %v3036_v54 = vpop.permute.xlu1 %3035  ;;  %v3122_v47 = vsel %vm209_vm0, %v3121_v14, %v3102_v39 }
 0x6c5   : > { %v3109_v55 = vrot.slane %v3036_v54, 4  ;;  %v3128_v33 = vperm.slane %v3122_v47, %v10300_v8  ;;  %v3151_v0 = vrot.slane %v3132_v18, 4 }
 0x6c7   : > { %v3110_v12 = vsel %vm209_vm0, %v3109_v55, %v3030_v26  ;;  %v3147_v16 = vrot.slane %v3128_v33, 4 }
 0x6c8   : > { %v3114_v51 = vperm.slane %v3110_v12, %v10299_v37 }
 0x6ca   : > { %v3135_v40 = vrot.slane %v3114_v51, 4  ;;  %v3134_v35 = vsel %vm209_vm0, %v3133_v19, %v3114_v51 }
 0x6cb   : > { %v3140_v6 = vperm.slane %v3134_v35, %v10300_v8 }
 0x6cc   : > { %v3136_v31 = vsel %vm209_vm0, %v3120_v29, %v3135_v40 }
 0x6cd   : > { %v3148_v38 = vsel %vm209_vm0, %v3140_v6, %v3147_v16  ;;  %v3145_v5 = vrot.slane %v3140_v6, 4  ;;  %v3144_v1 = vperm.slane %v3136_v31, %v10300_v8 }
 0x6ce   : > { %3167 = vrot.lane.b32.xlu0 %v3148_v38, %s6060_s9 }
 0x6cf   : > { %v3146_v27 = vsel %vm209_vm0, %v3145_v5, %v3128_v33  ;;  %v3149_v9 = vrot.slane %v3144_v1, 4  ;;  %v3152_v30 = vsel %vm209_vm0, %v3144_v1, %v3151_v0 }
 0x6d0   : > { %3163 = vrot.lane.b32.xlu1 %v3146_v27, %s6060_s9 }
 0x6d1   : > { %v3150_v62 = vsel %vm209_vm0, %v3149_v9, %v3132_v18 }
 0x6d2   : > { %3171 = vrot.lane.b32.xlu2 %v3150_v62, %s6060_s9 }
 0x6d6   : > { %3173 = vrot.lane.b32.xlu0 %v3096_v46, %s6060_s9 }
 0x6d8   : > { %3169 = vrot.lane.b32.xlu1 %v3094_v22, %s6060_s9 }
 0x6e0   : > { %3175 = vrot.lane.b32.xlu1 %v3152_v30, %s6060_s9 }
 0x712   : > { %v3166_v10 = vpop.permute.xlu2 %3165 }
 0x713   : > { %3194 = vst.msk [vmem:[#allocation2 + $0x17] sm:$0x2] %vm417_vm1, %v3166_v10 }
 0x714   : > { %3187 = vst.msk [vmem:[#allocation2 + $0x19] sm:$0xff] %vm392_vm3, %v3166_v10 }
 0x71b   : > { %v3205_v60 = vld [vmem:[#allocation2 + $0x18] sm:$0xff] }
 0x72c   : > { %v3162_v15 = vpop.permute.xlu0 %3161  ;;  %v3172_v49 = vpop.permute.xlu2 %3171 }
 0x72d   : > { %3193 = vst.msk [vmem:[#allocation2 - $0x1] sm:$0x2] %vm417_vm1, %v3162_v15 }
 0x72e   : > { %3185 = vst.msk [vmem:[#allocation2 + $0x1] sm:$0xff] %vm392_vm3, %v3162_v15 }
 0x72f   : > { %3200 = vst.msk [vmem:[#allocation2 + $0x3b] sm:$0x40] %vm3197_vm13, %v3172_v49 }
 0x730   : > { %3190 = vst.msk [vmem:[#allocation2 + $0x39] sm:$0xff] %vm392_vm3, %v3172_v49 }
 0x735   : > { %v3202_v50 = vld [vmem:[#allocation2] sm:$0xff] }
 0x736   : > { %3226 = vrot.lane.b32.xlu2 %v3202_v50, %s6061_s10 }
 0x737   : > { %v3210_v3 = vld [vmem:[#allocation2 + $0x40] sm:$0x3] }
 0x73e   : > { %3232 = vrot.lane.b32.xlu2 %v3205_v60, %s6061_s10 }
 0x740   : > { %v3168_v26 = vpop.permute.xlu0 %3167 }
 0x741   : > { %3199 = vst.msk [vmem:[#allocation2 + $0x23] sm:$0x40] %vm3197_vm13, %v3168_v26 }
 0x742   : > { %3188 = vst.msk [vmem:[#allocation2 + $0x21] sm:$0xff] %vm392_vm3, %v3168_v26  ;;  %v3164_v41 = vpop.permute.xlu1 %3163 }
 0x743   : > { %3198 = vst.msk [vmem:[#allocation2 + $0xb] sm:$0x40] %vm3197_vm13, %v3164_v41 }
 0x744   : > { %3186 = vst.msk [vmem:[#allocation2 + $0x9] sm:$0xff] %vm392_vm3, %v3164_v41 }
 0x748   : > { %v3174_v7 = vpop.permute.xlu0 %3173 }
 0x749   : > { %3196 = vst.msk [vmem:[#allocation2 + $0x47] sm:$0x2] %vm417_vm1, %v3174_v7  ;;  %v3207_v25 = vld [vmem:[#allocation2 + $0x28] sm:$0x3]  ;;  %v3206_v23 = vld [vmem:[#allocation2 + $0x20] sm:$0xff] }
 0x74a   : > { %3191 = vst.msk [vmem:[#allocation2 + $0x49] sm:$0xff] %vm392_vm3, %v3174_v7  ;;  %v3170_v45 = vpop.permute.xlu1 %3169 }
 0x74b   : > { %3195 = vst.msk [vmem:[#allocation2 + $0x2f] sm:$0x2] %vm417_vm1, %v3170_v45  ;;  %v3204_v61 = vld [vmem:[#allocation2 + $0x10] sm:$0x3]  ;;  %v3203_v28 = vld [vmem:[#allocation2 + $0x8] sm:$0xff]  ;;  %vm10359_vm1 = vcmask 785408  }
 0x74c   : > { %3189 = vst.msk [vmem:[#allocation2 + $0x31] sm:$0xff] %vm392_vm3, %v3170_v45  ;;  %3230 = vrot.lane.b32.xlu1 %v3204_v61, %s6061_s10  ;;  %3228 = vrot.lane.b32.xlu0 %v3203_v28, %s6061_s10  ;;  %vm10369_vm14 = vmmov %vm10359_vm1 }
 0x751   : > { %v3211_v32 = vld [vmem:[#allocation2 + $0x48] sm:$0xff] }
 0x752   : > { %v3176_v63 = vpop.permute.xlu1 %3175 }
 0x753   : > { %3201 = vst.msk [vmem:[#allocation2 + $0x53] sm:$0x40] %vm3197_vm13, %v3176_v63  ;;  %v3208_v48 = vld [vmem:[#allocation2 + $0x30] sm:$0xff]  ;;  %v3209_v53 = vld [vmem:[#allocation2 + $0x38] sm:$0xff]  ;;  %vm10374_vm13 = vmmov %vm10359_vm1 }
 0x754   : > { %3192 = vst.msk [vmem:[#allocation2 + $0x51] sm:$0xff] %vm392_vm3, %v3176_v63  ;;  %3236 = vrot.lane.b32.xlu1 %v3207_v25, %s6061_s10  ;;  %3234 = vrot.lane.b32.xlu0 %v3206_v23, %s6061_s10  ;;  %vm10360_vm3 = vcmask 916480  }
 0x755   : > { %3238 = vrot.lane.b32.xlu2 %v3208_v48, %s6061_s10  ;;  %vm10373_vm2 = vmmov %vm10360_vm3 }
 0x75b   : > { %v3213_v44 = vld [vmem:[#allocation2 + $0x58] sm:$0x3]  ;;  %v3212_v13 = vld [vmem:[#allocation2 + $0x50] sm:$0xff] }
 0x75c   : > { %3242 = vrot.lane.b32.xlu1 %v3210_v3, %s6061_s10  ;;  %3240 = vrot.lane.b32.xlu0 %v3209_v53, %s6061_s10 }
 0x75d   : > { %3244 = vrot.lane.b32.xlu2 %v3211_v32, %s6061_s10 }
 0x764   : > { %3248 = vrot.lane.b32.xlu1 %v3213_v44, %s6061_s10  ;;  %3246 = vrot.lane.b32.xlu0 %v3212_v13, %s6061_s10 }
 0x790   : > { %v3227_v59 = vpop.permute.xlu2 %3226 }
 0x791   : > { %3262 = vst.msk [vmem:[#allocation2] sm:$0xff] %vm503_vm5, %v3227_v59 }
 0x798   : > { %v3233_v20 = vpop.permute.xlu2 %3232  ;;  %v3274_v57 = vld [vmem:[#allocation2] sm:$0xff] }
 0x799   : > { %3265 = vst.msk [vmem:[#allocation2 + $0x18] sm:$0xff] %vm503_vm5, %v3233_v20  ;;  %3298 = vrot.lane.b32.xlu2 %v3274_v57, %s6062_s11 }
 0x7a0   : > { %v3277_v34 = vld [vmem:[#allocation2 + $0x18] sm:$0xff] }
 0x7a1   : > { %3304 = vrot.lane.b32.xlu2 %v3277_v34, %s6062_s11 }
 0x7af   : > { %v3239_v52 = vpop.permute.xlu2 %3238 }
 0x7b0   : > { %3268 = vst.msk [vmem:[#allocation2 + $0x30] sm:$0xff] %vm503_vm5, %v3239_v52 }
 0x7b7   : > { %v3245_v17 = vpop.permute.xlu2 %3244  ;;  %v3280_v39 = vld [vmem:[#allocation2 + $0x30] sm:$0xff] }
 0x7b8   : > { %3271 = vst.msk [vmem:[#allocation2 + $0x48] sm:$0xff] %vm503_vm5, %v3245_v17  ;;  %3310 = vrot.lane.b32.xlu2 %v3280_v39, %s6062_s11 }
 0x7be   : > { %v3229_v14 = vpop.permute.xlu0 %3228  ;;  %v3231_v29 = vpop.permute.xlu1 %3230 }
 0x7bf   : > { %3263 = vst.msk [vmem:[#allocation2 + $0x8] sm:$0xff] %vm503_vm5, %v3229_v14  ;;  %v3283_v54 = vld [vmem:[#allocation2 + $0x48] sm:$0xff] }
 0x7c0   : > { %3264 = vst.msk [vmem:[#allocation2 + $0x10] sm:$0x3] %vm506_vm4, %v3231_v29  ;;  %3316 = vrot.lane.b32.xlu2 %v3283_v54, %s6062_s11 }
 0x7c6   : > { %v3235_v47 = vpop.permute.xlu0 %3234  ;;  %v3237_v55 = vpop.permute.xlu1 %3236  ;;  %v3275_v12 = vld [vmem:[#allocation2 + $0x8] sm:$0xff] }
 0x7c7   : > { %3266 = vst.msk [vmem:[#allocation2 + $0x20] sm:$0xff] %vm503_vm5, %v3235_v47  ;;  %3300 = vrot.lane.b32.xlu0 %v3275_v12, %s6062_s11  ;;  %v3276_v33 = vld [vmem:[#allocation2 + $0x10] sm:$0x3] }
 0x7c8   : > { %3267 = vst.msk [vmem:[#allocation2 + $0x28] sm:$0x3] %vm506_vm4, %v3237_v55  ;;  %3302 = vrot.lane.b32.xlu1 %v3276_v33, %s6062_s11 }
 0x7ce   : > { %v3241_v19 = vpop.permute.xlu0 %3240  ;;  %v3243_v51 = vpop.permute.xlu1 %3242  ;;  %v3278_v2 = vld [vmem:[#allocation2 + $0x20] sm:$0xff] }
 0x7cf   : > { %3269 = vst.msk [vmem:[#allocation2 + $0x38] sm:$0xff] %vm503_vm5, %v3241_v19  ;;  %3306 = vrot.lane.b32.xlu0 %v3278_v2, %s6062_s11  ;;  %v3279_v4 = vld [vmem:[#allocation2 + $0x28] sm:$0x3] }
 0x7d0   : > { %3270 = vst.msk [vmem:[#allocation2 + $0x40] sm:$0x3] %vm506_vm4, %v3243_v51  ;;  %3308 = vrot.lane.b32.xlu1 %v3279_v4, %s6062_s11 }
 0x7d6   : > { %v3247_v36 = vpop.permute.xlu0 %3246  ;;  %v3249_v40 = vpop.permute.xlu1 %3248  ;;  %v3281_v35 = vld [vmem:[#allocation2 + $0x38] sm:$0xff] }
 0x7d7   : > { %3272 = vst.msk [vmem:[#allocation2 + $0x50] sm:$0xff] %vm503_vm5, %v3247_v36  ;;  %3312 = vrot.lane.b32.xlu0 %v3281_v35, %s6062_s11  ;;  %v3282_v6 = vld [vmem:[#allocation2 + $0x40] sm:$0x3]  ;;  %vm10363_vm5 = vmmov %vm10360_vm3 }
 0x7d8   : > { %3273 = vst.msk [vmem:[#allocation2 + $0x58] sm:$0x3] %vm506_vm4, %v3249_v40  ;;  %3314 = vrot.lane.b32.xlu1 %v3282_v6, %s6062_s11  ;;  %vm10362_vm4 = vmmov %vm10359_vm1 }
 0x7de   : > { %v3284_v16 = vld [vmem:[#allocation2 + $0x50] sm:$0xff] }
 0x7df   : > { %3318 = vrot.lane.b32.xlu0 %v3284_v16, %s6062_s11  ;;  %v3285_v11 = vld [vmem:[#allocation2 + $0x58] sm:$0x3] }
 0x7e0   : > { %3320 = vrot.lane.b32.xlu1 %v3285_v11, %s6062_s11 }
 0x7f3   : > { %v3299_v43 = vpop.permute.xlu2 %3298 }
 0x7f4   : > { %3334 = vst.msk [vmem:[#allocation2] sm:$0xff] %vm577_vm6, %v3299_v43 }
 0x7fb   : > { %v3305_v31 = vpop.permute.xlu2 %3304  ;;  %v8304_v58 = vld [vmem:[#allocation2] sm:$0xff] }
 0x7fc   : > { %3337 = vst.msk [vmem:[#allocation2 + $0x18] sm:$0xff] %vm577_vm6, %v3305_v31  ;;  %3545 = vrot.lane.b32.xlu1 %v8304_v58, %s6063_s17  ;;  %v3356_v27 = vrot.slane %v8304_v58, 4 }
 0x803   : > { %v8309_v38 = vld [vmem:[#allocation2 + $0x18] sm:$0xff] }
 0x804   : > { %3549 = vrot.lane.b32.xlu0 %v8309_v38, %s6063_s17  ;;  %v3368_v21 = vrot.slane %v8309_v38, 4 }
 0x812   : > { %v3311_v5 = vpop.permute.xlu2 %3310 }
 0x813   : > { %3340 = vst.msk [vmem:[#allocation2 + $0x30] sm:$0xff] %vm577_vm6, %v3311_v5 }
 0x81a   : > { %v3317_v1 = vpop.permute.xlu2 %3316  ;;  %v3350_v56 = vld [vmem:[#allocation2 + $0x30] sm:$0xff] }
 0x81b   : > { %3343 = vst.msk [vmem:[#allocation2 + $0x48] sm:$0xff] %vm577_vm6, %v3317_v1  ;;  %v3354_v18 = vrot.slane %v3350_v56, 4  ;;  %v3357_v9 = vsel %vm209_vm0, %v3350_v56, %v3356_v27 }
 0x81c   : > { %v3365_v42 = vperm.slane %v3357_v9, %v10299_v37 }
 0x81d   : > { %v3355_v62 = vsel %vm209_vm0, %v3354_v18, %v8304_v58 }
 0x81e   : > { %v3361_v0 = vperm.slane %v3355_v62, %v10299_v37  ;;  %v3392_v49 = vrot.slane %v3365_v42, 4 }
 0x820   : > { %v3380_v41 = vrot.slane %v3361_v0, 4 }
 0x822   : > { %v8321_v24 = vld [vmem:[#allocation2 + $0x48] sm:$0xff] }
 0x823   : > { %v3366_v46 = vrot.slane %v8321_v24, 4  ;;  %v3369_v22 = vsel %vm209_vm0, %v8321_v24, %v3368_v21 }
 0x824   : > { %v3377_v30 = vperm.slane %v3369_v22, %v10299_v37 }
 0x825   : > { %v3367_v10 = vsel %vm209_vm0, %v3366_v46, %v8309_v38 }
 0x826   : > { %v3373_v50 = vperm.slane %v3367_v10, %v10299_v37  ;;  %v3390_v60 = vrot.slane %v3377_v30, 4  ;;  %v8334_v7 = vsel %vm209_vm0, %v3377_v30, %v3392_v49 }
 0x828   : > { %v8337_v45 = vsel %vm209_vm0, %v3373_v50, %v3380_v41  ;;  %v8340_v61 = vsel %vm209_vm0, %v3390_v60, %v3365_v42  ;;  %v3378_v28 = vrot.slane %v3373_v50, 4 }
 0x82a   : > { %v8343_v63 = vsel %vm209_vm0, %v3378_v28, %v3361_v0 }
 0x839   : > { %v3301_v15 = vpop.permute.xlu0 %3300 }
 0x83a   : > { %3335 = vst.msk [vmem:[#allocation2 + $0x8] sm:$0xff] %vm577_vm6, %v3301_v15  ;;  %v3303_v26 = vpop.permute.xlu1 %3302 }
 0x83b   : > { %3336 = vst.msk [vmem:[#allocation2 + $0x10] sm:$0x3] %vm580_vm7, %v3303_v26 }
 0x841   : > { %v3307_v25 = vpop.permute.xlu0 %3306  ;;  %v3347_v23 = vld [vmem:[#allocation2 + $0x8] sm:$0xff] }
 0x842   : > { %3338 = vst.msk [vmem:[#allocation2 + $0x20] sm:$0xff] %vm577_vm6, %v3307_v25  ;;  %v3309_v48 = vpop.permute.xlu1 %3308  ;;  %3547 = vrot.lane.b32.xlu2 %v3347_v23, %s6063_s17  ;;  %v3412_v44 = vrot.slane %v3347_v23, 4  ;;  %v8369_v47 = vld [vmem:[#allocation2 + $0x1] sm:$0xff]  ;;  %v8376_v19 = vld [vmem:[#allocation2 + $0x9] sm:$0xff] }
 0x843   : > { %3339 = vst.msk [vmem:[#allocation2 + $0x28] sm:$0x3] %vm580_vm7, %v3309_v48  ;;  %v4136_v33 = vrot.slane %v8369_v47, 4  ;;  %v4192_v16 = vrot.slane %v8376_v19, 4 }
 0x849   : > { %v3313_v3 = vpop.permute.xlu0 %3312  ;;  %v3349_v53 = vld [vmem:[#allocation2 + $0x20] sm:$0xff] }
 0x84a   : > { %3341 = vst.msk [vmem:[#allocation2 + $0x38] sm:$0xff] %vm577_vm6, %v3313_v3  ;;  %v3315_v32 = vpop.permute.xlu1 %3314  ;;  %3553 = vrot.lane.b32.xlu2 %v3350_v56, %s6063_s17  ;;  %3551 = vrot.lane.b32.xlu1 %v3349_v53, %s6063_s17  ;;  %v3424_v17 = vrot.slane %v3349_v53, 4  ;;  %v8392_v6 = vld [vmem:[#allocation2 + $0x19] sm:$0xff]  ;;  %v4372_v42 = vld [vmem:[#allocation2 + $0x21] sm:$0xff] }
 0x84b   : > { %3342 = vst.msk [vmem:[#allocation2 + $0x40] sm:$0x3] %vm580_vm7, %v3315_v32  ;;  %v4148_v1 = vrot.slane %v8392_v6, 4 }
 0x851   : > { %v3319_v13 = vpop.permute.xlu0 %3318  ;;  %v3351_v59 = vld [vmem:[#allocation2 + $0x38] sm:$0xff] }
 0x852   : > { %3344 = vst.msk [vmem:[#allocation2 + $0x50] sm:$0xff] %vm577_vm6, %v3319_v13  ;;  %v3321_v20 = vpop.permute.xlu1 %3320  ;;  %3555 = vrot.lane.b32.xlu0 %v3351_v59, %s6063_s17  ;;  %v3410_v57 = vrot.slane %v3351_v59, 4  ;;  %v3413_v34 = vsel %vm209_vm0, %v3351_v59, %v3412_v44  ;;  %3557 = vrot.lane.b32.xlu1 %v8321_v24, %s6063_s17  ;;  %v8371_v55 = vld [vmem:[#allocation2 + $0x39] sm:$0xff]  ;;  %v8373_v12 = vld [vmem:[#allocation2 + $0x31] sm:$0xff]  ;;  %vm10367_vm6 = vmmov %vm10359_vm1 }
 0x853   : > { %3345 = vst.msk [vmem:[#allocation2 + $0x58] sm:$0x3] %vm580_vm7, %v3321_v20  ;;  %v4134_v51 = vrot.slane %v8373_v12, 4  ;;  %v4137_v2 = vsel %vm209_vm0, %v8373_v12, %v4136_v33  ;;  %v4190_v4 = vrot.slane %v8371_v55, 4  ;;  %v3421_v11 = vperm.slane %v3413_v34, %v10299_v37  ;;  %vm10368_vm7 = vmmov %vm10360_vm3 }
 0x854   : > { %v3411_v52 = vsel %vm209_vm0, %v3410_v57, %v3347_v23  ;;  %v8445_v57 = vld [vmem:[#allocation2 + $0x32] sm:$0xff] }
 0x855   : > { %v4191_v40 = vsel %vm209_vm0, %v4190_v4, %v8376_v19  ;;  %v4135_v35 = vsel %vm209_vm0, %v4134_v51, %v8369_v47  ;;  %v3417_v5 = vperm.slane %v3411_v52, %v10299_v37  ;;  %v3448_v27 = vrot.slane %v3421_v11, 4 }
 0x856   : > { %v4141_v41 = vperm.slane %v4135_v35, %v10299_v37  ;;  %v4927_v33 = vrot.slane %v8445_v57, 4 }
 0x857   : > { %v3436_v0 = vrot.slane %v3417_v5, 4 }
 0x858   : > { %v4160_v13 = vrot.slane %v4141_v41, 4 }
 0x859   : > { %v3353_v39 = vld [vmem:[#allocation2 + $0x50] sm:$0xff] }
 0x85a   : > { %3869 = vrot.lane.b32.xlu0 %v3347_v23, %s6061_s10  ;;  %3559 = vrot.lane.b32.xlu2 %v3353_v39, %s6063_s17  ;;  %v3422_v14 = vrot.slane %v3353_v39, 4  ;;  %v3425_v29 = vsel %vm209_vm0, %v3353_v39, %v3424_v17  ;;  %v8384_v36 = vld [vmem:[#allocation2 + $0x49] sm:$0xff]  ;;  %v4376_v31 = vld [vmem:[#allocation2 + $0x51] sm:$0xff] }
 0x85b   : > { %3871 = vrot.lane.b32.xlu1 %v8309_v38, %s6061_s10  ;;  %v3433_v43 = vperm.slane %v3425_v29, %v10299_v37  ;;  %v4193_v38 = vsel %vm209_vm0, %v8371_v55, %v4192_v16  ;;  %v4149_v18 = vsel %vm209_vm0, %v8384_v36, %v4148_v1  ;;  %v4202_v9 = vrot.slane %v4376_v31, 4  ;;  %v8434_v48 = vld [vmem:[#allocation2 + $0x4a] sm:$0xff]  ;;  %v8470_v16 = vld [vmem:[#allocation2 + $0x2] sm:$0xff] }
 0x85c   : > { %v3423_v54 = vsel %vm209_vm0, %v3422_v14, %v3349_v53  ;;  %v4157_v46 = vperm.slane %v4149_v18, %v10299_v37  ;;  %v4146_v15 = vrot.slane %v8384_v36, 4  ;;  %v4201_v3 = vperm.slane %v4193_v38, %v10299_v37 }
 0x85d   : > { %v3429_v21 = vperm.slane %v3423_v54, %v10299_v37  ;;  %v3446_v62 = vrot.slane %v3433_v43, 4  ;;  %v4203_v30 = vsel %vm209_vm0, %v4202_v9, %v4372_v42  ;;  %v8419_v26 = vsel %vm209_vm0, %v3433_v43, %v3448_v27  ;;  %v8456_v54 = vld [vmem:[#allocation2 + $0x1a] sm:$0xff]  ;;  %v8542_v27 = vld [vmem:[#allocation2 + $0xa] sm:$0xff] }
 0x85e   : > { %v4170_v49 = vrot.slane %v4157_v46, 4  ;;  %v4209_v50 = vperm.slane %v4203_v30, %v10299_v37  ;;  %v4147_v32 = vsel %vm209_vm0, %v4146_v15, %v8392_v6  ;;  %v4228_v17 = vrot.slane %v4201_v3, 4 }
 0x85f   : > { %v8426_v28 = vsel %vm209_vm0, %v3429_v21, %v3436_v0  ;;  %v4153_v44 = vperm.slane %v4147_v32, %v10299_v37  ;;  %v4928_v43 = vsel %vm209_vm0, %v4927_v33, %v8470_v16  ;;  %v8648_v33 = vperm.slane %v8419_v26, %v10300_v8 }
 0x860   : > { %v8483_v38 = vperm.slane %v4928_v43, %v10299_v37 }
 0x861   : > { %v8448_v34 = vsel %vm209_vm0, %v4153_v44, %v4160_v13 }
 0x862   : > { %3875 = vrot.lane.b32.xlu0 %v3350_v56, %s6061_s10  ;;  %3867 = vrot.lane.b32.xlu2 %v8304_v58, %s6061_s10  ;;  %v4145_v58 = vperm.slane %v4137_v2, %v10299_v37  ;;  %v4197_v56 = vperm.slane %v4191_v40, %v10299_v37  ;;  %v4158_v40 = vrot.slane %v4153_v44, 4 }
 0x863   : > { %3877 = vrot.lane.b32.xlu1 %v3351_v59, %s6061_s10  ;;  %v4939_v59 = vrot.slane %v8434_v48, 4 }
 0x864   : > { %v4172_v22 = vrot.slane %v4145_v58, 4  ;;  %v4216_v10 = vrot.slane %v4197_v56, 4  ;;  %v8429_v25 = vsel %vm209_vm0, %v4170_v49, %v4145_v58  ;;  %v8468_v35 = vsel %vm209_vm0, %v4158_v40, %v4141_v41 }
 0x865   : > { %v4940_v51 = vsel %vm209_vm0, %v4939_v59, %v8456_v54  ;;  %v4214_v58 = vrot.slane %v4209_v50, 4  ;;  %v8598_v49 = vperm.slane %v8340_v61, %v10300_v8  ;;  %v4941_v41 = vrot.slane %v8456_v54, 4 }
 0x866   : > { %v8416_v60 = vsel %vm209_vm0, %v4157_v46, %v4172_v22  ;;  %v8432_v23 = vsel %vm209_vm0, %v4209_v50, %v4216_v10  ;;  %v4929_v59 = vrot.slane %v8470_v16, 4 }
 0x867   : > { %v8487_v1 = vsel %vm209_vm0, %v4214_v58, %v4197_v56  ;;  %v8602_v50 = vperm.slane %v8432_v23, %v10300_v8  ;;  %v4942_v61 = vsel %vm209_vm0, %v8434_v48, %v4941_v41  ;;  %v4985_v58 = vrot.slane %v8542_v27, 4 }
 0x86a   : > { %3881 = vrot.lane.b32.xlu0 %v3353_v39, %s6061_s10  ;;  %3873 = vrot.lane.b32.xlu2 %v3349_v53, %s6061_s10  ;;  %v4204_v53 = vrot.slane %v4372_v42, 4  ;;  %v3434_v39 = vrot.slane %v3429_v21, 4 }
 0x86b   : > { %4397 = vrot.lane.b32.xlu1 %v8384_v36, %s6063_s17 }
 0x86c   : > { %v4205_v20 = vsel %vm209_vm0, %v4376_v31, %v4204_v53  ;;  %v8465_v4 = vsel %vm209_vm0, %v3434_v39, %v3417_v5 }
 0x86d   : > { %v4213_v52 = vperm.slane %v4205_v20, %v10299_v37  ;;  %v8633_v20 = vperm.slane %v4942_v61, %v10299_v37 }
 0x86f   : > { %v4226_v14 = vrot.slane %v4213_v52, 4  ;;  %v8454_v29 = vsel %vm209_vm0, %v4213_v52, %v4228_v17  ;;  %v4963_v43 = vrot.slane %v8633_v20, 4 }
 0x871   : > { %v8462_v2 = vsel %vm209_vm0, %v4226_v14, %v4201_v3  ;;  %v4953_v3 = vrot.slane %v8483_v38, 4  ;;  %v4930_v14 = vsel %vm209_vm0, %v8445_v57, %v4929_v59 }
 0x872   : > { %4389 = vrot.lane.b32.xlu0 %v8392_v6, %s6063_s17  ;;  %3879 = vrot.lane.b32.xlu2 %v8321_v24, %s6061_s10  ;;  %v8423_v24 = vsel %vm209_vm0, %v3446_v62, %v3421_v11  ;;  %v8473_v11 = vperm.slane %v4940_v51, %v10299_v37  ;;  %v8558_v62 = vperm.slane %v8337_v45, %v10300_v8 }
 0x873   : > { %4391 = vrot.lane.b32.xlu1 %v4372_v42, %s6063_s17  ;;  %v8578_v45 = vperm.slane %v8423_v24, %v10300_v8  ;;  %v8607_v24 = vperm.slane %v8429_v25, %v10300_v8 }
 0x874   : > { %v4951_v5 = vrot.slane %v8473_v11, 4  ;;  %v4954_v13 = vsel %vm209_vm0, %v8473_v11, %v4953_v3 }
 0x875   : > { %v8651_v51 = vperm.slane %v4954_v13, %v10300_v8 }
 0x876   : > { %v8548_v18 = vpop.permute.xlu0 %3549 }
 0x87a   : > { %4395 = vrot.lane.b32.xlu0 %v8371_v55, %s6063_s17  ;;  %4399 = vrot.lane.b32.xlu2 %v4376_v31, %s6063_s17 }
 0x87b   : > { %4385 = vrot.lane.b32.xlu1 %v8369_v47, %s6063_s17 }
 0x882   : > { %4672 = vrot.lane.b32.xlu0 %v8384_v36, %s6061_s10  ;;  %4393 = vrot.lane.b32.xlu2 %v8373_v12, %s6063_s17  ;;  %v8491_v36 = vsel %vm209_vm0, %v4951_v5, %v8483_v38  ;;  %v8676_v5 = vperm.slane %v4930_v14, %v10299_v37  ;;  %v8711_v14 = vperm.slane %v8448_v34, %v10300_v8 }
 0x883   : > { %4674 = vrot.lane.b32.xlu1 %v4376_v31, %s6061_s10  ;;  %v8504_v31 = vld [vmem:[#allocation2 + $0x52] sm:$0xff] }
 0x884   : > { %v4995_v25 = vrot.slane %v8504_v31, 4 }
 0x88a   : > { %4666 = vrot.lane.b32.xlu0 %v4372_v42, %s6061_s10  ;;  %4387 = vrot.lane.b32.xlu2 %v8376_v19, %s6063_s17  ;;  %v8562_v42 = vperm.slane %v8334_v7, %v10300_v8  ;;  %v8582_v7 = vperm.slane %v8426_v28, %v10300_v8 }
 0x88b   : > { %4668 = vrot.lane.b32.xlu1 %v8373_v12, %s6061_s10 }
 0x892   : > { %4660 = vrot.lane.b32.xlu0 %v8369_v47, %s6061_s10  ;;  %4664 = vrot.lane.b32.xlu2 %v8392_v6, %s6061_s10  ;;  %v8516_v47 = vld [vmem:[#allocation2 + $0x3a] sm:$0xff]  ;;  %v8538_v6 = vpop.permute.xlu1 %3545 }
 0x893   : > { %4662 = vrot.lane.b32.xlu1 %v8376_v19, %s6061_s10  ;;  %v8522_v19 = vld [vmem:[#allocation2 + $0x22] sm:$0xff]  ;;  %v4983_v28 = vrot.slane %v8516_v47, 4 }
 0x894   : > { %v4996_v17 = vsel %vm209_vm0, %v4995_v25, %v8522_v19  ;;  %v4997_v39 = vrot.slane %v8522_v19, 4 }
 0x895   : > { %v8668_v26 = vperm.slane %v4996_v17, %v10299_v37 }
 0x89a   : > { %5467 = vrot.lane.b32.xlu0 %v8504_v31, %s6061_s10  ;;  %4670 = vrot.lane.b32.xlu2 %v8371_v55, %s6061_s10 }
 0x89b   : > { %5457 = vrot.lane.b32.xlu1 %v8456_v54, %s6061_s10 }
 0x89c   : > { %v8512_v12 = vpop.permute.xlu2 %3547 }
 0x8a2   : > { %5461 = vrot.lane.b32.xlu0 %v8445_v57, %s6061_s10  ;;  %5465 = vrot.lane.b32.xlu2 %v8434_v48, %s6061_s10 }
 0x8a3   : > { %5463 = vrot.lane.b32.xlu1 %v8516_v47, %s6061_s10 }
 0x8a4   : > { %v8530_v55 = vpop.permute.xlu2 %3553 }
 0x8aa   : > { %5192 = vrot.lane.b32.xlu0 %v8504_v31, %s6063_s17  ;;  %5459 = vrot.lane.b32.xlu2 %v8522_v19, %s6061_s10 }
 0x8ab   : > { %5453 = vrot.lane.b32.xlu1 %v8470_v16, %s6061_s10 }
 0x8b2   : > { %5182 = vrot.lane.b32.xlu0 %v8456_v54, %s6063_s17  ;;  %5190 = vrot.lane.b32.xlu2 %v8434_v48, %s6063_s17  ;;  %v4984_v48 = vsel %vm209_vm0, %v4983_v28, %v8542_v27  ;;  %v8644_v54 = vperm.slane %v8416_v60, %v10300_v8 }
 0x8b3   : > { %5184 = vrot.lane.b32.xlu1 %v8522_v19, %s6063_s17  ;;  %v8654_v40 = vperm.slane %v4984_v48, %v10299_v37  ;;  %v4998_v19 = vsel %vm209_vm0, %v8504_v31, %v4997_v39  ;;  %v4964_v31 = vsel %vm209_vm0, %v4963_v43, %v8676_v5 }
 0x8b4   : > { %v8540_v56 = vpop.permute.xlu2 %3559 }
 0x8b5   : > { %v3637_v11 = vrot.slane %v8540_v56, 4  ;;  %v5009_v61 = vrot.slane %v8654_v40, 4 }
 0x8b7   : > { %v5010_v59 = vsel %vm209_vm0, %v8668_v26, %v5009_v61 }
 0x8ba   : > { %5188 = vrot.lane.b32.xlu0 %v8516_v47, %s6063_s17  ;;  %5455 = vrot.lane.b32.xlu2 %v8542_v27, %s6061_s10 }
 0x8bb   : > { %5178 = vrot.lane.b32.xlu1 %v8470_v16, %s6063_s17  ;;  %v3569_v16 = vrot.slane %v8530_v55, 4 }
 0x8bc   : > { %v8552_v9 = vpop.permute.xlu2 %3867  ;;  %v8554_v21 = vpop.permute.xlu1 %3551 }
 0x8bd   : > { %v3638_v38 = vsel %vm209_vm0, %v3637_v11, %v8554_v21  ;;  %v8717_v11 = vperm.slane %v5010_v59, %v10300_v8 }
 0x8be   : > { %v8696_v13 = vperm.slane %v3638_v38, %v10299_v37 }
 0x8c0   : > { %10305 = vst [vmem:[#allocation47_spill] sm:$0xff] %v8696_v13 }
 0x8c2   : > { %3471 = vrot.lane.b32.xlu0 %v8558_v62, %s6056_s7  ;;  %5186 = vrot.lane.b32.xlu2 %v8445_v57, %s6063_s17 }
 0x8c3   : > { %3487 = vrot.lane.b32.xlu1 %v8562_v42, %s6054_s5 }
 0x8c4   : > { %v8570_v46 = vpop.permute.xlu2 %3873  ;;  %v8572_v22 = vpop.permute.xlu0 %3555 }
 0x8c5   : > { %v8574_v0 = vpop.permute.xlu1 %3557  ;;  %v3625_v57 = vrot.slane %v8572_v22, 4 }
 0x8c6   : > { %v3581_v23 = vrot.slane %v8574_v0, 4 }
 0x8c7   : > { %v3626_v3 = vsel %vm209_vm0, %v3625_v57, %v8512_v12  ;;  %v3649_v57 = vrot.slane %v8696_v13, 4 }
 0x8c8   : > { %v3582_v52 = vsel %vm209_vm0, %v3581_v23, %v8548_v18  ;;  %v3570_v23 = vsel %vm209_vm0, %v3569_v16, %v8538_v6  ;;  %v8707_v39 = vperm.slane %v3626_v3, %v10299_v37  ;;  %v8714_v16 = vperm.slane %v4964_v31, %v10300_v8 }
 0x8c9   : > { %v8661_v60 = vperm.slane %v3582_v52, %v10299_v37  ;;  %v8704_v17 = vperm.slane %v3570_v23, %v10299_v37 }
 0x8ca   : > { %3507 = vrot.lane.b32.xlu0 %v8578_v45, %s6055_s6  ;;  %5180 = vrot.lane.b32.xlu2 %v8542_v27, %s6063_s17  ;;  %v4986_v27 = vsel %vm209_vm0, %v8516_v47, %v4985_v58  ;;  %v5006_v47 = vperm.slane %v4998_v19, %v10299_v37  ;;  %10306 = vst [vmem:[#allocation27_spill] sm:$0xff] %v8707_v39 }
 0x8cb   : > { %3499 = vrot.lane.b32.xlu1 %v8582_v7, %s6056_s7  ;;  %v3593_v48 = vrot.slane %v8661_v60, 4  ;;  %v4994_v52 = vperm.slane %v4986_v27, %v10299_v37  ;;  %v8737_v27 = vsel %vm209_vm0, %v3649_v57, %v8707_v39 }
 0x8cc   : > { %v8590_v30 = vpop.permute.xlu2 %3879  ;;  %v8592_v10 = vpop.permute.xlu0 %3869  ;;  %v5019_v43 = vrot.slane %v5006_v47, 4  ;;  %10308 = vst [vmem:[#allocation54_spill] sm:$0xff] %v8737_v27 }
 0x8cd   : > { %v8594_v15 = vpop.permute.xlu1 %3871  ;;  %v8726_v58 = vsel %vm209_vm0, %v3593_v48, %v8704_v17  ;;  %v5021_v34 = vrot.slane %v4994_v52, 4  ;;  %v3903_v38 = vrot.slane %v8590_v30, 4 }
 0x8ce   : > { %10307 = vst [vmem:[#allocation50_spill] sm:$0xff] %v8726_v58  ;;  %v5020_v48 = vsel %vm209_vm0, %v5019_v43, %v4994_v52  ;;  %v8748_v58 = vperm.slane %v8462_v2, %v10300_v8 }
 0x8cf   : > { %v5022_v3 = vsel %vm209_vm0, %v5006_v47, %v5021_v34  ;;  %v3904_v59 = vsel %vm209_vm0, %v3903_v38, %v8594_v15  ;;  %v8754_v57 = vperm.slane %v5020_v48, %v10300_v8  ;;  %v3404_v48 = vrot.slane %v8558_v62, 4 }
 0x8d0   : > { %v8751_v13 = vperm.slane %v5022_v3, %v10300_v8  ;;  %v8763_v52 = vperm.slane %v3904_v59, %v10299_v37 }
 0x8d1   : > { %10310 = vst [vmem:[#allocation55_spill] sm:$0xff] %v8754_v57 }
 0x8d2   : > { %3479 = vrot.lane.b32.xlu2 %v8598_v49, %s6055_s6  ;;  %4279 = vrot.lane.b32.xlu0 %v8602_v50, %s6056_s7  ;;  %10311 = vst [vmem:[#allocation38_spill] sm:$0xff] %v8763_v52  ;;  %v3915_v59 = vrot.slane %v8763_v52, 4 }
 0x8d3   : > { %4259 = vrot.lane.b32.xlu1 %v8607_v24, %s6055_s6 }
 0x8d4   : > { %v8621_v53 = vpop.permute.xlu0 %3875  ;;  %v8623_v32 = vpop.permute.xlu2 %4399 }
 0x8d5   : > { %10301 = vst [vmem:[#allocation12_spill] sm:$0xff] %v8623_v32  ;;  %v8625_v44 = vpop.permute.xlu1 %3877  ;;  %v3891_v31 = vrot.slane %v8621_v53, 4 }
 0x8d6   : > { %10302 = vst [vmem:[#allocation9_spill] sm:$0xff] %v8625_v44  ;;  %v3947_v39 = vrot.slane %v8625_v44, 4 }
 0x8d7   : > { %v3892_v47 = vsel %vm209_vm0, %v3891_v31, %v8552_v9  ;;  %v3406_v31 = vrot.slane %v8598_v49, 4 }
 0x8d8   : > { %v8773_v38 = vperm.slane %v3892_v47, %v10299_v37 }
 0x8d9   : > { %v3407_v47 = vsel %vm209_vm0, 0.0, %v3406_v31 }
 0x8da   : > { %3515 = vrot.lane.b32.xlu2 %v8648_v33, %s6054_s5  ;;  %5044 = vrot.lane.b32.xlu0 %v8651_v51, %s6056_s7  ;;  %10313 = vst [vmem:[#allocation29_spill] sm:$0xff] %v8773_v38  ;;  %v8794_v62 = vsel %vm209_vm0, %v3915_v59, %v8773_v38  ;;  %v3948_v59 = vsel %vm209_vm0, %v3947_v39, %v8592_v10 }
 0x8db   : > { %4267 = vrot.lane.b32.xlu1 %v8644_v54, %s6054_s5  ;;  %10315 = vst [vmem:[#allocation25_spill] sm:$0xff] %v8794_v62  ;;  %v8824_v39 = vperm.slane %v8343_v63, %v10300_v8 }
 0x8dc   : > { %v8680_v41 = vpop.permute.xlu0 %3881  ;;  %v8682_v28 = vpop.permute.xlu2 %4393 }
 0x8dd   : > { %10303 = vst [vmem:[#allocation15_spill] sm:$0xff] %v8680_v41  ;;  %v8691_v25 = vpop.permute.xlu1 %4397  ;;  %v3959_v2 = vrot.slane %v8680_v41, 4  ;;  %v8784_v41 = vperm.slane %v8454_v29, %v10300_v8  ;;  %v4965_v29 = vrot.slane %v8676_v5, 4 }
 0x8de   : > { %10304 = vst [vmem:[#allocation45_spill] sm:$0xff] %v8691_v25  ;;  %v4421_v63 = vrot.slane %v8691_v25, 4 }
 0x8df   : > { %v3960_v27 = vsel %vm209_vm0, %v3959_v2, %v8570_v46  ;;  %v3405_v2 = vsel %vm209_vm0, 0.0, %v3404_v48  ;;  %10318 = vst [vmem:[#allocation31_spill] sm:$0xff] %v8824_v39 }
 0x8e0   : > { %v8797_v49 = vperm.slane %v3960_v27, %v10299_v37  ;;  %v4966_v27 = vsel %vm209_vm0, %v8633_v20, %v4965_v29 }
 0x8e1   : > { %v8820_v5 = vperm.slane %v4966_v27, %v10300_v8 }
 0x8e2   : > { %4251 = vrot.lane.b32.xlu2 %v8711_v14, %s6056_s7  ;;  %5052 = vrot.lane.b32.xlu0 %v8714_v16, %s6055_s6  ;;  %10316 = vst [vmem:[#allocation49_spill] sm:$0xff] %v8797_v49  ;;  %v3971_v52 = vrot.slane %v8797_v49, 4  ;;  %v4477_v49 = vrot.slane %v8623_v32, 4 }
 0x8e3   : > { %5072 = vrot.lane.b32.xlu1 %v8717_v11, %s6056_s7 }
 0x8e4   : > { %v8731_v19 = vpop.permute.xlu0 %4389  ;;  %v8733_v61 = vpop.permute.xlu2 %4387 }
 0x8e5   : > { %v8739_v23 = vpop.permute.xlu1 %4391 }
 0x8e6   : > { %10309 = vst [vmem:[#allocation52_spill] sm:$0xff] %v8739_v23 }
 0x8ea   : > { %4287 = vrot.lane.b32.xlu2 %v8748_v58, %s6055_s6  ;;  %5088 = vrot.lane.b32.xlu0 %v8751_v13, %s6054_s5 }
 0x8eb   : > { %5080 = vrot.lane.b32.xlu1 %v8754_v57, %s6055_s6  ;;  %v8790_v57 = vperm.slane %v8465_v4, %v10300_v8 }
 0x8ec   : > { %v8768_v43 = vpop.permute.xlu0 %4395  ;;  %v8770_v34 = vpop.permute.xlu2 %4664 }
 0x8ed   : > { %10312 = vst [vmem:[#allocation13_spill] sm:$0xff] %v8768_v43  ;;  %v8775_v3 = vpop.permute.xlu1 %4385  ;;  %v3458_v48 = vrot.slane %v8790_v57, 4  ;;  %v4465_v44 = vrot.slane %v8768_v43, 4  ;;  %v4240_v43 = vrot.slane %v8602_v50, 4 }
 0x8ee   : > { %10314 = vst [vmem:[#allocation51_spill] sm:$0xff] %v8790_v57 }
 0x8ef   : > { %v3459_v38 = vsel %vm209_vm0, 0.0, %v3458_v48  ;;  %v3402_v48 = vrot.slane %v8824_v39, 4 }
 0x8f1   : > { %v3403_v39 = vsel %vm209_vm0, 0.0, %v3402_v48 }
 0x8f2   : > { %4295 = vrot.lane.b32.xlu2 %v8784_v41, %s6054_s5  ;;  %3483 = vrot.lane.b32.xlu0 %v3407_v47, %s6051_s29  ;;  %v3462_v47 = vrot.slane %v8578_v45, 4  ;;  %v8833_v45 = vperm.slane %v8468_v35, %v10300_v8  ;;  %v4409_v35 = vrot.slane %v8682_v28, 4 }
 0x8f3   : > { %3475 = vrot.lane.b32.xlu1 %v3405_v2, %s6053_s4  ;;  %v8817_v2 = vperm.slane %v3948_v59, %v10299_v37 }
 0x8f4   : > { %v8805_v4 = vpop.permute.xlu0 %4672  ;;  %v4671_v31 = vpop.permute.xlu2 %4670  ;;  %v3463_v20 = vsel %vm209_vm0, 0.0, %v3462_v47  ;;  %10319 = vst [vmem:[#allocation30_spill] sm:$0xff] %v8833_v45  ;;  %v4410_v57 = vsel %vm209_vm0, %v4409_v35, %v8775_v3 }
 0x8f5   : > { %v8809_v62 = vpop.permute.xlu1 %4674  ;;  %v8837_v29 = vsel %vm209_vm0, %v3971_v52, %v8817_v2  ;;  %v4422_v52 = vsel %vm209_vm0, %v4421_v63, %v8731_v19  ;;  %v8871_v48 = vperm.slane %v4410_v57, %v10299_v37  ;;  %v4184_v57 = vrot.slane %v8711_v14, 4 }
 0x8f6   : > { %10317 = vst [vmem:[#allocation10_spill] sm:$0xff] %v8809_v62 }
 0x8f7   : > { %10320 = vst [vmem:[#allocation18_spill] sm:$0xff] %v8837_v29  ;;  %v4752_v29 = vrot.slane %v8809_v62, 4 }
 0x8fa   : > { %5060 = vrot.lane.b32.xlu2 %v8820_v5, %s6054_s5  ;;  %3495 = vrot.lane.b32.xlu0 %v3459_v38, %s6057_s8  ;;  %v3464_v38 = vrot.slane %v8648_v33, 4  ;;  %v8861_v33 = vperm.slane %v4422_v52, %v10299_v37  ;;  %v4740_v52 = vrot.slane %v4671_v31, 4 }
 0x8fb   : > { %3511 = vrot.lane.b32.xlu1 %v3463_v20, %s6051_s29  ;;  %v4182_v20 = vrot.slane %v8833_v45, 4 }
 0x8fc   : > { %v8841_v59 = vpop.permute.xlu0 %4666  ;;  %v8843_v27 = vpop.permute.xlu2 %5465  ;;  %v3465_v63 = vsel %vm209_vm0, 0.0, %v3464_v38 }
 0x8fd   : > { %10321 = vst [vmem:[#allocation37_spill] sm:$0xff] %v8841_v59  ;;  %v8846_v47 = vpop.permute.xlu1 %4668  ;;  %v4753_v25 = vsel %vm209_vm0, %v4752_v29, %v8841_v59  ;;  %v4183_v62 = vsel %vm209_vm0, 0.0, %v4182_v20  ;;  %v4478_v29 = vsel %vm209_vm0, %v4477_v49, %v8739_v23  ;;  %v4433_v20 = vrot.slane %v8861_v33, 4 }
 0x8fe   : > { %v8874_v35 = vperm.slane %v4753_v25, %v10299_v37  ;;  %v3408_v49 = vrot.slane %v8562_v42, 4  ;;  %v8885_v59 = vperm.slane %v4478_v29, %v10299_v37 }
 0x900   : > { %v4764_v32 = vrot.slane %v8874_v35, 4  ;;  %v3409_v50 = vsel %vm209_vm0, 0.0, %v3408_v49  ;;  %v3460_v49 = vrot.slane %v8582_v7, 4 }
 0x902   : > { %3467 = vrot.lane.b32.xlu2 %v3403_v39, %s6057_s8  ;;  %3519 = vrot.lane.b32.xlu0 %v3465_v63, %s6052_s30  ;;  %v4466_v39 = vsel %vm209_vm0, %v4465_v44, %v8733_v61  ;;  %v8895_v44 = vsel %vm209_vm0, %v4433_v20, %v8871_v48  ;;  %v4241_v20 = vsel %vm209_vm0, 0.0, %v4240_v43  ;;  %v4186_v43 = vrot.slane %v8607_v24, 4 }
 0x903   : > { %4247 = vrot.lane.b32.xlu1 %v4183_v62, %s6057_s8  ;;  %10322 = vst [vmem:[#allocation39_spill] sm:$0xff] %v8895_v44  ;;  %v8898_v42 = vperm.slane %v4466_v39, %v10299_v37  ;;  %v4696_v24 = vrot.slane %v8805_v4, 4 }
 0x904   : > { %v8877_v45 = vpop.permute.xlu0 %4660  ;;  %v5460_v38 = vpop.permute.xlu2 %5459 }
 0x905   : > { %v4663_v63 = vpop.permute.xlu1 %4662 }
 0x906   : > { %v4741_v25 = vsel %vm209_vm0, %v4740_v52, %v4663_v63  ;;  %v4742_v62 = vrot.slane %v4663_v63, 4  ;;  %v4185_v52 = vsel %vm209_vm0, 0.0, %v4184_v57  ;;  %v5007_v63 = vrot.slane %v8668_v26, 4 }
 0x907   : > { %v8891_v23 = vperm.slane %v4741_v25, %v10299_v37  ;;  %v4489_v25 = vrot.slane %v8885_v59, 4 }
 0x908   : > { %v8901_v14 = vsel %vm209_vm0, %v4671_v31, %v4742_v62  ;;  %v5547_v31 = vrot.slane %v5460_v38, 4 }
 0x909   : > { %10323 = vst [vmem:[#allocation43_spill] sm:$0xff] %v8901_v14  ;;  %v8905_v29 = vsel %vm209_vm0, %v4764_v32, %v8891_v23  ;;  %v5489_v32 = vrot.slane %v8843_v27, 4  ;;  %v8921_v26 = vsel %vm209_vm0, %v4489_v25, %v8898_v42  ;;  %v4242_v14 = vrot.slane %v8748_v58, 4 }
 0x90a   : > { %10324 = vst [vmem:[#allocation28_spill] sm:$0xff] %v8905_v29  ;;  %3491 = vrot.lane.b32.xlu2 %v3409_v50, %s6052_s30  ;;  %4255 = vrot.lane.b32.xlu0 %v4185_v52, %s6053_s4 }
 0x90b   : > { %4283 = vrot.lane.b32.xlu1 %v4241_v20, %s6053_s4  ;;  %10325 = vst [vmem:[#allocation24_spill] sm:$0xff] %v8921_v26  ;;  %v5008_v20 = vsel %vm209_vm0, %v5007_v63, %v8654_v40  ;;  %v4187_v40 = vsel %vm209_vm0, 0.0, %v4186_v43  ;;  %v8944_v63 = vperm.slane %v8487_v1, %v10300_v8  ;;  %v4243_v58 = vsel %vm209_vm0, 0.0, %v4242_v14 }
 0x90c   : > { %v5468_v39 = vpop.permute.xlu0 %5467  ;;  %v8916_v62 = vpop.permute.xlu2 %5190  ;;  %v4684_v1 = vrot.slane %v8846_v47, 4  ;;  %v4977_v14 = vrot.slane %v8651_v51, 4  ;;  %v8974_v51 = vperm.slane %v8491_v36, %v10300_v8 }
 0x90d   : > { %v5545_v57 = vrot.slane %v5468_v39, 4  ;;  %v5548_v50 = vsel %vm209_vm0, %v5468_v39, %v5547_v31  ;;  %v5458_v52 = vpop.permute.xlu1 %5457  ;;  %v8937_v31 = vperm.slane %v5008_v20, %v10300_v8  ;;  %v3461_v39 = vsel %vm209_vm0, 0.0, %v3460_v49  ;;  %10327 = vst [vmem:[#allocation42_spill] sm:$0xff] %v8944_v63 }
 0x90e   : > { %v5490_v29 = vsel %vm209_vm0, %v5489_v32, %v5458_v52  ;;  %v5491_v44 = vrot.slane %v5458_v52, 4  ;;  %v4697_v49 = vsel %vm209_vm0, %v4696_v24, %v8770_v34  ;;  %v4238_v43 = vrot.slane %v8944_v63, 4 }
 0x90f   : > { %v8930_v7 = vsel %vm209_vm0, %v5545_v57, %v5460_v38  ;;  %10326 = vst [vmem:[#allocation17_spill] sm:$0xff] %v8937_v31  ;;  %v5031_v32 = vrot.slane %v8937_v31, 4 }
 0x910   : > { %v8934_v25 = vsel %vm209_vm0, %v8843_v27, %v5491_v44  ;;  %v8951_v27 = vperm.slane %v5548_v50, %v10299_v37  ;;  %v4685_v50 = vsel %vm209_vm0, %v4684_v1, %v8877_v45  ;;  %v4239_v63 = vsel %vm209_vm0, 0.0, %v4238_v43 }
 0x911   : > { %v5032_v31 = vsel %vm209_vm0, 0.0, %v5031_v32  ;;  %v8977_v1 = vperm.slane %v4685_v50, %v10299_v37  ;;  %v8987_v32 = vperm.slane %v5490_v29, %v10299_v37  ;;  %v4244_v50 = vrot.slane %v8784_v41, 4 }
 0x912   : > { %3503 = vrot.lane.b32.xlu2 %v3461_v39, %s6053_s4  ;;  %4263 = vrot.lane.b32.xlu0 %v4187_v40, %s6051_s29  ;;  %v8963_v40 = vperm.slane %v4697_v49, %v10299_v37 }
 0x913   : > { %4291 = vrot.lane.b32.xlu1 %v4243_v58, %s6051_s29  ;;  %v5569_v58 = vrot.slane %v8951_v27, 4 }
 0x914   : > { %v5462_v38 = vpop.permute.xlu0 %5461  ;;  %v5456_v44 = vpop.permute.xlu2 %5455  ;;  %v4708_v36 = vrot.slane %v8963_v40, 4 }
 0x915   : > { %v5535_v57 = vrot.slane %v5456_v44, 4  ;;  %v5464_v52 = vpop.permute.xlu1 %5463 }
 0x916   : > { %v5533_v20 = vrot.slane %v5464_v52, 4  ;;  %v8999_v29 = vsel %vm209_vm0, %v4708_v36, %v8977_v1  ;;  %v4245_v36 = vsel %vm209_vm0, 0.0, %v4244_v50  ;;  %v4981_v50 = vrot.slane %v8820_v5, 4 }
 0x917   : > { %v5536_v39 = vsel %vm209_vm0, %v5464_v52, %v5535_v57  ;;  %v5477_v57 = vrot.slane %v5462_v38, 4  ;;  %10329 = vst [vmem:[#allocation19_spill] sm:$0xff] %v8999_v29 }
 0x918   : > { %v5534_v24 = vsel %vm209_vm0, %v5533_v20, %v5456_v44  ;;  %v8968_v26 = vperm.slane %v5536_v39, %v10299_v37  ;;  %v4978_v44 = vsel %vm209_vm0, 0.0, %v4977_v14 }
 0x91a   : > { %v8981_v49 = vsel %vm209_vm0, %v5569_v58, %v8968_v26  ;;  %5068 = vrot.lane.b32.xlu0 %v5032_v31, %s6057_s8  ;;  %4275 = vrot.lane.b32.xlu2 %v4239_v63, %s6057_s8  ;;  %v4975_v31 = vrot.slane %v8974_v51, 4  ;;  %v4979_v63 = vrot.slane %v8714_v16, 4  ;;  %v3583_v58 = vrot.slane %v8548_v18, 4 }
 0x91b   : > { %10328 = vst [vmem:[#allocation26_spill] sm:$0xff] %v8981_v49  ;;  %5048 = vrot.lane.b32.xlu1 %v4978_v44, %s6053_s4  ;;  %v5501_v44 = vrot.slane %v8987_v32, 4  ;;  %v3627_v18 = vrot.slane %v8512_v12, 4 }
 0x91c   : > { %v5193_v52 = vpop.permute.xlu0 %5192  ;;  %v8991_v43 = vpop.permute.xlu2 %5186 }
 0x91d   : > { %v5454_v20 = vpop.permute.xlu1 %5453 }
 0x91e   : > { %v5478_v14 = vsel %vm209_vm0, %v5477_v57, %v5454_v20  ;;  %v5479_v39 = vrot.slane %v5454_v20, 4  ;;  %v3584_v57 = vsel %vm209_vm0, %v8574_v0, %v3583_v58  ;;  %v4976_v20 = vsel %vm209_vm0, 0.0, %v4975_v31 }
 0x91f   : > { %v9004_v49 = vperm.slane %v5478_v14, %v10299_v37  ;;  %v4980_v14 = vsel %vm209_vm0, 0.0, %v4979_v63  ;;  %v3639_v0 = vrot.slane %v8554_v21, 4  ;;  %v3628_v31 = vsel %vm209_vm0, %v8572_v22, %v3627_v18 }
 0x920   : > { %v9007_v41 = vsel %vm209_vm0, %v5462_v38, %v5479_v39  ;;  %v3571_v38 = vrot.slane %v8538_v6, 4  ;;  %v5214_v39 = vrot.slane %v8916_v62, 4  ;;  %v9029_v12 = vperm.slane %v3584_v57, %v10299_v37 }
 0x921   : > { %v9013_v16 = vsel %vm209_vm0, %v5501_v44, %v9004_v49  ;;  %v5270_v58 = vrot.slane %v5193_v52, 4  ;;  %v3640_v18 = vsel %vm209_vm0, %v8540_v56, %v3639_v0  ;;  %v5540_v56 = vperm.slane %v5534_v24, %v10299_v37 }
 0x922   : > { %10330 = vst [vmem:[#allocation23_spill] sm:$0xff] %v9013_v16  ;;  %4299 = vrot.lane.b32.xlu0 %v4245_v36, %s6052_s30  ;;  %5040 = vrot.lane.b32.xlu2 %v4976_v20, %s6057_s8  ;;  %v5037_v36 = vrot.slane %v8751_v13, 4  ;;  %v4188_v16 = vrot.slane %v8644_v54, 4  ;;  %v3572_v5 = vsel %vm209_vm0, %v8530_v55, %v3571_v38  ;;  %v9043_v13 = vperm.slane %v3628_v31, %v10299_v37 }
 0x923   : > { %5056 = vrot.lane.b32.xlu1 %v4980_v14, %s6051_s29  ;;  %v5033_v14 = vrot.slane %v8717_v11, 4  ;;  %v3605_v54 = vrot.slane %v9029_v12, 4  ;;  %v4982_v55 = vsel %vm209_vm0, 0.0, %v4981_v50  ;;  %v3905_v24 = vrot.slane %v8594_v15, 4 }
 0x924   : > { %v5183_v63 = vpop.permute.xlu0 %5182  ;;  %v5181_v44 = vpop.permute.xlu2 %5180  ;;  %v5038_v38 = vsel %vm209_vm0, 0.0, %v5037_v36  ;;  %v4189_v0 = vsel %vm209_vm0, 0.0, %v4188_v16  ;;  %v3663_v50 = vrot.slane %v9043_v13, 4 }
 0x925   : > { %v5215_v6 = vsel %vm209_vm0, %v5214_v39, %v5183_v63  ;;  %v5216_v21 = vrot.slane %v5183_v63, 4  ;;  %v5185_v20 = vpop.permute.xlu1 %5184  ;;  %v5034_v31 = vsel %vm209_vm0, 0.0, %v5033_v14  ;;  %v3893_v63 = vrot.slane %v8552_v9, 4 }
 0x926   : > { %v9038_v22 = vsel %vm209_vm0, %v5270_v58, %v5185_v20  ;;  %v5272_v57 = vrot.slane %v5185_v20, 4  ;;  %v9054_v58 = vperm.slane %v3572_v5, %v10299_v37  ;;  %v9070_v16 = vperm.slane %v5215_v6, %v10299_v37 }
 0x927   : > { %v9047_v39 = vsel %vm209_vm0, %v8916_v62, %v5216_v21  ;;  %v3595_v62 = vrot.slane %v8704_v17, 4  ;;  %v3648_v21 = vperm.slane %v3640_v18, %v10299_v37  ;;  %v5260_v36 = vrot.slane %v5181_v44, 4 }
 0x928   : > { %v5273_v11 = vsel %vm209_vm0, %v5193_v52, %v5272_v57  ;;  %v5552_v9 = vperm.slane %v8930_v7, %v10299_v37  ;;  %v5202_v17 = vrot.slane %v8991_v43, 4  ;;  %v3606_v5 = vsel %vm209_vm0, %v3605_v54, %v9054_v58 }
 0x929   : > { %v9063_v52 = vperm.slane %v5273_v11, %v10299_v37  ;;  %v3596_v15 = vsel %vm209_vm0, %v8661_v60, %v3595_v62  ;;  %v5559_v57 = vrot.slane %v5540_v56, 4  ;;  %v5571_v6 = vrot.slane %v8968_v26, 4 }
 0x92a   : > { %5064 = vrot.lane.b32.xlu0 %v4982_v55, %s6052_s30  ;;  %4271 = vrot.lane.b32.xlu2 %v4189_v0, %s6052_s30  ;;  %v3894_v54 = vsel %vm209_vm0, %v8621_v53, %v3893_v63  ;;  %v5226_v60 = vrot.slane %v9070_v16, 4  ;;  %v5500_v53 = vperm.slane %v8934_v25, %v10299_v37 }
 0x92b   : > { %5092 = vrot.lane.b32.xlu1 %v5038_v38, %s6052_s30  ;;  %v5294_v7 = vrot.slane %v9063_v52, 4  ;;  %v9124_v25 = vsel %vm209_vm0, %v5552_v9, %v5559_v57  ;;  %v10333_v57 = vld [vmem:[#allocation55_spill] sm:$0xff] }
 0x92c   : > { %v5189_v20 = vpop.permute.xlu0 %5188  ;;  %v9076_v14 = vpop.permute.xlu2 %3479 }
 0x92d   : > { %v5258_v18 = vrot.slane %v5189_v20, 4  ;;  %v5261_v11 = vsel %vm209_vm0, %v5189_v20, %v5260_v36  ;;  %v5179_v55 = vpop.permute.xlu1 %5178  ;;  %v5557_v36 = vrot.slane %v5552_v9, 4 }
 0x92e   : > { %v9086_v38 = vperm.slane %v5261_v11, %v10299_v37  ;;  %v5203_v0 = vsel %vm209_vm0, %v5202_v17, %v5179_v55  ;;  %v5204_v29 = vrot.slane %v5179_v55, 4  ;;  %v9103_v17 = vperm.slane %v3606_v5, %v10300_v8 }
 0x92f   : > { %v5259_v62 = vsel %vm209_vm0, %v5258_v18, %v5181_v44  ;;  %v9094_v26 = vperm.slane %v5203_v0, %v10299_v37  ;;  %v5488_v44 = vperm.slane %v9007_v41, %v10299_v37  ;;  %v9114_v18 = vperm.slane %v3596_v15, %v10300_v8 }
 0x930   : > { %v9098_v20 = vsel %vm209_vm0, %v5294_v7, %v9086_v38  ;;  %v5205_v11 = vsel %vm209_vm0, %v8991_v43, %v5204_v29  ;;  %v9121_v43 = vsel %vm209_vm0, %v8951_v27, %v5571_v6  ;;  %v9127_v29 = vsel %vm209_vm0, %v5557_v36, %v5540_v56 }
 0x931   : > { %v9111_v63 = vsel %vm209_vm0, %v5226_v60, %v9094_v26  ;;  %10332 = vst [vmem:[#allocation16_spill] sm:$0xff] %v9127_v29  ;;  %v3661_v41 = vrot.slane %v3648_v21, 4  ;;  %v5503_v5 = vrot.slane %v9004_v49, 4  ;;  %v3906_v27 = vsel %vm209_vm0, %v8590_v30, %v3905_v24 }
 0x932   : > { %10331 = vst [vmem:[#allocation44_spill] sm:$0xff] %v9111_v63  ;;  %5076 = vrot.lane.b32.xlu2 %v5034_v31, %s6053_s4  ;;  %3694 = vrot.lane.b32.xlu0 %v9103_v17, %s6055_s6  ;;  %v3902_v6 = vperm.slane %v3894_v54, %v10299_v37  ;;  %v5035_v56 = vrot.slane %v10333_v57, 4  ;;  %v3664_v55 = vsel %vm209_vm0, %v3648_v21, %v3663_v50  ;;  %v5513_v7 = vrot.slane %v5500_v53, 4 }
 0x933   : > { %3686 = vrot.lane.b32.xlu1 %v9114_v18, %s6056_s7  ;;  %v5515_v0 = vrot.slane %v5488_v44, 4  ;;  %v3662_v49 = vsel %vm209_vm0, %v3661_v41, %v9043_v13  ;;  %v3914_v60 = vperm.slane %v3906_v27, %v10299_v37  ;;  %v9147_v36 = vperm.slane %v3664_v55, %v10300_v8 }
 0x934   : > { %v9132_v31 = vpop.permute.xlu0 %3471  ;;  %v9134_v15 = vpop.permute.xlu2 %3515  ;;  %v9151_v30 = vsel %vm209_vm0, %v8987_v32, %v5503_v5  ;;  %v9154_v24 = vsel %vm209_vm0, %v5513_v7, %v5488_v44  ;;  %v3929_v54 = vrot.slane %v3902_v6, 4  ;;  %v5036_v21 = vsel %vm209_vm0, 0.0, %v5035_v56 }
 0x935   : > { %v9139_v9 = vpop.permute.xlu1 %3487  ;;  %v9158_v50 = vperm.slane %v3662_v49, %v10300_v8  ;;  %v9164_v13 = vsel %vm209_vm0, %v5500_v53, %v5515_v0  ;;  %v3607_v32 = vrot.slane %v9054_v58, 4  ;;  %v3927_v44 = vrot.slane %v3914_v60, 4  ;;  %v10334_v58 = vld [vmem:[#allocation27_spill] sm:$0xff] }
 0x936   : > { %v4411_v27 = vrot.slane %v8775_v3, 4  ;;  %v3930_v53 = vsel %vm209_vm0, %v3914_v60, %v3929_v54  ;;  %v3651_v7 = vrot.slane %v10334_v58, 4  ;;  %v3949_v0 = vrot.slane %v8592_v10, 4 }
 0x937   : > { %v3608_v56 = vsel %vm209_vm0, %v9029_v12, %v3607_v32  ;;  %v3928_v55 = vsel %vm209_vm0, %v3927_v44, %v3902_v6  ;;  %v4435_v63 = vrot.slane %v8871_v48, 4  ;;  %v5277_v12 = vperm.slane %v9038_v22, %v10299_v37  ;;  %v10337_v48 = vld [vmem:[#allocation9_spill] sm:$0xff]  ;;  %v10338_v44 = vld [vmem:[#allocation47_spill] sm:$0xff] }
 0x938   : > { %v9183_v49 = vperm.slane %v3608_v56, %v10300_v8  ;;  %v4412_v3 = vsel %vm209_vm0, %v8682_v28, %v4411_v27  ;;  %v9194_v6 = vperm.slane %v3928_v55, %v10300_v8  ;;  %v3973_v60 = vrot.slane %v8817_v2, 4  ;;  %v10339_v56 = vld [vmem:[#allocation49_spill] sm:$0xff] }
 0x939   : > { %v5225_v10 = vperm.slane %v9047_v39, %v10299_v37  ;;  %v5265_v54 = vperm.slane %v5259_v62, %v10299_v37  ;;  %v5213_v32 = vperm.slane %v5205_v11, %v10299_v37  ;;  %v3961_v28 = vrot.slane %v8570_v46, 4 }
 0x93a   : > { %5084 = vrot.lane.b32.xlu2 %v5036_v21, %s6051_s29  ;;  %3730 = vrot.lane.b32.xlu0 %v9147_v36, %s6054_s5  ;;  %v9186_v21 = vperm.slane %v3930_v53, %v10300_v8  ;;  %10336 = vst [vmem:[#allocation36_spill] sm:$0xff] %v9194_v6  ;;  %v3950_v22 = vsel %vm209_vm0, %v10337_v48, %v3949_v0  ;;  %v5296_v2 = vrot.slane %v9086_v38, 4  ;;  %v5228_v39 = vrot.slane %v9094_v26, 4  ;;  %v10340_v53 = vld [vmem:[#allocation15_spill] sm:$0xff] }
 0x93b   : > { %3722 = vrot.lane.b32.xlu1 %v9158_v50, %s6055_s6  ;;  %v3652_v27 = vsel %vm209_vm0, %v10338_v44, %v3651_v7  ;;  %v3974_v46 = vsel %vm209_vm0, %v10339_v56, %v3973_v60  ;;  %v3962_v55 = vsel %vm209_vm0, %v10340_v53, %v3961_v28  ;;  %v4423_v58 = vrot.slane %v8731_v19, 4  ;;  %v10341_v60 = vld [vmem:[#allocation52_spill] sm:$0xff]  ;;  %v10344_v53 = vld [vmem:[#allocation29_spill] sm:$0xff] }
 0x93c   : > { %v9169_v41 = vpop.permute.xlu0 %3507  ;;  %v9171_v5 = vpop.permute.xlu2 %4251  ;;  %10335 = vst [vmem:[#allocation34_spill] sm:$0xff] %v9186_v21  ;;  %v9224_v0 = vperm.slane %v4412_v3, %v10299_v37  ;;  %v4436_v26 = vsel %vm209_vm0, %v8861_v33, %v4435_v63  ;;  %v5238_v48 = vrot.slane %v5225_v10, 4  ;;  %v5282_v29 = vrot.slane %v5277_v12, 4 }
 0x93d   : > { %v9174_v57 = vpop.permute.xlu1 %3499  ;;  %v5240_v7 = vrot.slane %v5213_v32, 4  ;;  %v3958_v44 = vperm.slane %v3950_v22, %v10299_v37  ;;  %v4479_v56 = vrot.slane %v10341_v60, 4  ;;  %v9233_v28 = vperm.slane %v3652_v27, %v10300_v8 }
 0x93e   : > { %v9236_v19 = vperm.slane %v3974_v46, %v10300_v8  ;;  %v9240_v3 = vsel %vm209_vm0, %v9070_v16, %v5228_v39  ;;  %v9243_v33 = vsel %vm209_vm0, %v5238_v48, %v5213_v32  ;;  %v9246_v63 = vsel %vm209_vm0, %v5282_v29, %v5265_v54  ;;  %v10345_v46 = vld [vmem:[#allocation45_spill] sm:$0xff] }
 0x93f   : > { %10342 = vst [vmem:[#allocation11_spill] sm:$0xff] %v9246_v63  ;;  %v9250_v22 = vsel %vm209_vm0, %v9063_v52, %v5296_v2  ;;  %v3917_v27 = vrot.slane %v10344_v53, 4  ;;  %v3970_v60 = vperm.slane %v3962_v55, %v10299_v37  ;;  %v9257_v16 = vperm.slane %v4436_v26, %v10300_v8  ;;  %v10346_v55 = vld [vmem:[#allocation12_spill] sm:$0xff]  ;;  %v10348_v53 = vld [vmem:[#allocation13_spill] sm:$0xff] }
 0x940   : > { %10343 = vst [vmem:[#allocation22_spill] sm:$0xff] %v9250_v22  ;;  %v4447_v32 = vrot.slane %v9224_v0, 4  ;;  %v9265_v52 = vsel %vm209_vm0, %v5225_v10, %v5240_v7  ;;  %v4467_v39 = vrot.slane %v8733_v61, 4  ;;  %v10347_v7 = vld [vmem:[#allocation38_spill] sm:$0xff] }
 0x941   : > { %v3983_v22 = vrot.slane %v3970_v60, 4 }
 0x942   : > { %3702 = vrot.lane.b32.xlu2 %v9183_v49, %s6054_s5  ;;  %4024 = vrot.lane.b32.xlu0 %v9186_v21, %s6054_s5  ;;  %v5284_v21 = vrot.slane %v5265_v54, 4  ;;  %v3985_v54 = vrot.slane %v3958_v44, 4 }
 0x943   : > { %4016 = vrot.lane.b32.xlu1 %v9194_v6, %s6055_s6  ;;  %v4424_v6 = vsel %vm209_vm0, %v10345_v46, %v4423_v58  ;;  %v4480_v58 = vsel %vm209_vm0, %v10346_v55, %v4479_v56  ;;  %v4468_v46 = vsel %vm209_vm0, %v10348_v53, %v4467_v39 }
 0x944   : > { %v9212_v62 = vpop.permute.xlu2 %4287  ;;  %v9214_v11 = vpop.permute.xlu0 %4279  ;;  %v9268_v29 = vsel %vm209_vm0, %v5277_v12, %v5284_v21  ;;  %v4432_v2 = vperm.slane %v4424_v6, %v10299_v37  ;;  %v3918_v21 = vsel %vm209_vm0, %v10347_v7, %v3917_v27  ;;  %v3986_v12 = vsel %vm209_vm0, %v3970_v60, %v3985_v54 }
 0x945   : > { %v9226_v38 = vpop.permute.xlu1 %4259  ;;  %v9289_v61 = vperm.slane %v4480_v58, %v10299_v37  ;;  %v9292_v56 = vperm.slane %v3918_v21, %v10300_v8  ;;  %v9295_v55 = vperm.slane %v3986_v12, %v10300_v8  ;;  %v9298_v63 = vperm.slane %v4468_v46, %v10299_v37  ;;  %v10351_v12 = vld [vmem:[#allocation37_spill] sm:$0xff] }
 0x946   : > { %v4448_v6 = vsel %vm209_vm0, %v4432_v2, %v4447_v32  ;;  %v4766_v54 = vrot.slane %v8891_v23, 4  ;;  %v3984_v7 = vsel %vm209_vm0, %v3983_v22, %v3958_v44  ;;  %v4754_v53 = vrot.slane %v10351_v12, 4 }
 0x947   : > { %10349 = vst [vmem:[#allocation21_spill] sm:$0xff] %v9295_v55  ;;  %v9301_v27 = vperm.slane %v4448_v6, %v10300_v8  ;;  %v4501_v32 = vrot.slane %v9289_v61, 4  ;;  %v9324_v46 = vperm.slane %v3984_v7, %v10300_v8 }
 0x948   : > { %v4767_v21 = vsel %vm209_vm0, %v8874_v35, %v4766_v54  ;;  %v10354_v35 = vld [vmem:[#allocation10_spill] sm:$0xff] }
 0x949   : > { %10350 = vst [vmem:[#allocation53_spill] sm:$0xff] %v9301_v27  ;;  %v4502_v23 = vsel %vm209_vm0, %v4501_v32, %v9298_v63  ;;  %v9332_v44 = vperm.slane %v4767_v21, %v10300_v8  ;;  %v4755_v22 = vsel %vm209_vm0, %v10354_v35, %v4754_v53  ;;  %v10356_v53 = vld [vmem:[#allocation43_spill] sm:$0xff] }
 0x94a   : > { %3714 = vrot.lane.b32.xlu2 %v9233_v28, %s6056_s7  ;;  %4036 = vrot.lane.b32.xlu0 %v9236_v19, %s6056_s7  ;;  %v9327_v6 = vperm.slane %v4502_v23, %v10300_v8  ;;  %v4763_v23 = vperm.slane %v4755_v22, %v10299_v37  ;;  %v4751_v35 = vperm.slane %v10356_v53, %v10299_v37 }
 0x94b   : > { %4526 = vrot.lane.b32.xlu1 %v9257_v16, %s6056_s7  ;;  %10353 = vst [vmem:[#allocation33_spill] sm:$0xff] %v9332_v44 }
 0x94c   : > { %v9276_v26 = vpop.permute.xlu2 %4295  ;;  %v9278_v48 = vpop.permute.xlu0 %5044  ;;  %10352 = vst [vmem:[#allocation32_spill] sm:$0xff] %v9327_v6 }
 0x94d   : > { %v9280_v10 = vpop.permute.xlu1 %4267 }
 0x952   : > { %4008 = vrot.lane.b32.xlu2 %v9292_v56, %s6056_s7  ;;  %4052 = vrot.lane.b32.xlu0 %v9295_v55, %s6054_s5  ;;  %v4710_v55 = vrot.slane %v8977_v1, 4 }
 0x953   : > { %4542 = vrot.lane.b32.xlu1 %v9301_v27, %s6054_s5  ;;  %v4491_v27 = vrot.slane %v8898_v42, 4 }
 0x954   : > { %v9311_v60 = vpop.permute.xlu2 %5060  ;;  %v9313_v39 = vpop.permute.xlu0 %5052  ;;  %v4711_v7 = vsel %vm209_vm0, %v8963_v40, %v4710_v55  ;;  %v4445_v40 = vrot.slane %v4432_v2, 4  ;;  %v4776_v55 = vrot.slane %v4763_v23, 4 }
 0x955   : > { %v9315_v58 = vpop.permute.xlu1 %5072  ;;  %v4492_v1 = vsel %vm209_vm0, %v8885_v59, %v4491_v27  ;;  %v9355_v12 = vperm.slane %v4711_v7, %v10300_v8 }
 0x956   : > { %v9352_v21 = vperm.slane %v4492_v1, %v10300_v8 }
 0x957   : > { %10355 = vst [vmem:[#allocation41_spill] sm:$0xff] %v9355_v12 }
 0x95a   : > { %4044 = vrot.lane.b32.xlu2 %v9324_v46, %s6055_s6  ;;  %4562 = vrot.lane.b32.xlu0 %v9327_v6, %s6055_s6  ;;  %v10358_v6 = vld [vmem:[#allocation31_spill] sm:$0xff] }
 0x95b   : > { %4829 = vrot.lane.b32.xlu1 %v9332_v44, %s6056_s7  ;;  %v9361_v44 = vperm.slane %v9151_v30, %v10300_v8 }
 0x95c   : > { %v3468_v54 = vpop.permute.xlu2 %3467  ;;  %v9342_v32 = vpop.permute.xlu0 %5088 }
 0x95d   : > { %v9344_v42 = vpop.permute.xlu1 %5080  ;;  %10357 = vst [vmem:[#allocation48_spill] sm:$0xff] %v9361_v44  ;;  %v3522_v59 = vsel %vm767_vm8, %v10358_v6, %v3468_v54  ;;  %v4446_v6 = vsel %vm209_vm0, %v4445_v40, %v9224_v0  ;;  %v4777_v54 = vsel %vm209_vm0, %v4776_v55, %v4751_v35  ;;  %v9389_v0 = vperm.slane %v9154_v24, %v10300_v8 }
 0x95e   : > { %v3523_v30 = vsel %vm769_vm9, %v3522_v59, %v9132_v31  ;;  %v4503_v31 = vrot.slane %v9298_v63, 4  ;;  %v4778_v59 = vrot.slane %v4751_v35, 4  ;;  %v4686_v55 = vrot.slane %v8877_v45, 4  ;;  %v10361_v35 = vld [vmem:[#allocation51_spill] sm:$0xff] }
 0x962   : > { %4554 = vrot.lane.b32.xlu2 %v9352_v21, %s6056_s7  ;;  %4801 = vrot.lane.b32.xlu0 %v9355_v12, %s6056_s7  ;;  %v9384_v12 = vperm.slane %v4777_v54, %v10300_v8 }
 0x963   : > { %5594 = vrot.lane.b32.xlu1 %v9361_v44, %s6056_s7  ;;  %v9381_v44 = vperm.slane %v4446_v6, %v10300_v8 }
 0x964   : > { %v3492_v27 = vpop.permute.xlu2 %3491  ;;  %v3484_v22 = vpop.permute.xlu0 %3483 }
 0x965   : > { %v3476_v1 = vpop.permute.xlu1 %3475 }
 0x966   : > { %v3524_v7 = vsel %vm771_vm10, %v3523_v30, %v3476_v1  ;;  %v4504_v30 = vsel %vm209_vm0, %v9289_v61, %v4503_v31  ;;  %v4779_v1 = vsel %vm209_vm0, %v4763_v23, %v4778_v59 }
 0x967   : > { %v3525_v2 = vsel %vm773_vm11, %v3524_v7, %v9076_v14  ;;  %v4698_v14 = vrot.slane %v8770_v34, 4  ;;  %v9422_v61 = vperm.slane %v4779_v1, %v10300_v8 }
 0x968   : > { %v3526_v53 = vsel %vm775_vm12, %v3525_v2, %v3484_v22  ;;  %v9419_v2 = vperm.slane %v4504_v30, %v10300_v8 }
 0x969   : > { %v3527_v40 = vsel %vm10359_vm1, %v3526_v53, %v9139_v9  ;;  %v4699_v9 = vsel %vm209_vm0, %v8805_v4, %v4698_v14 }
 0x96a   : > { %4534 = vrot.lane.b32.xlu2 %v9381_v44, %s6055_s6  ;;  %4837 = vrot.lane.b32.xlu0 %v9384_v12, %s6055_s6  ;;  %v3528_v63 = vsel %vm10360_vm3, %v3527_v40, %v3492_v27  ;;  %v4687_v27 = vsel %vm209_vm0, %v8846_v47, %v4686_v55  ;;  %v4707_v54 = vperm.slane %v4699_v9, %v10299_v37  ;;  %vm10375_vm3 = vmmov %vm10373_vm2 }
 0x96b   : > { %5602 = vrot.lane.b32.xlu1 %v9389_v0, %s6055_s6  ;;  %5884 = vmatpush.msk.msrb.mxu0 %vm1009_vm15, %v3528_v63  ;;  %v4695_v23 = vperm.slane %v4687_v27, %v10299_v37  ;;  %v9446_v55 = vperm.slane %v9164_v13, %v10300_v8  ;;  %v9450_v9 = vperm.slane %v9121_v43, %v10300_v8 }
 0x96c   : > { %v3504_v24 = vpop.permute.xlu2 %3503  ;;  %v3496_v34 = vpop.permute.xlu0 %3495 }
 0x96d   : > { %v3529_v45 = vsel %vm767_vm8, %v10361_v35, %v3496_v34  ;;  %v3512_v22 = vpop.permute.xlu1 %3511  ;;  %v4722_v63 = vrot.slane %v4695_v23, 4  ;;  %v10365_v35 = vld [vmem:[#allocation30_spill] sm:$0xff] }
 0x96e   : > { %v3530_v6 = vsel %vm769_vm9, %v3529_v45, %v9174_v57  ;;  %v9428_v57 = vperm.slane %v9240_v3, %v10300_v8 }
 0x96f   : > { %v3531_v4 = vsel %vm771_vm10, %v3530_v6, %v3504_v24  ;;  %v4723_v1 = vsel %vm209_vm0, %v4707_v54, %v4722_v63  ;;  %v9514_v63 = vperm.slane %v9265_v52, %v10300_v8 }
 0x970   : > { %v3532_v7 = vsel %vm773_vm11, %v3531_v4, %v9169_v41  ;;  %v4720_v41 = vrot.slane %v4707_v54, 4  ;;  %v9484_v54 = vperm.slane %v9098_v20, %v10300_v8 }
 0x971   : > { %v3533_v47 = vsel %vm775_vm12, %v3532_v7, %v3512_v22 }
 0x972   : > { %4570 = vrot.lane.b32.xlu2 %v9419_v2, %s6054_s5  ;;  %4845 = vrot.lane.b32.xlu0 %v9422_v61, %s6054_s5  ;;  %v3534_v37 = vsel %vm10362_vm4, %v3533_v47, %v9134_v15  ;;  %v4721_v3 = vsel %vm209_vm0, %v4720_v41, %v4695_v23  ;;  %v10364_v15 = vld [vmem:[#allocation42_spill] sm:$0xff]  ;;  %v9475_v23 = vperm.slane %v4723_v1, %v10300_v8  ;;  %vm10376_vm4 = vmmov %vm10373_vm2 }
 0x973   : > { %5319 = vrot.lane.b32.xlu1 %v9428_v57, %s6056_s7  ;;  %v9442_v14 = vperm.slane %v4721_v3, %v10300_v8 }
 0x974   : > { %v3520_v53 = vpop.permute.xlu0 %3519  ;;  %v4276_v31 = vpop.permute.xlu2 %4275 }
 0x975   : > { %v3535_v59 = vsel %vm10363_vm5, %v3534_v37, %v3520_v53  ;;  %v4248_v40 = vpop.permute.xlu1 %4247  ;;  %v4309_v24 = vsel %vm767_vm8, %v10364_v15, %v4276_v31  ;;  %v10370_v15 = vld [vmem:[#allocation17_spill] sm:$0xff]  ;;  %vm10398_vm5 = vmmov %vm10359_vm1 }
 0x976   : > { %5886 = vmatpush.msk.msrb.mxu1 %vm1009_vm15, %v3535_v59  ;;  %v4302_v45 = vsel %vm767_vm8, %v10365_v35, %v4248_v40  ;;  %v4310_v22 = vsel %vm769_vm9, %v4309_v24, %v9214_v11  ;;  %v3621_v35 = vrot.slane %v9103_v17, 4 }
 0x977   : > { %v4303_v7 = vsel %vm769_vm9, %v4302_v45, %v9171_v5 }
 0x978   : > { %v3622_v17 = vsel %vm209_vm0, 0.0, %v3621_v35 }
 0x97a   : > { %4809 = vrot.lane.b32.xlu2 %v9442_v14, %s6055_s6  ;;  %5610 = vrot.lane.b32.xlu0 %v9446_v55, %s6054_s5 }
 0x97b   : > { %5638 = vrot.lane.b32.xlu1 %v9450_v9, %s6054_s5 }
 0x97c   : > { %v4256_v34 = vpop.permute.xlu0 %4255  ;;  %v5041_v13 = vpop.permute.xlu2 %5040 }
 0x97d   : > { %v5095_v43 = vsel %vm767_vm8, %v8974_v51, %v5041_v13  ;;  %v4284_v30 = vpop.permute.xlu1 %4283  ;;  %v9479_v51 = vperm.slane %v9243_v33, %v10300_v8  ;;  %v4304_v11 = vsel %vm771_vm10, %v4303_v7, %v4256_v34  ;;  %v3623_v34 = vrot.slane %v9183_v49, 4 }
 0x97e   : > { %v4311_v27 = vsel %vm771_vm10, %v4310_v22, %v4284_v30  ;;  %v5096_v6 = vsel %vm769_vm9, %v5095_v43, %v9278_v48  ;;  %v10366_v48 = vld [vmem:[#allocation50_spill] sm:$0xff] }
 0x97f   : > { %v4312_v4 = vsel %vm773_vm11, %v4311_v27, %v9212_v62  ;;  %v9488_v47 = vperm.slane %v10366_v48, %v10300_v8  ;;  %v4305_v62 = vsel %vm773_vm11, %v4304_v11, %v9226_v38  ;;  %v9509_v38 = vperm.slane %v9124_v25, %v10300_v8  ;;  %v10371_v22 = vld [vmem:[#allocation26_spill] sm:$0xff] }
 0x980   : > { %v9533_v30 = vperm.slane %v10371_v22, %v10300_v8  ;;  %v3624_v49 = vsel %vm209_vm0, 0.0, %v3623_v34  ;;  %v3675_v11 = vrot.slane %v9233_v28, 4  ;;  %v3999_v34 = vrot.slane %v9324_v46, 4 }
 0x981   : > { %v3617_v53 = vrot.slane %v9488_v47, 4 }
 0x982   : > { %4817 = vrot.lane.b32.xlu2 %v9475_v23, %s6054_s5  ;;  %5327 = vrot.lane.b32.xlu0 %v9479_v51, %s6055_s6  ;;  %v4000_v35 = vsel %vm209_vm0, 0.0, %v3999_v34 }
 0x983   : > { %5355 = vrot.lane.b32.xlu1 %v9484_v54, %s6055_s6  ;;  %v3618_v3 = vsel %vm209_vm0, 0.0, %v3617_v53 }
 0x984   : > { %v4264_v5 = vpop.permute.xlu0 %4263  ;;  %v4272_v33 = vpop.permute.xlu2 %4271 }
 0x985   : > { %v4306_v20 = vsel %vm775_vm12, %v4305_v62, %v4264_v5  ;;  %v4292_v41 = vpop.permute.xlu1 %4291 }
 0x986   : > { %v4307_v37 = vsel %vm10367_vm6, %v4306_v20, %v9280_v10  ;;  %v4313_v31 = vsel %vm775_vm12, %v4312_v4, %v4292_v41  ;;  %v9559_v20 = vperm.slane %v9268_v29, %v10300_v8  ;;  %v3676_v41 = vsel %vm209_vm0, 0.0, %v3675_v11  ;;  %vm10399_vm6 = vmmov %vm10373_vm2 }
 0x987   : > { %v4308_v59 = vsel %vm10368_vm7, %v4307_v37, %v4272_v33  ;;  %v4314_v40 = vsel %vm10369_vm14, %v4313_v31, %v9276_v26  ;;  %v3619_v29 = vrot.slane %v9114_v18, 4  ;;  %v3941_v31 = vrot.slane %v9292_v56, 4  ;;  %vm10401_vm14 = vmmov %vm10359_vm1 }
 0x988   : > { %5894 = vmatpush.msk.msra.mxu0 %vm1009_vm15, %v4308_v59  ;;  %vm10400_vm7 = vcmask 31744  }
 0x98a   : > { %5622 = vrot.lane.b32.xlu2 %v9509_v38, %s6056_s7  ;;  %3682 = vrot.lane.b32.xlu0 %v3618_v3, %s6057_s8  ;;  %v3620_v3 = vsel %vm209_vm0, 0.0, %v3619_v29 }
 0x98b   : > { %5335 = vrot.lane.b32.xlu1 %v9514_v63, %s6054_s5 }
 0x98c   : > { %v5069_v26 = vpop.permute.xlu0 %5068  ;;  %v5077_v10 = vpop.permute.xlu2 %5076 }
 0x98d   : > { %v5102_v25 = vsel %vm767_vm8, %v10370_v15, %v5069_v26  ;;  %v5049_v24 = vpop.permute.xlu1 %5048  ;;  %v3942_v26 = vsel %vm209_vm0, 0.0, %v3941_v31  ;;  %v10377_v15 = vld [vmem:[#allocation25_spill] sm:$0xff]  ;;  %v10382_v31 = vld [vmem:[#allocation39_spill] sm:$0xff] }
 0x98e   : > { %v5103_v52 = vsel %vm769_vm9, %v5102_v25, %v9315_v58  ;;  %v5097_v13 = vsel %vm771_vm10, %v5096_v6, %v5049_v24  ;;  %v10372_v58 = vld [vmem:[#allocation54_spill] sm:$0xff]  ;;  %v9585_v18 = vperm.slane %v10377_v15, %v10300_v8  ;;  %v3677_v24 = vrot.slane %v9158_v50, 4 }
 0x98f   : > { %v5104_v45 = vsel %vm771_vm10, %v5103_v52, %v5077_v10  ;;  %v5098_v43 = vsel %vm773_vm11, %v5097_v13, %v9313_v39  ;;  %v9544_v27 = vperm.slane %v10372_v58, %v10300_v8  ;;  %v4461_v15 = vrot.slane %v9381_v44, 4  ;;  %v10384_v44 = vld [vmem:[#allocation53_spill] sm:$0xff] }
 0x990   : > { %v5105_v1 = vsel %vm773_vm11, %v5104_v45, %v9344_v42  ;;  %v3939_v52 = vrot.slane %v9585_v18, 4  ;;  %v3678_v13 = vsel %vm209_vm0, 0.0, %v3677_v24  ;;  %v10378_v45 = vld [vmem:[#allocation24_spill] sm:$0xff]  ;;  %v10383_v24 = vld [vmem:[#allocation21_spill] sm:$0xff] }
 0x991   : > { %v3673_v5 = vrot.slane %v9544_v27, 4  ;;  %v4001_v34 = vrot.slane %v10383_v24, 4  ;;  %v10388_v24 = vld [vmem:[#allocation23_spill] sm:$0xff] }
 0x992   : > { %5630 = vrot.lane.b32.xlu2 %v9533_v30, %s6055_s6  ;;  %3706 = vrot.lane.b32.xlu0 %v3624_v49, %s6052_s30  ;;  %v3940_v22 = vsel %vm209_vm0, 0.0, %v3939_v52  ;;  %v10379_v49 = vld [vmem:[#allocation36_spill] sm:$0xff]  ;;  %s161_s6 = sand.u32 1, %s6041_s13  }
 0x993   : > { %3698 = vrot.lane.b32.xlu1 %v3622_v17, %s6051_s29  ;;  %v3674_v28 = vsel %vm209_vm0, 0.0, %v3673_v5  ;;  %v3943_v17 = vrot.slane %v10379_v49, 4 }
 0x994   : > { %v4300_v39 = vpop.permute.xlu0 %4299  ;;  %v5085_v6 = vpop.permute.xlu2 %5084 }
 0x995   : > { %v4315_v4 = vsel %vm10373_vm2, %v4314_v40, %v4300_v39  ;;  %v5106_v42 = vsel %vm775_vm12, %v5105_v1, %v5085_v6  ;;  %v5057_v7 = vpop.permute.xlu1 %5056  ;;  %v3679_v40 = vrot.slane %v9147_v36, 4  ;;  %v10380_v39 = vld [vmem:[#allocation34_spill] sm:$0xff] }
 0x996   : > { %v5099_v48 = vsel %vm775_vm12, %v5098_v43, %v5057_v7  ;;  %5896 = vmatpush.msk.msra.mxu1 %vm1009_vm15, %v4315_v4  ;;  %v5107_v62 = vsel %vm10374_vm13, %v5106_v42, %v9342_v32  ;;  %v9601_v43 = vperm.slane %v10378_v45, %v10300_v8  ;;  %v3945_v6 = vrot.slane %v10380_v39, 4  ;;  %v10381_v7 = vld [vmem:[#allocation18_spill] sm:$0xff]  ;;  %vm10403_vm13 = vmmov %vm10359_vm1 }
 0x997   : > { %v5100_v33 = vsel %vm10359_vm1, %v5099_v48, %v9311_v60  ;;  %v3680_v10 = vsel %vm209_vm0, 0.0, %v3679_v40  ;;  %v3944_v4 = vsel %vm209_vm0, 0.0, %v3943_v17  ;;  %v9620_v11 = vperm.slane %v10381_v7, %v10300_v8  ;;  %vm10404_vm1 = vmmov %vm10373_vm2 }
 0x998   : > { %v4513_v58 = vrot.slane %v9601_v43, 4  ;;  %v3946_v48 = vsel %vm209_vm0, 0.0, %v3945_v6  ;;  %v9639_v40 = vperm.slane %v10382_v31, %v10300_v8  ;;  %v4463_v17 = vrot.slane %v10384_v44, 4  ;;  %v10387_v31 = vld [vmem:[#allocation32_spill] sm:$0xff] }
 0x999   : > { %v4515_v39 = vrot.slane %v9352_v21, 4 }
 0x99a   : > { %5347 = vrot.lane.b32.xlu2 %v9559_v20, %s6056_s7  ;;  %3718 = vrot.lane.b32.xlu0 %v3676_v41, %s6053_s4  ;;  %v4514_v42 = vsel %vm209_vm0, 0.0, %v4513_v58  ;;  %v3995_v41 = vrot.slane %v9620_v11, 4  ;;  %v4519_v58 = vrot.slane %v9419_v2, 4  ;;  %v4464_v6 = vsel %vm209_vm0, 0.0, %v4463_v17  ;;  %v10389_v17 = vld [vmem:[#allocation33_spill] sm:$0xff] }
 0x99b   : > { %3710 = vrot.lane.b32.xlu1 %v3674_v28, %s6057_s8  ;;  %v4459_v28 = vrot.slane %v9257_v16, 4  ;;  %v4516_v2 = vsel %vm209_vm0, 0.0, %v4515_v39 }
 0x99c   : > { %v5065_v53 = vpop.permute.xlu0 %5064  ;;  %v9567_v32 = vpop.permute.xlu2 %3702 }
 0x99d   : > { %v9570_v60 = vsel %vm10375_vm3, %v5100_v33, %v5065_v53  ;;  %v5093_v37 = vpop.permute.xlu1 %5092  ;;  %v3997_v53 = vrot.slane %v9236_v19, 4  ;;  %v4460_v29 = vsel %vm209_vm0, 0.0, %v4459_v28 }
 0x99e   : > { %v9575_v59 = vsel %vm10376_vm4, %v5107_v62, %v5093_v37  ;;  %v3996_v37 = vsel %vm209_vm0, 0.0, %v3995_v41  ;;  %vm10406_vm4 = vmmov %vm10398_vm5 }
 0x9a2   : > { %3690 = vrot.lane.b32.xlu2 %v3620_v3, %s6053_s4  ;;  %4012 = vrot.lane.b32.xlu0 %v3942_v26, %s6053_s4  ;;  %v3998_v3 = vsel %vm209_vm0, 0.0, %v3997_v53 }
 0x9a3   : > { %3734 = vrot.lane.b32.xlu1 %v3680_v10, %s6052_s30  ;;  %v4457_v10 = vrot.slane %v9639_v40, 4 }
 0x9a4   : > { %v9588_v56 = vpop.permute.xlu2 %3714  ;;  %v9590_v25 = vpop.permute.xlu0 %3694 }
 0x9a5   : > { %v9592_v36 = vpop.permute.xlu1 %3686  ;;  %v4458_v52 = vsel %vm209_vm0, 0.0, %v4457_v10 }
 0x9aa   : > { %3726 = vrot.lane.b32.xlu2 %v3678_v13, %s6051_s29  ;;  %4048 = vrot.lane.b32.xlu0 %v4000_v35, %s6051_s29  ;;  %v4462_v13 = vsel %vm209_vm0, 0.0, %v4461_v15  ;;  %v4002_v35 = vsel %vm209_vm0, 0.0, %v4001_v34  ;;  %v9696_v34 = vperm.slane %v10388_v24, %v10300_v8 }
 0x9ab   : > { %4004 = vrot.lane.b32.xlu1 %v3940_v22, %s6057_s8 }
 0x9ac   : > { %v9607_v50 = vpop.permute.xlu0 %3730  ;;  %v9609_v46 = vpop.permute.xlu2 %4008  ;;  %v5525_v39 = vrot.slane %v9696_v34, 4 }
 0x9ad   : > { %v9611_v1 = vpop.permute.xlu1 %3722 }
 0x9b2   : > { %4020 = vrot.lane.b32.xlu2 %v3944_v4, %s6051_s29  ;;  %4550 = vrot.lane.b32.xlu0 %v4514_v42, %s6057_s8  ;;  %v4520_v4 = vsel %vm209_vm0, 0.0, %v4519_v58  ;;  %v10385_v42 = vld [vmem:[#allocation19_spill] sm:$0xff]  ;;  %v4790_v58 = vrot.slane %v10389_v17, 4 }
 0x9b3   : > { %4028 = vrot.lane.b32.xlu1 %v3946_v48, %s6052_s30  ;;  %v9673_v7 = vperm.slane %v10385_v42, %v10300_v8  ;;  %v10386_v48 = vld [vmem:[#allocation28_spill] sm:$0xff] }
 0x9b4   : > { %v9626_v5 = vpop.permute.xlu0 %4024  ;;  %v9628_v62 = vpop.permute.xlu2 %4044  ;;  %v9677_v41 = vperm.slane %v10386_v48, %v10300_v8  ;;  %v4791_v42 = vsel %vm209_vm0, 0.0, %v4790_v58  ;;  %v5526_v48 = vsel %vm209_vm0, 0.0, %v5525_v39  ;;  %v10391_v58 = vld [vmem:[#allocation16_spill] sm:$0xff] }
 0x9b5   : > { %v9630_v33 = vpop.permute.xlu1 %4016  ;;  %v9733_v39 = vperm.slane %v10391_v58, %v10300_v8  ;;  %v5529_v58 = vrot.slane %v9389_v0, 4 }
 0x9ba   : > { %4032 = vrot.lane.b32.xlu2 %v3996_v37, %s6057_s8  ;;  %4530 = vrot.lane.b32.xlu0 %v4460_v29, %s6053_s4  ;;  %v4732_v37 = vrot.slane %v9673_v7, 4  ;;  %v4788_v29 = vrot.slane %v9677_v41, 4 }
 0x9bb   : > { %4040 = vrot.lane.b32.xlu1 %v3998_v3, %s6053_s4  ;;  %v4517_v3 = vrot.slane %v10387_v31, 4 }
 0x9bc   : > { %v9645_v26 = vpop.permute.xlu0 %4036  ;;  %v9647_v16 = vpop.permute.xlu2 %4554  ;;  %v4733_v10 = vsel %vm209_vm0, 0.0, %v4732_v37  ;;  %v4789_v15 = vsel %vm209_vm0, 0.0, %v4788_v29 }
 0x9bd   : > { %v9649_v19 = vpop.permute.xlu1 %4526 }
 0x9c2   : > { %4522 = vrot.lane.b32.xlu2 %v4458_v52, %s6057_s8  ;;  %4538 = vrot.lane.b32.xlu0 %v4462_v13, %s6051_s29  ;;  %v4518_v52 = vsel %vm209_vm0, 0.0, %v4517_v3  ;;  %v4792_v3 = vrot.slane %v9384_v12, 4 }
 0x9c3   : > { %4056 = vrot.lane.b32.xlu1 %v4002_v35, %s6052_s30 }
 0x9c4   : > { %v9660_v45 = vpop.permute.xlu0 %4052  ;;  %v9662_v22 = vpop.permute.xlu2 %4534  ;;  %v4793_v24 = vsel %vm209_vm0, 0.0, %v4792_v3 }
 0x9c5   : > { %v9664_v49 = vpop.permute.xlu1 %4542 }
 0x9ca   : > { %4546 = vrot.lane.b32.xlu2 %v4464_v6, %s6052_s30  ;;  %4574 = vrot.lane.b32.xlu0 %v4520_v4, %s6052_s30  ;;  %v10390_v6 = vld [vmem:[#allocation41_spill] sm:$0xff] }
 0x9cb   : > { %4558 = vrot.lane.b32.xlu1 %v4516_v2, %s6053_s4  ;;  %v4734_v4 = vrot.slane %v10390_v6, 4  ;;  %v10392_v6 = vld [vmem:[#allocation48_spill] sm:$0xff] }
 0x9cc   : > { %v9683_v21 = vpop.permute.xlu0 %4562  ;;  %v9685_v28 = vpop.permute.xlu2 %4570 }
 0x9cd   : > { %v9687_v53 = vpop.permute.xlu1 %4829  ;;  %v4735_v2 = vsel %vm209_vm0, 0.0, %v4734_v4  ;;  %v5527_v4 = vrot.slane %v10392_v6, 4 }
 0x9d2   : > { %4797 = vrot.lane.b32.xlu2 %v4733_v10, %s6057_s8  ;;  %4825 = vrot.lane.b32.xlu0 %v4789_v15, %s6057_s8  ;;  %v4738_v10 = vrot.slane %v9475_v23, 4  ;;  %v4736_v15 = vrot.slane %v9442_v14, 4 }
 0x9d3   : > { %4566 = vrot.lane.b32.xlu1 %v4518_v52, %s6051_s29 }
 0x9d4   : > { %v9702_v13 = vpop.permute.xlu2 %4809  ;;  %v9704_v35 = vpop.permute.xlu0 %4801  ;;  %v4739_v52 = vsel %vm209_vm0, 0.0, %v4738_v10  ;;  %v4737_v17 = vsel %vm209_vm0, 0.0, %v4736_v15  ;;  %v10393_v10 = vld [vmem:[#allocation44_spill] sm:$0xff] }
 0x9d5   : > { %v9706_v44 = vpop.permute.xlu1 %5594  ;;  %v9749_v15 = vperm.slane %v10393_v10, %v10300_v8 }
 0x9d7   : > { %v5250_v6 = vrot.slane %v9749_v15, 4 }
 0x9da   : > { %4833 = vrot.lane.b32.xlu2 %v4791_v42, %s6053_s4  ;;  %5590 = vrot.lane.b32.xlu0 %v5526_v48, %s6057_s8  ;;  %v5583_v42 = vrot.slane %v9509_v38, 4  ;;  %v5581_v48 = vrot.slane %v9733_v39, 4 }
 0x9db   : > { %4805 = vrot.lane.b32.xlu1 %v4735_v2, %s6053_s4  ;;  %v5528_v2 = vsel %vm209_vm0, 0.0, %v5527_v4  ;;  %v4794_v4 = vrot.slane %v9422_v61, 4 }
 0x9dc   : > { %v9717_v37 = vpop.permute.xlu2 %4817  ;;  %v9719_v29 = vpop.permute.xlu0 %4837  ;;  %v5584_v3 = vsel %vm209_vm0, 0.0, %v5583_v42  ;;  %v5530_v42 = vsel %vm209_vm0, 0.0, %v5529_v58  ;;  %v5252_v58 = vrot.slane %v9428_v57, 4 }
 0x9dd   : > { %v9721_v31 = vpop.permute.xlu1 %5602 }
 0x9e2   : > { %4841 = vrot.lane.b32.xlu2 %v4793_v24, %s6051_s29  ;;  %4821 = vrot.lane.b32.xlu0 %v4739_v52, %s6052_s30  ;;  %v5582_v24 = vsel %vm209_vm0, 0.0, %v5581_v48  ;;  %v4795_v48 = vsel %vm209_vm0, 0.0, %v4794_v4 }
 0x9e3   : > { %4813 = vrot.lane.b32.xlu1 %v4737_v17, %s6051_s29 }
 0x9e4   : > { %v9736_v12 = vpop.permute.xlu0 %4845  ;;  %v9738_v23 = vpop.permute.xlu2 %5622 }
 0x9e5   : > { %v9740_v14 = vpop.permute.xlu1 %5319 }
 0x9ea   : > { %5598 = vrot.lane.b32.xlu2 %v5528_v2, %s6053_s4  ;;  %5626 = vrot.lane.b32.xlu0 %v5584_v3, %s6053_s4  ;;  %v5251_v2 = vsel %vm209_vm0, 0.0, %v5250_v6  ;;  %v10394_v3 = vld [vmem:[#allocation11_spill] sm:$0xff]  ;;  %v5585_v6 = vrot.slane %v9533_v30, 4 }
 0x9eb   : > { %5618 = vrot.lane.b32.xlu1 %v5582_v24, %s6057_s8  ;;  %v9771_v10 = vperm.slane %v10394_v3, %v10300_v8 }
 0x9ec   : > { %v9755_v52 = vpop.permute.xlu2 %5630  ;;  %v9757_v38 = vpop.permute.xlu0 %5610 }
 0x9ed   : > { %v9759_v17 = vpop.permute.xlu1 %5638  ;;  %v5306_v4 = vrot.slane %v9771_v10, 4 }
 0x9ef   : > { %v5307_v3 = vsel %vm209_vm0, 0.0, %v5306_v4 }
 0x9f2   : > { %5606 = vrot.lane.b32.xlu2 %v5530_v42, %s6051_s29  ;;  %5315 = vrot.lane.b32.xlu0 %v5251_v2, %s6057_s8  ;;  %v5253_v42 = vsel %vm209_vm0, 0.0, %v5252_v58  ;;  %v5586_v2 = vsel %vm209_vm0, 0.0, %v5585_v6  ;;  %v5308_v58 = vrot.slane %v9559_v20, 4  ;;  %v5531_v6 = vrot.slane %v9446_v55, 4 }
 0x9f3   : > { %4849 = vrot.lane.b32.xlu1 %v4795_v48, %s6052_s30 }
 0x9f4   : > { %v9774_v0 = vpop.permute.xlu2 %5347  ;;  %v9776_v24 = vpop.permute.xlu0 %5327 }
 0x9f5   : > { %10395 = vst [vmem:[#allocation20_spill] sm:$0xff] %v9776_v24  ;;  %v9778_v61 = vpop.permute.xlu1 %5355 }
 0x9f6   : > { %10396 = vst [vmem:[#allocation40_spill] sm:$0xff] %v9778_v61  ;;  %v5587_v61 = vrot.slane %v9450_v9, 4  ;;  %v10397_v9 = vld [vmem:[#allocation22_spill] sm:$0xff] }
 0x9f7   : > { %v5305_v20 = vperm.slane %v10397_v9, %v10300_v8 }
 0x9fa   : > { %5323 = vrot.lane.b32.xlu2 %v5253_v42, %s6053_s4  ;;  %5634 = vrot.lane.b32.xlu0 %v5586_v2, %s6051_s29  ;;  %v5588_v42 = vsel %vm209_vm0, 0.0, %v5587_v61  ;;  %v5309_v2 = vsel %vm209_vm0, 0.0, %v5308_v58  ;;  %v5310_v58 = vrot.slane %v9484_v54, 4 }
 0x9fb   : > { %5343 = vrot.lane.b32.xlu1 %v5307_v3, %s6057_s8  ;;  %v5532_v3 = vsel %vm209_vm0, 0.0, %v5531_v6 }
 0x9fc   : > { %v3691_v48 = vpop.permute.xlu2 %3690  ;;  %v3683_v24 = vpop.permute.xlu0 %3682 }
 0x9fd   : > { %v3737_v57 = vsel %vm767_vm8, %v9488_v47, %v3683_v24  ;;  %v9791_v30 = vpop.permute.xlu1 %5335 }
 0x9fe   : > { %v3738_v4 = vsel %vm769_vm9, %v3737_v57, %v9592_v36  ;;  %v5254_v57 = vrot.slane %v9479_v51, 4 }
 0x9ff   : > { %v3739_v47 = vsel %vm771_vm10, %v3738_v4, %v3691_v48 }
 0xa00   : > { %v3740_v36 = vsel %vm773_vm11, %v3739_v47, %v9590_v25  ;;  %v5255_v4 = vsel %vm209_vm0, 0.0, %v5254_v57 }
 0xa02   : > { %5642 = vrot.lane.b32.xlu2 %v5588_v42, %s6052_s30  ;;  %5351 = vrot.lane.b32.xlu0 %v5309_v2, %s6053_s4  ;;  %v5312_v42 = vrot.slane %v5305_v20, 4  ;;  %v5311_v2 = vsel %vm209_vm0, 0.0, %v5310_v58 }
 0xa03   : > { %5614 = vrot.lane.b32.xlu1 %v5532_v3, %s6052_s30 }
 0xa04   : > { %v3727_v55 = vpop.permute.xlu2 %3726  ;;  %v3707_v24 = vpop.permute.xlu0 %3706  ;;  %v5313_v25 = vsel %vm209_vm0, 0.0, %v5312_v42 }
 0xa05   : > { %v3699_v61 = vpop.permute.xlu1 %3698 }
 0xa06   : > { %v3741_v6 = vsel %vm775_vm12, %v3740_v36, %v3699_v61 }
 0xa07   : > { %v3742_v48 = vsel %vm10398_vm5, %v3741_v6, %v9567_v32  ;;  %v5256_v32 = vrot.slane %v9514_v63, 4  ;;  %vm10407_vm5 = vmmov %vm10406_vm4 }
 0xa08   : > { %v3743_v8 = vsel %vm10399_vm6, %v3742_v48, %v3707_v24  ;;  %v5879_v24 = vld [vmem:[%s10046_s2 + $0x4] sm:$0xf]  ;;  %vm10408_vm6 = vmmov %vm10404_vm1 }
 0xa09   : > { %5880 = vmatpush.msk.msra.mxu2 %vm1009_vm15, %v3743_v8  ;;  %v5257_v61 = vsel %vm209_vm0, 0.0, %v5256_v32  ;;  %vm10402_vm0 = vmmov %vm10400_vm7 }
 0xa0a   : > { %5331 = vrot.lane.b32.xlu2 %v5255_v4, %s6051_s29  ;;  %5359 = vrot.lane.b32.xlu0 %v5311_v2, %s6051_s29  ;;  %vm10405_vm3 = vmmov %vm10402_vm0  ;;  %s5828_s29 = sshll.u32 %s161_s6, 3 }
 0xa0b   : > { %5367 = vrot.lane.b32.xlu1 %v5313_v25, %s6052_s30  ;;  %5881 = vmatmul.msk.f32.vlgmr.msra.gmra.mxu2 %vm10400_vm7, %v5879_v24  ;;  %vm10409_vm7 = vmmov %vm10404_vm1  ;;  %s163_s9 = scalar_lea.vmem [#allocation3], %s5828_s29 }
 0xa0c   : > { %v4021_v51 = vpop.permute.xlu2 %4020  ;;  %v3719_v54 = vpop.permute.xlu0 %3718  ;;  %s5762_s10 = sshll.u32 %s163_s9, 4  ;;  %s5763_s10 = int_to_ptr.vmem [resolvable:$true] %s5762_s10 }
 0xa0d   : > { %v3711_v3 = vpop.permute.xlu1 %3710 }
 0xa0e   : > { %v3744_v47 = vsel %vm767_vm8, %v9544_v27, %v3711_v3 }
 0xa0f   : > { %v3745_v9 = vsel %vm769_vm9, %v3744_v47, %v9588_v56 }
 0xa10   : > { %v3746_v36 = vsel %vm771_vm10, %v3745_v9, %v3719_v54 }
 0xa11   : > { %v3747_v57 = vsel %vm773_vm11, %v3746_v36, %v9611_v1 }
 0xa12   : > { %5363 = vrot.lane.b32.xlu2 %v5305_v20, %s6054_s5  ;;  %5339 = vrot.lane.b32.xlu0 %v5257_v61, %s6052_s30  ;;  %v3748_v63 = vsel %vm775_vm12, %v3747_v57, %v3727_v55  ;;  %s5929_s30 = sshll.u32 %s6105_s16, 3  ;;  %s5749_s16 = scalar_lea.sflag [#allocation4], %s161_s6 }
 0xa13   : > { %v3749_v58 = vsel %vm10401_vm14, %v3748_v63, %v9607_v50  ;;  %vm10410_vm14 = vmmov %vm10402_vm0  ;;  %s5760_s8 = scalar_lea.hbm %s10047_s3, %s5929_s30 }
 0xa14   : > { %v4033_v27 = vpop.permute.xlu2 %4032  ;;  %v4013_v56 = vpop.permute.xlu0 %4012  ;;  %s5764_s11 = sshll.u32 %s5760_s8, 4  ;;  %s5765_s11 = int_to_ptr.hbm [resolvable:$true] %s5764_s11 }
 0xa15   : > { %v3735_v6 = vpop.permute.xlu1 %3734  ;;  %s6001_s17 = sshra.s32 %s5765_s11, 4  ;;  %s6002_s17 = int_to_ptr.hbm [resolvable:$true] %s6001_s17 }
 0xa16   : > { %v3750_v42 = vsel %vm10373_vm2, %v3749_v58, %v3735_v6  ;;  %vm10411_vm2 = vmmov %vm10402_vm0  ;;  %s6003_s19 = scalar_lea.hbm %s6002_s17, 8  ;;  %p6008_p0 = scmp.lt.s32.totalorder %s6002_s17, %s10047_s3 }
 0xa17   : > { %5882 = vmatpush.msk.msra.mxu3 %vm1009_vm15, %v3750_v42  ;;  %p6004_p11 = scmp.ne.s32.totalorder %s6002_s17, %s6003_s19  ;;  %p6009_p1 = scmp.lt.s32.totalorder %s6007_s25, %s6003_s19 }
 0xa18   : > { %5883 = vmatmul.msk.f32.vlgmr.msra.gmra.mxu3 %vm10402_vm0, %v5879_v24 }
 0xa19   : > { %p6005_p12 = pnand %p6004_p11, %p6122_p5  ;;  %p6010_p2 = por %p6009_p1, %p6008_p0 }
 0xa1b   : > { %p6006_p13 = pneg %p6005_p12 }
 0xa1c   : > { %v4523_v48 = vpop.permute.xlu2 %4522  ;;  %v4049_v1 = vpop.permute.xlu0 %4048 }
 0xa1d   : > { %v4005_v8 = vpop.permute.xlu1 %4004  ;;  %p6011_p3 = pnand %p6010_p2, %p6006_p13 }
 0xa1e   : > { %v4059_v20 = vsel %vm767_vm8, %v9585_v18, %v4005_v8  ;;  %v5888_v18 = vld [vmem:[%s10046_s2 + $0x8] sm:$0xf] }
 0xa1f   : > { %v4060_v55 = vsel %vm769_vm9, %v4059_v20, %v9609_v46  ;;  %v4066_v46 = vsel %vm767_vm8, %v9620_v11, %v4033_v27 }
 0xa20   : > { %v4061_v4 = vsel %vm771_vm10, %v4060_v55, %v4013_v56 }
 0xa21   : > { %v4062_v50 = vsel %vm773_vm11, %v4061_v4, %v9630_v33 }
 0xa22   : > { %v4063_v2 = vsel %vm775_vm12, %v4062_v50, %v4021_v51  ;;  %v4577_v51 = vsel %vm767_vm8, %v9639_v40, %v4523_v48 }
 0xa23   : > { %v4064_v3 = vsel %vm10403_vm13, %v4063_v2, %v9626_v5  ;;  %v4067_v5 = vsel %vm769_vm9, %v4066_v46, %v9645_v26  ;;  %v4578_v57 = vsel %vm769_vm9, %v4577_v51, %v9649_v19  ;;  %vm10412_vm13 = vmmov %vm10406_vm4 }
 0xa24   : > { %v4547_v25 = vpop.permute.xlu2 %4546  ;;  %v4551_v54 = vpop.permute.xlu0 %4550 }
 0xa25   : > { %v4029_v32 = vpop.permute.xlu1 %4028  ;;  %v4584_v48 = vsel %vm767_vm8, %v9601_v43, %v4551_v54 }
 0xa26   : > { %v4065_v47 = vsel %vm10404_vm1, %v4064_v3, %v4029_v32  ;;  %v4585_v8 = vsel %vm769_vm9, %v4584_v48, %v9647_v16 }
 0xa27   : > { %5889 = vmatpush.msk.msrb.mxu2 %vm1009_vm15, %v4065_v47 }
 0xa28   : > { %5890 = vmatmul.msk.f32.vlgmr.msrb.gmra.mxu2 %vm10405_vm3, %v5888_v18  ;;  %vm10413_vm3 = vmmov %vm10402_vm0 }
 0xa2c   : > { %v4531_v33 = vpop.permute.xlu0 %4530  ;;  %v4798_v9 = vpop.permute.xlu2 %4797 }
 0xa2d   : > { %v4041_v24 = vpop.permute.xlu1 %4040  ;;  %v4579_v63 = vsel %vm771_vm10, %v4578_v57, %v4531_v33  ;;  %v4852_v3 = vsel %vm767_vm8, %v9673_v7, %v4798_v9  ;;  %v5908_v33 = vld [vmem:[%s10046_s2 + $0x18] sm:$0xf] }
 0xa2e   : > { %v4068_v36 = vsel %vm771_vm10, %v4067_v5, %v4041_v24  ;;  %v4580_v40 = vsel %vm773_vm11, %v4579_v63, %v9662_v22  ;;  %v3536_v22 = vld [vmem:[%s10046_s2] sm:$0xf] }
 0xa2f   : > { %v4069_v61 = vsel %vm773_vm11, %v4068_v36, %v9628_v62  ;;  %5885 = vmatmul.msk.f32.vlgmr.msrb.gmra.mxu0 %vm10411_vm2, %v3536_v22  ;;  %5887 = vmatmul.msk.f32.vlgmr.msrb.gmra.mxu1 %vm10402_vm0, %v3536_v22  ;;  %vm10419_vm2 = vmmov %vm10402_vm0  ;;  %v5918_v22 = vld [vmem:[%s10046_s2 + $0x20] sm:$0xf] }
 0xa30   : > { %v4070_v11 = vsel %vm775_vm12, %v4069_v61, %v4049_v1 }
 0xa31   : > { %v4071_v26 = vsel %vm10406_vm4, %v4070_v11, %v9660_v45  ;;  %vm10414_vm4 = vmmov %vm10402_vm0 }
 0xa34   : > { %v4539_v27 = vpop.permute.xlu0 %4538  ;;  %v4834_v19 = vpop.permute.xlu2 %4833 }
 0xa35   : > { %v4581_v56 = vsel %vm775_vm12, %v4580_v40, %v4539_v27  ;;  %v4057_v58 = vpop.permute.xlu1 %4056 }
 0xa36   : > { %v4582_v62 = vsel %vm10407_vm5, %v4581_v56, %v9664_v49  ;;  %v4072_v6 = vsel %vm10408_vm6, %v4071_v26, %v4057_v58  ;;  %vm10415_vm5 = vmmov %vm10402_vm0 }
 0xa37   : > { %5891 = vmatpush.msk.msrb.mxu3 %vm1009_vm15, %v4072_v6  ;;  %v4583_v42 = vsel %vm10409_vm7, %v4582_v62, %v4547_v25  ;;  %vm10416_vm6 = vmmov %vm10402_vm0 }
 0xa38   : > { %5899 = vmatpush.msk.msra.mxu2 %vm1009_vm15, %v4583_v42  ;;  %5892 = vmatmul.msk.f32.vlgmr.msrb.gmra.mxu3 %vm10410_vm14, %v5888_v18  ;;  %vm10417_vm7 = vmmov %vm10412_vm13 }
 0xa39   : > { %vm10418_vm14 = vmmov %vm10402_vm0 }
 0xa3a   : > { %5909 = vmatpush.msk.msrb.mxu2 %vm1009_vm15, %v9570_v60  ;;  %vm10420_vm0 = vmmov %vm10404_vm1 }
 0xa3c   : > { %v4575_v45 = vpop.permute.xlu0 %4574  ;;  %v4842_v1 = vpop.permute.xlu2 %4841 }
 0xa3d   : > { %v4559_v49 = vpop.permute.xlu1 %4558 }
 0xa3e   : > { %v4586_v20 = vsel %vm771_vm10, %v4585_v8, %v4559_v49 }
 0xa3f   : > { %v4587_v4 = vsel %vm773_vm11, %v4586_v20, %v9683_v21  ;;  %v5898_v21 = vld [vmem:[%s10046_s2 + $0x10] sm:$0xf] }
 0xa40   : > { %5900 = vmatmul.msk.f32.vlgmr.msra.gmra.mxu2 %vm10413_vm3, %v5898_v21  ;;  %vm10423_vm3 = vmmov %vm10420_vm0 }
 0xa44   : > { %v4826_v55 = vpop.permute.xlu0 %4825  ;;  %v5599_v43 = vpop.permute.xlu2 %5598 }
 0xa45   : > { %v4567_v60 = vpop.permute.xlu1 %4566  ;;  %v4859_v51 = vsel %vm767_vm8, %v9677_v41, %v4826_v55 }
 0xa46   : > { %v4588_v50 = vsel %vm775_vm12, %v4587_v4, %v4567_v60  ;;  %v4860_v24 = vsel %vm769_vm9, %v4859_v51, %v9687_v53 }
 0xa47   : > { %v4589_v2 = vsel %vm10412_vm13, %v4588_v50, %v9685_v28  ;;  %v5893_v28 = vld [vmem:[%s10046_s2 + $0xc] sm:$0xf]  ;;  %vm10421_vm13 = vmmov %vm10419_vm2  ;;  %v4861_v41 = vsel %vm771_vm10, %v4860_v24, %v4834_v19 }
 0xa48   : > { %v4590_v25 = vsel %vm10404_vm1, %v4589_v2, %v4575_v45  ;;  %5895 = vmatmul.msk.f32.vlgmr.msra.gmra.mxu0 %vm10415_vm5, %v5893_v28  ;;  %5897 = vmatmul.msk.f32.vlgmr.msra.gmra.mxu1 %vm10416_vm6, %v5893_v28  ;;  %v4862_v57 = vsel %vm773_vm11, %v4861_v41, %v9719_v29  ;;  %vm10422_vm1 = vmmov %vm10417_vm7  ;;  %v10431_v50 = vld [vmem:[#allocation40_spill] sm:$0xff] }
 0xa49   : > { %5901 = vmatpush.msk.msra.mxu3 %vm1009_vm15, %v4590_v25  ;;  %5910 = vmatmul.msk.f32.vlgmr.msrb.gmra.mxu2 %vm10418_vm14, %v5908_v33  ;;  %v4863_v63 = vsel %vm775_vm12, %v4862_v57, %v4842_v1  ;;  %vm10425_vm5 = vmmov %vm10422_vm1 }
 0xa4a   : > { %5902 = vmatmul.msk.f32.vlgmr.msra.gmra.mxu3 %vm10414_vm4, %v5898_v21  ;;  %v4864_v53 = vsel %vm10422_vm1, %v4863_v63, %v9736_v12  ;;  %vm10424_vm4 = vmmov %vm10419_vm2 }
 0xa4b   : > { %5911 = vmatpush.msk.msrb.mxu3 %vm1009_vm15, %v9575_v59  ;;  %v4853_v59 = vsel %vm769_vm9, %v4852_v3, %v9704_v35  ;;  %vm10426_vm6 = vmmov %vm10420_vm0 }
 0xa4c   : > { %v5591_v16 = vpop.permute.xlu0 %5590  ;;  %v5607_v18 = vpop.permute.xlu2 %5606  ;;  %vm10428_vm14 = vmmov %vm10422_vm1 }
 0xa4d   : > { %v4806_v54 = vpop.permute.xlu1 %4805  ;;  %v5645_v56 = vsel %vm767_vm8, %v9696_v34, %v5591_v16 }
 0xa4e   : > { %v4854_v7 = vsel %vm771_vm10, %v4853_v59, %v4806_v54  ;;  %v5646_v29 = vsel %vm769_vm9, %v5645_v56, %v9706_v44 }
 0xa4f   : > { %v4855_v47 = vsel %vm773_vm11, %v4854_v7, %v9702_v13  ;;  %v5903_v13 = vld [vmem:[%s10046_s2 + $0x14] sm:$0xf]  ;;  %v5647_v12 = vsel %vm771_vm10, %v5646_v29, %v5599_v43 }
 0xa50   : > { %v5648_v45 = vsel %vm773_vm11, %v5647_v12, %v9721_v31 }
 0xa52   : > { %5912 = vmatmul.msk.f32.vlgmr.msrb.gmra.mxu3 %vm10419_vm2, %v5908_v33 }
 0xa54   : > { %v4822_v32 = vpop.permute.xlu0 %4821  ;;  %v5324_v61 = vpop.permute.xlu2 %5323 }
 0xa55   : > { %v4814_v46 = vpop.permute.xlu1 %4813 }
 0xa56   : > { %v4856_v9 = vsel %vm775_vm12, %v4855_v47, %v4814_v46 }
 0xa57   : > { %v4857_v35 = vsel %vm10417_vm7, %v4856_v9, %v9717_v37  ;;  %vm10427_vm7 = vmmov %vm10419_vm2 }
 0xa58   : > { %v4858_v5 = vsel %vm10420_vm0, %v4857_v35, %v4822_v32  ;;  %vm10429_vm2 = vmmov %vm10420_vm0 }
 0xa59   : > { %5904 = vmatpush.msk.msrb.mxu0 %vm1009_vm15, %v4858_v5  ;;  %vm10430_vm0 = vmmov %vm10424_vm4 }
 0xa5a   : > { %5905 = vmatmul.msk.f32.vlgmr.msrb.gmra.mxu0 %vm10421_vm13, %v5903_v13  ;;  %vm10436_vm13 = vmmov %vm10422_vm1 }
 0xa5c   : > { %v5627_v37 = vpop.permute.xlu0 %5626 }
 0xa5d   : > { %v5619_v36 = vpop.permute.xlu1 %5618 }
 0xa5e   : > { %v5652_v11 = vsel %vm767_vm8, %v9733_v39, %v5619_v36  ;;  %v5643_v39 = vpop.permute.xlu2 %5642 }
 0xa5f   : > { %v5653_v26 = vsel %vm769_vm9, %v5652_v11, %v9738_v23 }
 0xa60   : > { %v5654_v62 = vsel %vm771_vm10, %v5653_v26, %v5627_v37 }
 0xa61   : > { %v5655_v34 = vsel %vm773_vm11, %v5654_v62, %v9755_v52  ;;  %v5649_v52 = vsel %vm775_vm12, %v5648_v45, %v5607_v18 }
 0xa62   : > { %v5650_v8 = vsel %vm10428_vm14, %v5649_v52, %v9757_v38 }
 0xa64   : > { %v5316_v27 = vpop.permute.xlu0 %5315 }
 0xa65   : > { %v4850_v40 = vpop.permute.xlu1 %4849 }
 0xa66   : > { %v4865_v58 = vsel %vm10423_vm3, %v4864_v53, %v4850_v40  ;;  %v5332_v49 = vpop.permute.xlu2 %5331  ;;  %vm10438_vm3 = vmmov %vm10430_vm0 }
 0xa67   : > { %5906 = vmatpush.msk.msrb.mxu1 %vm1009_vm15, %v4865_v58 }
 0xa68   : > { %5907 = vmatmul.msk.f32.vlgmr.msrb.gmra.mxu1 %vm10424_vm4, %v5903_v13 }
 0xa6c   : > { %v5635_v6 = vpop.permute.xlu0 %5634 }
 0xa6d   : > { %v5656_v23 = vsel %vm775_vm12, %v5655_v34, %v5635_v6  ;;  %v5344_v19 = vpop.permute.xlu1 %5343 }
 0xa6e   : > { %v5657_v42 = vsel %vm10425_vm5, %v5656_v23, %v9759_v17  ;;  %v5370_v17 = vsel %vm767_vm8, %v9749_v15, %v5316_v27  ;;  %v5377_v1 = vsel %vm767_vm8, %v9771_v10, %v5344_v19  ;;  %v5364_v2 = vpop.permute.xlu2 %5363  ;;  %vm10432_vm8 = vmmov %vm10422_vm1 }
 0xa6f   : > { %v5658_v44 = vsel %vm10426_vm6, %v5657_v42, %v5643_v39  ;;  %v5371_v55 = vsel %vm769_vm9, %v5370_v17, %v9740_v14  ;;  %v5378_v4 = vsel %vm769_vm9, %v5377_v1, %v9774_v0  ;;  %v5913_v14 = vld [vmem:[%s10046_s2 + $0x1c] sm:$0xf]  ;;  %v10433_v0 = vld [vmem:[#allocation20_spill] sm:$0xff]  ;;  %vm10434_vm9 = vmmov %vm10429_vm2 }
 0xa70   : > { %5921 = vmatpush.msk.msra.mxu3 %vm1009_vm15, %v5658_v44  ;;  %v5372_v10 = vsel %vm771_vm10, %v5371_v55, %v5324_v61  ;;  %vm10437_vm1 = vmmov %vm10429_vm2 }
 0xa71   : > { %5922 = vmatmul.msk.f32.vlgmr.msra.gmra.mxu3 %vm10427_vm7, %v5918_v22  ;;  %v5373_v54 = vsel %vm773_vm11, %v5372_v10, %v10433_v0 }
 0xa72   : > { %v5374_v21 = vsel %vm775_vm12, %v5373_v54, %v5332_v49 }
 0xa73   : > { %v5375_v59 = vsel %vm10436_vm13, %v5374_v21, %v9791_v30  ;;  %v5986_v21 = vld [vmem:[%s6137_s28] sm:$0xff] }
 0xa74   : > { %v5352_v48 = vpop.permute.xlu0 %5351 }
 0xa75   : > { %v5615_v20 = vpop.permute.xlu1 %5614  ;;  %v5379_v15 = vsel %vm771_vm10, %v5378_v4, %v5352_v48  ;;  %vm10435_vm10 = vmmov %vm10430_vm0 }
 0xa76   : > { %v5651_v31 = vsel %vm10429_vm2, %v5650_v8, %v5615_v20  ;;  %v5380_v38 = vsel %vm773_vm11, %v5379_v15, %v10431_v50 }
 0xa77   : > { %5919 = vmatpush.msk.msra.mxu2 %vm1009_vm15, %v5651_v31 }
 0xa78   : > { %5920 = vmatmul.msk.f32.vlgmr.msra.gmra.mxu2 %vm10430_vm0, %v5918_v22 }
 0xa7c   : > { %v5360_v60 = vpop.permute.xlu0 %5359 }
 0xa7d   : > { %v5381_v25 = vsel %vm775_vm12, %v5380_v38, %v5360_v60  ;;  %v5368_v16 = vpop.permute.xlu1 %5367 }
 0xa7e   : > { %v5382_v43 = vsel %vm10432_vm8, %v5381_v25, %v5364_v2 }
 0xa7f   : > { %v5383_v3 = vsel %vm10434_vm9, %v5382_v43, %v5368_v16 }
 0xa80   : > { %5916 = vmatpush.msk.msra.mxu1 %vm1009_vm15, %v5383_v3 }
 0xa81   : > { %5917 = vmatmul.msk.f32.vlgmr.msra.gmra.mxu1 %vm10435_vm10, %v5913_v14 }
 0xa84   : > { %v5340_v28 = vpop.permute.xlu0 %5339 }
 0xa85   : > { %v5376_v7 = vsel %vm10437_vm1, %v5375_v59, %v5340_v28 }
 0xa86   : > { %5914 = vmatpush.msk.msra.mxu0 %vm1009_vm15, %v5376_v7 }
 0xa87   : > { %5915 = vmatmul.msk.f32.vlgmr.msra.gmra.mxu0 %vm10438_vm3, %v5913_v14 }
 0xa8e   : > { %v3779_v18 = vpop.f32.mrf.mxu2 }
 0xa9b   : > { %v3799_v32 = vpop.f32.mrf.mxu3 }
 0xaab   : > { %v4101_v51 = vpop.f32.mrf.mxu2 }
 0xaac   : > { %v3848_v47 = vpop.f32.mrf.mxu1  ;;  %v3828_v33 = vpop.f32.mrf.mxu0 }
 0xaad   : > { %v3849_v9 = vadd.f32 %v3848_v47, %v3799_v32  ;;  %v3829_v13 = vadd.f32 %v3828_v33, %v3779_v18 }
 0xaaf   : > { %v4124_v30 = vadd.f32 %v4101_v51, %v3829_v13 }
 0xabb   : > { %v4121_v46 = vpop.f32.mrf.mxu3 }
 0xabc   : > { %v4125_v5 = vadd.f32 %v4121_v46, %v3849_v9 }
 0xac3   : > { %v4619_v37 = vpop.f32.mrf.mxu2 }
 0xac5   : > { %v4364_v35 = vpop.f32.mrf.mxu1  ;;  %v4344_v41 = vpop.f32.mrf.mxu0 }
 0xac6   : > { %v4368_v36 = vadd.f32 %v4364_v35, %v4125_v5  ;;  %v4367_v57 = vadd.f32 %v4344_v41, %v4124_v30 }
 0xac8   : > { %v4642_v27 = vadd.f32 %v4619_v37, %v4367_v57 }
 0xacc   : > { %v5137_v56 = vpop.f32.mrf.mxu2 }
 0xacd   : > { %v4639_v24 = vpop.f32.mrf.mxu3 }
 0xace   : > { %v4643_v63 = vadd.f32 %v4639_v24, %v4368_v36 }
 0xad5   : > { %v5157_v11 = vpop.f32.mrf.mxu3 }
 0xad7   : > { %v4894_v40 = vpop.f32.mrf.mxu0 }
 0xad8   : > { %v4917_v58 = vadd.f32 %v4894_v40, %v4642_v27 }
 0xada   : > { %v5160_v12 = vadd.f32 %v5137_v56, %v4917_v58 }
 0xae5   : > { %v4914_v61 = vpop.f32.mrf.mxu1 }
 0xae6   : > { %v4918_v53 = vadd.f32 %v4914_v61, %v4643_v63 }
 0xae8   : > { %v5161_v29 = vadd.f32 %v5157_v11, %v4918_v53 }
 0xaf4   : > { %v5707_v62 = vpop.f32.mrf.mxu3 }
 0xafb   : > { %v5687_v34 = vpop.f32.mrf.mxu2 }
 0xafe   : > { %v5432_v26 = vpop.f32.mrf.mxu1 }
 0xaff   : > { %v5436_v39 = vadd.f32 %v5432_v26, %v5161_v29 }
 0xb01   : > { %v5711_v23 = vadd.f32 %v5707_v62, %v5436_v39 }
 0xb03   : > { %v5713_v22 = vsel %vm1009_vm15, %v5711_v23, 0.0 }
 0xb04   : > { %v5412_v6 = vpop.f32.mrf.mxu0 }
 0xb05   : > { %v5435_v19 = vadd.f32 %v5412_v6, %v5160_v12 }
 0xb07   : > { %v5710_v42 = vadd.f32 %v5687_v34, %v5435_v19 }
 0xb09   : > { %v5712_v44 = vsel %vm1009_vm15, %v5710_v42, 0.0 }
 0xb0a   : > { %v5714_v45 = vadd.f32 %v5713_v22, %v5712_v44 }
 0xb0c   : > { %5715 = vadd.xlane.f32.xlu2 %v5714_v45 }
 0xb7f   : > { %v5716_v52 = vpop.xlane.xlu2 %5715 }
 0xb80   : > { %v5717_v49 = vmul.f32 0.00390625, %v5716_v52 }
 0xb82   : > { %v5718_v48 = vsub.f32 %v5710_v42, %v5717_v49  ;;  %v5719_v17 = vsub.f32 %v5711_v23, %v5717_v49 }
 0xb84   : > { %v5720_v1 = vmul.f32 %v5718_v48, %v5718_v48  ;;  %v5721_v8 = vmul.f32 %v5719_v17, %v5719_v17 }
 0xb86   : > { %v5722_v20 = vsel %vm1009_vm15, %v5720_v1, 0.0  ;;  %v5723_v31 = vsel %vm1009_vm15, %v5721_v8, 0.0 }
 0xb87   : > { %v5724_v55 = vadd.f32 %v5723_v31, %v5722_v20 }
 0xb89   : > { %5725 = vadd.xlane.f32.xlu0 %v5724_v55 }
 0xbfc   : > { %v5726_v4 = vpop.xlane.xlu0 %5725 }
 0xbfd   : > { %v5727_v15 = vmul.f32 0.00390625, %v5726_v4 }
 0xbff   : > { %v5728_v10 = vadd.f32 1e-05, %v5727_v15 }
 0xc01   : > { %5984 = vrsqrt.f32 %v5728_v10  ;;  %vm5735_vm12 = vweird.f32 %v5728_v10 }
 0xc07   : > { %v5985_v60 = vpop.eup %5984 }
 0xc08   : > { %v5730_v50 = vmul.f32 %v5985_v60, %v5728_v10  ;;  %vm5736_vm11 = vweird.f32 %v5985_v60 }
 0xc09   : > { %vm5737_vm4 = vmor %vm5735_vm12, %vm5736_vm11 }
 0xc0a   : > { %v5731_v38 = vmul.f32 %v5985_v60, %v5730_v50 }
 0xc0c   : > { %v5732_v2 = vmul.f32 0.5, %v5731_v38 }
 0xc0e   : > { %v5733_v25 = vsub.f32 1.5, %v5732_v2 }
 0xc10   : > { %v5734_v43 = vmul.f32 %v5985_v60, %v5733_v25 }
 0xc12   : > { %v5738_v16 = vsel %vm5737_vm4, %v5985_v60, %v5734_v43 }
 0xc13   : > { %v5740_v14 = vmul.f32 %v5738_v16, %v5719_v17  ;;  %v5739_v0 = vmul.f32 %v5738_v16, %v5718_v48 }
 0xc15   : > { %v5743_v54 = vrot.slane %v5740_v14, 4 }
 0xc17   : > { %v5744_v3 = vsel %vm1009_vm15, %v5739_v0, %v5743_v54 }
 0xc18   : > { %v5746_v28 = vadd.f32 %v5986_v21, %v5744_v3 }
 0xc1a   : > { %5747 = vst [vmem:[%s163_s9] sm:$0xff] %v5746_v28 }
 0xc1b   : > { %6014 = shalt.err (!%p6011_p3)
}
 0xc1c   : > { %5930 = dma.vmem_to_hbm [thread:$0]  (%p6122_p5), %s5763_s10, 128, %s5765_s11, %s5749_s16  }
 0xc1d PF: > { %p5936_p4 = scmp.ge.s32.totalorder %s6049_s15, 2  ;;  %s5776_s28 = sand.u32 1, %s6037_s12  }
 0xc1e   : > { %s5777_s4 = scalar_lea.sflag [#allocation4], %s5776_s28 }
 0xc1f   : > { %p5933_p7 = pnand %p5936_p4, %p6126_p6 }
 0xc21   : > { %p5934_p8 = pneg %p5933_p7 }
 0xc23   : > { %6032 = dma.done.wait (%p5934_p8), %s5777_s4, 128  }
 0xc24   : > { %6034 = vsyncadd (%p5934_p8), %s5777_s4, 4294967168  ;;  %p13_p9 = scmp.ge.s32.totalorder %s6109_s18, 4   ;;  %s10439_s12 = smov %s6041_s13 }
 0xc25   : > { %s10440_s13 = smov %s6045_s14  ;;  %s10441_s14 = smov %s6120_s21 }
 0xc26   : > { %s10442_s15 = smov %s6109_s18  ;;  %15 = sbr.rel (!%p13_p9) target bundleno = 3 (0x3), region = 90 }
 0xc2b   :  { %5783 = vsyncpa [#allocation4], 1 }
 0xc2c   :  { %5785 = vsyncpa [#allocation4 + $0x1], 1 }

// kernel: tpu_custom_call.1
= control target key start
LH: loop header
LB: loop body
LE: loop exit
PB: predicated region body
PF: predicated region fallthrough
CT: control target
= control target key end

     0   :  { %8 = vsyncpa [#allocation4], 0  ;;  %s10044_s0 = inlined_call_operand.vmem [shape: f32[2,4,256], index: 0, kind: input, shape index: {}]   ;;  %s10045_s1 = inlined_call_operand.vmem [shape: f32[9,4,4], index: 1, kind: input, shape index: {}]   ;;  %s10046_s2 = inlined_call_operand.vmem [shape: f32[9,4,4], index: 2, kind: input, shape index: {}]   ;;  %s10047_s3 = inlined_call_operand.hbm [shape: f32[2,4,256], index: 3, kind: output, shape index: {}]  }
   0x1   :  { %10 = vsyncpa [#allocation4 + $0x1], 0  ;;  %s6084_s12 = smov 0   ;;  %s6086_s13 = smov 0  }
   0x2   :  { %s6088_s14 = smov 0   ;;  %s6090_s15 = smov 0  }
   0x3 LB: > { %s6105_s16 = sadd.s32 4294967295, %s6049_s15   ;;  %s5824_s17 = sadd.s32 4294967294, %s6049_s15   ;;  %s6049_s15 = sphi %s6090_s15, %s10442_s15   ;;  %s6045_s14 = sphi %s6088_s14, %s10441_s14   ;;  %s6041_s13 = sphi %s6086_s13, %s10440_s13   ;;  %s6037_s12 = sphi %s6084_s12, %s10439_s12  }
   0x4   : > { %s6109_s18 = sadd.s32 1, %s6049_s15   ;;  %s91_s19 = sadd.s32 1, %s6045_s14 }
   0x5   : > { %s88_s20 = ssub.s32 %s6049_s15, %s6109_s18  ;;  %p101_p0 = scmp.ne.s32.totalorder %s6045_s14, %s6041_s13 }
   0x6   : > { %p89_p1 = scmp.eq.s32.totalorder %s88_s20, 0  ;;  %p102_p2 = scmp.eq.s32.totalorder %s6105_s16, 1 }
   0x7   : > { %p107_p3 = scmp.ne.s32.totalorder %s6041_s13, %s6037_s12  ;;  %p108_p4 = scmp.eq.s32.totalorder %s5824_s17, 1 }
   0x8   : > { %s6120_s21 = scalar_select %p89_p1, %s6045_s14, %s91_s19  }
   0x9   : > { %p6122_p5 = por %p102_p2, %p101_p0  ;;  %p6126_p6 = por %p108_p4, %p107_p3 }
   0xa   : > { %p5827_p7 = scmp.ge.s32.totalorder %s6049_s15, 1  ;;  %p140_p8 = scmp.lt.s32.totalorder %s6049_s15, 3 }
   0xc   : > { %p141_p9 = pnand %p5827_p7, %p140_p8 }
   0xe   : > { %144 = sbr.rel (%p141_p9) target bundleno = 3101 (0xc1d), region = 32 }
  0x13   : > { %p164_p10 = scmp.lt.s32.totalorder %s6105_s16, 1  ;;  %s6051_s29 = smov 80   ;;  %v6058_v2 = vmov 1983009808   ;;  %vm209_vm0 = vcmask 1047556   ;;  %vm417_vm1 = vcmask 132105  }
  0x14   : > { %s6052_s30 = smov 112   ;;  %s6053_s4 = smov 48   ;;  %v212_v3 = vunpack.c.l.s4 %v6058_v2  ;;  %v6059_v12 = vmov 1934713408   ;;  %vm438_vm2 = vcmask 133130   ;;  %vm392_vm3 = vcmask 138248  }
  0x15   : > { %s165_s24 = scalar_select %p164_p10, %s6105_s16, 1  ;;  %v226_v13 = vunpack.c.l.s4 %v6059_v12  ;;  %vm506_vm4 = vcmask 1024   ;;  %vm503_vm5 = vcmask 7168   ;;  %vm577_vm6 = vcmask 146568  }
  0x16   : > { %s6054_s5 = smov 96   ;;  %s6055_s6 = smov 64   ;;  %v6147_v8 = vunpack.c.0.s8 %v212_v3  ;;  %vm580_vm7 = vcmask 140424   ;;  %vm767_vm8 = vcmask 130048   ;;  %vm769_vm9 = vcmask 261120  }
  0x17   : > { %s5928_s25 = sshll.u32 %s165_s24, 3  ;;  %s6056_s7 = smov 32   ;;  %v6154_v22 = vunpack.c.0.s8 %v226_v13  ;;  %vm771_vm10 = vcmask 392192   ;;  %vm773_vm11 = vcmask 523264   ;;  %vm775_vm12 = vcmask 654336  }
  0x18   : > { %s6137_s28 = scalar_lea.vmem %s10044_s0, %s5928_s25  ;;  %s6057_s8 = smov 16   ;;  %10122 = vst [vmem:[#allocation6_spill] sm:$0xff] %v6147_v8  ;;  %vm10092_vm13 = vcmask 785408   ;;  %vm10091_vm14 = vcmask 916480   ;;  %vm1009_vm15 = vcmask 1043456  }
  0x19   : > { %v169_v0 = vld [vmem:[%s6137_s28] sm:$0xff]  ;;  %10123 = vst [vmem:[#allocation7_spill] sm:$0xff] %v6154_v22  ;;  %s6060_s9 = smov 1   ;;  %s6061_s10 = smov 126  }
  0x1a   : > { %181 = vrot.lane.b32.xlu1 %v169_v0, %s6051_s29  ;;  %173 = vrot.lane.b32.xlu0 %v169_v0, %s6052_s30  ;;  %v171_v11 = vrot.slane %v169_v0, 4  ;;  %s6062_s11 = smov 2   ;;  %s6063_s17 = smov 127  }
  0x1b   : > { %189 = vrot.lane.b32.xlu2 %v169_v0, %s6053_s4  ;;  %s6007_s25 = scalar_lea.hbm %s10047_s3, 16 }
  0x22   : > { %177 = vrot.lane.b32.xlu0 %v169_v0, %s6054_s5  ;;  %185 = vrot.lane.b32.xlu1 %v169_v0, %s6055_s6 }
  0x23   : > { %193 = vrot.lane.b32.xlu2 %v169_v0, %s6056_s7 }
  0x2a   : > { %197 = vrot.lane.b32.xlu0 %v169_v0, %s6057_s8 }
  0x75   : > { %v190_v1 = vpop.permute.xlu2 %189 }
  0x76   : > { %v191_v35 = vrot.slane %v190_v1, 4 }
  0x7d   : > { %v194_v15 = vpop.permute.xlu2 %193 }
  0x7e   : > { %v237_v30 = vrot.slane %v194_v15, 4 }
  0x8c   : > { %v182_v4 = vpop.permute.xlu1 %181  ;;  %v174_v5 = vpop.permute.xlu0 %173 }
  0x8d   : > { %v215_v6 = vrot.slane %v182_v4, 4  ;;  %v175_v7 = vrot.slane %v174_v5, 4 }
  0x8f   : > { %v272_v9 = vsel %vm209_vm0, %v182_v4, %v175_v7  ;;  %v216_v10 = vsel %vm209_vm0, %v215_v6, %v174_v5 }
  0x90   : > { %v276_v14 = vperm.slane %v272_v9, %v6147_v8  ;;  %v220_v16 = vperm.slane %v216_v10, %v6147_v8 }
  0x92   : > { %v277_v23 = vrot.slane %v276_v14, 4  ;;  %v221_v27 = vrot.slane %v220_v16, 4 }
  0x94   : > { %v178_v17 = vpop.permute.xlu0 %177  ;;  %v186_v18 = vpop.permute.xlu1 %185 }
  0x95   : > { %v208_v19 = vrot.slane %v178_v17, 4  ;;  %v266_v20 = vsel %vm209_vm0, %v178_v17, %v171_v11  ;;  %v187_v21 = vrot.slane %v186_v18, 4  ;;  %v238_v38 = vsel %vm209_vm0, %v237_v30, %v186_v18 }
  0x96   : > { %v270_v24 = vperm.slane %v266_v20, %v6147_v8  ;;  %v242_v50 = vperm.slane %v238_v38, %v6147_v8 }
  0x97   : > { %v210_v25 = vsel %vm209_vm0, %v208_v19, %v169_v0  ;;  %v294_v26 = vsel %vm209_vm0, %v194_v15, %v187_v21 }
  0x98   : > { %v214_v28 = vperm.slane %v210_v25, %v6147_v8  ;;  %v278_v29 = vsel %vm209_vm0, %v277_v23, %v270_v24  ;;  %v298_v31 = vperm.slane %v294_v26, %v6147_v8  ;;  %v279_v49 = vrot.slane %v270_v24, 4 }
  0x99   : > { %v284_v32 = vperm.slane %v278_v29, %v6154_v22  ;;  %v251_v60 = vrot.slane %v242_v50, 4 }
  0x9a   : > { %v223_v33 = vrot.slane %v214_v28, 4  ;;  %v222_v34 = vsel %vm209_vm0, %v221_v27, %v214_v28  ;;  %v307_v39 = vrot.slane %v298_v31, 4  ;;  %v280_v62 = vsel %vm209_vm0, %v276_v14, %v279_v49 }
  0x9b   : > { %v228_v36 = vperm.slane %v222_v34, %v6154_v22  ;;  %341 = vst [vmem:[#allocation1 + $0x10] ss:$2 sm:$0xff] %v284_v32  ;;  %v289_v37 = vrot.slane %v284_v32, 4  ;;  %v288_v6 = vperm.slane %v280_v62, %v6154_v22 }
  0x9c   : > { %v198_v40 = vpop.permute.xlu0 %197  ;;  %v224_v41 = vsel %vm209_vm0, %v220_v16, %v223_v33 }
  0x9d   : > { %v243_v42 = vrot.slane %v198_v40, 4  ;;  %v300_v43 = vsel %vm209_vm0, %v198_v40, %v191_v35  ;;  %v401_v44 = vperm.slane %v228_v36, 1  ;;  %337 = vst [vmem:[#allocation1] ss:$2 sm:$0xff] %v228_v36  ;;  %v6169_v45 = vperm.slane %v224_v41, %v6154_v22 }
  0x9e   : > { %v304_v46 = vperm.slane %v300_v43, %v6147_v8  ;;  %v233_v47 = vrot.slane %v228_v36, 4  ;;  %v290_v48 = vsel %vm209_vm0, 0.0, %v289_v37  ;;  %v291_v14 = vrot.slane %v288_v6, 4 }
  0x9f   : > { %v244_v51 = vsel %vm209_vm0, %v243_v42, %v190_v1  ;;  %405 = vrot.lane.b32.xlu0 %v401_v44, %s6060_s9  ;;  %v403_v52 = vperm.slane %v6169_v45, 1  ;;  %351 = vst [vmem:[#allocation1 + $0x30] ss:$2 sm:$0xff] %v290_v48  ;;  %v235_v4 = vrot.slane %v6169_v45, 4 }
  0xa0   : > { %v248_v53 = vperm.slane %v244_v51, %v6147_v8  ;;  %v305_v54 = vrot.slane %v304_v46, 4  ;;  %v308_v55 = vsel %vm209_vm0, %v304_v46, %v307_v39  ;;  %v234_v56 = vsel %vm209_vm0, 0.0, %v233_v47 }
  0xa1   : > { %409 = vrot.lane.b32.xlu2 %v403_v52, %s6060_s9  ;;  %v316_v57 = vperm.slane %v308_v55, %v6154_v22  ;;  %347 = vst [vmem:[#allocation1 + $0x20] ss:$2 sm:$0xff] %v234_v56  ;;  %v236_v12 = vsel %vm209_vm0, 0.0, %v235_v4  ;;  %v402_v18 = vperm.slane %v234_v56, 1  ;;  %v292_v21 = vsel %vm209_vm0, 0.0, %v291_v14 }
  0xa2   : > { %v249_v58 = vrot.slane %v248_v53, 4  ;;  %v306_v59 = vsel %vm209_vm0, %v305_v54, %v298_v31  ;;  %v252_v7 = vsel %vm209_vm0, %v248_v53, %v251_v60  ;;  %v404_v17 = vperm.slane %v236_v12, 1 }
  0xa3   : > { %v312_v61 = vperm.slane %v306_v59, %v6154_v22  ;;  %v424_v0 = vperm.slane %v316_v57, 2  ;;  %v260_v13 = vperm.slane %v252_v7, %v6154_v22  ;;  %v319_v16 = vrot.slane %v316_v57, 4 }
  0xa4   : > { %v250_v63 = vsel %vm209_vm0, %v249_v58, %v242_v50 }
  0xa5   : > { %v422_v1 = vperm.slane %v312_v61, 2  ;;  %343 = vst [vmem:[#allocation1 + $0x11] ss:$2 sm:$0xff] %v312_v61  ;;  %v317_v2 = vrot.slane %v312_v61, 4  ;;  %v256_v3 = vperm.slane %v250_v63, %v6154_v22  ;;  %v263_v19 = vrot.slane %v260_v13, 4 }
  0xa6   : > { %v320_v24 = vsel %vm209_vm0, 0.0, %v319_v16 }
  0xa7   : > { %430 = vrot.lane.b32.xlu0 %v424_v0, %s6060_s9  ;;  %426 = vrot.lane.b32.xlu1 %v422_v1, %s6060_s9  ;;  %v318_v5 = vsel %vm209_vm0, 0.0, %v317_v2  ;;  %v261_v9 = vrot.slane %v256_v3, 4  ;;  %339 = vst [vmem:[#allocation1 + $0x1] ss:$2 sm:$0xff] %v256_v3  ;;  %v264_v26 = vsel %vm209_vm0, 0.0, %v263_v19  ;;  %v425_v27 = vperm.slane %v320_v24, 2 }
  0xa8   : > { %v423_v10 = vperm.slane %v318_v5, 2  ;;  %353 = vst [vmem:[#allocation1 + $0x31] ss:$2 sm:$0xff] %v318_v5 }
  0xa9   : > { %v262_v11 = vsel %vm209_vm0, 0.0, %v261_v9 }
  0xaa   : > { %428 = vrot.lane.b32.xlu2 %v423_v10, %s6060_s9  ;;  %349 = vst [vmem:[#allocation1 + $0x21] ss:$2 sm:$0xff] %v262_v11 }
  0xac   : > { %v345_v15 = vld.sshfl [vmem:[#allocation1 + $0x10] sm:$0xff pattern:$0x75316420] }
  0xad   : > { %358 = vst [vmem:[#allocation1 + $0x10] ss:$2 sm:$0xff] %v288_v6 }
  0xae   : > { %359 = vst [vmem:[#allocation1 + $0x11] ss:$2 sm:$0xff] %v316_v57  ;;  %v344_v20 = vld.sshfl [vmem:[#allocation1] sm:$0xff pattern:$0x75316420] }
  0xaf   : > { %411 = vrot.lane.b32.xlu0 %v404_v17, %s6060_s9  ;;  %407 = vrot.lane.b32.xlu1 %v402_v18, %s6060_s9  ;;  %v355_v23 = vld.sshfl [vmem:[#allocation1 + $0x30] sm:$0xff pattern:$0x75316420]  ;;  %357 = vst [vmem:[#allocation1 + $0x1] ss:$2 sm:$0xff] %v260_v13 }
  0xb0   : > { %364 = vst [vmem:[#allocation1 + $0x30] ss:$2 sm:$0xff] %v292_v21 }
  0xb1   : > { %365 = vst [vmem:[#allocation1 + $0x31] ss:$2 sm:$0xff] %v320_v24  ;;  %v354_v25 = vld.sshfl [vmem:[#allocation1 + $0x20] sm:$0xff pattern:$0x75316420] }
  0xb2   : > { %370 = vrot.lane.b32.xlu2 %v345_v15, %s6060_s9  ;;  %362 = vst [vmem:[#allocation1 + $0x20] ss:$2 sm:$0xff] %v236_v12 }
  0xb3   : > { %363 = vst [vmem:[#allocation1 + $0x21] ss:$2 sm:$0xff] %v264_v26 }
  0xb4   : > { %356 = vst [vmem:[#allocation1] ss:$2 sm:$0xff] %v6169_v45 }
  0xb5   : > { %v361_v29 = vld.sshfl [vmem:[#allocation1 + $0x10] sm:$0xff pattern:$0x75316420] }
  0xb7   : > { %432 = vrot.lane.b32.xlu1 %v425_v27, %s6060_s9  ;;  %372 = vrot.lane.b32.xlu0 %v354_v25, %s6060_s9 }
  0xb8   : > { %v367_v30 = vld.sshfl [vmem:[#allocation1 + $0x30] sm:$0xff pattern:$0x75316420] }
  0xba   : > { %v366_v31 = vld.sshfl [vmem:[#allocation1 + $0x20] sm:$0xff pattern:$0x75316420] }
  0xbb   : > { %v360_v28 = vld.sshfl [vmem:[#allocation1] sm:$0xff pattern:$0x75316420] }
  0xbc   : > { %376 = vrot.lane.b32.xlu2 %v360_v28, %s6060_s9 }
  0xbf   : > { %368 = vrot.lane.b32.xlu1 %v344_v20, %s6060_s9  ;;  %378 = vrot.lane.b32.xlu0 %v361_v29, %s6060_s9 }
  0xc4   : > { %382 = vrot.lane.b32.xlu2 %v367_v30, %s6060_s9 }
  0xc7   : > { %374 = vrot.lane.b32.xlu1 %v355_v23, %s6060_s9 }
  0xcf   : > { %380 = vrot.lane.b32.xlu1 %v366_v31, %s6060_s9 }
  0xfb   : > { %v410_v32 = vpop.permute.xlu2 %409 }
  0xfc   : > { %420 = vst.msk [vmem:[#allocation2 + $0x2f] sm:$0x2] %vm417_vm1, %v410_v32 }
 0x104   : > { %v429_v33 = vpop.permute.xlu2 %428 }
 0x105   : > { %440 = vst.msk [vmem:[#allocation2 + $0x27] sm:$0x4] %vm438_vm2, %v429_v33 }
 0x10c   : > { %v371_v34 = vpop.permute.xlu2 %370 }
 0x10d   : > { %394 = vst.msk [vmem:[#allocation2 + $0x9] sm:$0xff] %vm392_vm3, %v371_v34 }
 0x111   : > { %v406_v35 = vpop.permute.xlu0 %405 }
 0x112   : > { %418 = vst.msk [vmem:[#allocation2 - $0x1] sm:$0x2] %vm417_vm1, %v406_v35 }
 0x116   : > { %v377_v36 = vpop.permute.xlu2 %376 }
 0x117   : > { %397 = vst.msk [vmem:[#allocation2 + $0x31] sm:$0xff] %vm392_vm3, %v377_v36 }
 0x119   : > { %v427_v37 = vpop.permute.xlu1 %426  ;;  %v431_v38 = vpop.permute.xlu0 %430 }
 0x11a   : > { %439 = vst.msk [vmem:[#allocation2 + $0xf] sm:$0x4] %vm438_vm2, %v427_v37 }
 0x11b   : > { %441 = vst.msk [vmem:[#allocation2 + $0x3f] sm:$0x4] %vm438_vm2, %v431_v38 }
 0x11e   : > { %v383_v39 = vpop.permute.xlu2 %382  ;;  %v449_v56 = vld [vmem:[#allocation2 + $0x30] sm:$0xff] }
 0x11f   : > { %400 = vst.msk [vmem:[#allocation2 + $0x51] sm:$0xff] %vm392_vm3, %v383_v39 }
 0x121   : > { %v408_v40 = vpop.permute.xlu1 %407  ;;  %v412_v41 = vpop.permute.xlu0 %411  ;;  %v445_v42 = vld [vmem:[#allocation2 + $0x10] sm:$0x3] }
 0x122   : > { %419 = vst.msk [vmem:[#allocation2 + $0x17] sm:$0x2] %vm417_vm1, %v408_v40  ;;  %471 = vrot.lane.b32.xlu1 %v445_v42, %s6061_s10 }
 0x123   : > { %421 = vst.msk [vmem:[#allocation2 + $0x47] sm:$0x2] %vm417_vm1, %v412_v41 }
 0x129   : > { %v433_v43 = vpop.permute.xlu1 %432  ;;  %v373_v44 = vpop.permute.xlu0 %372 }
 0x12a   : > { %442 = vst.msk [vmem:[#allocation2 + $0x57] sm:$0x4] %vm438_vm2, %v433_v43  ;;  %vm10090_vm2 = vcmask 31744  }
 0x12b   : > { %395 = vst.msk [vmem:[#allocation2 + $0x19] sm:$0xff] %vm392_vm3, %v373_v44 }
 0x131   : > { %v369_v45 = vpop.permute.xlu1 %368  ;;  %v379_v46 = vpop.permute.xlu0 %378  ;;  %v454_v57 = vld [vmem:[#allocation2 + $0x58] sm:$0x3] }
 0x132   : > { %393 = vst.msk [vmem:[#allocation2 + $0x1] sm:$0xff] %vm392_vm3, %v369_v45  ;;  %v446_v53 = vld [vmem:[#allocation2 + $0x18] sm:$0xff] }
 0x133   : > { %398 = vst.msk [vmem:[#allocation2 + $0x39] sm:$0xff] %vm392_vm3, %v379_v46 }
 0x139   : > { %v375_v47 = vpop.permute.xlu1 %374  ;;  %v444_v48 = vld [vmem:[#allocation2 + $0x8] sm:$0xff]  ;;  %v443_v49 = vld [vmem:[#allocation2] sm:$0xff] }
 0x13a   : > { %396 = vst.msk [vmem:[#allocation2 + $0x21] sm:$0xff] %vm392_vm3, %v375_v47  ;;  %469 = vrot.lane.b32.xlu0 %v444_v48, %s6061_s10  ;;  %467 = vrot.lane.b32.xlu2 %v443_v49, %s6061_s10  ;;  %v451_v54 = vld [vmem:[#allocation2 + $0x40] sm:$0x3]  ;;  %v450_v55 = vld [vmem:[#allocation2 + $0x38] sm:$0xff] }
 0x141   : > { %v381_v50 = vpop.permute.xlu1 %380  ;;  %v448_v51 = vld [vmem:[#allocation2 + $0x28] sm:$0x3]  ;;  %v447_v52 = vld [vmem:[#allocation2 + $0x20] sm:$0xff] }
 0x142   : > { %399 = vst.msk [vmem:[#allocation2 + $0x49] sm:$0xff] %vm392_vm3, %v381_v50  ;;  %477 = vrot.lane.b32.xlu1 %v448_v51, %s6061_s10  ;;  %475 = vrot.lane.b32.xlu0 %v447_v52, %s6061_s10 }
 0x143   : > { %473 = vrot.lane.b32.xlu2 %v446_v53, %s6061_s10 }
 0x149   : > { %v453_v58 = vld [vmem:[#allocation2 + $0x50] sm:$0xff]  ;;  %v452_v59 = vld [vmem:[#allocation2 + $0x48] sm:$0xff] }
 0x14a   : > { %483 = vrot.lane.b32.xlu1 %v451_v54, %s6061_s10  ;;  %481 = vrot.lane.b32.xlu0 %v450_v55, %s6061_s10 }
 0x14b   : > { %479 = vrot.lane.b32.xlu2 %v449_v56, %s6061_s10 }
 0x152   : > { %489 = vrot.lane.b32.xlu1 %v454_v57, %s6061_s10  ;;  %487 = vrot.lane.b32.xlu0 %v453_v58, %s6061_s10 }
 0x153   : > { %485 = vrot.lane.b32.xlu2 %v452_v59, %s6061_s10 }
 0x194   : > { %v472_v60 = vpop.permute.xlu1 %471  ;;  %v468_v61 = vpop.permute.xlu2 %467 }
 0x195   : > { %507 = vst.msk [vmem:[#allocation2 + $0x10] sm:$0x3] %vm506_vm4, %v472_v60 }
 0x196   : > { %504 = vst.msk [vmem:[#allocation2] sm:$0xff] %vm503_vm5, %v468_v61 }
 0x19c   : > { %v519_v62 = vld [vmem:[#allocation2 + $0x10] sm:$0x3] }
 0x19d   : > { %v474_v63 = vpop.permute.xlu2 %473  ;;  %545 = vrot.lane.b32.xlu1 %v519_v62, %s6062_s11  ;;  %v517_v0 = vld [vmem:[#allocation2] sm:$0xff] }
 0x19e   : > { %508 = vst.msk [vmem:[#allocation2 + $0x18] sm:$0xff] %vm503_vm5, %v474_v63  ;;  %541 = vrot.lane.b32.xlu2 %v517_v0, %s6062_s11 }
 0x1a5   : > { %v480_v1 = vpop.permute.xlu2 %479  ;;  %v520_v2 = vld [vmem:[#allocation2 + $0x18] sm:$0xff] }
 0x1a6   : > { %511 = vst.msk [vmem:[#allocation2 + $0x30] sm:$0xff] %vm503_vm5, %v480_v1  ;;  %547 = vrot.lane.b32.xlu2 %v520_v2, %s6062_s11 }
 0x1ac   : > { %v470_v3 = vpop.permute.xlu0 %469 }
 0x1ad   : > { %505 = vst.msk [vmem:[#allocation2 + $0x8] sm:$0xff] %vm503_vm5, %v470_v3  ;;  %v486_v4 = vpop.permute.xlu2 %485  ;;  %v523_v5 = vld [vmem:[#allocation2 + $0x30] sm:$0xff] }
 0x1ae   : > { %514 = vst.msk [vmem:[#allocation2 + $0x48] sm:$0xff] %vm503_vm5, %v486_v4  ;;  %553 = vrot.lane.b32.xlu2 %v523_v5, %s6062_s11 }
 0x1b4   : > { %v476_v6 = vpop.permute.xlu0 %475  ;;  %v478_v7 = vpop.permute.xlu1 %477  ;;  %v518_v9 = vld [vmem:[#allocation2 + $0x8] sm:$0xff] }
 0x1b5   : > { %509 = vst.msk [vmem:[#allocation2 + $0x20] sm:$0xff] %vm503_vm5, %v476_v6  ;;  %543 = vrot.lane.b32.xlu0 %v518_v9, %s6062_s11  ;;  %v526_v10 = vld [vmem:[#allocation2 + $0x48] sm:$0xff] }
 0x1b6   : > { %510 = vst.msk [vmem:[#allocation2 + $0x28] sm:$0x3] %vm506_vm4, %v478_v7  ;;  %559 = vrot.lane.b32.xlu2 %v526_v10, %s6062_s11 }
 0x1bc   : > { %v482_v11 = vpop.permute.xlu0 %481  ;;  %v484_v12 = vpop.permute.xlu1 %483  ;;  %v521_v13 = vld [vmem:[#allocation2 + $0x20] sm:$0xff] }
 0x1bd   : > { %512 = vst.msk [vmem:[#allocation2 + $0x38] sm:$0xff] %vm503_vm5, %v482_v11  ;;  %v522_v14 = vld [vmem:[#allocation2 + $0x28] sm:$0x3]  ;;  %549 = vrot.lane.b32.xlu0 %v521_v13, %s6062_s11 }
 0x1be   : > { %513 = vst.msk [vmem:[#allocation2 + $0x40] sm:$0x3] %vm506_vm4, %v484_v12  ;;  %551 = vrot.lane.b32.xlu1 %v522_v14, %s6062_s11 }
 0x1c4   : > { %v490_v15 = vpop.permute.xlu1 %489  ;;  %v488_v16 = vpop.permute.xlu0 %487  ;;  %v524_v17 = vld [vmem:[#allocation2 + $0x38] sm:$0xff] }
 0x1c5   : > { %516 = vst.msk [vmem:[#allocation2 + $0x58] sm:$0x3] %vm506_vm4, %v490_v15  ;;  %v525_v18 = vld [vmem:[#allocation2 + $0x40] sm:$0x3]  ;;  %555 = vrot.lane.b32.xlu0 %v524_v17, %s6062_s11 }
 0x1c6   : > { %515 = vst.msk [vmem:[#allocation2 + $0x50] sm:$0xff] %vm503_vm5, %v488_v16  ;;  %557 = vrot.lane.b32.xlu1 %v525_v18, %s6062_s11 }
 0x1cc   : > { %v528_v19 = vld [vmem:[#allocation2 + $0x58] sm:$0x3] }
 0x1cd   : > { %v527_v20 = vld [vmem:[#allocation2 + $0x50] sm:$0xff] }
 0x1ce   : > { %563 = vrot.lane.b32.xlu1 %v528_v19, %s6062_s11  ;;  %561 = vrot.lane.b32.xlu0 %v527_v20, %s6062_s11 }
 0x1f8   : > { %v542_v21 = vpop.permute.xlu2 %541 }
 0x1f9   : > { %578 = vst.msk [vmem:[#allocation2] sm:$0xff] %vm577_vm6, %v542_v21 }
 0x200   : > { %v548_v23 = vpop.permute.xlu2 %547  ;;  %v6265_v24 = vld [vmem:[#allocation2] sm:$0xff] }
 0x201   : > { %582 = vst.msk [vmem:[#allocation2 + $0x18] sm:$0xff] %vm577_vm6, %v548_v23  ;;  %797 = vrot.lane.b32.xlu1 %v6265_v24, %s6063_s17 }
 0x208   : > { %v554_v25 = vpop.permute.xlu2 %553  ;;  %v6279_v32 = vld [vmem:[#allocation2 + $0x18] sm:$0xff] }
 0x209   : > { %585 = vst.msk [vmem:[#allocation2 + $0x30] sm:$0xff] %vm577_vm6, %v554_v25 }
 0x20f   : > { %v546_v26 = vpop.permute.xlu1 %545 }
 0x210   : > { %581 = vst.msk [vmem:[#allocation2 + $0x10] sm:$0x3] %vm580_vm7, %v546_v26  ;;  %v560_v27 = vpop.permute.xlu2 %559  ;;  %v6273_v28 = vld [vmem:[#allocation2 + $0x30] sm:$0xff] }
 0x211   : > { %588 = vst.msk [vmem:[#allocation2 + $0x48] sm:$0xff] %vm577_vm6, %v560_v27  ;;  %v599_v29 = vrot.slane %v6273_v28, 4 }
 0x213   : > { %v600_v33 = vsel %vm209_vm0, %v599_v29, %v6265_v24 }
 0x214   : > { %v6289_v36 = vperm.slane %v600_v33, %v6147_v8 }
 0x218   : > { %v6276_v30 = vld [vmem:[#allocation2 + $0x48] sm:$0xff] }
 0x219   : > { %v611_v31 = vrot.slane %v6276_v30, 4 }
 0x21b   : > { %v612_v34 = vsel %vm209_vm0, %v611_v31, %v6279_v32 }
 0x21c   : > { %v6286_v35 = vperm.slane %v612_v34, %v6147_v8 }
 0x21e   : > { %v623_v37 = vrot.slane %v6286_v35, 4 }
 0x220   : > { %v6294_v38 = vsel %vm209_vm0, %v623_v37, %v6289_v36 }
 0x227   : > { %v544_v39 = vpop.permute.xlu0 %543 }
 0x228   : > { %579 = vst.msk [vmem:[#allocation2 + $0x8] sm:$0xff] %vm577_vm6, %v544_v39 }
 0x22f   : > { %v550_v40 = vpop.permute.xlu0 %549  ;;  %v6297_v41 = vld [vmem:[#allocation2 + $0x8] sm:$0xff] }
 0x230   : > { %v6299_v42 = vld [vmem:[#allocation2 + $0x2] sm:$0xff]  ;;  %v552_v43 = vpop.permute.xlu1 %551  ;;  %583 = vst.msk [vmem:[#allocation2 + $0x20] sm:$0xff] %vm577_vm6, %v550_v40  ;;  %1123 = vrot.lane.b32.xlu0 %v6297_v41, %s6061_s10  ;;  %799 = vrot.lane.b32.xlu2 %v6297_v41, %s6063_s17  ;;  %v6316_v47 = vld [vmem:[#allocation2 + $0xa] sm:$0xff] }
 0x231   : > { %584 = vst.msk [vmem:[#allocation2 + $0x28] sm:$0x3] %vm580_vm7, %v552_v43  ;;  %2432 = vrot.lane.b32.xlu1 %v6299_v42, %s6063_s17  ;;  %v6309_v45 = vld [vmem:[#allocation2 + $0x9] sm:$0xff]  ;;  %v6321_v48 = vld [vmem:[#allocation2 + $0x1] sm:$0xff] }
 0x237   : > { %v556_v44 = vpop.permute.xlu0 %555  ;;  %v6327_v51 = vld [vmem:[#allocation2 + $0x20] sm:$0xff] }
 0x238   : > { %v558_v46 = vpop.permute.xlu1 %557  ;;  %586 = vst.msk [vmem:[#allocation2 + $0x38] sm:$0xff] %vm577_vm6, %v556_v44  ;;  %1641 = vrot.lane.b32.xlu0 %v6309_v45, %s6063_s17  ;;  %1121 = vrot.lane.b32.xlu2 %v6265_v24, %s6061_s10  ;;  %v6341_v52 = vld [vmem:[#allocation2 + $0x19] sm:$0xff]  ;;  %v6375_v2 = vld [vmem:[#allocation2 + $0x22] sm:$0xff] }
 0x239   : > { %587 = vst.msk [vmem:[#allocation2 + $0x40] sm:$0x3] %vm580_vm7, %v558_v46  ;;  %2709 = vrot.lane.b32.xlu1 %v6316_v47, %s6061_s10  ;;  %v6363_v63 = vld [vmem:[#allocation2 + $0x1a] sm:$0xff]  ;;  %v601_v46 = vrot.slane %v6265_v24, 4 }
 0x23a   : > { %v6409_v20 = vld [vmem:[#allocation2 + $0x21] sm:$0xff] }
 0x23f   : > { %v6357_v59 = vld [vmem:[#allocation2 + $0x38] sm:$0xff] }
 0x240   : > { %v564_v49 = vpop.permute.xlu1 %563  ;;  %v562_v50 = vpop.permute.xlu0 %561  ;;  %1916 = vrot.lane.b32.xlu0 %v6309_v45, %s6061_s10  ;;  %1639 = vrot.lane.b32.xlu2 %v6321_v48, %s6063_s17  ;;  %v6359_v60 = vld [vmem:[#allocation2 + $0x31] sm:$0xff]  ;;  %v6367_v1 = vld [vmem:[#allocation2 + $0x3a] sm:$0xff]  ;;  %v655_v3 = vrot.slane %v6357_v59, 4 }
 0x241   : > { %590 = vst.msk [vmem:[#allocation2 + $0x58] sm:$0x3] %vm580_vm7, %v564_v49  ;;  %803 = vrot.lane.b32.xlu1 %v6327_v51, %s6063_s17  ;;  %v6365_v0 = vld [vmem:[#allocation2 + $0x32] sm:$0xff]  ;;  %v1388_v5 = vrot.slane %v6359_v60, 4  ;;  %v2237_v7 = vrot.slane %v6367_v1, 4 }
 0x242   : > { %589 = vst.msk [vmem:[#allocation2 + $0x50] sm:$0xff] %vm577_vm6, %v562_v50  ;;  %v2181_v10 = vrot.slane %v6365_v0, 4  ;;  %v656_v14 = vsel %vm209_vm0, %v655_v3, %v6297_v41  ;;  %v6457_v43 = vld [vmem:[#allocation2 + $0x39] sm:$0xff]  ;;  %v602_v50 = vsel %vm209_vm0, %v6273_v28, %v601_v46 }
 0x243   : > { %v1389_v15 = vsel %vm209_vm0, %v1388_v5, %v6321_v48  ;;  %v2238_v18 = vsel %vm209_vm0, %v2237_v7, %v6316_v47  ;;  %v6416_v21 = vperm.slane %v656_v14, %v6147_v8 }
 0x244   : > { %v2182_v19 = vsel %vm209_vm0, %v2181_v10, %v6299_v42  ;;  %v6419_v23 = vperm.slane %v1389_v15, %v6147_v8  ;;  %v6426_v27 = vperm.slane %v2238_v18, %v6147_v8  ;;  %v1458_v18 = vrot.slane %v6409_v20, 4 }
 0x245   : > { %v6429_v29 = vperm.slane %v2182_v19, %v6147_v8 }
 0x248   : > { %2707 = vrot.lane.b32.xlu0 %v6299_v42, %s6061_s10  ;;  %1914 = vrot.lane.b32.xlu2 %v6321_v48, %s6061_s10 }
 0x249   : > { %1125 = vrot.lane.b32.xlu1 %v6279_v32, %s6061_s10  ;;  %v6347_v53 = vld [vmem:[#allocation2 + $0x50] sm:$0xff] }
 0x24a   : > { %v6349_v54 = vld [vmem:[#allocation2 + $0x49] sm:$0xff]  ;;  %v6353_v56 = vld [vmem:[#allocation2 + $0x52] sm:$0xff]  ;;  %v667_v57 = vrot.slane %v6347_v53, 4 }
 0x24b   : > { %v6351_v55 = vld [vmem:[#allocation2 + $0x4a] sm:$0xff]  ;;  %v1400_v58 = vrot.slane %v6349_v54, 4  ;;  %v2249_v61 = vrot.slane %v6353_v56, 4 }
 0x24c   : > { %v2193_v62 = vrot.slane %v6351_v55, 4  ;;  %v668_v4 = vsel %vm209_vm0, %v667_v57, %v6327_v51  ;;  %v613_v57 = vrot.slane %v6279_v32, 4 }
 0x24d   : > { %v1401_v6 = vsel %vm209_vm0, %v1400_v58, %v6341_v52  ;;  %v2250_v9 = vsel %vm209_vm0, %v2249_v61, %v6375_v2  ;;  %v6390_v12 = vperm.slane %v668_v4, %v6147_v8  ;;  %v6498_v61 = vperm.slane %v602_v50, %v6147_v8 }
 0x24e   : > { %v2194_v11 = vsel %vm209_vm0, %v2193_v62, %v6363_v63  ;;  %v6393_v13 = vperm.slane %v1401_v6, %v6147_v8  ;;  %v6400_v16 = vperm.slane %v2250_v9, %v6147_v8  ;;  %v614_v58 = vsel %vm209_vm0, %v6276_v30, %v613_v57  ;;  %v6500_v62 = vld [vmem:[#allocation2 + $0x51] sm:$0xff] }
 0x24f   : > { %v6403_v17 = vperm.slane %v2194_v11, %v6147_v8  ;;  %v679_v25 = vrot.slane %v6390_v12, 4  ;;  %v6507_v24 = vperm.slane %v614_v58, %v6147_v8  ;;  %v637_v3 = vrot.slane %v6498_v61, 4 }
 0x250   : > { %2434 = vrot.lane.b32.xlu2 %v6316_v47, %s6063_s17  ;;  %801 = vrot.lane.b32.xlu0 %v6279_v32, %s6063_s17  ;;  %v1412_v26 = vrot.slane %v6393_v13, 4  ;;  %v2261_v31 = vrot.slane %v6400_v16, 4  ;;  %v2195_v6 = vrot.slane %v6363_v63, 4  ;;  %v657_v50 = vrot.slane %v6297_v41, 4 }
 0x251   : > { %1643 = vrot.lane.b32.xlu1 %v6341_v52, %s6063_s17  ;;  %v2205_v33 = vrot.slane %v6403_v17, 4  ;;  %v6435_v34 = vsel %vm209_vm0, %v679_v25, %v6416_v21 }
 0x252   : > { %v6439_v37 = vsel %vm209_vm0, %v1412_v26, %v6419_v23  ;;  %v6443_v39 = vsel %vm209_vm0, %v2261_v31, %v6426_v27  ;;  %v2196_v7 = vsel %vm209_vm0, %v6351_v55, %v2195_v6  ;;  %v1459_v26 = vsel %vm209_vm0, %v6500_v62, %v1458_v18 }
 0x253   : > { %v6447_v40 = vsel %vm209_vm0, %v2205_v33, %v6429_v29  ;;  %v1467_v46 = vperm.slane %v1459_v26, %v6147_v8 }
 0x258   : > { %1127 = vrot.lane.b32.xlu2 %v6327_v51, %s6061_s10  ;;  %2436 = vrot.lane.b32.xlu0 %v6363_v63, %s6063_s17 }
 0x259   : > { %1918 = vrot.lane.b32.xlu1 %v6341_v52, %s6061_s10 }
 0x260   : > { %1645 = vrot.lane.b32.xlu2 %v6409_v20, %s6063_s17  ;;  %2713 = vrot.lane.b32.xlu0 %v6375_v2, %s6061_s10 }
 0x261   : > { %2438 = vrot.lane.b32.xlu1 %v6375_v2, %s6063_s17 }
 0x268   : > { %1920 = vrot.lane.b32.xlu2 %v6409_v20, %s6061_s10  ;;  %807 = vrot.lane.b32.xlu0 %v6357_v59, %s6063_s17 }
 0x269   : > { %1131 = vrot.lane.b32.xlu1 %v6357_v59, %s6061_s10 }
 0x270   : > { %2711 = vrot.lane.b32.xlu2 %v6363_v63, %s6061_s10  ;;  %1129 = vrot.lane.b32.xlu0 %v6273_v28, %s6061_s10  ;;  %v6535_v63 = vperm.slane %v2196_v7, %v6147_v8 }
 0x271   : > { %1649 = vrot.lane.b32.xlu1 %v6457_v43, %s6063_s17 }
 0x273   : > { %v6515_v4 = vpop.permute.xlu1 %797 }
 0x278   : > { %1647 = vrot.lane.b32.xlu0 %v6359_v60, %s6063_s17  ;;  %805 = vrot.lane.b32.xlu2 %v6273_v28, %s6063_s17  ;;  %v2183_v28 = vrot.slane %v6299_v42, 4 }
 0x279   : > { %1924 = vrot.lane.b32.xlu1 %v6457_v43, %s6061_s10 }
 0x27a   : > { %v2184_v5 = vsel %vm209_vm0, %v6365_v0, %v2183_v28 }
 0x27b   : > { %v6525_v9 = vperm.slane %v2184_v5, %v6147_v8  ;;  %v658_v5 = vsel %vm209_vm0, %v6357_v59, %v657_v50  ;;  %v1390_v59 = vrot.slane %v6321_v48, 4  ;;  %v1402_v50 = vrot.slane %v6341_v52, 4 }
 0x27d   : > { %v2219_v14 = vrot.slane %v6525_v9, 4  ;;  %v1391_v26 = vsel %vm209_vm0, %v6359_v60, %v1390_v59 }
 0x27f   : > { %v2220_v25 = vsel %vm209_vm0, %v6535_v63, %v2219_v14 }
 0x280   : > { %1922 = vrot.lane.b32.xlu0 %v6359_v60, %s6061_s10  ;;  %2440 = vrot.lane.b32.xlu2 %v6365_v0, %s6063_s17  ;;  %v6556_v33 = vperm.slane %v2220_v25, %v6154_v22  ;;  %v1414_v25 = vrot.slane %v6419_v23, 4  ;;  %v1399_v23 = vperm.slane %v1391_v26, %v6147_v8 }
 0x281   : > { %2715 = vrot.lane.b32.xlu1 %v6365_v0, %s6061_s10  ;;  %v1446_v0 = vrot.slane %v6309_v45, 4 }
 0x283   : > { %v1447_v15 = vsel %vm209_vm0, %v6457_v43, %v1446_v0  ;;  %v666_v0 = vperm.slane %v658_v5, %v6147_v8  ;;  %v1403_v5 = vsel %vm209_vm0, %v6349_v54, %v1402_v50 }
 0x284   : > { %v1455_v31 = vperm.slane %v1447_v15, %v6147_v8 }
 0x286   : > { %v1482_v57 = vrot.slane %v1455_v31, 4 }
 0x288   : > { %2442 = vrot.lane.b32.xlu0 %v6367_v1, %s6063_s17  ;;  %2717 = vrot.lane.b32.xlu2 %v6367_v1, %s6061_s10 }
 0x289   : > { %809 = vrot.lane.b32.xlu1 %v6276_v30, %s6063_s17 }
 0x28a   : > { %v6481_v44 = vpop.permute.xlu2 %799 }
 0x290   : > { %1135 = vrot.lane.b32.xlu0 %v6347_v53, %s6061_s10  ;;  %811 = vrot.lane.b32.xlu2 %v6347_v53, %s6063_s17 }
 0x291   : > { %2444 = vrot.lane.b32.xlu1 %v6351_v55, %s6063_s17 }
 0x292   : > { %v6490_v49 = vpop.permute.xlu2 %1121 }
 0x298   : > { %1653 = vrot.lane.b32.xlu0 %v6500_v62, %s6063_s17  ;;  %1133 = vrot.lane.b32.xlu2 %v6276_v30, %s6061_s10  ;;  %v638_v30 = vsel %vm209_vm0, %v6507_v24, %v637_v3  ;;  %v681_v3 = vrot.slane %v6416_v21, 4 }
 0x299   : > { %2721 = vrot.lane.b32.xlu1 %v6353_v56, %s6061_s10  ;;  %v6528_v42 = vperm.slane %v638_v30, %v6154_v22  ;;  %v1483_v30 = vsel %vm209_vm0, %v1467_v46, %v1482_v57 }
 0x29a   : > { %v6512_v32 = vpop.permute.xlu2 %1639  ;;  %v682_v41 = vsel %vm209_vm0, %v6390_v12, %v681_v3  ;;  %v6583_v14 = vperm.slane %v1483_v30, %v6154_v22  ;;  %v625_v12 = vrot.slane %v6289_v36, 4  ;;  %v1415_v36 = vsel %vm209_vm0, %v6393_v13, %v1414_v25 }
 0x29b   : > { %v6586_v21 = vperm.slane %v682_v41, %v6154_v22  ;;  %v6622_v60 = vperm.slane %v1415_v36, %v6154_v22  ;;  %v1411_v30 = vperm.slane %v1403_v5, %v6147_v8  ;;  %v2239_v13 = vrot.slane %v6316_v47, 4 }
 0x29c   : > { %v626_v3 = vsel %vm209_vm0, %v6286_v35, %v625_v12  ;;  %v1426_v41 = vrot.slane %v1399_v23, 4  ;;  %v2263_v5 = vrot.slane %v6426_v27, 4  ;;  %v635_v27 = vrot.slane %v6507_v24, 4 }
 0x29d   : > { %v6619_v52 = vperm.slane %v626_v3, %v6154_v22  ;;  %v1424_v36 = vrot.slane %v1411_v30, 4 }
 0x29e   : > { %v1427_v25 = vsel %vm209_vm0, %v1411_v30, %v1426_v41 }
 0x2a0   : > { %1928 = vrot.lane.b32.xlu0 %v6500_v62, %s6061_s10  ;;  %1651 = vrot.lane.b32.xlu2 %v6349_v54, %s6063_s17 }
 0x2a1   : > { %732 = vrot.lane.b32.xlu1 %v6528_v42, %s6054_s5 }
 0x2a2   : > { %v6540_v10 = vpop.permute.xlu0 %1123  ;;  %v6542_v11 = vpop.permute.xlu2 %1914 }
 0x2a3   : > { %v6548_v19 = vpop.permute.xlu1 %2432 }
 0x2a8   : > { %2719 = vrot.lane.b32.xlu0 %v6351_v55, %s6061_s10  ;;  %1926 = vrot.lane.b32.xlu2 %v6349_v54, %s6061_s10  ;;  %v669_v55 = vrot.slane %v6327_v51, 4  ;;  %v1480_v54 = vrot.slane %v1467_v46, 4 }
 0x2a9   : > { %2314 = vrot.lane.b32.xlu1 %v6556_v33, %s6054_s5 }
 0x2aa   : > { %v6566_v58 = vpop.permute.xlu0 %1641  ;;  %v6568_v28 = vpop.permute.xlu2 %2434  ;;  %v670_v7 = vsel %vm209_vm0, %v6347_v53, %v669_v55  ;;  %v693_v53 = vrot.slane %v666_v0, 4  ;;  %v1481_v47 = vsel %vm209_vm0, %v1480_v54, %v1455_v31  ;;  %v1425_v54 = vsel %vm209_vm0, %v1424_v36, %v1399_v23 }
 0x2ab   : > { %10124 = vst [vmem:[#allocation8_spill] sm:$0xff] %v6566_v58  ;;  %v6574_v6 = vpop.permute.xlu1 %2709  ;;  %v678_v51 = vperm.slane %v670_v7, %v6147_v8  ;;  %v2207_v23 = vrot.slane %v6429_v29, 4  ;;  %v1498_v36 = vrot.slane %v6583_v14, 4 }
 0x2ad   : > { %v694_v48 = vsel %vm209_vm0, %v678_v51, %v693_v53  ;;  %v691_v35 = vrot.slane %v678_v51, 4  ;;  %v2240_v51 = vsel %vm209_vm0, %v6367_v1, %v2239_v13  ;;  %v2251_v53 = vrot.slane %v6375_v2, 4 }
 0x2ae   : > { %v6616_v55 = vperm.slane %v694_v48, %v6154_v22  ;;  %v2248_v50 = vperm.slane %v2240_v51, %v6147_v8  ;;  %v6648_v48 = vperm.slane %v1427_v25, %v6154_v22  ;;  %v6654_v2 = vperm.slane %v1481_v47, %v6154_v22 }
 0x2af   : > { %v692_v46 = vsel %vm209_vm0, %v691_v35, %v666_v0  ;;  %v2252_v26 = vsel %vm209_vm0, %v6353_v56, %v2251_v53  ;;  %v2264_v13 = vsel %vm209_vm0, %v6400_v16, %v2263_v5  ;;  %v6678_v51 = vperm.slane %v1425_v54, %v6154_v22 }
 0x2b0   : > { %1549 = vrot.lane.b32.xlu0 %v6583_v14, %s6054_s5  ;;  %2446 = vrot.lane.b32.xlu2 %v6353_v56, %s6063_s17  ;;  %v6651_v1 = vperm.slane %v692_v46, %v6154_v22  ;;  %v2260_v3 = vperm.slane %v2252_v26, %v6147_v8  ;;  %v2275_v56 = vrot.slane %v2248_v50, 4  ;;  %v1444_v53 = vrot.slane %v6457_v43, 4 }
 0x2b1   : > { %744 = vrot.lane.b32.xlu1 %v6586_v21, %s6056_s7  ;;  %v6682_v25 = vperm.slane %v2264_v13, %v6154_v22  ;;  %v1456_v16 = vrot.slane %v6500_v62, 4  ;;  %v636_v26 = vsel %vm209_vm0, %v635_v27, %v6498_v61  ;;  %v2208_v62 = vsel %vm209_vm0, %v6403_v17, %v2207_v23 }
 0x2b2   : > { %v6597_v15 = vpop.permute.xlu0 %1916  ;;  %v6599_v18 = vpop.permute.xlu2 %1127  ;;  %v2276_v30 = vsel %vm209_vm0, %v2260_v3, %v2275_v56  ;;  %v1445_v24 = vsel %vm209_vm0, %v1444_v53, %v6309_v45  ;;  %v6712_v5 = vperm.slane %v636_v26, %v6154_v22  ;;  %v2216_v45 = vperm.slane %v2208_v62, %v6154_v22 }
 0x2b3   : > { %10125 = vst [vmem:[#allocation9_spill] sm:$0xff] %v6597_v15  ;;  %v6605_v57 = vpop.permute.xlu1 %803  ;;  %v6675_v41 = vperm.slane %v2276_v30, %v6154_v22  ;;  %v1457_v29 = vsel %vm209_vm0, %v1456_v16, %v6409_v20  ;;  %v6709_v56 = vperm.slane %v1445_v24, %v6147_v8  ;;  %v2273_v61 = vrot.slane %v2260_v3, 4 }
 0x2b4   : > { %10126 = vst [vmem:[#allocation10_spill] sm:$0xff] %v6599_v18  ;;  %v6716_v30 = vperm.slane %v1457_v29, %v6147_v8  ;;  %v1499_v54 = vsel %vm209_vm0, 0.0, %v1498_v36  ;;  %v649_v27 = vrot.slane %v6619_v52, 4  ;;  %v2217_v24 = vrot.slane %v6535_v63, 4 }
 0x2b5   : > { %v1470_v17 = vrot.slane %v6709_v56, 4  ;;  %v2274_v53 = vsel %vm209_vm0, %v2273_v61, %v2248_v50  ;;  %v709_v63 = vrot.slane %v6616_v55, 4  ;;  %v707_v29 = vrot.slane %v6651_v1, 4 }
 0x2b6   : > { %v2280_v23 = vperm.slane %v2274_v53, %v6154_v22  ;;  %v650_v26 = vsel %vm209_vm0, 0.0, %v649_v27  ;;  %v2218_v36 = vsel %vm209_vm0, %v2217_v24, %v6525_v9  ;;  %v1442_v53 = vrot.slane %v6648_v48, 4 }
 0x2b7   : > { %v1471_v3 = vsel %vm209_vm0, %v6716_v30, %v1470_v17  ;;  %v6755_v61 = vperm.slane %v2218_v36, %v6154_v22  ;;  %v708_v17 = vsel %vm209_vm0, 0.0, %v707_v29  ;;  %v1440_v27 = vrot.slane %v6678_v51, 4 }
 0x2b8   : > { %760 = vrot.lane.b32.xlu2 %v6616_v55, %s6054_s5  ;;  %716 = vrot.lane.b32.xlu0 %v6619_v52, %s6056_s7  ;;  %v6735_v16 = vperm.slane %v1471_v3, %v6154_v22 }
 0x2b9   : > { %1505 = vrot.lane.b32.xlu1 %v6622_v60, %s6056_s7  ;;  %v1441_v36 = vsel %vm209_vm0, 0.0, %v1440_v27  ;;  %v1468_v27 = vrot.slane %v6716_v30, 4 }
 0x2ba   : > { %v6632_v7 = vpop.permute.xlu0 %2707  ;;  %v6634_v59 = vpop.permute.xlu2 %1645 }
 0x2bb   : > { %10127 = vst [vmem:[#allocation11_spill] sm:$0xff] %v6632_v7  ;;  %v6639_v12 = vpop.permute.xlu1 %1125 }
 0x2bc   : > { %10128 = vst [vmem:[#allocation12_spill] sm:$0xff] %v6634_v59 }
 0x2c0   : > { %1521 = vrot.lane.b32.xlu2 %v6648_v48, %s6054_s5  ;;  %752 = vrot.lane.b32.xlu0 %v6651_v1, %s6055_s6  ;;  %v653_v1 = vrot.slane %v6528_v42, 4  ;;  %v2235_v48 = vrot.slane %v6556_v33, 4 }
 0x2c1   : > { %1541 = vrot.lane.b32.xlu1 %v6654_v2, %s6055_s6 }
 0x2c2   : > { %v6663_v31 = vpop.permute.xlu0 %801  ;;  %v6665_v0 = vpop.permute.xlu2 %1920  ;;  %v654_v24 = vsel %vm209_vm0, 0.0, %v653_v1 }
 0x2c3   : > { %10129 = vst [vmem:[#allocation13_spill] sm:$0xff] %v6665_v0  ;;  %v6668_v35 = vpop.permute.xlu1 %1643 }
 0x2c8   : > { %2342 = vrot.lane.b32.xlu2 %v6675_v41, %s6054_s5  ;;  %1513 = vrot.lane.b32.xlu0 %v6678_v51, %s6055_s6  ;;  %v2291_v51 = vrot.slane %v6675_v41, 4 }
 0x2c9   : > { %2326 = vrot.lane.b32.xlu1 %v6682_v25, %s6056_s7 }
 0x2ca   : > { %v6693_v46 = vpop.permute.xlu0 %2436  ;;  %v6695_v43 = vpop.permute.xlu2 %2711  ;;  %v2292_v1 = vsel %vm209_vm0, 0.0, %v2291_v51 }
 0x2cb   : > { %10130 = vst [vmem:[#allocation14_spill] sm:$0xff] %v6695_v43  ;;  %v6699_v47 = vpop.permute.xlu1 %1918 }
 0x2d0   : > { %724 = vrot.lane.b32.xlu2 %v6712_v5, %s6055_s6  ;;  %2298 = vrot.lane.b32.xlu0 %v2216_v45, %s6056_s7 }
 0x2d1   : > { %1553 = vrot.lane.b32.xlu1 %v1499_v54, %s6052_s30  ;;  %v710_v54 = vsel %vm209_vm0, 0.0, %v709_v63 }
 0x2d2   : > { %v6724_v20 = vpop.permute.xlu0 %2713  ;;  %v6726_v14 = vpop.permute.xlu2 %805 }
 0x2d3   : > { %10131 = vst [vmem:[#allocation15_spill] sm:$0xff] %v6724_v20  ;;  %v6728_v13 = vpop.permute.xlu1 %2438 }
 0x2d8   : > { %1533 = vrot.lane.b32.xlu2 %v6735_v16, %s6056_s7  ;;  %2334 = vrot.lane.b32.xlu0 %v2280_v23, %s6055_s6 }
 0x2d9   : > { %720 = vrot.lane.b32.xlu1 %v650_v26, %s6053_s4  ;;  %v1443_v26 = vsel %vm209_vm0, 0.0, %v1442_v53 }
 0x2da   : > { %v6744_v62 = vpop.permute.xlu0 %807  ;;  %v6746_v50 = vpop.permute.xlu2 %2440 }
 0x2db   : > { %v6748_v52 = vpop.permute.xlu1 %1131 }
 0x2e0   : > { %2306 = vrot.lane.b32.xlu2 %v6755_v61, %s6055_s6  ;;  %764 = vrot.lane.b32.xlu0 %v710_v54, %s6052_s30  ;;  %v2231_v54 = vrot.slane %v2216_v45, 4  ;;  %v705_v45 = vrot.slane %v6586_v21, 4 }
 0x2e1   : > { %756 = vrot.lane.b32.xlu1 %v708_v17, %s6051_s29  ;;  %v2236_v17 = vsel %vm209_vm0, 0.0, %v2235_v48  ;;  %v1469_v48 = vsel %vm209_vm0, %v1468_v27, %v6709_v56 }
 0x2e2   : > { %v6763_v3 = vpop.permute.xlu0 %1129  ;;  %v6765_v9 = vpop.permute.xlu2 %2717  ;;  %v2232_v53 = vsel %vm209_vm0, 0.0, %v2231_v54  ;;  %v706_v51 = vsel %vm209_vm0, 0.0, %v705_v45 }
 0x2e3   : > { %v6767_v55 = vpop.permute.xlu1 %1649 }
 0x2e4   : > { %10132 = vst [vmem:[#allocation16_spill] sm:$0xff] %v6767_v55 }
 0x2e8   : > { %736 = vrot.lane.b32.xlu2 %v654_v24, %s6052_s30  ;;  %1525 = vrot.lane.b32.xlu0 %v1443_v26, %s6052_s30  ;;  %v651_v26 = vrot.slane %v6712_v5, 4 }
 0x2e9   : > { %1517 = vrot.lane.b32.xlu1 %v1441_v36, %s6051_s29  ;;  %v2289_v36 = vrot.slane %v2280_v23, 4  ;;  %v1438_v23 = vrot.slane %v6622_v60, 4  ;;  %v1215_v60 = vrot.slane %v6599_v18, 4 }
 0x2ea   : > { %v6778_v63 = vpop.permute.xlu0 %1647  ;;  %v6780_v29 = vpop.permute.xlu2 %811  ;;  %v652_v54 = vsel %vm209_vm0, 0.0, %v651_v26 }
 0x2eb   : > { %v6782_v42 = vpop.permute.xlu1 %1924  ;;  %v2290_v30 = vsel %vm209_vm0, 0.0, %v2289_v36  ;;  %v1439_v26 = vsel %vm209_vm0, 0.0, %v1438_v23 }
 0x2f0   : > { %2318 = vrot.lane.b32.xlu2 %v2236_v17, %s6052_s30  ;;  %2346 = vrot.lane.b32.xlu0 %v2292_v1, %s6052_s30  ;;  %v6809_v17 = vperm.slane %v1469_v48, %v6154_v22  ;;  %v1494_v1 = vrot.slane %v6735_v16, 4 }
 0x2f1   : > { %2302 = vrot.lane.b32.xlu1 %v2232_v53, %s6053_s4  ;;  %v1203_v53 = vrot.slane %v6540_v10, 4 }
 0x2f2   : > { %v6793_v24 = vpop.permute.xlu0 %1922  ;;  %v6795_v33 = vpop.permute.xlu2 %1133  ;;  %10134 = vst [vmem:[#allocation18_spill] sm:$0xff] %v6809_v17  ;;  %v1492_v27 = vrot.slane %v6809_v17, 4  ;;  %v1495_v36 = vsel %vm209_vm0, 0.0, %v1494_v1  ;;  %v1496_v1 = vrot.slane %v6654_v2, 4  ;;  %v6857_v2 = vperm.slane %v6435_v34, %v6154_v22 }
 0x2f3   : > { %v6797_v41 = vpop.permute.xlu1 %2715  ;;  %v1204_v45 = vsel %vm209_vm0, %v6748_v52, %v1203_v53  ;;  %v2233_v53 = vrot.slane %v6755_v61, 4 }
 0x2f4   : > { %10133 = vst [vmem:[#allocation17_spill] sm:$0xff] %v6797_v41  ;;  %v1493_v48 = vsel %vm209_vm0, 0.0, %v1492_v27  ;;  %v6831_v16 = vperm.slane %v1204_v45, %v6147_v8  ;;  %v1721_v27 = vrot.slane %v6566_v58, 4 }
 0x2f5   : > { %10135 = vst [vmem:[#allocation19_spill] sm:$0xff] %v6857_v2 }
 0x2f8   : > { %748 = vrot.lane.b32.xlu2 %v706_v51, %s6053_s4  ;;  %728 = vrot.lane.b32.xlu0 %v652_v54, %s6051_s29 }
 0x2f9   : > { %2338 = vrot.lane.b32.xlu1 %v2290_v30, %s6051_s29 }
 0x2fa   : > { %v6812_v21 = vpop.permute.xlu0 %2442  ;;  %v6814_v5 = vpop.permute.xlu2 %1651 }
 0x2fb   : > { %v6816_v56 = vpop.permute.xlu1 %809 }
 0x300   : > { %1509 = vrot.lane.b32.xlu2 %v1439_v26, %s6053_s4  ;;  %1537 = vrot.lane.b32.xlu0 %v1495_v36, %s6053_s4  ;;  %v1239_v26 = vrot.slane %v6831_v16, 4  ;;  %v1722_v36 = vsel %vm209_vm0, %v6767_v55, %v1721_v27 }
 0x301   : > { %1529 = vrot.lane.b32.xlu1 %v1493_v48, %s6057_s8  ;;  %v1497_v48 = vsel %vm209_vm0, 0.0, %v1496_v1  ;;  %v1730_v1 = vperm.slane %v1722_v36, %v6147_v8  ;;  %v703_v36 = vrot.slane %v6857_v2, 4 }
 0x302   : > { %v6834_v51 = vpop.permute.xlu0 %1135  ;;  %v6836_v54 = vpop.permute.xlu2 %1926 }
 0x303   : > { %v1216_v30 = vsel %vm209_vm0, %v6834_v51, %v1215_v60  ;;  %v6840_v23 = vpop.permute.xlu1 %2444  ;;  %v2234_v60 = vsel %vm209_vm0, 0.0, %v2233_v53  ;;  %v2526_v53 = vrot.slane %v6728_v13, 4  ;;  %v1757_v58 = vrot.slane %v1730_v1, 4 }
 0x304   : > { %v6846_v45 = vperm.slane %v1216_v30, %v6147_v8  ;;  %v1733_v30 = vrot.slane %v6634_v59, 4  ;;  %v704_v2 = vsel %vm209_vm0, 0.0, %v703_v36 }
 0x306   : > { %v1240_v17 = vsel %vm209_vm0, %v6846_v45, %v1239_v26  ;;  %v2287_v26 = vrot.slane %v6682_v25, 4 }
 0x307   : > { %v6862_v61 = vperm.slane %v1240_v17, %v6154_v22 }
 0x308   : > { %1545 = vrot.lane.b32.xlu2 %v1497_v48, %s6051_s29  ;;  %2310 = vrot.lane.b32.xlu0 %v2234_v60, %s6051_s29  ;;  %v1996_v48 = vrot.slane %v6597_v15, 4  ;;  %v2288_v25 = vsel %vm209_vm0, 0.0, %v2287_v26  ;;  %v6888_v15 = vperm.slane %v6294_v38, %v6154_v22 }
 0x309   : > { %10136 = vst [vmem:[#allocation20_spill] sm:$0xff] %v6862_v61  ;;  %1306 = vrot.lane.b32.xlu1 %v6862_v61, %s6054_s5 }
 0x30a   : > { %v6869_v27 = vpop.permute.xlu0 %1653  ;;  %v6871_v34 = vpop.permute.xlu2 %2446  ;;  %v1997_v55 = vsel %vm209_vm0, %v6782_v42, %v1996_v48  ;;  %10138 = vst [vmem:[#allocation22_spill] sm:$0xff] %v6888_v15 }
 0x30b   : > { %10137 = vst [vmem:[#allocation21_spill] sm:$0xff] %v6869_v27  ;;  %v1734_v17 = vsel %vm209_vm0, %v6869_v27, %v1733_v30  ;;  %v6877_v60 = vpop.permute.xlu1 %2721  ;;  %v2527_v61 = vsel %vm209_vm0, %v6871_v34, %v2526_v53  ;;  %v6895_v53 = vperm.slane %v6439_v37, %v6154_v22  ;;  %v2514_v27 = vrot.slane %v6568_v28, 4 }
 0x30c   : > { %v1742_v59 = vperm.slane %v1734_v17, %v6147_v8  ;;  %v2535_v30 = vperm.slane %v2527_v61, %v6147_v8  ;;  %v2005_v48 = vperm.slane %v1997_v55, %v6147_v8  ;;  %v2008_v61 = vrot.slane %v6665_v0, 4 }
 0x30d   : > { %10139 = vst [vmem:[#allocation23_spill] sm:$0xff] %v6895_v53  ;;  %v2515_v37 = vsel %vm209_vm0, %v6812_v21, %v2514_v27  ;;  %v647_v55 = vrot.slane %v6888_v15, 4  ;;  %v1436_v27 = vrot.slane %v6895_v53, 4 }
 0x30e   : > { %v1755_v18 = vrot.slane %v1742_v59, 4  ;;  %v1758_v17 = vsel %vm209_vm0, %v1742_v59, %v1757_v58  ;;  %v2548_v36 = vrot.slane %v2535_v30, 4 }
 0x30f   : > { %v6902_v38 = vperm.slane %v1758_v17, %v6154_v22  ;;  %v1437_v53 = vsel %vm209_vm0, 0.0, %v1436_v27  ;;  %v2733_v27 = vrot.slane %v6632_v7, 4 }
 0x310   : > { %2330 = vrot.lane.b32.xlu2 %v2288_v25, %s6053_s4  ;;  %740 = vrot.lane.b32.xlu0 %v704_v2, %s6057_s8  ;;  %v6906_v26 = vsel %vm209_vm0, %v1755_v18, %v1730_v1  ;;  %v6919_v2 = vperm.slane %v6443_v39, %v6154_v22  ;;  %v2032_v25 = vrot.slane %v2005_v48, 4  ;;  %v648_v39 = vsel %vm209_vm0, 0.0, %v647_v55 }
 0x311   : > { %10140 = vst [vmem:[#allocation24_spill] sm:$0xff] %v6902_v38  ;;  %1824 = vrot.lane.b32.xlu1 %v6902_v38, %s6054_s5  ;;  %v6929_v38 = vperm.slane %v6447_v40, %v6154_v22  ;;  %v823_v40 = vrot.slane %v6515_v4, 4 }
 0x312   : > { %10141 = vst [vmem:[#allocation25_spill] sm:$0xff] %v6906_v26  ;;  %v6912_v58 = vpop.permute.xlu0 %1928  ;;  %v6914_v59 = vpop.permute.xlu2 %760 }
 0x313   : > { %10142 = vst [vmem:[#allocation26_spill] sm:$0xff] %v6914_v59  ;;  %v2009_v18 = vsel %vm209_vm0, %v6912_v58, %v2008_v61  ;;  %v6923_v1 = vpop.permute.xlu1 %732  ;;  %v2523_v59 = vperm.slane %v2515_v37, %v6147_v8  ;;  %v2285_v61 = vrot.slane %v6919_v2, 4  ;;  %v2229_v37 = vrot.slane %v6929_v38, 4 }
 0x314   : > { %10143 = vst [vmem:[#allocation27_spill] sm:$0xff] %v6919_v2  ;;  %v2017_v17 = vperm.slane %v2009_v18, %v6147_v8 }
 0x315   : > { %10144 = vst [vmem:[#allocation28_spill] sm:$0xff] %v6923_v1  ;;  %v879_v1 = vrot.slane %v6481_v44, 4  ;;  %v6941_v18 = vsel %vm209_vm0, %v2548_v36, %v2523_v59  ;;  %v2550_v2 = vrot.slane %v2523_v59, 4 }
 0x316   : > { %10145 = vst [vmem:[#allocation29_spill] sm:$0xff] %v6929_v38  ;;  %v2030_v15 = vrot.slane %v2017_v17, 4  ;;  %v2033_v26 = vsel %vm209_vm0, %v2017_v17, %v2032_v25  ;;  %v891_v25 = vrot.slane %v6605_v57, 4  ;;  %v835_v17 = vrot.slane %v6663_v31, 4 }
 0x317   : > { %v6938_v0 = vperm.slane %v2033_v26, %v6154_v22  ;;  %10147 = vst [vmem:[#allocation31_spill] sm:$0xff] %v6941_v18  ;;  %v2745_v26 = vrot.slane %v6695_v43, 4  ;;  %v880_v36 = vsel %vm209_vm0, %v6744_v62, %v879_v1  ;;  %v2734_v1 = vsel %vm209_vm0, %v6797_v41, %v2733_v27 }
 0x318   : > { %1501 = vrot.lane.b32.xlu0 %v1437_v53, %s6057_s8  ;;  %712 = vrot.lane.b32.xlu2 %v648_v39, %s6057_s8  ;;  %v6948_v55 = vsel %vm209_vm0, %v2030_v15, %v2005_v48  ;;  %v824_v53 = vsel %vm209_vm0, %v6726_v14, %v823_v40  ;;  %v2286_v48 = vsel %vm209_vm0, 0.0, %v2285_v61  ;;  %v892_v38 = vsel %vm209_vm0, %v6780_v29, %v891_v25 }
 0x319   : > { %10146 = vst [vmem:[#allocation30_spill] sm:$0xff] %v6938_v0  ;;  %2099 = vrot.lane.b32.xlu1 %v6938_v0, %s6054_s5  ;;  %v6974_v0 = vperm.slane %v880_v36, %v6147_v8  ;;  %v2230_v43 = vsel %vm209_vm0, 0.0, %v2229_v37  ;;  %v1147_v25 = vrot.slane %v6490_v49, 4  ;;  %v821_v27 = vrot.slane %v6726_v14, 4 }
 0x31a   : > { %v6960_v39 = vpop.permute.xlu0 %2719  ;;  %v6962_v15 = vpop.permute.xlu2 %1521  ;;  %v6983_v59 = vperm.slane %v824_v53, %v6147_v8  ;;  %v6988_v36 = vperm.slane %v892_v38, %v6147_v8  ;;  %v1159_v37 = vrot.slane %v6639_v12, 4  ;;  %v1675_v14 = vrot.slane %v6814_v5, 4 }
 0x31b   : > { %10148 = vst [vmem:[#allocation32_spill] sm:$0xff] %v6960_v39  ;;  %v2746_v18 = vsel %vm209_vm0, %v6960_v39, %v2745_v26  ;;  %v6971_v40 = vpop.permute.xlu1 %2314  ;;  %v2551_v26 = vsel %vm209_vm0, %v2535_v30, %v2550_v2  ;;  %v915_v30 = vrot.slane %v6974_v0, 4  ;;  %v1148_v53 = vsel %vm209_vm0, %v6763_v3, %v1147_v25 }
 0x31c   : > { %10149 = vst [vmem:[#allocation33_spill] sm:$0xff] %v6962_v15  ;;  %v836_v15 = vsel %vm209_vm0, %v6816_v56, %v835_v17  ;;  %v2754_v61 = vperm.slane %v2746_v18, %v6147_v8  ;;  %v2742_v17 = vperm.slane %v2734_v1, %v6147_v8  ;;  %v2789_v18 = vrot.slane %v6574_v6, 4 }
 0x31d   : > { %10150 = vst [vmem:[#allocation34_spill] sm:$0xff] %v6971_v40  ;;  %v1665_v40 = vrot.slane %v6512_v32, 4  ;;  %v6994_v39 = vperm.slane %v836_v15, %v6147_v8  ;;  %v7002_v38 = vperm.slane %v2551_v26, %v6154_v22  ;;  %v2801_v1 = vrot.slane %v6724_v20, 4 }
 0x31e   : > { %v2767_v7 = vrot.slane %v2754_v61, 4  ;;  %v822_v15 = vsel %vm209_vm0, %v821_v27, %v6515_v4  ;;  %v859_v41 = vrot.slane %v6983_v59, 4  ;;  %v1950_v26 = vrot.slane %v6836_v54, 4 }
 0x31f   : > { %10151 = vst [vmem:[#allocation35_spill] sm:$0xff] %v7002_v38  ;;  %v916_v4 = vsel %vm209_vm0, %v6988_v36, %v915_v30  ;;  %v877_v27 = vrot.slane %v6744_v62, 4  ;;  %v2769_v25 = vrot.slane %v2742_v17, 4  ;;  %v1160_v30 = vsel %vm209_vm0, %v6795_v33, %v1159_v37 }
 0x320   : > { %2322 = vrot.lane.b32.xlu0 %v2286_v48, %s6057_s8  ;;  %2294 = vrot.lane.b32.xlu2 %v2230_v43, %s6057_s8  ;;  %v7005_v2 = vsel %vm209_vm0, %v2767_v7, %v2742_v17  ;;  %v2790_v48 = vsel %vm209_vm0, %v6765_v9, %v2789_v18  ;;  %v833_v43 = vrot.slane %v6816_v56, 4  ;;  %v1676_v18 = vsel %vm209_vm0, %v1675_v14, %v6668_v35 }
 0x321   : > { %10152 = vst [vmem:[#allocation36_spill] sm:$0xff] %v7005_v2  ;;  %2617 = vrot.lane.b32.xlu1 %v7002_v38, %s6054_s5  ;;  %v860_v56 = vsel %vm209_vm0, %v6994_v39, %v859_v41  ;;  %v7033_v38 = vperm.slane %v822_v15, %v6147_v8  ;;  %v2802_v62 = vsel %vm209_vm0, %v6877_v60, %v2801_v1  ;;  %v1663_v14 = vrot.slane %v6778_v63, 4 }
 0x322   : > { %v7019_v7 = vpop.permute.xlu0 %1549  ;;  %v7021_v2 = vpop.permute.xlu2 %2342  ;;  %v7043_v17 = vperm.slane %v2790_v48, %v6147_v8  ;;  %v2770_v41 = vsel %vm209_vm0, %v2754_v61, %v2769_v25  ;;  %v7053_v15 = vperm.slane %v1676_v18, %v6147_v8  ;;  %v1951_v37 = vsel %vm209_vm0, %v1950_v26, %v6699_v47 }
 0x323   : > { %10153 = vst [vmem:[#allocation37_spill] sm:$0xff] %v7019_v7  ;;  %v7028_v20 = vpop.permute.xlu1 %744  ;;  %v7036_v7 = vperm.slane %v1148_v53, %v6147_v8  ;;  %v834_v53 = vsel %vm209_vm0, %v833_v43, %v6663_v31  ;;  %v7058_v1 = vperm.slane %v860_v56, %v6154_v22  ;;  %v878_v48 = vsel %vm209_vm0, %v877_v27, %v6481_v44 }
 0x324   : > { %10154 = vst [vmem:[#allocation38_spill] sm:$0xff] %v7021_v2  ;;  %v7047_v2 = vperm.slane %v916_v4, %v6154_v22  ;;  %v7063_v4 = vperm.slane %v1160_v30, %v6147_v8  ;;  %v7066_v61 = vperm.slane %v2802_v62, %v6147_v8  ;;  %v2524_v31 = vrot.slane %v6871_v34, 4 }
 0x325   : > { %10155 = vst [vmem:[#allocation39_spill] sm:$0xff] %v7028_v20  ;;  %v1183_v43 = vrot.slane %v7036_v7, 4  ;;  %v889_v25 = vrot.slane %v6780_v29, 4  ;;  %v1938_v26 = vrot.slane %v6793_v24, 4  ;;  %v7077_v44 = vperm.slane %v2770_v41, %v6154_v22 }
 0x326   : > { %10156 = vst [vmem:[#allocation40_spill] sm:$0xff] %v7033_v38  ;;  %v2825_v27 = vrot.slane %v7043_v17, 4  ;;  %v1664_v34 = vsel %vm209_vm0, %v1663_v14, %v6512_v32  ;;  %v7083_v18 = vperm.slane %v834_v53, %v6147_v8  ;;  %v7086_v29 = vperm.slane %v1951_v37, %v6147_v8 }
 0x327   : > { %10157 = vst [vmem:[#allocation41_spill] sm:$0xff] %v7077_v44  ;;  %v847_v56 = vrot.slane %v7033_v38, 4  ;;  %v7090_v30 = vperm.slane %v878_v48, %v6147_v8  ;;  %v1666_v62 = vsel %vm209_vm0, %v6778_v63, %v1665_v40  ;;  %v1687_v41 = vrot.slane %v7053_v15, 4 }
 0x328   : > { %954 = vrot.lane.b32.xlu2 %v7058_v1, %s6054_s5  ;;  %982 = vrot.lane.b32.xlu0 %v7047_v2, %s6054_s5  ;;  %10158 = vst [vmem:[#allocation42_spill] sm:$0xff] %v7083_v18  ;;  %v1145_v53 = vrot.slane %v6763_v3, 4  ;;  %v2525_v37 = vsel %vm209_vm0, %v2524_v31, %v6728_v13  ;;  %v2826_v48 = vsel %vm209_vm0, %v7066_v61, %v2825_v27  ;;  %v10160_v20 = vrot.slane %v6668_v35, 4 }
 0x329   : > { %10159 = vst [vmem:[#allocation43_spill] sm:$0xff] %v7090_v30  ;;  %2864 = vrot.lane.b32.xlu1 %v7077_v44, %s6054_s5  ;;  %v1184_v63 = vsel %vm209_vm0, %v7063_v4, %v1183_v43  ;;  %v7111_v40 = vperm.slane %v1664_v34, %v6147_v8  ;;  %v890_v44 = vsel %vm209_vm0, %v889_v25, %v6605_v57  ;;  %v2512_v27 = vrot.slane %v6812_v21, 4 }
 0x32a   : > { %v7097_v32 = vpop.permute.xlu0 %716  ;;  %v7099_v14 = vpop.permute.xlu2 %724  ;;  %v1939_v3 = vsel %vm209_vm0, %v1938_v26, %v6542_v11  ;;  %v1678_v13 = vsel %vm209_vm0, %v6814_v5, %v10160_v20  ;;  %v7122_v31 = vperm.slane %v1666_v62, %v6147_v8  ;;  %v1962_v43 = vrot.slane %v7086_v29, 4 }
 0x32b   : > { %v7104_v38 = vpop.permute.xlu1 %1505  ;;  %v848_v34 = vsel %vm209_vm0, %v7083_v18, %v847_v56  ;;  %v7129_v57 = vperm.slane %v2525_v37, %v6147_v8  ;;  %v7132_v25 = vperm.slane %v2826_v48, %v6154_v22  ;;  %v7135_v35 = vperm.slane %v1184_v63, %v6154_v22 }
 0x32c   : > { %v7139_v20 = vsel %vm209_vm0, %v1687_v41, %v7111_v40  ;;  %v7142_v21 = vperm.slane %v890_v44, %v6147_v8  ;;  %v7145_v5 = vperm.slane %v1939_v3, %v6147_v8  ;;  %v7148_v26 = vperm.slane %v1678_v13, %v6147_v8 }
 0x32d   : > { %10161 = vst [vmem:[#allocation44_spill] sm:$0xff] %v7139_v20  ;;  %v1940_v56 = vrot.slane %v6542_v11, 4  ;;  %v1157_v62 = vrot.slane %v6795_v33, 4  ;;  %v7157_v41 = vperm.slane %v848_v34, %v6154_v22  ;;  %v903_v44 = vrot.slane %v7090_v30, 4  ;;  %v10183_v30 = vld [vmem:[#allocation25_spill] sm:$0xff] }
 0x32e   : > { %v1701_v37 = vrot.slane %v7122_v31, 4  ;;  %v913_v48 = vrot.slane %v6988_v36, 4  ;;  %v2513_v11 = vsel %vm209_vm0, %v2512_v27, %v6568_v28  ;;  %v7166_v33 = vsel %vm209_vm0, %v1962_v43, %v7145_v5 }
 0x32f   : > { %10162 = vst [vmem:[#allocation45_spill] sm:$0xff] %v7166_v33  ;;  %v1952_v63 = vrot.slane %v6699_v47, 4  ;;  %v1146_v3 = vsel %vm209_vm0, %v1145_v53, %v6490_v49  ;;  %v1941_v13 = vsel %vm209_vm0, %v6793_v24, %v1940_v56  ;;  %v2536_v34 = vrot.slane %v7129_v57, 4 }
 0x330   : > { %2892 = vrot.lane.b32.xlu2 %v7132_v25, %s6054_s5  ;;  %1278 = vrot.lane.b32.xlu0 %v7135_v35, %s6054_s5  ;;  %v904_v47 = vsel %vm209_vm0, %v7142_v21, %v903_v44  ;;  %v1702_v49 = vsel %vm209_vm0, %v7148_v26, %v1701_v37  ;;  %v1158_v24 = vsel %vm209_vm0, %v1157_v62, %v6639_v12 }
 0x331   : > { %938 = vrot.lane.b32.xlu1 %v7157_v41, %s6056_s7  ;;  %v7189_v53 = vperm.slane %v2513_v11, %v6147_v8  ;;  %v1953_v43 = vsel %vm209_vm0, %v6836_v54, %v1952_v63  ;;  %v7194_v56 = vperm.slane %v1146_v3, %v6147_v8  ;;  %v7197_v33 = vperm.slane %v1941_v13, %v6147_v8 }
 0x332   : > { %v7176_v36 = vpop.permute.xlu0 %752  ;;  %v7178_v28 = vpop.permute.xlu2 %1533  ;;  %v914_v44 = vsel %vm209_vm0, %v913_v48, %v6974_v0  ;;  %v7202_v37 = vperm.slane %v904_v47, %v6154_v22  ;;  %v7205_v12 = vperm.slane %v1702_v49, %v6154_v22  ;;  %v7212_v54 = vperm.slane %v1158_v24, %v6147_v8 }
 0x333   : > { %v7180_v27 = vpop.permute.xlu1 %1541  ;;  %10163 = vst [vmem:[#allocation46_spill] sm:$0xff] %v7194_v56  ;;  %v7209_v62 = vsel %vm209_vm0, %v2536_v34, %v7189_v53  ;;  %v7215_v11 = vperm.slane %v1953_v43, %v6147_v8  ;;  %v2458_v63 = vrot.slane %v6548_v19, 4  ;;  %v7223_v0 = vperm.slane %v914_v44, %v6154_v22 }
 0x334   : > { %10164 = vst [vmem:[#allocation47_spill] sm:$0xff] %v7209_v62  ;;  %v1171_v48 = vrot.slane %v7194_v56, 4  ;;  %v1976_v3 = vrot.slane %v7197_v33, 4  ;;  %v1181_v13 = vrot.slane %v7063_v4, 4  ;;  %v2470_v34 = vrot.slane %v6693_v46, 4 }
 0x335   : > { %10165 = vst [vmem:[#allocation48_spill] sm:$0xff] %v7212_v54  ;;  %v2459_v47 = vsel %vm209_vm0, %v6746_v50, %v2458_v63 }
 0x336   : > { %v1172_v44 = vsel %vm209_vm0, %v7212_v54, %v1171_v48  ;;  %v1977_v4 = vsel %vm209_vm0, %v7215_v11, %v1976_v3  ;;  %v2471_v62 = vsel %vm209_vm0, %v6840_v23, %v2470_v34  ;;  %v2467_v63 = vperm.slane %v2459_v47, %v6147_v8 }
 0x337   : > { %v1182_v20 = vsel %vm209_vm0, %v1181_v13, %v7036_v7  ;;  %v7249_v18 = vperm.slane %v1172_v44, %v6154_v22  ;;  %v2479_v48 = vperm.slane %v2471_v62, %v6147_v8  ;;  %v1699_v13 = vrot.slane %v7148_v26, 4 }
 0x338   : > { %966 = vrot.lane.b32.xlu2 %v7202_v37, %s6056_s7  ;;  %1796 = vrot.lane.b32.xlu0 %v7205_v12, %s6054_s5  ;;  %v7261_v3 = vperm.slane %v1182_v20, %v6154_v22  ;;  %v2494_v7 = vrot.slane %v2467_v63, 4  ;;  %v1213_v54 = vrot.slane %v6834_v51, 4 }
 0x339   : > { %974 = vrot.lane.b32.xlu1 %v7223_v0, %s6055_s6  ;;  %v1700_v20 = vsel %vm209_vm0, %v1699_v13, %v7122_v31 }
 0x33a   : > { %v7233_v49 = vpop.permute.xlu0 %1513  ;;  %v7235_v24 = vpop.permute.xlu2 %2306  ;;  %v2495_v44 = vsel %vm209_vm0, %v2479_v48, %v2494_v7 }
 0x33b   : > { %10166 = vst [vmem:[#allocation49_spill] sm:$0xff] %v7235_v24  ;;  %v7237_v43 = vpop.permute.xlu1 %2326  ;;  %v7252_v24 = vperm.slane %v1977_v4, %v6154_v22  ;;  %v1201_v4 = vrot.slane %v6748_v52, 4  ;;  %v7282_v56 = vperm.slane %v2495_v44, %v6154_v22  ;;  %v1689_v52 = vrot.slane %v7111_v40, 4 }
 0x33c   : > { %10167 = vst [vmem:[#allocation50_spill] sm:$0xff] %v7237_v43  ;;  %v1237_v43 = vrot.slane %v6846_v45, 4 }
 0x33d   : > { %v1202_v31 = vsel %vm209_vm0, %v1201_v4, %v6540_v10  ;;  %v1690_v13 = vsel %vm209_vm0, %v7053_v15, %v1689_v52  ;;  %v10173_v4 = vld [vmem:[#allocation16_spill] sm:$0xff]  ;;  %v2006_v52 = vrot.slane %v6912_v58, 4 }
 0x33e   : > { %v1238_v47 = vsel %vm209_vm0, %v1237_v43, %v6831_v16  ;;  %v7291_v16 = vperm.slane %v1700_v20, %v6154_v22  ;;  %v1964_v43 = vrot.slane %v7145_v5, 4  ;;  %v7312_v44 = vperm.slane %v1202_v31, %v6147_v8 }
 0x33f   : > { %v7279_v26 = vperm.slane %v1238_v47, %v6154_v22  ;;  %v10171_v47 = vld [vmem:[#allocation10_spill] sm:$0xff]  ;;  %v1994_v5 = vrot.slane %v6782_v42, 4  ;;  %v2492_v31 = vrot.slane %v2479_v48, 4 }
 0x340   : > { %1262 = vrot.lane.b32.xlu2 %v7249_v18, %s6056_s7  ;;  %2071 = vrot.lane.b32.xlu0 %v7252_v24, %s6054_s5  ;;  %v1214_v10 = vsel %vm209_vm0, %v1213_v54, %v10171_v47  ;;  %10172 = vst [vmem:[#allocation10_spill] sm:$0xff] %v7312_v44  ;;  %v1965_v20 = vsel %vm209_vm0, %v7086_v29, %v1964_v43  ;;  %v10175_v54 = vld [vmem:[#allocation21_spill] sm:$0xff]  ;;  %v1227_v29 = vrot.slane %v7312_v44, 4  ;;  %v10177_v43 = vld [vmem:[#allocation8_spill] sm:$0xff] }
 0x341   : > { %1270 = vrot.lane.b32.xlu1 %v7261_v3, %s6055_s6  ;;  %v7334_v42 = vperm.slane %v1965_v20, %v6154_v22  ;;  %v10180_v44 = vld [vmem:[#allocation13_spill] sm:$0xff] }
 0x342   : > { %v7266_v34 = vpop.permute.xlu0 %2298  ;;  %v7268_v45 = vpop.permute.xlu2 %736 }
 0x343   : > { %10168 = vst [vmem:[#allocation51_spill] sm:$0xff] %v7266_v34  ;;  %v7270_v62 = vpop.permute.xlu1 %1553  ;;  %v857_v34 = vrot.slane %v6994_v39, 4 }
 0x344   : > { %10176 = vst [vmem:[#allocation21_spill] sm:$0xff] %v7334_v42 }
 0x345   : > { %v858_v40 = vsel %vm209_vm0, %v857_v34, %v6983_v59  ;;  %v7325_v59 = vperm.slane %v1214_v10, %v6147_v8  ;;  %v1731_v34 = vrot.slane %v10175_v54, 4  ;;  %v10179_v54 = vld [vmem:[#allocation12_spill] sm:$0xff] }
 0x346   : > { %v7322_v15 = vperm.slane %v858_v40, %v6154_v22  ;;  %v10178_v40 = vld [vmem:[#allocation9_spill] sm:$0xff] }
 0x347   : > { %10174 = vst [vmem:[#allocation16_spill] sm:$0xff] %v7325_v59  ;;  %v1995_v47 = vsel %vm209_vm0, %v1994_v5, %v10178_v40  ;;  %v1228_v20 = vsel %vm209_vm0, %v7325_v59, %v1227_v29  ;;  %v1732_v48 = vsel %vm209_vm0, %v1731_v34, %v10179_v54  ;;  %v2493_v40 = vsel %vm209_vm0, %v2492_v31, %v2467_v63 }
 0x348   : > { %1298 = vrot.lane.b32.xlu2 %v7279_v26, %s6055_s6  ;;  %2589 = vrot.lane.b32.xlu0 %v7282_v56, %s6054_s5  ;;  %v7367_v29 = vperm.slane %v1228_v20, %v6154_v22  ;;  %v7370_v34 = vperm.slane %v1732_v48, %v6147_v8  ;;  %v7380_v63 = vperm.slane %v2493_v40, %v6154_v22  ;;  %v2823_v31 = vrot.slane %v7066_v61, 4 }
 0x349   : > { %1788 = vrot.lane.b32.xlu1 %v7291_v16, %s6055_s6  ;;  %v2456_v61 = vrot.slane %v6746_v50, 4  ;;  %v2468_v59 = vrot.slane %v6840_v23, 4 }
 0x34a   : > { %v7298_v39 = vpop.permute.xlu0 %2334  ;;  %v7300_v51 = vpop.permute.xlu2 %2318 }
 0x34b   : > { %10169 = vst [vmem:[#allocation52_spill] sm:$0xff] %v7298_v39  ;;  %v7303_v7 = vpop.permute.xlu1 %720  ;;  %v7319_v39 = vperm.slane %v1690_v13, %v6154_v22  ;;  %v2457_v50 = vsel %vm209_vm0, %v2456_v61, %v6548_v19  ;;  %v931_v19 = vrot.slane %v7047_v2, 4 }
 0x34c   : > { %10170 = vst [vmem:[#allocation53_spill] sm:$0xff] %v7300_v51  ;;  %v1719_v51 = vrot.slane %v10173_v4, 4 }
 0x34e   : > { %v1720_v13 = vsel %vm209_vm0, %v1719_v51, %v10177_v43  ;;  %v2007_v51 = vsel %vm209_vm0, %v2006_v52, %v10180_v44  ;;  %v7359_v43 = vperm.slane %v1995_v47, %v6147_v8 }
 0x34f   : > { %v7356_v5 = vperm.slane %v1720_v13, %v6147_v8  ;;  %v7373_v44 = vperm.slane %v2007_v51, %v6147_v8  ;;  %v2824_v51 = vsel %vm209_vm0, %v2823_v31, %v7043_v17  ;;  %v2469_v31 = vsel %vm209_vm0, %v2468_v59, %v6693_v46 }
 0x350   : > { %1780 = vrot.lane.b32.xlu2 %v7319_v39, %s6056_s7  ;;  %946 = vrot.lane.b32.xlu0 %v7322_v15, %s6055_s6  ;;  %10182 = vst [vmem:[#allocation9_spill] sm:$0xff] %v7359_v43  ;;  %v2020_v52 = vrot.slane %v7359_v43, 4  ;;  %v7413_v17 = vperm.slane %v2824_v51, %v6154_v22  ;;  %v7436_v51 = vperm.slane %v6948_v55, %v6154_v22  ;;  %v932_v55 = vsel %vm209_vm0, 0.0, %v931_v19 }
 0x351   : > { %2055 = vrot.lane.b32.xlu1 %v7334_v42, %s6056_s7  ;;  %10181 = vst [vmem:[#allocation8_spill] sm:$0xff] %v7356_v5  ;;  %v7364_v42 = vperm.slane %v10183_v30, %v6154_v22  ;;  %v1745_v30 = vrot.slane %v7356_v5, 4  ;;  %v1974_v5 = vrot.slane %v7215_v11, 4 }
 0x352   : > { %v7343_v58 = vpop.permute.xlu0 %764  ;;  %v7345_v10 = vpop.permute.xlu2 %748  ;;  %10184 = vst [vmem:[#allocation12_spill] sm:$0xff] %v7373_v44  ;;  %v2021_v54 = vsel %vm209_vm0, %v7373_v44, %v2020_v52 }
 0x353   : > { %v7347_v4 = vpop.permute.xlu1 %756  ;;  %v1746_v48 = vsel %vm209_vm0, %v7370_v34, %v1745_v30  ;;  %v7401_v40 = vperm.slane %v2021_v54, %v6154_v22  ;;  %v1975_v52 = vsel %vm209_vm0, %v1974_v5, %v7197_v33  ;;  %v7430_v54 = vperm.slane %v2457_v50, %v6147_v8 }
 0x354   : > { %v7404_v43 = vperm.slane %v1746_v48, %v6154_v22  ;;  %v2787_v48 = vrot.slane %v6765_v9, 4  ;;  %v7439_v61 = vperm.slane %v1975_v52, %v6154_v22  ;;  %v2799_v33 = vrot.slane %v6877_v60, 4 }
 0x355   : > { %v2482_v46 = vrot.slane %v7430_v54, 4  ;;  %v2538_v9 = vrot.slane %v7189_v53, 4 }
 0x356   : > { %v2788_v2 = vsel %vm209_vm0, %v2787_v48, %v6574_v6  ;;  %v1199_v6 = vrot.slane %v7135_v35, 4  ;;  %v10191_v48 = vld [vmem:[#allocation17_spill] sm:$0xff] }
 0x357   : > { %v2539_v52 = vsel %vm209_vm0, %v7129_v57, %v2538_v9  ;;  %v7466_v19 = vperm.slane %v2788_v2, %v6147_v8  ;;  %v10192_v57 = vld [vmem:[#allocation32_spill] sm:$0xff]  ;;  %v10193_v2 = vld [vmem:[#allocation11_spill] sm:$0xff] }
 0x358   : > { %1816 = vrot.lane.b32.xlu2 %v7364_v42, %s6055_s6  ;;  %1290 = vrot.lane.b32.xlu0 %v7367_v29, %s6056_s7  ;;  %v2743_v9 = vrot.slane %v10192_v57, 4 }
 0x359   : > { %2581 = vrot.lane.b32.xlu1 %v7380_v63, %s6055_s6  ;;  %v2813_v35 = vrot.slane %v7466_v19, 4 }
 0x35a   : > { %v7387_v13 = vpop.permute.xlu0 %1525  ;;  %v7389_v47 = vpop.permute.xlu2 %1509 }
 0x35b   : > { %v7391_v20 = vpop.permute.xlu1 %1517 }
 0x360   : > { %2083 = vrot.lane.b32.xlu2 %v7401_v40, %s6056_s7  ;;  %1808 = vrot.lane.b32.xlu0 %v7404_v43, %s6056_s7 }
 0x361   : > { %2884 = vrot.lane.b32.xlu1 %v7413_v17, %s6055_s6 }
 0x362   : > { %v7419_v30 = vpop.permute.xlu0 %2346  ;;  %v7421_v11 = vpop.permute.xlu2 %1545 }
 0x363   : > { %10185 = vst [vmem:[#allocation13_spill] sm:$0xff] %v7419_v30  ;;  %v7423_v23 = vpop.permute.xlu1 %2302 }
 0x364   : > { %10186 = vst [vmem:[#allocation25_spill] sm:$0xff] %v7423_v23  ;;  %v7442_v23 = vperm.slane %v2469_v31, %v6147_v8  ;;  %v10189_v31 = vld [vmem:[#allocation15_spill] sm:$0xff] }
 0x365   : > { %v2800_v53 = vsel %vm209_vm0, %v2799_v33, %v10189_v31  ;;  %10190 = vst [vmem:[#allocation15_spill] sm:$0xff] %v7466_v19  ;;  %v1200_v33 = vsel %vm209_vm0, 0.0, %v1199_v6  ;;  %v10195_v19 = vld [vmem:[#allocation14_spill] sm:$0xff] }
 0x366   : > { %v2483_v50 = vsel %vm209_vm0, %v7442_v23, %v2482_v46  ;;  %v7477_v46 = vperm.slane %v2800_v53, %v6147_v8  ;;  %v2744_v6 = vsel %vm209_vm0, %v2743_v9, %v10195_v19 }
 0x367   : > { %v7471_v30 = vperm.slane %v2483_v50, %v6154_v22  ;;  %v7513_v19 = vperm.slane %v2744_v6, %v6147_v8 }
 0x368   : > { %2091 = vrot.lane.b32.xlu0 %v7436_v51, %s6055_s6  ;;  %2063 = vrot.lane.b32.xlu2 %v7439_v61, %s6055_s6 }
 0x369   : > { %986 = vrot.lane.b32.xlu1 %v932_v55, %s6052_s30  ;;  %v2731_v55 = vrot.slane %v10191_v48, 4  ;;  %v10194_v48 = vld [vmem:[#allocation22_spill] sm:$0xff] }
 0x36a   : > { %v729_v59 = vpop.permute.xlu0 %728  ;;  %v7455_v5 = vpop.permute.xlu2 %2330 }
 0x36b   : > { %10187 = vst [vmem:[#allocation54_spill] sm:$0xff] %v7455_v5  ;;  %v7457_v60 = vpop.permute.xlu1 %2338  ;;  %v2732_v50 = vsel %vm209_vm0, %v2731_v55, %v10193_v2  ;;  %v2814_v5 = vsel %vm209_vm0, %v7477_v46, %v2813_v35  ;;  %v1717_v2 = vrot.slane %v7205_v12, 4 }
 0x36c   : > { %10188 = vst [vmem:[#allocation55_spill] sm:$0xff] %v7457_v60  ;;  %v7474_v60 = vperm.slane %v2539_v52, %v6154_v22  ;;  %v7498_v55 = vperm.slane %v2732_v50, %v6147_v8 }
 0x36d   : > { %v1718_v50 = vsel %vm209_vm0, 0.0, %v1717_v2  ;;  %v10200_v2 = vld [vmem:[#allocation30_spill] sm:$0xff] }
 0x370   : > { %2573 = vrot.lane.b32.xlu2 %v7471_v30, %s6056_s7  ;;  %2601 = vrot.lane.b32.xlu0 %v7474_v60, %s6056_s7 }
 0x371   : > { %1282 = vrot.lane.b32.xlu1 %v1200_v33, %s6052_s30 }
 0x372   : > { %v1538_v52 = vpop.permute.xlu0 %1537  ;;  %v713_v31 = vpop.permute.xlu2 %712 }
 0x373   : > { %v1530_v53 = vpop.permute.xlu1 %1529  ;;  %v768_v57 = vsel %vm767_vm8, %v10194_v48, %v713_v31  ;;  %v10196_v31 = vld [vmem:[#allocation31_spill] sm:$0xff]  ;;  %v7508_v48 = vperm.slane %v2814_v5, %v6154_v22 }
 0x374   : > { %v770_v44 = vsel %vm769_vm9, %v768_v57, %v7097_v32  ;;  %v7505_v35 = vperm.slane %v10196_v31, %v6154_v22 }
 0x375   : > { %v772_v33 = vsel %vm771_vm10, %v770_v44, %v7303_v7  ;;  %v10197_v7 = vld [vmem:[#allocation18_spill] sm:$0xff]  ;;  %v10198_v44 = vld [vmem:[#allocation28_spill] sm:$0xff] }
 0x376   : > { %v774_v32 = vsel %vm773_vm11, %v772_v33, %v7099_v14  ;;  %v1563_v12 = vsel %vm767_vm8, %v10197_v7, %v1530_v53  ;;  %v2757_v14 = vrot.slane %v7498_v55, 4  ;;  %v10201_v7 = vld [vmem:[#allocation36_spill] sm:$0xff] }
 0x377   : > { %v776_v9 = vsel %vm775_vm12, %v774_v32, %v729_v59  ;;  %v1564_v6 = vsel %vm769_vm9, %v1563_v12, %v7178_v28  ;;  %v2048_v32 = vrot.slane %v10200_v2, 4  ;;  %v10204_v2 = vld [vmem:[#allocation39_spill] sm:$0xff] }
 0x378   : > { %2609 = vrot.lane.b32.xlu2 %v7505_v35, %s6055_s6  ;;  %2876 = vrot.lane.b32.xlu0 %v7508_v48, %s6056_s7  ;;  %v778_v5 = vsel %vm10092_vm13, %v776_v9, %v10198_v44  ;;  %v2758_v33 = vsel %vm209_vm0, %v7513_v19, %v2757_v14  ;;  %v7547_v44 = vperm.slane %v10201_v7, %v6154_v22  ;;  %v10202_v14 = vld [vmem:[#allocation19_spill] sm:$0xff] }
 0x379   : > { %v780_v59 = vsel %vm10091_vm14, %v778_v5, %v7268_v45  ;;  %1800 = vrot.lane.b32.xlu1 %v1718_v50, %s6052_s30  ;;  %v1565_v45 = vsel %vm771_vm10, %v1564_v6, %v1538_v52  ;;  %v7543_v9 = vperm.slane %v2758_v33, %v6154_v22  ;;  %v2049_v28 = vsel %vm209_vm0, 0.0, %v2048_v32 }
 0x37a   : > { %v7529_v57 = vpop.permute.xlu0 %2310  ;;  %5840 = vmatpush.msk.msra.mxu2 %vm1009_vm15, %v780_v59  ;;  %v7532_v53 = vpop.permute.xlu2 %2294  ;;  %v1566_v12 = vsel %vm773_vm11, %v1565_v45, %v7180_v27  ;;  %v10203_v59 = vld [vmem:[#allocation20_spill] sm:$0xff]  ;;  %v875_v33 = vrot.slane %v7058_v1, 4  ;;  %v2510_v45 = vrot.slane %v7282_v56, 4 }
 0x37b   : > { %10199 = vst [vmem:[#allocation17_spill] sm:$0xff] %v7529_v57  ;;  %v7538_v31 = vpop.permute.xlu1 %1306  ;;  %v1255_v6 = vrot.slane %v10203_v59, 4  ;;  %v1567_v27 = vsel %vm775_vm12, %v1566_v12, %v7421_v11 }
 0x37c   : > { %v876_v1 = vsel %vm209_vm0, 0.0, %v875_v33  ;;  %v2511_v11 = vsel %vm209_vm0, 0.0, %v2510_v45  ;;  %v10208_v33 = vld [vmem:[#allocation23_spill] sm:$0xff] }
 0x380   : > { %2848 = vrot.lane.b32.xlu2 %v7543_v9, %s6056_s7  ;;  %2856 = vrot.lane.b32.xlu0 %v7547_v44, %s6055_s6 }
 0x381   : > { %2103 = vrot.lane.b32.xlu1 %v2049_v28, %s6052_s30 }
 0x382   : > { %v741_v52 = vpop.permute.xlu0 %740  ;;  %v7557_v5 = vpop.permute.xlu2 %954 }
 0x383   : > { %v781_v50 = vsel %vm767_vm8, %v10202_v14, %v741_v52  ;;  %v7565_v8 = vpop.permute.xlu1 %1824  ;;  %v1256_v52 = vsel %vm209_vm0, 0.0, %v1255_v6 }
 0x384   : > { %v782_v7 = vsel %vm769_vm9, %v781_v50, %v10204_v2  ;;  %v10205_v50 = vld [vmem:[#allocation37_spill] sm:$0xff] }
 0x385   : > { %v783_v32 = vsel %vm771_vm10, %v782_v7, %v7345_v10  ;;  %v1568_v59 = vsel %vm10092_vm13, %v1567_v27, %v10205_v50  ;;  %v10206_v10 = vld [vmem:[#allocation26_spill] sm:$0xff]  ;;  %v10209_v7 = vld [vmem:[#allocation24_spill] sm:$0xff] }
 0x386   : > { %v784_v28 = vsel %vm773_vm11, %v783_v32, %v7176_v36  ;;  %v1569_v6 = vsel %vm10091_vm14, %v1568_v59, %v7270_v62  ;;  %v1773_v27 = vrot.slane %v10209_v7, 4  ;;  %v1992_v32 = vrot.slane %v7252_v24, 4 }
 0x387   : > { %v785_v14 = vsel %vm775_vm12, %v784_v28, %v7347_v4 }
 0x388   : > { %1310 = vrot.lane.b32.xlu2 %v1256_v52, %s6052_s30  ;;  %958 = vrot.lane.b32.xlu0 %v876_v1, %s6052_s30  ;;  %v786_v56 = vsel %vm10092_vm13, %v785_v14, %v10206_v10  ;;  %v2841_v52 = vrot.slane %v7132_v25, 4  ;;  %v1774_v1 = vsel %vm209_vm0, 0.0, %v1773_v27  ;;  %v1993_v14 = vsel %vm209_vm0, 0.0, %v1992_v32 }
 0x389   : > { %v787_v36 = vsel %vm10091_vm14, %v786_v56, %v7343_v58  ;;  %2593 = vrot.lane.b32.xlu1 %v2511_v11, %s6052_s30  ;;  %v10213_v56 = vld [vmem:[#allocation41_spill] sm:$0xff]  ;;  %v871_v27 = vrot.slane %v7157_v41, 4 }
 0x38a   : > { %v1502_v12 = vpop.permute.xlu0 %1501  ;;  %5842 = vmatpush.msk.msra.mxu3 %vm1009_vm15, %v787_v36  ;;  %v7589_v4 = vpop.permute.xlu2 %2892  ;;  %v2785_v11 = vrot.slane %v10213_v56, 4 }
 0x38b   : > { %10207 = vst [vmem:[#allocation32_spill] sm:$0xff] %v7589_v4  ;;  %v1556_v2 = vsel %vm767_vm8, %v10208_v33, %v1502_v12  ;;  %v7600_v45 = vpop.permute.xlu1 %2099  ;;  %v873_v12 = vrot.slane %v7322_v15, 4  ;;  %v927_v15 = vrot.slane %v7202_v37, 4  ;;  %v929_v37 = vrot.slane %v7223_v0, 4 }
 0x38c   : > { %5852 = vmatpush.msk.msrb.mxu3 %vm1009_vm15, %v1569_v6  ;;  %v1557_v58 = vsel %vm769_vm9, %v1556_v2, %v7104_v38  ;;  %10210 = vst [vmem:[#allocation11_spill] sm:$0xff] %v7600_v45  ;;  %v10211_v38 = vld [vmem:[#allocation33_spill] sm:$0xff] }
 0x38d   : > { %v1558_v28 = vsel %vm771_vm10, %v1557_v58, %v7389_v47  ;;  %v2842_v47 = vsel %vm209_vm0, 0.0, %v2841_v52  ;;  %v874_v33 = vsel %vm209_vm0, 0.0, %v873_v12  ;;  %v1251_v58 = vrot.slane %v7367_v29, 4 }
 0x38e   : > { %v1559_v62 = vsel %vm773_vm11, %v1558_v28, %v7233_v49  ;;  %v872_v28 = vsel %vm209_vm0, 0.0, %v871_v27  ;;  %v928_v52 = vsel %vm209_vm0, 0.0, %v927_v15  ;;  %v1195_v29 = vrot.slane %v7249_v18, 4 }
 0x38f   : > { %v1560_v24 = vsel %vm775_vm12, %v1559_v62, %v7391_v20  ;;  %v10212_v20 = vld [vmem:[#allocation35_spill] sm:$0xff]  ;;  %v1252_v62 = vsel %vm209_vm0, 0.0, %v1251_v58  ;;  %v1197_v18 = vrot.slane %v7261_v3, 4 }
 0x390   : > { %1828 = vrot.lane.b32.xlu2 %v1774_v1, %s6052_s30  ;;  %2075 = vrot.lane.b32.xlu0 %v1993_v14, %s6052_s30  ;;  %v1561_v50 = vsel %vm10092_vm13, %v1560_v24, %v10211_v38  ;;  %v2566_v10 = vrot.slane %v10212_v20, 4  ;;  %v1769_v24 = vrot.slane %v7404_v43, 4  ;;  %v930_v38 = vsel %vm209_vm0, 0.0, %v929_v37 }
 0x391   : > { %v1562_v25 = vsel %vm10091_vm14, %v1561_v50, %v7387_v13  ;;  %2896 = vrot.lane.b32.xlu1 %v2842_v47, %s6052_s30  ;;  %v2786_v13 = vsel %vm209_vm0, 0.0, %v2785_v11  ;;  %v1196_v50 = vsel %vm209_vm0, 0.0, %v1195_v29  ;;  %v1253_v43 = vrot.slane %v7279_v26, 4 }
 0x392   : > { %v7619_v49 = vpop.permute.xlu0 %2322  ;;  %5850 = vmatpush.msk.msrb.mxu2 %vm1009_vm15, %v1562_v25  ;;  %v7622_v59 = vpop.permute.xlu2 %966  ;;  %v2567_v6 = vsel %vm209_vm0, 0.0, %v2566_v10  ;;  %v1770_v47 = vsel %vm209_vm0, 0.0, %v1769_v24  ;;  %v2044_v10 = vrot.slane %v7401_v40, 4  ;;  %v1198_v56 = vsel %vm209_vm0, 0.0, %v1197_v18 }
 0x393   : > { %v7626_v36 = vpop.permute.xlu1 %2617  ;;  %v1254_v11 = vsel %vm209_vm0, 0.0, %v1253_v43  ;;  %v1715_v26 = vrot.slane %v7291_v16, 4  ;;  %v1713_v40 = vrot.slane %v7319_v39, 4  ;;  %v2046_v39 = vrot.slane %v7436_v51, 4 }
 0x394   : > { %10214 = vst [vmem:[#allocation22_spill] sm:$0xff] %v7626_v36  ;;  %v2045_v12 = vsel %vm209_vm0, 0.0, %v2044_v10  ;;  %v2781_v43 = vrot.slane %v7543_v9, 4  ;;  %v10220_v10 = vld [vmem:[#allocation43_spill] sm:$0xff] }
 0x395   : > { %v1716_v27 = vsel %vm209_vm0, 0.0, %v1715_v26  ;;  %v1714_v15 = vsel %vm209_vm0, 0.0, %v1713_v40  ;;  %v2047_v37 = vsel %vm209_vm0, 0.0, %v2046_v39  ;;  %v10221_v26 = vld [vmem:[#allocation48_spill] sm:$0xff] }
 0x396   : > { %v1169_v40 = vrot.slane %v10221_v26, 4 }
 0x398   : > { %2621 = vrot.lane.b32.xlu2 %v2567_v6, %s6052_s30  ;;  %2868 = vrot.lane.b32.xlu0 %v2786_v13, %s6052_s30 }
 0x399   : > { %950 = vrot.lane.b32.xlu1 %v874_v33, %s6051_s29  ;;  %v1990_v33 = vrot.slane %v7439_v61, 4  ;;  %v1771_v61 = vrot.slane %v7364_v42, 4 }
 0x39a   : > { %v7635_v2 = vpop.permute.xlu0 %982  ;;  %v7637_v7 = vpop.permute.xlu2 %1262 }
 0x39b   : > { %v7641_v32 = vpop.permute.xlu1 %2864  ;;  %v1991_v58 = vsel %vm209_vm0, 0.0, %v1990_v33  ;;  %v1772_v29 = vsel %vm209_vm0, 0.0, %v1771_v61  ;;  %v10222_v61 = vld [vmem:[#allocation46_spill] sm:$0xff] }
 0x39c   : > { %10215 = vst [vmem:[#allocation14_spill] sm:$0xff] %v7641_v32  ;;  %v2755_v32 = vrot.slane %v7513_v19, 4 }
 0x3a0   : > { %942 = vrot.lane.b32.xlu2 %v872_v28, %s6053_s4  ;;  %970 = vrot.lane.b32.xlu0 %v928_v52, %s6053_s4 }
 0x3a1   : > { %1294 = vrot.lane.b32.xlu1 %v1252_v62, %s6053_s4  ;;  %v2562_v62 = vrot.slane %v7474_v60, 4  ;;  %v2508_v60 = vrot.slane %v7380_v63, 4 }
 0x3a2   : > { %v7650_v1 = vpop.permute.xlu0 %1278  ;;  %v7652_v41 = vpop.permute.xlu2 %1298 }
 0x3a3   : > { %v7656_v14 = vpop.permute.xlu1 %938  ;;  %v2563_v24 = vsel %vm209_vm0, 0.0, %v2562_v62  ;;  %v1170_v62 = vsel %vm209_vm0, %v1169_v40, %v10222_v61 }
 0x3a8   : > { %978 = vrot.lane.b32.xlu2 %v930_v38, %s6051_s29  ;;  %1266 = vrot.lane.b32.xlu0 %v1196_v50, %s6053_s4  ;;  %v901_v38 = vrot.slane %v7142_v21, 4  ;;  %v10219_v50 = vld [vmem:[#allocation21_spill] sm:$0xff] }
 0x3a9   : > { %1812 = vrot.lane.b32.xlu1 %v1770_v47, %s6053_s4  ;;  %v1988_v47 = vrot.slane %v10219_v50, 4 }
 0x3aa   : > { %v7665_v25 = vpop.permute.xlu0 %1796  ;;  %v7667_v0 = vpop.permute.xlu2 %1780 }
 0x3ab   : > { %10216 = vst [vmem:[#allocation31_spill] sm:$0xff] %v7665_v25  ;;  %v7671_v20 = vpop.permute.xlu1 %974  ;;  %v1989_v21 = vsel %vm209_vm0, 0.0, %v1988_v47  ;;  %v2783_v47 = vrot.slane %v7547_v44, 4  ;;  %v1743_v44 = vrot.slane %v7370_v34, 4  ;;  %v10257_v25 = vld [vmem:[#allocation50_spill] sm:$0xff] }
 0x3b0   : > { %1274 = vrot.lane.b32.xlu2 %v1198_v56, %s6051_s29  ;;  %1302 = vrot.lane.b32.xlu0 %v1254_v11, %s6051_s29  ;;  %v902_v56 = vsel %vm209_vm0, %v901_v38, %v10220_v10  ;;  %v2509_v11 = vsel %vm209_vm0, 0.0, %v2508_v60 }
 0x3b1   : > { %2087 = vrot.lane.b32.xlu1 %v2045_v12, %s6053_s4  ;;  %v2782_v12 = vsel %vm209_vm0, 0.0, %v2781_v43  ;;  %v7728_v63 = vperm.slane %v902_v56, %v6154_v22  ;;  %v2564_v43 = vrot.slane %v7505_v35, 4  ;;  %v10226_v56 = vld [vmem:[#allocation10_spill] sm:$0xff] }
 0x3b2   : > { %v7680_v6 = vpop.permute.xlu0 %2071  ;;  %v7682_v3 = vpop.permute.xlu2 %1816 }
 0x3b3   : > { %v7686_v13 = vpop.permute.xlu1 %1270  ;;  %v925_v39 = vrot.slane %v7728_v63, 4  ;;  %v2565_v26 = vsel %vm209_vm0, 0.0, %v2564_v43  ;;  %v10232_v43 = vld [vmem:[#allocation40_spill] sm:$0xff] }
 0x3b8   : > { %1792 = vrot.lane.b32.xlu2 %v1716_v27, %s6051_s29  ;;  %1784 = vrot.lane.b32.xlu0 %v1714_v15, %s6053_s4  ;;  %v2837_v27 = vrot.slane %v7508_v48, 4  ;;  %v2506_v15 = vrot.slane %v7471_v30, 4  ;;  %v926_v48 = vsel %vm209_vm0, 0.0, %v925_v39  ;;  %v7750_v30 = vperm.slane %v1170_v62, %v6154_v22  ;;  %v10228_v39 = vld [vmem:[#allocation44_spill] sm:$0xff] }
 0x3b9   : > { %2067 = vrot.lane.b32.xlu1 %v1991_v58, %s6051_s29  ;;  %v7776_v61 = vperm.slane %v10228_v39, %v6154_v22  ;;  %v2480_v62 = vrot.slane %v7442_v23, 4 }
 0x3ba   : > { %v7695_v28 = vpop.permute.xlu0 %2589  ;;  %v7697_v16 = vpop.permute.xlu2 %2083 }
 0x3bb   : > { %10217 = vst [vmem:[#allocation18_spill] sm:$0xff] %v7695_v28  ;;  %v7701_v52 = vpop.permute.xlu1 %1788  ;;  %v1711_v23 = vrot.slane %v7776_v61, 4 }
 0x3bc   : > { %10218 = vst [vmem:[#allocation28_spill] sm:$0xff] %v7697_v16  ;;  %v788_v16 = vld [vmem:[%s10045_s1] sm:$0xf] }
 0x3bd   : > { %5841 = vmatmul.msk.f32.vlgmr.msra.gmra.mxu2 %vm10090_vm2, %v788_v16  ;;  %5843 = vmatmul.msk.f32.vlgmr.msra.gmra.mxu3 %vm10090_vm2, %v788_v16 }
 0x3c0   : > { %2095 = vrot.lane.b32.xlu2 %v2047_v37, %s6051_s29  ;;  %1820 = vrot.lane.b32.xlu0 %v1772_v29, %s6051_s29  ;;  %v2838_v37 = vsel %vm209_vm0, 0.0, %v2837_v27  ;;  %v2507_v29 = vsel %vm209_vm0, 0.0, %v2506_v15  ;;  %v10227_v27 = vld [vmem:[#allocation42_spill] sm:$0xff] }
 0x3c1   : > { %2605 = vrot.lane.b32.xlu1 %v2563_v24, %s6053_s4  ;;  %v10223_v24 = vld [vmem:[#allocation16_spill] sm:$0xff]  ;;  %v845_v15 = vrot.slane %v10227_v27, 4 }
 0x3c2   : > { %v7711_v51 = vpop.permute.xlu0 %946  ;;  %v7713_v42 = vpop.permute.xlu2 %2063  ;;  %v1225_v38 = vrot.slane %v10223_v24, 4  ;;  %v2839_v24 = vrot.slane %v7413_v17, 4  ;;  %v10233_v27 = vld [vmem:[#allocation12_spill] sm:$0xff] }
 0x3c3   : > { %v7717_v18 = vpop.permute.xlu1 %2055 }
 0x3c8   : > { %2585 = vrot.lane.b32.xlu2 %v2509_v11, %s6051_s29  ;;  %2059 = vrot.lane.b32.xlu0 %v1989_v21, %s6053_s4  ;;  %v1226_v11 = vsel %vm209_vm0, %v1225_v38, %v10226_v56  ;;  %v1193_v21 = vrot.slane %v7750_v30, 4  ;;  %v846_v56 = vsel %vm209_vm0, %v845_v15, %v10232_v43  ;;  %v1712_v15 = vsel %vm209_vm0, 0.0, %v1711_v23  ;;  %v10236_v23 = vld [vmem:[#allocation15_spill] sm:$0xff] }
 0x3c9   : > { %2852 = vrot.lane.b32.xlu1 %v2782_v12, %s6053_s4  ;;  %v2784_v12 = vsel %vm209_vm0, 0.0, %v2783_v47  ;;  %v7767_v40 = vperm.slane %v1226_v11, %v6154_v22  ;;  %v2481_v11 = vsel %vm209_vm0, %v2480_v62, %v7430_v54  ;;  %v7801_v17 = vperm.slane %v846_v56, %v6154_v22 }
 0x3ca   : > { %v7732_v9 = vpop.permute.xlu0 %1290  ;;  %v7734_v33 = vpop.permute.xlu2 %2573  ;;  %v1194_v35 = vsel %vm209_vm0, 0.0, %v1193_v21  ;;  %v7808_v54 = vperm.slane %v2481_v11, %v6154_v22 }
 0x3cb   : > { %v7738_v58 = vpop.permute.xlu1 %2581  ;;  %v1249_v34 = vrot.slane %v7767_v40, 4 }
 0x3cc   : > { %v2504_v56 = vrot.slane %v7808_v54, 4 }
 0x3cd   : > { %v1250_v21 = vsel %vm209_vm0, 0.0, %v1249_v34 }
 0x3d0   : > { %2880 = vrot.lane.b32.xlu2 %v2838_v37, %s6053_s4  ;;  %2577 = vrot.lane.b32.xlu0 %v2507_v29, %s6053_s4 }
 0x3d1   : > { %962 = vrot.lane.b32.xlu1 %v926_v48, %s6057_s8  ;;  %v10231_v48 = vld [vmem:[#allocation8_spill] sm:$0xff] }
 0x3d2   : > { %v7753_v60 = vpop.permute.xlu0 %1808  ;;  %v7755_v50 = vpop.permute.xlu2 %2609  ;;  %v1744_v47 = vsel %vm209_vm0, %v1743_v44, %v10231_v48  ;;  %v2018_v44 = vrot.slane %v10233_v27, 4 }
 0x3d3   : > { %10224 = vst [vmem:[#allocation30_spill] sm:$0xff] %v7755_v50  ;;  %v7759_v10 = vpop.permute.xlu1 %2884 }
 0x3d4   : > { %10225 = vst [vmem:[#allocation36_spill] sm:$0xff] %v7759_v10 }
 0x3d8   : > { %2860 = vrot.lane.b32.xlu2 %v2784_v12, %s6051_s29  ;;  %2613 = vrot.lane.b32.xlu0 %v2565_v26, %s6051_s29  ;;  %v2840_v12 = vsel %vm209_vm0, 0.0, %v2839_v24  ;;  %v7798_v26 = vperm.slane %v1744_v47, %v6154_v22  ;;  %v869_v24 = vrot.slane %v7801_v17, 4  ;;  %v10235_v47 = vld [vmem:[#allocation9_spill] sm:$0xff] }
 0x3d9   : > { %1258 = vrot.lane.b32.xlu1 %v1194_v35, %s6057_s8  ;;  %v2811_v35 = vrot.slane %v7477_v46, 4  ;;  %v2019_v43 = vsel %vm209_vm0, %v2018_v44, %v10235_v47  ;;  %v2505_v44 = vsel %vm209_vm0, 0.0, %v2504_v56 }
 0x3da   : > { %v7780_v37 = vpop.permute.xlu0 %2091  ;;  %v7782_v29 = vpop.permute.xlu2 %2848  ;;  %v1767_v34 = vrot.slane %v7798_v26, 4 }
 0x3db   : > { %10229 = vst [vmem:[#allocation19_spill] sm:$0xff] %v7780_v37  ;;  %v7786_v38 = vpop.permute.xlu1 %986  ;;  %v2812_v46 = vsel %vm209_vm0, %v2811_v35, %v10236_v23  ;;  %v2756_v23 = vsel %vm209_vm0, %v2755_v32, %v7498_v55 }
 0x3dc   : > { %10230 = vst [vmem:[#allocation20_spill] sm:$0xff] %v7782_v29  ;;  %v1768_v11 = vsel %vm209_vm0, 0.0, %v1767_v34  ;;  %v7839_v35 = vperm.slane %v2812_v46, %v6154_v22 }
 0x3de   : > { %10239 = vst [vmem:[#allocation26_spill] sm:$0xff] %v7839_v35  ;;  %v2835_v56 = vrot.slane %v7839_v35, 4 }
 0x3e0   : > { %1286 = vrot.lane.b32.xlu2 %v1250_v21, %s6057_s8  ;;  %2888 = vrot.lane.b32.xlu0 %v2840_v12, %s6051_s29  ;;  %v870_v21 = vsel %vm209_vm0, 0.0, %v869_v24  ;;  %v10237_v12 = vld [vmem:[#allocation45_spill] sm:$0xff]  ;;  %v2836_v29 = vsel %vm209_vm0, 0.0, %v2835_v56 }
 0x3e1   : > { %1776 = vrot.lane.b32.xlu1 %v1712_v15, %s6057_s8  ;;  %v7829_v27 = vperm.slane %v10237_v12, %v6154_v22  ;;  %v7832_v15 = vperm.slane %v2019_v43, %v6154_v22  ;;  %v10243_v12 = vld [vmem:[#allocation47_spill] sm:$0xff] }
 0x3e2   : > { %v7812_v39 = vpop.permute.xlu0 %2601  ;;  %v7814_v62 = vpop.permute.xlu2 %1310 }
 0x3e3   : > { %v7818_v48 = vpop.permute.xlu1 %1282  ;;  %10238 = vst [vmem:[#allocation37_spill] sm:$0xff] %v7832_v15  ;;  %v1986_v47 = vrot.slane %v7829_v27, 4  ;;  %v2042_v43 = vrot.slane %v7832_v15, 4  ;;  %v5849_v15 = vld [vmem:[%s10045_s1 + $0xc] sm:$0xf] }
 0x3e4   : > { %10234 = vst [vmem:[#allocation39_spill] sm:$0xff] %v7818_v48  ;;  %5853 = vmatmul.msk.f32.vlgmr.msrb.gmra.mxu3 %vm10090_vm2, %v5849_v15  ;;  %5851 = vmatmul.msk.f32.vlgmr.msrb.gmra.mxu2 %vm10090_vm2, %v5849_v15 }
 0x3e5   : > { %v1987_v46 = vsel %vm209_vm0, 0.0, %v1986_v47 }
 0x3e8   : > { %1804 = vrot.lane.b32.xlu2 %v1768_v11, %s6057_s8  ;;  %934 = vrot.lane.b32.xlu0 %v870_v21, %s6057_s8  ;;  %v2043_v11 = vsel %vm209_vm0, 0.0, %v2042_v43  ;;  %v7856_v21 = vperm.slane %v2756_v23, %v6154_v22 }
 0x3e9   : > { %2569 = vrot.lane.b32.xlu1 %v2505_v44, %s6057_s8  ;;  %v7860_v44 = vperm.slane %v10243_v12, %v6154_v22 }
 0x3ea   : > { %v7842_v34 = vpop.permute.xlu0 %2876  ;;  %v7844_v24 = vpop.permute.xlu2 %1828  ;;  %10242 = vst [vmem:[#allocation33_spill] sm:$0xff] %v7856_v21  ;;  %v2779_v47 = vrot.slane %v7856_v21, 4 }
 0x3eb   : > { %10240 = vst [vmem:[#allocation23_spill] sm:$0xff] %v7842_v34  ;;  %v7848_v19 = vpop.permute.xlu1 %1800  ;;  %v2560_v43 = vrot.slane %v7860_v44, 4 }
 0x3ec   : > { %10241 = vst [vmem:[#allocation24_spill] sm:$0xff] %v7848_v19  ;;  %v2780_v12 = vsel %vm209_vm0, 0.0, %v2779_v47 }
 0x3f0   : > { %2051 = vrot.lane.b32.xlu2 %v1987_v46, %s6057_s8  ;;  %2079 = vrot.lane.b32.xlu0 %v2043_v11, %s6057_s8  ;;  %v2561_v46 = vsel %vm209_vm0, 0.0, %v2560_v43 }
 0x3f1   : > { %2872 = vrot.lane.b32.xlu1 %v2836_v29, %s6057_s8 }
 0x3f2   : > { %v7866_v55 = vpop.permute.xlu0 %2856  ;;  %v7868_v32 = vpop.permute.xlu2 %2621 }
 0x3f3   : > { %10244 = vst [vmem:[#allocation35_spill] sm:$0xff] %v7866_v55  ;;  %v7872_v23 = vpop.permute.xlu1 %2103 }
 0x3f4   : > { %10245 = vst [vmem:[#allocation41_spill] sm:$0xff] %v7868_v32 }
 0x3f5   : > { %10246 = vst [vmem:[#allocation21_spill] sm:$0xff] %v7872_v23 }
 0x3f8   : > { %2844 = vrot.lane.b32.xlu0 %v2780_v12, %s6057_s8  ;;  %2597 = vrot.lane.b32.xlu2 %v2561_v46, %s6057_s8 }
 0x3fa   : > { %v7878_v56 = vpop.permute.xlu0 %958  ;;  %v7880_v29 = vpop.permute.xlu2 %942 }
 0x3fb   : > { %v7882_v11 = vpop.permute.xlu1 %2593 }
 0x3fc   : > { %10247 = vst [vmem:[#allocation43_spill] sm:$0xff] %v7882_v11 }
 0x402   : > { %v7884_v22 = vpop.permute.xlu0 %2075  ;;  %v979_v55 = vpop.permute.xlu2 %978 }
 0x403   : > { %v7886_v32 = vpop.permute.xlu1 %2896 }
 0x404   : > { %10248 = vst [vmem:[#allocation48_spill] sm:$0xff] %v7886_v32 }
 0x40a   : > { %v7888_v21 = vpop.permute.xlu0 %2868  ;;  %v7890_v47 = vpop.permute.xlu2 %1274 }
 0x40b   : > { %10249 = vst [vmem:[#allocation46_spill] sm:$0xff] %v7888_v21  ;;  %v7892_v43 = vpop.permute.xlu1 %950 }
 0x412   : > { %v971_v12 = vpop.permute.xlu0 %970  ;;  %v7894_v4 = vpop.permute.xlu2 %1792 }
 0x413   : > { %v1295_v46 = vpop.permute.xlu1 %1294 }
 0x41a   : > { %v7896_v23 = vpop.permute.xlu0 %1266  ;;  %v7898_v36 = vpop.permute.xlu2 %2095 }
 0x41b   : > { %10250 = vst [vmem:[#allocation16_spill] sm:$0xff] %v7898_v36  ;;  %v1813_v45 = vpop.permute.xlu1 %1812 }
 0x422   : > { %v1303_v10 = vpop.permute.xlu0 %1302  ;;  %v7900_v34 = vpop.permute.xlu2 %2585 }
 0x423   : > { %10251 = vst [vmem:[#allocation10_spill] sm:$0xff] %v7900_v34  ;;  %v7902_v37 = vpop.permute.xlu1 %2087 }
 0x424   : > { %10252 = vst [vmem:[#allocation42_spill] sm:$0xff] %v7902_v37 }
 0x42a   : > { %v7904_v32 = vpop.permute.xlu0 %1784  ;;  %v7906_v21 = vpop.permute.xlu2 %2880 }
 0x42b   : > { %10253 = vst [vmem:[#allocation44_spill] sm:$0xff] %v7906_v21  ;;  %v2068_v35 = vpop.permute.xlu1 %2067 }
 0x432   : > { %v1821_v57 = vpop.permute.xlu0 %1820  ;;  %v7908_v19 = vpop.permute.xlu2 %2860 }
 0x433   : > { %10254 = vst [vmem:[#allocation8_spill] sm:$0xff] %v7908_v19  ;;  %v7915_v36 = vpop.permute.xlu1 %2605 }
 0x43a   : > { %v2060_v37 = vpop.permute.xlu0 %2059  ;;  %v1287_v11 = vpop.permute.xlu2 %1286 }
 0x43b   : > { %v1320_v21 = vsel %vm767_vm8, %v7767_v40, %v1287_v11  ;;  %v7919_v48 = vpop.permute.xlu1 %2852  ;;  %v10256_v40 = vld [vmem:[#allocation27_spill] sm:$0xff] }
 0x43c   : > { %10255 = vst [vmem:[#allocation40_spill] sm:$0xff] %v7919_v48  ;;  %v1321_v19 = vsel %vm769_vm9, %v1320_v21, %v7732_v9  ;;  %v2356_v11 = vsel %vm767_vm8, %v10256_v40, %v7619_v49 }
 0x43d   : > { %v1322_v28 = vsel %vm771_vm10, %v1321_v19, %v1295_v46  ;;  %v2357_v34 = vsel %vm769_vm9, %v2356_v11, %v10257_v25 }
 0x43e   : > { %v1323_v19 = vsel %vm773_vm11, %v1322_v28, %v7652_v41  ;;  %v10258_v28 = vld [vmem:[#allocation54_spill] sm:$0xff] }
 0x442   : > { %v7929_v16 = vpop.permute.xlu0 %2577  ;;  %v1805_v50 = vpop.permute.xlu2 %1804 }
 0x443   : > { %v1838_v9 = vsel %vm767_vm8, %v7798_v26, %v1805_v50  ;;  %v963_v48 = vpop.permute.xlu1 %962  ;;  %v1324_v26 = vsel %vm775_vm12, %v1323_v19, %v1303_v10  ;;  %v7964_v10 = vld [vmem:[%s10045_s1 + $0x4] sm:$0xf] }
 0x444   : > { %v1839_v21 = vsel %vm769_vm9, %v1838_v9, %v7753_v60  ;;  %v996_v15 = vsel %vm767_vm8, %v7728_v63, %v963_v48  ;;  %v2358_v63 = vsel %vm771_vm10, %v2357_v34, %v10258_v28  ;;  %v10260_v9 = vld [vmem:[#allocation55_spill] sm:$0xff] }
 0x445   : > { %v1840_v46 = vsel %vm771_vm10, %v1839_v21, %v1813_v45  ;;  %v997_v50 = vsel %vm769_vm9, %v996_v15, %v7622_v59 }
 0x446   : > { %v1841_v49 = vsel %vm773_vm11, %v1840_v46, %v7682_v3  ;;  %v998_v60 = vsel %vm771_vm10, %v997_v50, %v971_v12  ;;  %v10259_v12 = vld [vmem:[#allocation52_spill] sm:$0xff] }
 0x447   : > { %v999_v41 = vsel %vm773_vm11, %v998_v60, %v7671_v20  ;;  %v1842_v45 = vsel %vm775_vm12, %v1841_v49, %v1821_v57  ;;  %v1325_v20 = vsel %vm10092_vm13, %v1324_v26, %v7538_v31  ;;  %v10262_v49 = vld [vmem:[#allocation13_spill] sm:$0xff] }
 0x448   : > { %v1000_v25 = vsel %vm775_vm12, %v999_v41, %v979_v55  ;;  %v1843_v55 = vsel %vm10092_vm13, %v1842_v45, %v7565_v8 }
 0x449   : > { %v1001_v59 = vsel %vm10092_vm13, %v1000_v25, %v7635_v2  ;;  %v2359_v2 = vsel %vm773_vm11, %v2358_v63, %v10259_v12 }
 0x44a   : > { %v7957_v48 = vpop.permute.xlu0 %2613  ;;  %v2052_v3 = vpop.permute.xlu2 %2051  ;;  %v1002_v34 = vsel %vm10091_vm14, %v1001_v59, %v7786_v38  ;;  %v1326_v38 = vsel %vm10091_vm14, %v1325_v20, %v7814_v62 }
 0x44b   : > { %v2106_v57 = vsel %vm767_vm8, %v7829_v27, %v2052_v3  ;;  %v1259_v11 = vpop.permute.xlu1 %1258  ;;  %5838 = vmatpush.msk.msra.mxu1 %vm1009_vm15, %v1002_v34  ;;  %v1844_v27 = vsel %vm10091_vm14, %v1843_v55, %v7844_v24  ;;  %v10261_v24 = vld [vmem:[#allocation38_spill] sm:$0xff] }
 0x44c   : > { %v2107_v40 = vsel %vm769_vm9, %v2106_v57, %v7717_v18  ;;  %5839 = vmatmul.msk.f32.vlgmr.msra.gmra.mxu1 %vm10090_vm2, %v7964_v10  ;;  %v1313_v62 = vsel %vm767_vm8, %v7750_v30, %v1259_v11  ;;  %v10268_v11 = vld [vmem:[#allocation31_spill] sm:$0xff] }
 0x44d   : > { %v2108_v31 = vsel %vm771_vm10, %v2107_v40, %v2060_v37  ;;  %5847 = vmatpush.msk.msrb.mxu1 %vm1009_vm15, %v1326_v38  ;;  %v2360_v37 = vsel %vm775_vm12, %v2359_v2, %v10260_v9  ;;  %v10266_v2 = vld [vmem:[#allocation49_spill] sm:$0xff]  ;;  %v10267_v40 = vld [vmem:[#allocation10_spill] sm:$0xff] }
 0x44e   : > { %v2109_v8 = vsel %vm773_vm11, %v2108_v31, %v7713_v42  ;;  %v2361_v46 = vsel %vm10092_vm13, %v2360_v37, %v10261_v24  ;;  %v10269_v31 = vld [vmem:[#allocation30_spill] sm:$0xff]  ;;  %v10273_v37 = vld [vmem:[#allocation43_spill] sm:$0xff] }
 0x44f   : > { %5857 = vmatpush.msk.msra.mxu1 %vm1009_vm15, %v1844_v27  ;;  %v2110_v18 = vsel %vm775_vm12, %v2109_v8, %v2068_v35  ;;  %v8005_v35 = vld [vmem:[%s10045_s1 + $0x8] sm:$0xf]  ;;  %v2362_v50 = vsel %vm10091_vm14, %v2361_v46, %v10262_v49  ;;  %v5864_v8 = vld [vmem:[%s10045_s1 + $0x18] sm:$0xf] }
 0x450   : > { %v2111_v21 = vsel %vm10092_vm13, %v2110_v18, %v7680_v6  ;;  %v8012_v6 = vld [vmem:[%s10045_s1 + $0x14] sm:$0xf]  ;;  %v10272_v18 = vld [vmem:[#allocation39_spill] sm:$0xff]  ;;  %v10275_v46 = vld [vmem:[#allocation24_spill] sm:$0xff] }
 0x451   : > { %v2112_v42 = vsel %vm10091_vm14, %v2111_v21, %v7884_v22  ;;  %v1314_v22 = vsel %vm769_vm9, %v1313_v62, %v7637_v7  ;;  %v10263_v7 = vld [vmem:[#allocation29_spill] sm:$0xff]  ;;  %v10274_v62 = vld [vmem:[#allocation28_spill] sm:$0xff] }
 0x452   : > { %v7999_v19 = vpop.permute.xlu0 %2888  ;;  %5860 = vmatpush.msk.msra.mxu2 %vm1009_vm15, %v2112_v42  ;;  %v2598_v60 = vpop.permute.xlu2 %2597  ;;  %v1315_v41 = vsel %vm771_vm10, %v1314_v22, %v7896_v23  ;;  %v2349_v45 = vsel %vm767_vm8, %v10263_v7, %v7532_v53  ;;  %v10264_v23 = vld [vmem:[#allocation51_spill] sm:$0xff] }
 0x453   : > { %5861 = vmatmul.msk.f32.vlgmr.msra.gmra.mxu2 %vm10090_vm2, %v8012_v6  ;;  %v1777_v30 = vpop.permute.xlu1 %1776  ;;  %v2631_v28 = vsel %vm767_vm8, %v7860_v44, %v2598_v60  ;;  %v1316_v25 = vsel %vm773_vm11, %v1315_v41, %v7686_v13  ;;  %v2350_v3 = vsel %vm769_vm9, %v2349_v45, %v10264_v23  ;;  %v5869_v41 = vld [vmem:[%s10045_s1 + $0x1c] sm:$0xf]  ;;  %v10279_v7 = vld [vmem:[#allocation19_spill] sm:$0xff]  ;;  %v10282_v23 = vld [vmem:[#allocation16_spill] sm:$0xff] }
 0x454   : > { %v1831_v15 = vsel %vm767_vm8, %v7776_v61, %v1777_v30  ;;  %5848 = vmatmul.msk.f32.vlgmr.msrb.gmra.mxu1 %vm10090_vm2, %v8005_v35  ;;  %v2632_v44 = vsel %vm769_vm9, %v2631_v28, %v7812_v39  ;;  %v1317_v34 = vsel %vm775_vm12, %v1316_v25, %v7890_v47  ;;  %v10276_v30 = vld [vmem:[#allocation17_spill] sm:$0xff] }
 0x455   : > { %v1832_v26 = vsel %vm769_vm9, %v1831_v15, %v7667_v0  ;;  %5867 = vmatpush.msk.msrb.mxu1 %vm1009_vm15, %v2362_v50  ;;  %v8041_v0 = vld [vmem:[%s10045_s1 + $0x10] sm:$0xf]  ;;  %v10277_v15 = vld [vmem:[#allocation42_spill] sm:$0xff] }
 0x456   : > { %v1833_v61 = vsel %vm771_vm10, %v1832_v26, %v7904_v32  ;;  %v10278_v50 = vld [vmem:[#allocation26_spill] sm:$0xff] }
 0x457   : > { %v1834_v53 = vsel %vm773_vm11, %v1833_v61, %v7701_v52  ;;  %v10265_v52 = vld [vmem:[#allocation25_spill] sm:$0xff]  ;;  %v10280_v61 = vld [vmem:[#allocation23_spill] sm:$0xff] }
 0x45a   : > { %v935_v63 = vpop.permute.xlu0 %934 }
 0x45b   : > { %v989_v32 = vsel %vm767_vm8, %v7801_v17, %v935_v63  ;;  %v2570_v59 = vpop.permute.xlu1 %2569  ;;  %v2351_v17 = vsel %vm771_vm10, %v2350_v3, %v10265_v52  ;;  %v10281_v63 = vld [vmem:[#allocation44_spill] sm:$0xff]  ;;  %v10283_v3 = vld [vmem:[#allocation34_spill] sm:$0xff] }
 0x45c   : > { %v990_v13 = vsel %vm769_vm9, %v989_v32, %v7656_v14  ;;  %v2624_v57 = vsel %vm767_vm8, %v7808_v54, %v2570_v59  ;;  %5858 = vmatmul.msk.f32.vlgmr.msra.gmra.mxu1 %vm10090_vm2, %v8041_v0  ;;  %v2633_v54 = vsel %vm771_vm10, %v2632_v44, %v7915_v36  ;;  %v10284_v32 = vld [vmem:[#allocation36_spill] sm:$0xff] }
 0x45d   : > { %v991_v20 = vsel %vm771_vm10, %v990_v13, %v7880_v29  ;;  %v2625_v39 = vsel %vm769_vm9, %v2624_v57, %v7734_v33  ;;  %v1835_v29 = vsel %vm775_vm12, %v1834_v53, %v7894_v4  ;;  %v2352_v4 = vsel %vm773_vm11, %v2351_v17, %v10266_v2  ;;  %v10285_v13 = vld [vmem:[#allocation11_spill] sm:$0xff] }
 0x45e   : > { %v992_v14 = vsel %vm773_vm11, %v991_v20, %v7711_v51  ;;  %v2626_v47 = vsel %vm771_vm10, %v2625_v39, %v7929_v16  ;;  %v1318_v51 = vsel %vm10092_vm13, %v1317_v34, %v7650_v1  ;;  %v10286_v20 = vld [vmem:[#allocation22_spill] sm:$0xff]  ;;  %v10287_v34 = vld [vmem:[#allocation21_spill] sm:$0xff] }
 0x45f   : > { %v993_v55 = vsel %vm775_vm12, %v992_v14, %v7892_v43  ;;  %v2627_v12 = vsel %vm773_vm11, %v2626_v47, %v7738_v58  ;;  %v1836_v43 = vsel %vm10092_vm13, %v1835_v29, %v10268_v11  ;;  %v2634_v58 = vsel %vm773_vm11, %v2633_v54, %v10269_v31  ;;  %v10288_v14 = vld [vmem:[#allocation53_spill] sm:$0xff]  ;;  %v10289_v54 = vld [vmem:[#allocation32_spill] sm:$0xff] }
 0x460   : > { %v994_v33 = vsel %vm10092_vm13, %v993_v55, %v7557_v5  ;;  %v2628_v16 = vsel %vm775_vm12, %v2627_v12, %v10267_v40  ;;  %v10270_v5 = vld [vmem:[#allocation18_spill] sm:$0xff]  ;;  %v1319_v9 = vsel %vm10091_vm14, %v1318_v51, %v10272_v18  ;;  %v1837_v22 = vsel %vm10091_vm14, %v1836_v43, %v10275_v46  ;;  %v10290_v55 = vld [vmem:[#allocation33_spill] sm:$0xff]  ;;  %v10292_v51 = vld [vmem:[#allocation48_spill] sm:$0xff]  ;;  %v1082_v18 = vpop.f32.mrf.mxu2 }
 0x461   : > { %v995_v36 = vsel %vm10091_vm14, %v994_v33, %v7878_v56  ;;  %v2629_v1 = vsel %vm10092_vm13, %v2628_v16, %v10270_v5  ;;  %v10271_v56 = vld [vmem:[#allocation37_spill] sm:$0xff]  ;;  %v2635_v26 = vsel %vm775_vm12, %v2634_v58, %v7957_v48  ;;  %v10295_v16 = vld [vmem:[#allocation35_spill] sm:$0xff]  ;;  %v10296_v43 = vld [vmem:[#allocation8_spill] sm:$0xff] }
 0x462   : > { %v2080_v38 = vpop.permute.xlu0 %2079  ;;  %5836 = vmatpush.msk.msra.mxu0 %vm1009_vm15, %v995_v36  ;;  %v2630_v21 = vsel %vm10091_vm14, %v2629_v1, %v10273_v37  ;;  %v2636_v57 = vsel %vm10092_vm13, %v2635_v26, %v10286_v20  ;;  %v10291_v33 = vld [vmem:[#allocation41_spill] sm:$0xff]  ;;  %v10293_v36 = vld [vmem:[#allocation20_spill] sm:$0xff]  ;;  %v10297_v58 = vld [vmem:[#allocation14_spill] sm:$0xff] }
 0x463   : > { %v2113_v27 = vsel %vm767_vm8, %v10271_v56, %v2080_v38  ;;  %5837 = vmatmul.msk.f32.vlgmr.msra.gmra.mxu0 %vm10090_vm2, %v7964_v10  ;;  %v2873_v24 = vpop.permute.xlu1 %2872  ;;  %5870 = vmatpush.msk.msrb.mxu2 %vm1009_vm15, %v2630_v21  ;;  %v2353_v10 = vsel %vm775_vm12, %v2352_v4, %v10276_v30  ;;  %v5874_v4 = vld [vmem:[%s10045_s1 + $0x20] sm:$0xf]  ;;  %v10298_v5 = vld [vmem:[#allocation46_spill] sm:$0xff] }
 0x464   : > { %v2114_v42 = vsel %vm769_vm9, %v2113_v27, %v10274_v62  ;;  %5845 = vmatpush.msk.msrb.mxu0 %vm1009_vm15, %v1319_v9  ;;  %v2906_v60 = vsel %vm767_vm8, %v10278_v50, %v2873_v24  ;;  %5868 = vmatmul.msk.f32.vlgmr.msrb.gmra.mxu1 %vm10090_vm2, %v5864_v8  ;;  %v2354_v53 = vsel %vm10092_vm13, %v2353_v10, %v10283_v3  ;;  %v1102_v27 = vpop.f32.mrf.mxu3 }
 0x465   : > { %v2115_v49 = vsel %vm771_vm10, %v2114_v42, %v10277_v15  ;;  %v2907_v28 = vsel %vm769_vm9, %v2906_v60, %v10280_v61  ;;  %5871 = vmatmul.msk.f32.vlgmr.msrb.gmra.mxu2 %vm10090_vm2, %v5869_v41  ;;  %v2355_v29 = vsel %vm10091_vm14, %v2354_v53, %v10288_v14 }
 0x466   : > { %5855 = vmatpush.msk.msra.mxu0 %vm1009_vm15, %v1837_v22  ;;  %v2116_v45 = vsel %vm773_vm11, %v2115_v49, %v10279_v7  ;;  %v2908_v25 = vsel %vm771_vm10, %v2907_v28, %v10281_v63 }
 0x467   : > { %v2117_v48 = vsel %vm775_vm12, %v2116_v45, %v10282_v23  ;;  %v2909_v44 = vsel %vm773_vm11, %v2908_v25, %v10284_v32 }
 0x468   : > { %v2118_v59 = vsel %vm10092_vm13, %v2117_v48, %v10285_v13  ;;  %v2910_v17 = vsel %vm775_vm12, %v2909_v44, %v7999_v19  ;;  %v2637_v19 = vsel %vm10091_vm14, %v2636_v57, %v10291_v33  ;;  %v1598_v24 = vpop.f32.mrf.mxu2 }
 0x469   : > { %v2119_v52 = vsel %vm10091_vm14, %v2118_v59, %v10287_v34  ;;  %v2911_v47 = vsel %vm10092_vm13, %v2910_v17, %v10289_v54 }
 0x46a   : > { %v2845_v39 = vpop.permute.xlu0 %2844  ;;  %5862 = vmatpush.msk.msra.mxu3 %vm1009_vm15, %v2119_v52  ;;  %v2912_v2 = vsel %vm10091_vm14, %v2911_v47, %v10292_v51 }
 0x46b   : > { %v2899_v12 = vsel %vm767_vm8, %v10290_v55, %v2845_v39  ;;  %5846 = vmatmul.msk.f32.vlgmr.msrb.gmra.mxu0 %vm10090_vm2, %v8005_v35  ;;  %5863 = vmatmul.msk.f32.vlgmr.msra.gmra.mxu3 %vm10090_vm2, %v8012_v6  ;;  %v10294_v35 = vld [vmem:[#allocation40_spill] sm:$0xff] }
 0x46c   : > { %v2900_v40 = vsel %vm769_vm9, %v2899_v12, %v10293_v36  ;;  %5865 = vmatpush.msk.msrb.mxu0 %vm1009_vm15, %v2355_v29  ;;  %5872 = vmatpush.msk.msrb.mxu3 %vm1009_vm15, %v2637_v19  ;;  %v1618_v21 = vpop.f32.mrf.mxu3 }
 0x46d   : > { %v2901_v6 = vsel %vm771_vm10, %v2900_v40, %v10294_v35  ;;  %5877 = vmatpush.msk.msra.mxu1 %vm1009_vm15, %v2912_v2 }
 0x46e   : > { %v2902_v11 = vsel %vm773_vm11, %v2901_v6, %v10295_v16  ;;  %5878 = vmatmul.msk.f32.vlgmr.msra.gmra.mxu1 %vm10090_vm2, %v5874_v4 }
 0x46f   : > { %v2903_v31 = vsel %vm775_vm12, %v2902_v11, %v10296_v43 }
 0x470   : > { %v2904_v38 = vsel %vm10092_vm13, %v2903_v31, %v10297_v58 }
 0x471   : > { %v2905_v1 = vsel %vm10091_vm14, %v2904_v38, %v10298_v5 }
 0x473   : > { %5856 = vmatmul.msk.f32.vlgmr.msra.gmra.mxu0 %vm10090_vm2, %v8041_v0  ;;  %5873 = vmatmul.msk.f32.vlgmr.msrb.gmra.mxu3 %vm10090_vm2, %v5869_v41 }
 0x474   : > { %5875 = vmatpush.msk.msra.mxu0 %vm1009_vm15, %v2905_v1 }
 0x47b   : > { %5866 = vmatmul.msk.f32.vlgmr.msrb.gmra.mxu0 %vm10090_vm2, %v5864_v8 }
 0x483   : > { %5876 = vmatmul.msk.f32.vlgmr.msra.gmra.mxu0 %vm10090_vm2, %v5874_v4 }
 0x4c9   : > { %v1053_v56 = vpop.f32.mrf.mxu1 }
 0x4ca   : > { %v1103_v62 = vadd.f32 %v1102_v27, %v1053_v56 }
 0x4d1   : > { %v1375_v9 = vpop.f32.mrf.mxu1 }
 0x4d2   : > { %v1379_v22 = vadd.f32 %v1375_v9, %v1103_v62 }
 0x4d4   : > { %v1622_v10 = vadd.f32 %v1618_v21, %v1379_v22 }
 0x4d6   : > { %v2148_v8 = vpop.f32.mrf.mxu2 }
 0x4d9   : > { %v1893_v46 = vpop.f32.mrf.mxu1 }
 0x4da   : > { %v1897_v60 = vadd.f32 %v1893_v46, %v1622_v10 }
 0x4e0   : > { %v1033_v37 = vpop.f32.mrf.mxu0 }
 0x4e1   : > { %v1083_v0 = vadd.f32 %v1082_v18, %v1033_v37  ;;  %v2411_v50 = vpop.f32.mrf.mxu1  ;;  %v10299_v37 = vld [vmem:[#allocation6_spill] sm:$0xff] }
 0x4e8   : > { %v1355_v42 = vpop.f32.mrf.mxu0  ;;  %v2666_v3 = vpop.f32.mrf.mxu2 }
 0x4e9   : > { %v1378_v15 = vadd.f32 %v1355_v42, %v1083_v0 }
 0x4eb   : > { %v1621_v26 = vadd.f32 %v1598_v24, %v1378_v15  ;;  %v2961_v48 = vpop.f32.mrf.mxu1 }
 0x4ee   : > { %v2168_v30 = vpop.f32.mrf.mxu3 }
 0x4ef   : > { %v2172_v41 = vadd.f32 %v2168_v30, %v1897_v60 }
 0x4f0   : > { %v1873_v49 = vpop.f32.mrf.mxu0 }
 0x4f1   : > { %v1896_v7 = vadd.f32 %v1873_v49, %v1621_v26  ;;  %v2415_v28 = vadd.f32 %v2411_v50, %v2172_v41 }
 0x4f3   : > { %v2171_v63 = vadd.f32 %v2148_v8, %v1896_v7  ;;  %v10300_v8 = vld [vmem:[#allocation7_spill] sm:$0xff] }
 0x4f6   : > { %v2686_v45 = vpop.f32.mrf.mxu3 }
 0x4f7   : > { %v2690_v25 = vadd.f32 %v2686_v45, %v2415_v28 }
 0x4f8   : > { %v2391_v61 = vpop.f32.mrf.mxu0 }
 0x4f9   : > { %v2414_v23 = vadd.f32 %v2391_v61, %v2171_v63  ;;  %v2965_v53 = vadd.f32 %v2961_v48, %v2690_v25 }
 0x4fb   : > { %v2689_v32 = vadd.f32 %v2666_v3, %v2414_v23  ;;  %v2967_v59 = vsel %vm1009_vm15, %v2965_v53, 0.0 }
 0x500   : > { %v2941_v44 = vpop.f32.mrf.mxu0 }
 0x501   : > { %v2964_v13 = vadd.f32 %v2941_v44, %v2689_v32 }
 0x503   : > { %v2966_v20 = vsel %vm1009_vm15, %v2964_v13, 0.0 }
 0x504   : > { %v2968_v57 = vadd.f32 %v2967_v59, %v2966_v20 }
 0x506   : > { %2969 = vadd.xlane.f32.xlu2 %v2968_v57 }
 0x579   : > { %v2970_v34 = vpop.xlane.xlu2 %2969 }
 0x57a   : > { %v2971_v52 = vmul.f32 0.00390625, %v2970_v34 }
 0x57c   : > { %v2972_v17 = vsub.f32 %v2964_v13, %v2971_v52  ;;  %v2973_v39 = vsub.f32 %v2965_v53, %v2971_v52 }
 0x57e   : > { %v2974_v14 = vmul.f32 %v2972_v17, %v2972_v17  ;;  %v2975_v29 = vmul.f32 %v2973_v39, %v2973_v39 }
 0x580   : > { %v2976_v54 = vsel %vm1009_vm15, %v2974_v14, 0.0  ;;  %v2977_v47 = vsel %vm1009_vm15, %v2975_v29, 0.0 }
 0x581   : > { %v2978_v55 = vadd.f32 %v2977_v47, %v2976_v54 }
 0x583   : > { %2979 = vadd.xlane.f32.xlu0 %v2978_v55 }
 0x5f6   : > { %v2980_v12 = vpop.xlane.xlu0 %2979 }
 0x5f7   : > { %v2981_v33 = vmul.f32 0.00390625, %v2980_v12 }
 0x5f9   : > { %v2982_v19 = vadd.f32 1e-05, %v2981_v33 }
 0x5fb   : > { %5982 = vrsqrt.f32 %v2982_v19  ;;  %vm2989_vm14 = vweird.f32 %v2982_v19 }
 0x601   : > { %v5983_v51 = vpop.eup %5982 }
 0x602   : > { %v2984_v2 = vmul.f32 %v5983_v51, %v2982_v19  ;;  %vm2990_vm2 = vweird.f32 %v5983_v51 }
 0x603   : > { %vm2991_vm13 = vmor %vm2989_vm14, %vm2990_vm2 }
 0x604   : > { %v2985_v4 = vmul.f32 %v5983_v51, %v2984_v2 }
 0x606   : > { %v2986_v36 = vmul.f32 0.5, %v2985_v4 }
 0x608   : > { %v2987_v40 = vsub.f32 1.5, %v2986_v36 }
 0x60a   : > { %v2988_v35 = vmul.f32 %v5983_v51, %v2987_v40 }
 0x60c   : > { %v2992_v6 = vsel %vm2991_vm13, %v5983_v51, %v2988_v35  ;;  %vm3197_vm13 = vcmask 137230  }
 0x60d   : > { %v2993_v16 = vmul.f32 %v2992_v6, %v2972_v17  ;;  %v2994_v11 = vmul.f32 %v2992_v6, %v2973_v39 }
 0x60f   : > { %v2995_v43 = vmax.f32 %v2993_v16, 0.0  ;;  %v2996_v31 = vmax.f32 %v2994_v11, 0.0 }
 0x611   : > { %3020 = vrot.lane.b32.xlu0 %v2996_v31, %s6052_s30  ;;  %3013 = vrot.lane.b32.xlu2 %v2995_v43, %s6056_s7 }
 0x612   : > { %2998 = vrot.lane.b32.xlu1 %v2995_v43, %s6052_s30 }
 0x619   : > { %3032 = vrot.lane.b32.xlu0 %v2996_v31, %s6053_s4  ;;  %3029 = vrot.lane.b32.xlu2 %v2996_v31, %s6055_s6 }
 0x61a   : > { %3001 = vrot.lane.b32.xlu1 %v2995_v43, %s6054_s5 }
 0x621   : > { %3038 = vrot.lane.b32.xlu2 %v2996_v31, %s6057_s8 }
 0x622   : > { %3004 = vrot.lane.b32.xlu1 %v2995_v43, %s6051_s29 }
 0x62a   : > { %3007 = vrot.lane.b32.xlu1 %v2995_v43, %s6055_s6 }
 0x632   : > { %3010 = vrot.lane.b32.xlu1 %v2995_v43, %s6053_s4 }
 0x63a   : > { %3016 = vrot.lane.b32.xlu1 %v2995_v43, %s6057_s8 }
 0x642   : > { %3023 = vrot.lane.b32.xlu1 %v2996_v31, %s6054_s5 }
 0x64a   : > { %3026 = vrot.lane.b32.xlu1 %v2996_v31, %s6051_s29 }
 0x652   : > { %3035 = vrot.lane.b32.xlu1 %v2996_v31, %s6056_s7 }
 0x66b   : > { %v3014_v62 = vpop.permute.xlu2 %3013 }
 0x66c   : > { %v3053_v0 = vrot.slane %v3014_v62, 4 }
 0x673   : > { %v3030_v26 = vpop.permute.xlu2 %3029 }
 0x67b   : > { %v3039_v32 = vpop.permute.xlu2 %3038 }
 0x67c   : > { %v3115_v20 = vrot.slane %v3039_v32, 4 }
 0x683   : > { %v3021_v45 = vpop.permute.xlu0 %3020 }
 0x684   : > { %v2999_v58 = vpop.permute.xlu1 %2998 }
 0x68b   : > { %v3033_v59 = vpop.permute.xlu0 %3032 }
 0x68c   : > { %v3002_v38 = vpop.permute.xlu1 %3001  ;;  %v3116_v17 = vsel %vm209_vm0, %v3115_v20, %v3033_v59 }
 0x68d   : > { %v3041_v9 = vrot.slane %v3002_v38, 4  ;;  %v3120_v29 = vperm.slane %v3116_v17, %v10299_v37 }
 0x68f   : > { %v3042_v42 = vsel %vm209_vm0, %v3041_v9, %v2995_v43  ;;  %v3133_v19 = vrot.slane %v3120_v29, 4 }
 0x690   : > { %v3046_v46 = vperm.slane %v3042_v42, %v10299_v37 }
 0x692   : > { %v3067_v2 = vrot.slane %v3046_v46, 4 }
 0x694   : > { %v3005_v5 = vpop.permute.xlu1 %3004 }
 0x695   : > { %v3047_v56 = vrot.slane %v3005_v5, 4 }
 0x697   : > { %v3048_v27 = vsel %vm209_vm0, %v3047_v56, %v2999_v58 }
 0x698   : > { %v3052_v21 = vperm.slane %v3048_v27, %v10299_v37 }
 0x69a   : > { %v3065_v24 = vrot.slane %v3052_v21, 4  ;;  %v3068_v11 = vsel %vm209_vm0, %v3052_v21, %v3067_v2 }
 0x69b   : > { %v3076_v56 = vperm.slane %v3068_v11, %v10300_v8 }
 0x69c   : > { %v3008_v1 = vpop.permute.xlu1 %3007  ;;  %v3066_v10 = vsel %vm209_vm0, %v3065_v24, %v3046_v46 }
 0x69d   : > { %v3054_v15 = vsel %vm209_vm0, %v3053_v0, %v3008_v1  ;;  %v3072_v60 = vperm.slane %v3066_v10, %v10300_v8  ;;  %v3095_v42 = vrot.slane %v3076_v56, 4 }
 0x69e   : > { %v3058_v41 = vperm.slane %v3054_v15, %v10299_v37 }
 0x69f   : > { %v3091_v25 = vrot.slane %v3072_v60, 4 }
 0x6a0   : > { %v3079_v4 = vrot.slane %v3058_v41, 4 }
 0x6a4   : > { %v3011_v18 = vpop.permute.xlu1 %3010 }
 0x6ac   : > { %v3017_v22 = vpop.permute.xlu1 %3016 }
 0x6ad   : > { %v3059_v30 = vrot.slane %v3017_v22, 4 }
 0x6af   : > { %v3060_v49 = vsel %vm209_vm0, %v3059_v30, %v3011_v18 }
 0x6b0   : > { %v3064_v50 = vperm.slane %v3060_v49, %v10299_v37 }
 0x6b2   : > { %v3077_v7 = vrot.slane %v3064_v50, 4  ;;  %v3080_v58 = vsel %vm209_vm0, %v3064_v50, %v3079_v4 }
 0x6b3   : > { %v3088_v21 = vperm.slane %v3080_v58, %v10300_v8 }
 0x6b4   : > { %v3024_v61 = vpop.permute.xlu1 %3023  ;;  %v3078_v28 = vsel %vm209_vm0, %v3077_v7, %v3058_v41 }
 0x6b5   : > { %v3084_v63 = vperm.slane %v3078_v28, %v10300_v8  ;;  %v3097_v53 = vrot.slane %v3024_v61, 4  ;;  %v3093_v24 = vrot.slane %v3088_v21, 4  ;;  %v3096_v46 = vsel %vm209_vm0, %v3088_v21, %v3095_v42 }
 0x6b7   : > { %v3092_v23 = vsel %vm209_vm0, %v3084_v63, %v3091_v25  ;;  %v3089_v48 = vrot.slane %v3084_v63, 4  ;;  %v3098_v57 = vsel %vm209_vm0, %v3097_v53, %v2996_v31  ;;  %v3094_v22 = vsel %vm209_vm0, %v3093_v24, %v3076_v56 }
 0x6b8   : > { %3165 = vrot.lane.b32.xlu2 %v3092_v23, %s6060_s9  ;;  %v3102_v39 = vperm.slane %v3098_v57, %v10299_v37 }
 0x6b9   : > { %v3090_v3 = vsel %vm209_vm0, %v3089_v48, %v3072_v60 }
 0x6ba   : > { %3161 = vrot.lane.b32.xlu0 %v3090_v3, %s6060_s9  ;;  %v3123_v36 = vrot.slane %v3102_v39, 4 }
 0x6bc   : > { %v3027_v44 = vpop.permute.xlu1 %3026 }
 0x6bd   : > { %v3103_v13 = vrot.slane %v3027_v44, 4 }
 0x6bf   : > { %v3104_v34 = vsel %vm209_vm0, %v3103_v13, %v3021_v45 }
 0x6c0   : > { %v3108_v52 = vperm.slane %v3104_v34, %v10299_v37 }
 0x6c2   : > { %v3121_v14 = vrot.slane %v3108_v52, 4  ;;  %v3124_v43 = vsel %vm209_vm0, %v3108_v52, %v3123_v36 }
 0x6c3   : > { %v3132_v18 = vperm.slane %v3124_v43, %v10300_v8 }
 0x6c4   : > { %v3036_v54 = vpop.permute.xlu1 %3035  ;;  %v3122_v47 = vsel %vm209_vm0, %v3121_v14, %v3102_v39 }
 0x6c5   : > { %v3109_v55 = vrot.slane %v3036_v54, 4  ;;  %v3128_v33 = vperm.slane %v3122_v47, %v10300_v8  ;;  %v3151_v0 = vrot.slane %v3132_v18, 4 }
 0x6c7   : > { %v3110_v12 = vsel %vm209_vm0, %v3109_v55, %v3030_v26  ;;  %v3147_v16 = vrot.slane %v3128_v33, 4 }
 0x6c8   : > { %v3114_v51 = vperm.slane %v3110_v12, %v10299_v37 }
 0x6ca   : > { %v3135_v40 = vrot.slane %v3114_v51, 4  ;;  %v3134_v35 = vsel %vm209_vm0, %v3133_v19, %v3114_v51 }
 0x6cb   : > { %v3140_v6 = vperm.slane %v3134_v35, %v10300_v8 }
 0x6cc   : > { %v3136_v31 = vsel %vm209_vm0, %v3120_v29, %v3135_v40 }
 0x6cd   : > { %v3148_v38 = vsel %vm209_vm0, %v3140_v6, %v3147_v16  ;;  %v3145_v5 = vrot.slane %v3140_v6, 4  ;;  %v3144_v1 = vperm.slane %v3136_v31, %v10300_v8 }
 0x6ce   : > { %3167 = vrot.lane.b32.xlu0 %v3148_v38, %s6060_s9 }
 0x6cf   : > { %v3146_v27 = vsel %vm209_vm0, %v3145_v5, %v3128_v33  ;;  %v3149_v9 = vrot.slane %v3144_v1, 4  ;;  %v3152_v30 = vsel %vm209_vm0, %v3144_v1, %v3151_v0 }
 0x6d0   : > { %3163 = vrot.lane.b32.xlu1 %v3146_v27, %s6060_s9 }
 0x6d1   : > { %v3150_v62 = vsel %vm209_vm0, %v3149_v9, %v3132_v18 }
 0x6d2   : > { %3171 = vrot.lane.b32.xlu2 %v3150_v62, %s6060_s9 }
 0x6d6   : > { %3173 = vrot.lane.b32.xlu0 %v3096_v46, %s6060_s9 }
 0x6d8   : > { %3169 = vrot.lane.b32.xlu1 %v3094_v22, %s6060_s9 }
 0x6e0   : > { %3175 = vrot.lane.b32.xlu1 %v3152_v30, %s6060_s9 }
 0x712   : > { %v3166_v10 = vpop.permute.xlu2 %3165 }
 0x713   : > { %3194 = vst.msk [vmem:[#allocation2 + $0x17] sm:$0x2] %vm417_vm1, %v3166_v10 }
 0x714   : > { %3187 = vst.msk [vmem:[#allocation2 + $0x19] sm:$0xff] %vm392_vm3, %v3166_v10 }
 0x71b   : > { %v3205_v60 = vld [vmem:[#allocation2 + $0x18] sm:$0xff] }
 0x72c   : > { %v3162_v15 = vpop.permute.xlu0 %3161  ;;  %v3172_v49 = vpop.permute.xlu2 %3171 }
 0x72d   : > { %3193 = vst.msk [vmem:[#allocation2 - $0x1] sm:$0x2] %vm417_vm1, %v3162_v15 }
 0x72e   : > { %3185 = vst.msk [vmem:[#allocation2 + $0x1] sm:$0xff] %vm392_vm3, %v3162_v15 }
 0x72f   : > { %3200 = vst.msk [vmem:[#allocation2 + $0x3b] sm:$0x40] %vm3197_vm13, %v3172_v49 }
 0x730   : > { %3190 = vst.msk [vmem:[#allocation2 + $0x39] sm:$0xff] %vm392_vm3, %v3172_v49 }
 0x735   : > { %v3202_v50 = vld [vmem:[#allocation2] sm:$0xff] }
 0x736   : > { %3226 = vrot.lane.b32.xlu2 %v3202_v50, %s6061_s10 }
 0x737   : > { %v3210_v3 = vld [vmem:[#allocation2 + $0x40] sm:$0x3] }
 0x73e   : > { %3232 = vrot.lane.b32.xlu2 %v3205_v60, %s6061_s10 }
 0x740   : > { %v3168_v26 = vpop.permute.xlu0 %3167 }
 0x741   : > { %3199 = vst.msk [vmem:[#allocation2 + $0x23] sm:$0x40] %vm3197_vm13, %v3168_v26 }
 0x742   : > { %3188 = vst.msk [vmem:[#allocation2 + $0x21] sm:$0xff] %vm392_vm3, %v3168_v26  ;;  %v3164_v41 = vpop.permute.xlu1 %3163 }
 0x743   : > { %3198 = vst.msk [vmem:[#allocation2 + $0xb] sm:$0x40] %vm3197_vm13, %v3164_v41 }
 0x744   : > { %3186 = vst.msk [vmem:[#allocation2 + $0x9] sm:$0xff] %vm392_vm3, %v3164_v41 }
 0x748   : > { %v3174_v7 = vpop.permute.xlu0 %3173 }
 0x749   : > { %3196 = vst.msk [vmem:[#allocation2 + $0x47] sm:$0x2] %vm417_vm1, %v3174_v7  ;;  %v3207_v25 = vld [vmem:[#allocation2 + $0x28] sm:$0x3]  ;;  %v3206_v23 = vld [vmem:[#allocation2 + $0x20] sm:$0xff] }
 0x74a   : > { %3191 = vst.msk [vmem:[#allocation2 + $0x49] sm:$0xff] %vm392_vm3, %v3174_v7  ;;  %v3170_v45 = vpop.permute.xlu1 %3169 }
 0x74b   : > { %3195 = vst.msk [vmem:[#allocation2 + $0x2f] sm:$0x2] %vm417_vm1, %v3170_v45  ;;  %v3204_v61 = vld [vmem:[#allocation2 + $0x10] sm:$0x3]  ;;  %v3203_v28 = vld [vmem:[#allocation2 + $0x8] sm:$0xff]  ;;  %vm10359_vm1 = vcmask 785408  }
 0x74c   : > { %3189 = vst.msk [vmem:[#allocation2 + $0x31] sm:$0xff] %vm392_vm3, %v3170_v45  ;;  %3230 = vrot.lane.b32.xlu1 %v3204_v61, %s6061_s10  ;;  %3228 = vrot.lane.b32.xlu0 %v3203_v28, %s6061_s10  ;;  %vm10369_vm14 = vmmov %vm10359_vm1 }
 0x751   : > { %v3211_v32 = vld [vmem:[#allocation2 + $0x48] sm:$0xff] }
 0x752   : > { %v3176_v63 = vpop.permute.xlu1 %3175 }
 0x753   : > { %3201 = vst.msk [vmem:[#allocation2 + $0x53] sm:$0x40] %vm3197_vm13, %v3176_v63  ;;  %v3208_v48 = vld [vmem:[#allocation2 + $0x30] sm:$0xff]  ;;  %v3209_v53 = vld [vmem:[#allocation2 + $0x38] sm:$0xff]  ;;  %vm10374_vm13 = vmmov %vm10359_vm1 }
 0x754   : > { %3192 = vst.msk [vmem:[#allocation2 + $0x51] sm:$0xff] %vm392_vm3, %v3176_v63  ;;  %3236 = vrot.lane.b32.xlu1 %v3207_v25, %s6061_s10  ;;  %3234 = vrot.lane.b32.xlu0 %v3206_v23, %s6061_s10  ;;  %vm10360_vm3 = vcmask 916480  }
 0x755   : > { %3238 = vrot.lane.b32.xlu2 %v3208_v48, %s6061_s10  ;;  %vm10373_vm2 = vmmov %vm10360_vm3 }
 0x75b   : > { %v3213_v44 = vld [vmem:[#allocation2 + $0x58] sm:$0x3]  ;;  %v3212_v13 = vld [vmem:[#allocation2 + $0x50] sm:$0xff] }
 0x75c   : > { %3242 = vrot.lane.b32.xlu1 %v3210_v3, %s6061_s10  ;;  %3240 = vrot.lane.b32.xlu0 %v3209_v53, %s6061_s10 }
 0x75d   : > { %3244 = vrot.lane.b32.xlu2 %v3211_v32, %s6061_s10 }
 0x764   : > { %3248 = vrot.lane.b32.xlu1 %v3213_v44, %s6061_s10  ;;  %3246 = vrot.lane.b32.xlu0 %v3212_v13, %s6061_s10 }
 0x790   : > { %v3227_v59 = vpop.permute.xlu2 %3226 }
 0x791   : > { %3262 = vst.msk [vmem:[#allocation2] sm:$0xff] %vm503_vm5, %v3227_v59 }
 0x798   : > { %v3233_v20 = vpop.permute.xlu2 %3232  ;;  %v3274_v57 = vld [vmem:[#allocation2] sm:$0xff] }
 0x799   : > { %3265 = vst.msk [vmem:[#allocation2 + $0x18] sm:$0xff] %vm503_vm5, %v3233_v20  ;;  %3298 = vrot.lane.b32.xlu2 %v3274_v57, %s6062_s11 }
 0x7a0   : > { %v3277_v34 = vld [vmem:[#allocation2 + $0x18] sm:$0xff] }
 0x7a1   : > { %3304 = vrot.lane.b32.xlu2 %v3277_v34, %s6062_s11 }
 0x7af   : > { %v3239_v52 = vpop.permute.xlu2 %3238 }
 0x7b0   : > { %3268 = vst.msk [vmem:[#allocation2 + $0x30] sm:$0xff] %vm503_vm5, %v3239_v52 }
 0x7b7   : > { %v3245_v17 = vpop.permute.xlu2 %3244  ;;  %v3280_v39 = vld [vmem:[#allocation2 + $0x30] sm:$0xff] }
 0x7b8   : > { %3271 = vst.msk [vmem:[#allocation2 + $0x48] sm:$0xff] %vm503_vm5, %v3245_v17  ;;  %3310 = vrot.lane.b32.xlu2 %v3280_v39, %s6062_s11 }
 0x7be   : > { %v3229_v14 = vpop.permute.xlu0 %3228  ;;  %v3231_v29 = vpop.permute.xlu1 %3230 }
 0x7bf   : > { %3263 = vst.msk [vmem:[#allocation2 + $0x8] sm:$0xff] %vm503_vm5, %v3229_v14  ;;  %v3283_v54 = vld [vmem:[#allocation2 + $0x48] sm:$0xff] }
 0x7c0   : > { %3264 = vst.msk [vmem:[#allocation2 + $0x10] sm:$0x3] %vm506_vm4, %v3231_v29  ;;  %3316 = vrot.lane.b32.xlu2 %v3283_v54, %s6062_s11 }
 0x7c6   : > { %v3235_v47 = vpop.permute.xlu0 %3234  ;;  %v3237_v55 = vpop.permute.xlu1 %3236  ;;  %v3275_v12 = vld [vmem:[#allocation2 + $0x8] sm:$0xff] }
 0x7c7   : > { %3266 = vst.msk [vmem:[#allocation2 + $0x20] sm:$0xff] %vm503_vm5, %v3235_v47  ;;  %3300 = vrot.lane.b32.xlu0 %v3275_v12, %s6062_s11  ;;  %v3276_v33 = vld [vmem:[#allocation2 + $0x10] sm:$0x3] }
 0x7c8   : > { %3267 = vst.msk [vmem:[#allocation2 + $0x28] sm:$0x3] %vm506_vm4, %v3237_v55  ;;  %3302 = vrot.lane.b32.xlu1 %v3276_v33, %s6062_s11 }
 0x7ce   : > { %v3241_v19 = vpop.permute.xlu0 %3240  ;;  %v3243_v51 = vpop.permute.xlu1 %3242  ;;  %v3278_v2 = vld [vmem:[#allocation2 + $0x20] sm:$0xff] }
 0x7cf   : > { %3269 = vst.msk [vmem:[#allocation2 + $0x38] sm:$0xff] %vm503_vm5, %v3241_v19  ;;  %3306 = vrot.lane.b32.xlu0 %v3278_v2, %s6062_s11  ;;  %v3279_v4 = vld [vmem:[#allocation2 + $0x28] sm:$0x3] }
 0x7d0   : > { %3270 = vst.msk [vmem:[#allocation2 + $0x40] sm:$0x3] %vm506_vm4, %v3243_v51  ;;  %3308 = vrot.lane.b32.xlu1 %v3279_v4, %s6062_s11 }
 0x7d6   : > { %v3247_v36 = vpop.permute.xlu0 %3246  ;;  %v3249_v40 = vpop.permute.xlu1 %3248  ;;  %v3281_v35 = vld [vmem:[#allocation2 + $0x38] sm:$0xff] }
 0x7d7   : > { %3272 = vst.msk [vmem:[#allocation2 + $0x50] sm:$0xff] %vm503_vm5, %v3247_v36  ;;  %3312 = vrot.lane.b32.xlu0 %v3281_v35, %s6062_s11  ;;  %v3282_v6 = vld [vmem:[#allocation2 + $0x40] sm:$0x3]  ;;  %vm10363_vm5 = vmmov %vm10360_vm3 }
 0x7d8   : > { %3273 = vst.msk [vmem:[#allocation2 + $0x58] sm:$0x3] %vm506_vm4, %v3249_v40  ;;  %3314 = vrot.lane.b32.xlu1 %v3282_v6, %s6062_s11  ;;  %vm10362_vm4 = vmmov %vm10359_vm1 }
 0x7de   : > { %v3284_v16 = vld [vmem:[#allocation2 + $0x50] sm:$0xff] }
 0x7df   : > { %3318 = vrot.lane.b32.xlu0 %v3284_v16, %s6062_s11  ;;  %v3285_v11 = vld [vmem:[#allocation2 + $0x58] sm:$0x3] }
 0x7e0   : > { %3320 = vrot.lane.b32.xlu1 %v3285_v11, %s6062_s11 }
 0x7f3   : > { %v3299_v43 = vpop.permute.xlu2 %3298 }
 0x7f4   : > { %3334 = vst.msk [vmem:[#allocation2] sm:$0xff] %vm577_vm6, %v3299_v43 }
 0x7fb   : > { %v3305_v31 = vpop.permute.xlu2 %3304  ;;  %v8304_v58 = vld [vmem:[#allocation2] sm:$0xff] }
 0x7fc   : > { %3337 = vst.msk [vmem:[#allocation2 + $0x18] sm:$0xff] %vm577_vm6, %v3305_v31  ;;  %3545 = vrot.lane.b32.xlu1 %v8304_v58, %s6063_s17  ;;  %v3356_v27 = vrot.slane %v8304_v58, 4 }
 0x803   : > { %v8309_v38 = vld [vmem:[#allocation2 + $0x18] sm:$0xff] }
 0x804   : > { %3549 = vrot.lane.b32.xlu0 %v8309_v38, %s6063_s17  ;;  %v3368_v21 = vrot.slane %v8309_v38, 4 }
 0x812   : > { %v3311_v5 = vpop.permute.xlu2 %3310 }
 0x813   : > { %3340 = vst.msk [vmem:[#allocation2 + $0x30] sm:$0xff] %vm577_vm6, %v3311_v5 }
 0x81a   : > { %v3317_v1 = vpop.permute.xlu2 %3316  ;;  %v3350_v56 = vld [vmem:[#allocation2 + $0x30] sm:$0xff] }
 0x81b   : > { %3343 = vst.msk [vmem:[#allocation2 + $0x48] sm:$0xff] %vm577_vm6, %v3317_v1  ;;  %v3354_v18 = vrot.slane %v3350_v56, 4  ;;  %v3357_v9 = vsel %vm209_vm0, %v3350_v56, %v3356_v27 }
 0x81c   : > { %v3365_v42 = vperm.slane %v3357_v9, %v10299_v37 }
 0x81d   : > { %v3355_v62 = vsel %vm209_vm0, %v3354_v18, %v8304_v58 }
 0x81e   : > { %v3361_v0 = vperm.slane %v3355_v62, %v10299_v37  ;;  %v3392_v49 = vrot.slane %v3365_v42, 4 }
 0x820   : > { %v3380_v41 = vrot.slane %v3361_v0, 4 }
 0x822   : > { %v8321_v24 = vld [vmem:[#allocation2 + $0x48] sm:$0xff] }
 0x823   : > { %v3366_v46 = vrot.slane %v8321_v24, 4  ;;  %v3369_v22 = vsel %vm209_vm0, %v8321_v24, %v3368_v21 }
 0x824   : > { %v3377_v30 = vperm.slane %v3369_v22, %v10299_v37 }
 0x825   : > { %v3367_v10 = vsel %vm209_vm0, %v3366_v46, %v8309_v38 }
 0x826   : > { %v3373_v50 = vperm.slane %v3367_v10, %v10299_v37  ;;  %v3390_v60 = vrot.slane %v3377_v30, 4  ;;  %v8334_v7 = vsel %vm209_vm0, %v3377_v30, %v3392_v49 }
 0x828   : > { %v8337_v45 = vsel %vm209_vm0, %v3373_v50, %v3380_v41  ;;  %v8340_v61 = vsel %vm209_vm0, %v3390_v60, %v3365_v42  ;;  %v3378_v28 = vrot.slane %v3373_v50, 4 }
 0x82a   : > { %v8343_v63 = vsel %vm209_vm0, %v3378_v28, %v3361_v0 }
 0x839   : > { %v3301_v15 = vpop.permute.xlu0 %3300 }
 0x83a   : > { %3335 = vst.msk [vmem:[#allocation2 + $0x8] sm:$0xff] %vm577_vm6, %v3301_v15  ;;  %v3303_v26 = vpop.permute.xlu1 %3302 }
 0x83b   : > { %3336 = vst.msk [vmem:[#allocation2 + $0x10] sm:$0x3] %vm580_vm7, %v3303_v26 }
 0x841   : > { %v3307_v25 = vpop.permute.xlu0 %3306  ;;  %v3347_v23 = vld [vmem:[#allocation2 + $0x8] sm:$0xff] }
 0x842   : > { %3338 = vst.msk [vmem:[#allocation2 + $0x20] sm:$0xff] %vm577_vm6, %v3307_v25  ;;  %v3309_v48 = vpop.permute.xlu1 %3308  ;;  %3547 = vrot.lane.b32.xlu2 %v3347_v23, %s6063_s17  ;;  %v3412_v44 = vrot.slane %v3347_v23, 4  ;;  %v8369_v47 = vld [vmem:[#allocation2 + $0x1] sm:$0xff]  ;;  %v8376_v19 = vld [vmem:[#allocation2 + $0x9] sm:$0xff] }
 0x843   : > { %3339 = vst.msk [vmem:[#allocation2 + $0x28] sm:$0x3] %vm580_vm7, %v3309_v48  ;;  %v4136_v33 = vrot.slane %v8369_v47, 4  ;;  %v4192_v16 = vrot.slane %v8376_v19, 4 }
 0x849   : > { %v3313_v3 = vpop.permute.xlu0 %3312  ;;  %v3349_v53 = vld [vmem:[#allocation2 + $0x20] sm:$0xff] }
 0x84a   : > { %3341 = vst.msk [vmem:[#allocation2 + $0x38] sm:$0xff] %vm577_vm6, %v3313_v3  ;;  %v3315_v32 = vpop.permute.xlu1 %3314  ;;  %3553 = vrot.lane.b32.xlu2 %v3350_v56, %s6063_s17  ;;  %3551 = vrot.lane.b32.xlu1 %v3349_v53, %s6063_s17  ;;  %v3424_v17 = vrot.slane %v3349_v53, 4  ;;  %v8392_v6 = vld [vmem:[#allocation2 + $0x19] sm:$0xff]  ;;  %v4372_v42 = vld [vmem:[#allocation2 + $0x21] sm:$0xff] }
 0x84b   : > { %3342 = vst.msk [vmem:[#allocation2 + $0x40] sm:$0x3] %vm580_vm7, %v3315_v32  ;;  %v4148_v1 = vrot.slane %v8392_v6, 4 }
 0x851   : > { %v3319_v13 = vpop.permute.xlu0 %3318  ;;  %v3351_v59 = vld [vmem:[#allocation2 + $0x38] sm:$0xff] }
 0x852   : > { %3344 = vst.msk [vmem:[#allocation2 + $0x50] sm:$0xff] %vm577_vm6, %v3319_v13  ;;  %v3321_v20 = vpop.permute.xlu1 %3320  ;;  %3555 = vrot.lane.b32.xlu0 %v3351_v59, %s6063_s17  ;;  %v3410_v57 = vrot.slane %v3351_v59, 4  ;;  %v3413_v34 = vsel %vm209_vm0, %v3351_v59, %v3412_v44  ;;  %3557 = vrot.lane.b32.xlu1 %v8321_v24, %s6063_s17  ;;  %v8371_v55 = vld [vmem:[#allocation2 + $0x39] sm:$0xff]  ;;  %v8373_v12 = vld [vmem:[#allocation2 + $0x31] sm:$0xff]  ;;  %vm10367_vm6 = vmmov %vm10359_vm1 }
 0x853   : > { %3345 = vst.msk [vmem:[#allocation2 + $0x58] sm:$0x3] %vm580_vm7, %v3321_v20  ;;  %v4134_v51 = vrot.slane %v8373_v12, 4  ;;  %v4137_v2 = vsel %vm209_vm0, %v8373_v12, %v4136_v33  ;;  %v4190_v4 = vrot.slane %v8371_v55, 4  ;;  %v3421_v11 = vperm.slane %v3413_v34, %v10299_v37  ;;  %vm10368_vm7 = vmmov %vm10360_vm3 }
 0x854   : > { %v3411_v52 = vsel %vm209_vm0, %v3410_v57, %v3347_v23  ;;  %v8445_v57 = vld [vmem:[#allocation2 + $0x32] sm:$0xff] }
 0x855   : > { %v4191_v40 = vsel %vm209_vm0, %v4190_v4, %v8376_v19  ;;  %v4135_v35 = vsel %vm209_vm0, %v4134_v51, %v8369_v47  ;;  %v3417_v5 = vperm.slane %v3411_v52, %v10299_v37  ;;  %v3448_v27 = vrot.slane %v3421_v11, 4 }
 0x856   : > { %v4141_v41 = vperm.slane %v4135_v35, %v10299_v37  ;;  %v4927_v33 = vrot.slane %v8445_v57, 4 }
 0x857   : > { %v3436_v0 = vrot.slane %v3417_v5, 4 }
 0x858   : > { %v4160_v13 = vrot.slane %v4141_v41, 4 }
 0x859   : > { %v3353_v39 = vld [vmem:[#allocation2 + $0x50] sm:$0xff] }
 0x85a   : > { %3869 = vrot.lane.b32.xlu0 %v3347_v23, %s6061_s10  ;;  %3559 = vrot.lane.b32.xlu2 %v3353_v39, %s6063_s17  ;;  %v3422_v14 = vrot.slane %v3353_v39, 4  ;;  %v3425_v29 = vsel %vm209_vm0, %v3353_v39, %v3424_v17  ;;  %v8384_v36 = vld [vmem:[#allocation2 + $0x49] sm:$0xff]  ;;  %v4376_v31 = vld [vmem:[#allocation2 + $0x51] sm:$0xff] }
 0x85b   : > { %3871 = vrot.lane.b32.xlu1 %v8309_v38, %s6061_s10  ;;  %v3433_v43 = vperm.slane %v3425_v29, %v10299_v37  ;;  %v4193_v38 = vsel %vm209_vm0, %v8371_v55, %v4192_v16  ;;  %v4149_v18 = vsel %vm209_vm0, %v8384_v36, %v4148_v1  ;;  %v4202_v9 = vrot.slane %v4376_v31, 4  ;;  %v8434_v48 = vld [vmem:[#allocation2 + $0x4a] sm:$0xff]  ;;  %v8470_v16 = vld [vmem:[#allocation2 + $0x2] sm:$0xff] }
 0x85c   : > { %v3423_v54 = vsel %vm209_vm0, %v3422_v14, %v3349_v53  ;;  %v4157_v46 = vperm.slane %v4149_v18, %v10299_v37  ;;  %v4146_v15 = vrot.slane %v8384_v36, 4  ;;  %v4201_v3 = vperm.slane %v4193_v38, %v10299_v37 }
 0x85d   : > { %v3429_v21 = vperm.slane %v3423_v54, %v10299_v37  ;;  %v3446_v62 = vrot.slane %v3433_v43, 4  ;;  %v4203_v30 = vsel %vm209_vm0, %v4202_v9, %v4372_v42  ;;  %v8419_v26 = vsel %vm209_vm0, %v3433_v43, %v3448_v27  ;;  %v8456_v54 = vld [vmem:[#allocation2 + $0x1a] sm:$0xff]  ;;  %v8542_v27 = vld [vmem:[#allocation2 + $0xa] sm:$0xff] }
 0x85e   : > { %v4170_v49 = vrot.slane %v4157_v46, 4  ;;  %v4209_v50 = vperm.slane %v4203_v30, %v10299_v37  ;;  %v4147_v32 = vsel %vm209_vm0, %v4146_v15, %v8392_v6  ;;  %v4228_v17 = vrot.slane %v4201_v3, 4 }
 0x85f   : > { %v8426_v28 = vsel %vm209_vm0, %v3429_v21, %v3436_v0  ;;  %v4153_v44 = vperm.slane %v4147_v32, %v10299_v37  ;;  %v4928_v43 = vsel %vm209_vm0, %v4927_v33, %v8470_v16  ;;  %v8648_v33 = vperm.slane %v8419_v26, %v10300_v8 }
 0x860   : > { %v8483_v38 = vperm.slane %v4928_v43, %v10299_v37 }
 0x861   : > { %v8448_v34 = vsel %vm209_vm0, %v4153_v44, %v4160_v13 }
 0x862   : > { %3875 = vrot.lane.b32.xlu0 %v3350_v56, %s6061_s10  ;;  %3867 = vrot.lane.b32.xlu2 %v8304_v58, %s6061_s10  ;;  %v4145_v58 = vperm.slane %v4137_v2, %v10299_v37  ;;  %v4197_v56 = vperm.slane %v4191_v40, %v10299_v37  ;;  %v4158_v40 = vrot.slane %v4153_v44, 4 }
 0x863   : > { %3877 = vrot.lane.b32.xlu1 %v3351_v59, %s6061_s10  ;;  %v4939_v59 = vrot.slane %v8434_v48, 4 }
 0x864   : > { %v4172_v22 = vrot.slane %v4145_v58, 4  ;;  %v4216_v10 = vrot.slane %v4197_v56, 4  ;;  %v8429_v25 = vsel %vm209_vm0, %v4170_v49, %v4145_v58  ;;  %v8468_v35 = vsel %vm209_vm0, %v4158_v40, %v4141_v41 }
 0x865   : > { %v4940_v51 = vsel %vm209_vm0, %v4939_v59, %v8456_v54  ;;  %v4214_v58 = vrot.slane %v4209_v50, 4  ;;  %v8598_v49 = vperm.slane %v8340_v61, %v10300_v8  ;;  %v4941_v41 = vrot.slane %v8456_v54, 4 }
 0x866   : > { %v8416_v60 = vsel %vm209_vm0, %v4157_v46, %v4172_v22  ;;  %v8432_v23 = vsel %vm209_vm0, %v4209_v50, %v4216_v10  ;;  %v4929_v59 = vrot.slane %v8470_v16, 4 }
 0x867   : > { %v8487_v1 = vsel %vm209_vm0, %v4214_v58, %v4197_v56  ;;  %v8602_v50 = vperm.slane %v8432_v23, %v10300_v8  ;;  %v4942_v61 = vsel %vm209_vm0, %v8434_v48, %v4941_v41  ;;  %v4985_v58 = vrot.slane %v8542_v27, 4 }
 0x86a   : > { %3881 = vrot.lane.b32.xlu0 %v3353_v39, %s6061_s10  ;;  %3873 = vrot.lane.b32.xlu2 %v3349_v53, %s6061_s10  ;;  %v4204_v53 = vrot.slane %v4372_v42, 4  ;;  %v3434_v39 = vrot.slane %v3429_v21, 4 }
 0x86b   : > { %4397 = vrot.lane.b32.xlu1 %v8384_v36, %s6063_s17 }
 0x86c   : > { %v4205_v20 = vsel %vm209_vm0, %v4376_v31, %v4204_v53  ;;  %v8465_v4 = vsel %vm209_vm0, %v3434_v39, %v3417_v5 }
 0x86d   : > { %v4213_v52 = vperm.slane %v4205_v20, %v10299_v37  ;;  %v8633_v20 = vperm.slane %v4942_v61, %v10299_v37 }
 0x86f   : > { %v4226_v14 = vrot.slane %v4213_v52, 4  ;;  %v8454_v29 = vsel %vm209_vm0, %v4213_v52, %v4228_v17  ;;  %v4963_v43 = vrot.slane %v8633_v20, 4 }
 0x871   : > { %v8462_v2 = vsel %vm209_vm0, %v4226_v14, %v4201_v3  ;;  %v4953_v3 = vrot.slane %v8483_v38, 4  ;;  %v4930_v14 = vsel %vm209_vm0, %v8445_v57, %v4929_v59 }
 0x872   : > { %4389 = vrot.lane.b32.xlu0 %v8392_v6, %s6063_s17  ;;  %3879 = vrot.lane.b32.xlu2 %v8321_v24, %s6061_s10  ;;  %v8423_v24 = vsel %vm209_vm0, %v3446_v62, %v3421_v11  ;;  %v8473_v11 = vperm.slane %v4940_v51, %v10299_v37  ;;  %v8558_v62 = vperm.slane %v8337_v45, %v10300_v8 }
 0x873   : > { %4391 = vrot.lane.b32.xlu1 %v4372_v42, %s6063_s17  ;;  %v8578_v45 = vperm.slane %v8423_v24, %v10300_v8  ;;  %v8607_v24 = vperm.slane %v8429_v25, %v10300_v8 }
 0x874   : > { %v4951_v5 = vrot.slane %v8473_v11, 4  ;;  %v4954_v13 = vsel %vm209_vm0, %v8473_v11, %v4953_v3 }
 0x875   : > { %v8651_v51 = vperm.slane %v4954_v13, %v10300_v8 }
 0x876   : > { %v8548_v18 = vpop.permute.xlu0 %3549 }
 0x87a   : > { %4395 = vrot.lane.b32.xlu0 %v8371_v55, %s6063_s17  ;;  %4399 = vrot.lane.b32.xlu2 %v4376_v31, %s6063_s17 }
 0x87b   : > { %4385 = vrot.lane.b32.xlu1 %v8369_v47, %s6063_s17 }
 0x882   : > { %4672 = vrot.lane.b32.xlu0 %v8384_v36, %s6061_s10  ;;  %4393 = vrot.lane.b32.xlu2 %v8373_v12, %s6063_s17  ;;  %v8491_v36 = vsel %vm209_vm0, %v4951_v5, %v8483_v38  ;;  %v8676_v5 = vperm.slane %v4930_v14, %v10299_v37  ;;  %v8711_v14 = vperm.slane %v8448_v34, %v10300_v8 }
 0x883   : > { %4674 = vrot.lane.b32.xlu1 %v4376_v31, %s6061_s10  ;;  %v8504_v31 = vld [vmem:[#allocation2 + $0x52] sm:$0xff] }
 0x884   : > { %v4995_v25 = vrot.slane %v8504_v31, 4 }
 0x88a   : > { %4666 = vrot.lane.b32.xlu0 %v4372_v42, %s6061_s10  ;;  %4387 = vrot.lane.b32.xlu2 %v8376_v19, %s6063_s17  ;;  %v8562_v42 = vperm.slane %v8334_v7, %v10300_v8  ;;  %v8582_v7 = vperm.slane %v8426_v28, %v10300_v8 }
 0x88b   : > { %4668 = vrot.lane.b32.xlu1 %v8373_v12, %s6061_s10 }
 0x892   : > { %4660 = vrot.lane.b32.xlu0 %v8369_v47, %s6061_s10  ;;  %4664 = vrot.lane.b32.xlu2 %v8392_v6, %s6061_s10  ;;  %v8516_v47 = vld [vmem:[#allocation2 + $0x3a] sm:$0xff]  ;;  %v8538_v6 = vpop.permute.xlu1 %3545 }
 0x893   : > { %4662 = vrot.lane.b32.xlu1 %v8376_v19, %s6061_s10  ;;  %v8522_v19 = vld [vmem:[#allocation2 + $0x22] sm:$0xff]  ;;  %v4983_v28 = vrot.slane %v8516_v47, 4 }
 0x894   : > { %v4996_v17 = vsel %vm209_vm0, %v4995_v25, %v8522_v19  ;;  %v4997_v39 = vrot.slane %v8522_v19, 4 }
 0x895   : > { %v8668_v26 = vperm.slane %v4996_v17, %v10299_v37 }
 0x89a   : > { %5467 = vrot.lane.b32.xlu0 %v8504_v31, %s6061_s10  ;;  %4670 = vrot.lane.b32.xlu2 %v8371_v55, %s6061_s10 }
 0x89b   : > { %5457 = vrot.lane.b32.xlu1 %v8456_v54, %s6061_s10 }
 0x89c   : > { %v8512_v12 = vpop.permute.xlu2 %3547 }
 0x8a2   : > { %5461 = vrot.lane.b32.xlu0 %v8445_v57, %s6061_s10  ;;  %5465 = vrot.lane.b32.xlu2 %v8434_v48, %s6061_s10 }
 0x8a3   : > { %5463 = vrot.lane.b32.xlu1 %v8516_v47, %s6061_s10 }
 0x8a4   : > { %v8530_v55 = vpop.permute.xlu2 %3553 }
 0x8aa   : > { %5192 = vrot.lane.b32.xlu0 %v8504_v31, %s6063_s17  ;;  %5459 = vrot.lane.b32.xlu2 %v8522_v19, %s6061_s10 }
 0x8ab   : > { %5453 = vrot.lane.b32.xlu1 %v8470_v16, %s6061_s10 }
 0x8b2   : > { %5182 = vrot.lane.b32.xlu0 %v8456_v54, %s6063_s17  ;;  %5190 = vrot.lane.b32.xlu2 %v8434_v48, %s6063_s17  ;;  %v4984_v48 = vsel %vm209_vm0, %v4983_v28, %v8542_v27  ;;  %v8644_v54 = vperm.slane %v8416_v60, %v10300_v8 }
 0x8b3   : > { %5184 = vrot.lane.b32.xlu1 %v8522_v19, %s6063_s17  ;;  %v8654_v40 = vperm.slane %v4984_v48, %v10299_v37  ;;  %v4998_v19 = vsel %vm209_vm0, %v8504_v31, %v4997_v39  ;;  %v4964_v31 = vsel %vm209_vm0, %v4963_v43, %v8676_v5 }
 0x8b4   : > { %v8540_v56 = vpop.permute.xlu2 %3559 }
 0x8b5   : > { %v3637_v11 = vrot.slane %v8540_v56, 4  ;;  %v5009_v61 = vrot.slane %v8654_v40, 4 }
 0x8b7   : > { %v5010_v59 = vsel %vm209_vm0, %v8668_v26, %v5009_v61 }
 0x8ba   : > { %5188 = vrot.lane.b32.xlu0 %v8516_v47, %s6063_s17  ;;  %5455 = vrot.lane.b32.xlu2 %v8542_v27, %s6061_s10 }
 0x8bb   : > { %5178 = vrot.lane.b32.xlu1 %v8470_v16, %s6063_s17  ;;  %v3569_v16 = vrot.slane %v8530_v55, 4 }
 0x8bc   : > { %v8552_v9 = vpop.permute.xlu2 %3867  ;;  %v8554_v21 = vpop.permute.xlu1 %3551 }
 0x8bd   : > { %v3638_v38 = vsel %vm209_vm0, %v3637_v11, %v8554_v21  ;;  %v8717_v11 = vperm.slane %v5010_v59, %v10300_v8 }
 0x8be   : > { %v8696_v13 = vperm.slane %v3638_v38, %v10299_v37 }
 0x8c0   : > { %10305 = vst [vmem:[#allocation47_spill] sm:$0xff] %v8696_v13 }
 0x8c2   : > { %3471 = vrot.lane.b32.xlu0 %v8558_v62, %s6056_s7  ;;  %5186 = vrot.lane.b32.xlu2 %v8445_v57, %s6063_s17 }
 0x8c3   : > { %3487 = vrot.lane.b32.xlu1 %v8562_v42, %s6054_s5 }
 0x8c4   : > { %v8570_v46 = vpop.permute.xlu2 %3873  ;;  %v8572_v22 = vpop.permute.xlu0 %3555 }
 0x8c5   : > { %v8574_v0 = vpop.permute.xlu1 %3557  ;;  %v3625_v57 = vrot.slane %v8572_v22, 4 }
 0x8c6   : > { %v3581_v23 = vrot.slane %v8574_v0, 4 }
 0x8c7   : > { %v3626_v3 = vsel %vm209_vm0, %v3625_v57, %v8512_v12  ;;  %v3649_v57 = vrot.slane %v8696_v13, 4 }
 0x8c8   : > { %v3582_v52 = vsel %vm209_vm0, %v3581_v23, %v8548_v18  ;;  %v3570_v23 = vsel %vm209_vm0, %v3569_v16, %v8538_v6  ;;  %v8707_v39 = vperm.slane %v3626_v3, %v10299_v37  ;;  %v8714_v16 = vperm.slane %v4964_v31, %v10300_v8 }
 0x8c9   : > { %v8661_v60 = vperm.slane %v3582_v52, %v10299_v37  ;;  %v8704_v17 = vperm.slane %v3570_v23, %v10299_v37 }
 0x8ca   : > { %3507 = vrot.lane.b32.xlu0 %v8578_v45, %s6055_s6  ;;  %5180 = vrot.lane.b32.xlu2 %v8542_v27, %s6063_s17  ;;  %v4986_v27 = vsel %vm209_vm0, %v8516_v47, %v4985_v58  ;;  %v5006_v47 = vperm.slane %v4998_v19, %v10299_v37  ;;  %10306 = vst [vmem:[#allocation27_spill] sm:$0xff] %v8707_v39 }
 0x8cb   : > { %3499 = vrot.lane.b32.xlu1 %v8582_v7, %s6056_s7  ;;  %v3593_v48 = vrot.slane %v8661_v60, 4  ;;  %v4994_v52 = vperm.slane %v4986_v27, %v10299_v37  ;;  %v8737_v27 = vsel %vm209_vm0, %v3649_v57, %v8707_v39 }
 0x8cc   : > { %v8590_v30 = vpop.permute.xlu2 %3879  ;;  %v8592_v10 = vpop.permute.xlu0 %3869  ;;  %v5019_v43 = vrot.slane %v5006_v47, 4  ;;  %10308 = vst [vmem:[#allocation54_spill] sm:$0xff] %v8737_v27 }
 0x8cd   : > { %v8594_v15 = vpop.permute.xlu1 %3871  ;;  %v8726_v58 = vsel %vm209_vm0, %v3593_v48, %v8704_v17  ;;  %v5021_v34 = vrot.slane %v4994_v52, 4  ;;  %v3903_v38 = vrot.slane %v8590_v30, 4 }
 0x8ce   : > { %10307 = vst [vmem:[#allocation50_spill] sm:$0xff] %v8726_v58  ;;  %v5020_v48 = vsel %vm209_vm0, %v5019_v43, %v4994_v52  ;;  %v8748_v58 = vperm.slane %v8462_v2, %v10300_v8 }
 0x8cf   : > { %v5022_v3 = vsel %vm209_vm0, %v5006_v47, %v5021_v34  ;;  %v3904_v59 = vsel %vm209_vm0, %v3903_v38, %v8594_v15  ;;  %v8754_v57 = vperm.slane %v5020_v48, %v10300_v8  ;;  %v3404_v48 = vrot.slane %v8558_v62, 4 }
 0x8d0   : > { %v8751_v13 = vperm.slane %v5022_v3, %v10300_v8  ;;  %v8763_v52 = vperm.slane %v3904_v59, %v10299_v37 }
 0x8d1   : > { %10310 = vst [vmem:[#allocation55_spill] sm:$0xff] %v8754_v57 }
 0x8d2   : > { %3479 = vrot.lane.b32.xlu2 %v8598_v49, %s6055_s6  ;;  %4279 = vrot.lane.b32.xlu0 %v8602_v50, %s6056_s7  ;;  %10311 = vst [vmem:[#allocation38_spill] sm:$0xff] %v8763_v52  ;;  %v3915_v59 = vrot.slane %v8763_v52, 4 }
 0x8d3   : > { %4259 = vrot.lane.b32.xlu1 %v8607_v24, %s6055_s6 }
 0x8d4   : > { %v8621_v53 = vpop.permute.xlu0 %3875  ;;  %v8623_v32 = vpop.permute.xlu2 %4399 }
 0x8d5   : > { %10301 = vst [vmem:[#allocation12_spill] sm:$0xff] %v8623_v32  ;;  %v8625_v44 = vpop.permute.xlu1 %3877  ;;  %v3891_v31 = vrot.slane %v8621_v53, 4 }
 0x8d6   : > { %10302 = vst [vmem:[#allocation9_spill] sm:$0xff] %v8625_v44  ;;  %v3947_v39 = vrot.slane %v8625_v44, 4 }
 0x8d7   : > { %v3892_v47 = vsel %vm209_vm0, %v3891_v31, %v8552_v9  ;;  %v3406_v31 = vrot.slane %v8598_v49, 4 }
 0x8d8   : > { %v8773_v38 = vperm.slane %v3892_v47, %v10299_v37 }
 0x8d9   : > { %v3407_v47 = vsel %vm209_vm0, 0.0, %v3406_v31 }
 0x8da   : > { %3515 = vrot.lane.b32.xlu2 %v8648_v33, %s6054_s5  ;;  %5044 = vrot.lane.b32.xlu0 %v8651_v51, %s6056_s7  ;;  %10313 = vst [vmem:[#allocation29_spill] sm:$0xff] %v8773_v38  ;;  %v8794_v62 = vsel %vm209_vm0, %v3915_v59, %v8773_v38  ;;  %v3948_v59 = vsel %vm209_vm0, %v3947_v39, %v8592_v10 }
 0x8db   : > { %4267 = vrot.lane.b32.xlu1 %v8644_v54, %s6054_s5  ;;  %10315 = vst [vmem:[#allocation25_spill] sm:$0xff] %v8794_v62  ;;  %v8824_v39 = vperm.slane %v8343_v63, %v10300_v8 }
 0x8dc   : > { %v8680_v41 = vpop.permute.xlu0 %3881  ;;  %v8682_v28 = vpop.permute.xlu2 %4393 }
 0x8dd   : > { %10303 = vst [vmem:[#allocation15_spill] sm:$0xff] %v8680_v41  ;;  %v8691_v25 = vpop.permute.xlu1 %4397  ;;  %v3959_v2 = vrot.slane %v8680_v41, 4  ;;  %v8784_v41 = vperm.slane %v8454_v29, %v10300_v8  ;;  %v4965_v29 = vrot.slane %v8676_v5, 4 }
 0x8de   : > { %10304 = vst [vmem:[#allocation45_spill] sm:$0xff] %v8691_v25  ;;  %v4421_v63 = vrot.slane %v8691_v25, 4 }
 0x8df   : > { %v3960_v27 = vsel %vm209_vm0, %v3959_v2, %v8570_v46  ;;  %v3405_v2 = vsel %vm209_vm0, 0.0, %v3404_v48  ;;  %10318 = vst [vmem:[#allocation31_spill] sm:$0xff] %v8824_v39 }
 0x8e0   : > { %v8797_v49 = vperm.slane %v3960_v27, %v10299_v37  ;;  %v4966_v27 = vsel %vm209_vm0, %v8633_v20, %v4965_v29 }
 0x8e1   : > { %v8820_v5 = vperm.slane %v4966_v27, %v10300_v8 }
 0x8e2   : > { %4251 = vrot.lane.b32.xlu2 %v8711_v14, %s6056_s7  ;;  %5052 = vrot.lane.b32.xlu0 %v8714_v16, %s6055_s6  ;;  %10316 = vst [vmem:[#allocation49_spill] sm:$0xff] %v8797_v49  ;;  %v3971_v52 = vrot.slane %v8797_v49, 4  ;;  %v4477_v49 = vrot.slane %v8623_v32, 4 }
 0x8e3   : > { %5072 = vrot.lane.b32.xlu1 %v8717_v11, %s6056_s7 }
 0x8e4   : > { %v8731_v19 = vpop.permute.xlu0 %4389  ;;  %v8733_v61 = vpop.permute.xlu2 %4387 }
 0x8e5   : > { %v8739_v23 = vpop.permute.xlu1 %4391 }
 0x8e6   : > { %10309 = vst [vmem:[#allocation52_spill] sm:$0xff] %v8739_v23 }
 0x8ea   : > { %4287 = vrot.lane.b32.xlu2 %v8748_v58, %s6055_s6  ;;  %5088 = vrot.lane.b32.xlu0 %v8751_v13, %s6054_s5 }
 0x8eb   : > { %5080 = vrot.lane.b32.xlu1 %v8754_v57, %s6055_s6  ;;  %v8790_v57 = vperm.slane %v8465_v4, %v10300_v8 }
 0x8ec   : > { %v8768_v43 = vpop.permute.xlu0 %4395  ;;  %v8770_v34 = vpop.permute.xlu2 %4664 }
 0x8ed   : > { %10312 = vst [vmem:[#allocation13_spill] sm:$0xff] %v8768_v43  ;;  %v8775_v3 = vpop.permute.xlu1 %4385  ;;  %v3458_v48 = vrot.slane %v8790_v57, 4  ;;  %v4465_v44 = vrot.slane %v8768_v43, 4  ;;  %v4240_v43 = vrot.slane %v8602_v50, 4 }
 0x8ee   : > { %10314 = vst [vmem:[#allocation51_spill] sm:$0xff] %v8790_v57 }
 0x8ef   : > { %v3459_v38 = vsel %vm209_vm0, 0.0, %v3458_v48  ;;  %v3402_v48 = vrot.slane %v8824_v39, 4 }
 0x8f1   : > { %v3403_v39 = vsel %vm209_vm0, 0.0, %v3402_v48 }
 0x8f2   : > { %4295 = vrot.lane.b32.xlu2 %v8784_v41, %s6054_s5  ;;  %3483 = vrot.lane.b32.xlu0 %v3407_v47, %s6051_s29  ;;  %v3462_v47 = vrot.slane %v8578_v45, 4  ;;  %v8833_v45 = vperm.slane %v8468_v35, %v10300_v8  ;;  %v4409_v35 = vrot.slane %v8682_v28, 4 }
 0x8f3   : > { %3475 = vrot.lane.b32.xlu1 %v3405_v2, %s6053_s4  ;;  %v8817_v2 = vperm.slane %v3948_v59, %v10299_v37 }
 0x8f4   : > { %v8805_v4 = vpop.permute.xlu0 %4672  ;;  %v4671_v31 = vpop.permute.xlu2 %4670  ;;  %v3463_v20 = vsel %vm209_vm0, 0.0, %v3462_v47  ;;  %10319 = vst [vmem:[#allocation30_spill] sm:$0xff] %v8833_v45  ;;  %v4410_v57 = vsel %vm209_vm0, %v4409_v35, %v8775_v3 }
 0x8f5   : > { %v8809_v62 = vpop.permute.xlu1 %4674  ;;  %v8837_v29 = vsel %vm209_vm0, %v3971_v52, %v8817_v2  ;;  %v4422_v52 = vsel %vm209_vm0, %v4421_v63, %v8731_v19  ;;  %v8871_v48 = vperm.slane %v4410_v57, %v10299_v37  ;;  %v4184_v57 = vrot.slane %v8711_v14, 4 }
 0x8f6   : > { %10317 = vst [vmem:[#allocation10_spill] sm:$0xff] %v8809_v62 }
 0x8f7   : > { %10320 = vst [vmem:[#allocation18_spill] sm:$0xff] %v8837_v29  ;;  %v4752_v29 = vrot.slane %v8809_v62, 4 }
 0x8fa   : > { %5060 = vrot.lane.b32.xlu2 %v8820_v5, %s6054_s5  ;;  %3495 = vrot.lane.b32.xlu0 %v3459_v38, %s6057_s8  ;;  %v3464_v38 = vrot.slane %v8648_v33, 4  ;;  %v8861_v33 = vperm.slane %v4422_v52, %v10299_v37  ;;  %v4740_v52 = vrot.slane %v4671_v31, 4 }
 0x8fb   : > { %3511 = vrot.lane.b32.xlu1 %v3463_v20, %s6051_s29  ;;  %v4182_v20 = vrot.slane %v8833_v45, 4 }
 0x8fc   : > { %v8841_v59 = vpop.permute.xlu0 %4666  ;;  %v8843_v27 = vpop.permute.xlu2 %5465  ;;  %v3465_v63 = vsel %vm209_vm0, 0.0, %v3464_v38 }
 0x8fd   : > { %10321 = vst [vmem:[#allocation37_spill] sm:$0xff] %v8841_v59  ;;  %v8846_v47 = vpop.permute.xlu1 %4668  ;;  %v4753_v25 = vsel %vm209_vm0, %v4752_v29, %v8841_v59  ;;  %v4183_v62 = vsel %vm209_vm0, 0.0, %v4182_v20  ;;  %v4478_v29 = vsel %vm209_vm0, %v4477_v49, %v8739_v23  ;;  %v4433_v20 = vrot.slane %v8861_v33, 4 }
 0x8fe   : > { %v8874_v35 = vperm.slane %v4753_v25, %v10299_v37  ;;  %v3408_v49 = vrot.slane %v8562_v42, 4  ;;  %v8885_v59 = vperm.slane %v4478_v29, %v10299_v37 }
 0x900   : > { %v4764_v32 = vrot.slane %v8874_v35, 4  ;;  %v3409_v50 = vsel %vm209_vm0, 0.0, %v3408_v49  ;;  %v3460_v49 = vrot.slane %v8582_v7, 4 }
 0x902   : > { %3467 = vrot.lane.b32.xlu2 %v3403_v39, %s6057_s8  ;;  %3519 = vrot.lane.b32.xlu0 %v3465_v63, %s6052_s30  ;;  %v4466_v39 = vsel %vm209_vm0, %v4465_v44, %v8733_v61  ;;  %v8895_v44 = vsel %vm209_vm0, %v4433_v20, %v8871_v48  ;;  %v4241_v20 = vsel %vm209_vm0, 0.0, %v4240_v43  ;;  %v4186_v43 = vrot.slane %v8607_v24, 4 }
 0x903   : > { %4247 = vrot.lane.b32.xlu1 %v4183_v62, %s6057_s8  ;;  %10322 = vst [vmem:[#allocation39_spill] sm:$0xff] %v8895_v44  ;;  %v8898_v42 = vperm.slane %v4466_v39, %v10299_v37  ;;  %v4696_v24 = vrot.slane %v8805_v4, 4 }
 0x904   : > { %v8877_v45 = vpop.permute.xlu0 %4660  ;;  %v5460_v38 = vpop.permute.xlu2 %5459 }
 0x905   : > { %v4663_v63 = vpop.permute.xlu1 %4662 }
 0x906   : > { %v4741_v25 = vsel %vm209_vm0, %v4740_v52, %v4663_v63  ;;  %v4742_v62 = vrot.slane %v4663_v63, 4  ;;  %v4185_v52 = vsel %vm209_vm0, 0.0, %v4184_v57  ;;  %v5007_v63 = vrot.slane %v8668_v26, 4 }
 0x907   : > { %v8891_v23 = vperm.slane %v4741_v25, %v10299_v37  ;;  %v4489_v25 = vrot.slane %v8885_v59, 4 }
 0x908   : > { %v8901_v14 = vsel %vm209_vm0, %v4671_v31, %v4742_v62  ;;  %v5547_v31 = vrot.slane %v5460_v38, 4 }
 0x909   : > { %10323 = vst [vmem:[#allocation43_spill] sm:$0xff] %v8901_v14  ;;  %v8905_v29 = vsel %vm209_vm0, %v4764_v32, %v8891_v23  ;;  %v5489_v32 = vrot.slane %v8843_v27, 4  ;;  %v8921_v26 = vsel %vm209_vm0, %v4489_v25, %v8898_v42  ;;  %v4242_v14 = vrot.slane %v8748_v58, 4 }
 0x90a   : > { %10324 = vst [vmem:[#allocation28_spill] sm:$0xff] %v8905_v29  ;;  %3491 = vrot.lane.b32.xlu2 %v3409_v50, %s6052_s30  ;;  %4255 = vrot.lane.b32.xlu0 %v4185_v52, %s6053_s4 }
 0x90b   : > { %4283 = vrot.lane.b32.xlu1 %v4241_v20, %s6053_s4  ;;  %10325 = vst [vmem:[#allocation24_spill] sm:$0xff] %v8921_v26  ;;  %v5008_v20 = vsel %vm209_vm0, %v5007_v63, %v8654_v40  ;;  %v4187_v40 = vsel %vm209_vm0, 0.0, %v4186_v43  ;;  %v8944_v63 = vperm.slane %v8487_v1, %v10300_v8  ;;  %v4243_v58 = vsel %vm209_vm0, 0.0, %v4242_v14 }
 0x90c   : > { %v5468_v39 = vpop.permute.xlu0 %5467  ;;  %v8916_v62 = vpop.permute.xlu2 %5190  ;;  %v4684_v1 = vrot.slane %v8846_v47, 4  ;;  %v4977_v14 = vrot.slane %v8651_v51, 4  ;;  %v8974_v51 = vperm.slane %v8491_v36, %v10300_v8 }
 0x90d   : > { %v5545_v57 = vrot.slane %v5468_v39, 4  ;;  %v5548_v50 = vsel %vm209_vm0, %v5468_v39, %v5547_v31  ;;  %v5458_v52 = vpop.permute.xlu1 %5457  ;;  %v8937_v31 = vperm.slane %v5008_v20, %v10300_v8  ;;  %v3461_v39 = vsel %vm209_vm0, 0.0, %v3460_v49  ;;  %10327 = vst [vmem:[#allocation42_spill] sm:$0xff] %v8944_v63 }
 0x90e   : > { %v5490_v29 = vsel %vm209_vm0, %v5489_v32, %v5458_v52  ;;  %v5491_v44 = vrot.slane %v5458_v52, 4  ;;  %v4697_v49 = vsel %vm209_vm0, %v4696_v24, %v8770_v34  ;;  %v4238_v43 = vrot.slane %v8944_v63, 4 }
 0x90f   : > { %v8930_v7 = vsel %vm209_vm0, %v5545_v57, %v5460_v38  ;;  %10326 = vst [vmem:[#allocation17_spill] sm:$0xff] %v8937_v31  ;;  %v5031_v32 = vrot.slane %v8937_v31, 4 }
 0x910   : > { %v8934_v25 = vsel %vm209_vm0, %v8843_v27, %v5491_v44  ;;  %v8951_v27 = vperm.slane %v5548_v50, %v10299_v37  ;;  %v4685_v50 = vsel %vm209_vm0, %v4684_v1, %v8877_v45  ;;  %v4239_v63 = vsel %vm209_vm0, 0.0, %v4238_v43 }
 0x911   : > { %v5032_v31 = vsel %vm209_vm0, 0.0, %v5031_v32  ;;  %v8977_v1 = vperm.slane %v4685_v50, %v10299_v37  ;;  %v8987_v32 = vperm.slane %v5490_v29, %v10299_v37  ;;  %v4244_v50 = vrot.slane %v8784_v41, 4 }
 0x912   : > { %3503 = vrot.lane.b32.xlu2 %v3461_v39, %s6053_s4  ;;  %4263 = vrot.lane.b32.xlu0 %v4187_v40, %s6051_s29  ;;  %v8963_v40 = vperm.slane %v4697_v49, %v10299_v37 }
 0x913   : > { %4291 = vrot.lane.b32.xlu1 %v4243_v58, %s6051_s29  ;;  %v5569_v58 = vrot.slane %v8951_v27, 4 }
 0x914   : > { %v5462_v38 = vpop.permute.xlu0 %5461  ;;  %v5456_v44 = vpop.permute.xlu2 %5455  ;;  %v4708_v36 = vrot.slane %v8963_v40, 4 }
 0x915   : > { %v5535_v57 = vrot.slane %v5456_v44, 4  ;;  %v5464_v52 = vpop.permute.xlu1 %5463 }
 0x916   : > { %v5533_v20 = vrot.slane %v5464_v52, 4  ;;  %v8999_v29 = vsel %vm209_vm0, %v4708_v36, %v8977_v1  ;;  %v4245_v36 = vsel %vm209_vm0, 0.0, %v4244_v50  ;;  %v4981_v50 = vrot.slane %v8820_v5, 4 }
 0x917   : > { %v5536_v39 = vsel %vm209_vm0, %v5464_v52, %v5535_v57  ;;  %v5477_v57 = vrot.slane %v5462_v38, 4  ;;  %10329 = vst [vmem:[#allocation19_spill] sm:$0xff] %v8999_v29 }
 0x918   : > { %v5534_v24 = vsel %vm209_vm0, %v5533_v20, %v5456_v44  ;;  %v8968_v26 = vperm.slane %v5536_v39, %v10299_v37  ;;  %v4978_v44 = vsel %vm209_vm0, 0.0, %v4977_v14 }
 0x91a   : > { %v8981_v49 = vsel %vm209_vm0, %v5569_v58, %v8968_v26  ;;  %5068 = vrot.lane.b32.xlu0 %v5032_v31, %s6057_s8  ;;  %4275 = vrot.lane.b32.xlu2 %v4239_v63, %s6057_s8  ;;  %v4975_v31 = vrot.slane %v8974_v51, 4  ;;  %v4979_v63 = vrot.slane %v8714_v16, 4  ;;  %v3583_v58 = vrot.slane %v8548_v18, 4 }
 0x91b   : > { %10328 = vst [vmem:[#allocation26_spill] sm:$0xff] %v8981_v49  ;;  %5048 = vrot.lane.b32.xlu1 %v4978_v44, %s6053_s4  ;;  %v5501_v44 = vrot.slane %v8987_v32, 4  ;;  %v3627_v18 = vrot.slane %v8512_v12, 4 }
 0x91c   : > { %v5193_v52 = vpop.permute.xlu0 %5192  ;;  %v8991_v43 = vpop.permute.xlu2 %5186 }
 0x91d   : > { %v5454_v20 = vpop.permute.xlu1 %5453 }
 0x91e   : > { %v5478_v14 = vsel %vm209_vm0, %v5477_v57, %v5454_v20  ;;  %v5479_v39 = vrot.slane %v5454_v20, 4  ;;  %v3584_v57 = vsel %vm209_vm0, %v8574_v0, %v3583_v58  ;;  %v4976_v20 = vsel %vm209_vm0, 0.0, %v4975_v31 }
 0x91f   : > { %v9004_v49 = vperm.slane %v5478_v14, %v10299_v37  ;;  %v4980_v14 = vsel %vm209_vm0, 0.0, %v4979_v63  ;;  %v3639_v0 = vrot.slane %v8554_v21, 4  ;;  %v3628_v31 = vsel %vm209_vm0, %v8572_v22, %v3627_v18 }
 0x920   : > { %v9007_v41 = vsel %vm209_vm0, %v5462_v38, %v5479_v39  ;;  %v3571_v38 = vrot.slane %v8538_v6, 4  ;;  %v5214_v39 = vrot.slane %v8916_v62, 4  ;;  %v9029_v12 = vperm.slane %v3584_v57, %v10299_v37 }
 0x921   : > { %v9013_v16 = vsel %vm209_vm0, %v5501_v44, %v9004_v49  ;;  %v5270_v58 = vrot.slane %v5193_v52, 4  ;;  %v3640_v18 = vsel %vm209_vm0, %v8540_v56, %v3639_v0  ;;  %v5540_v56 = vperm.slane %v5534_v24, %v10299_v37 }
 0x922   : > { %10330 = vst [vmem:[#allocation23_spill] sm:$0xff] %v9013_v16  ;;  %4299 = vrot.lane.b32.xlu0 %v4245_v36, %s6052_s30  ;;  %5040 = vrot.lane.b32.xlu2 %v4976_v20, %s6057_s8  ;;  %v5037_v36 = vrot.slane %v8751_v13, 4  ;;  %v4188_v16 = vrot.slane %v8644_v54, 4  ;;  %v3572_v5 = vsel %vm209_vm0, %v8530_v55, %v3571_v38  ;;  %v9043_v13 = vperm.slane %v3628_v31, %v10299_v37 }
 0x923   : > { %5056 = vrot.lane.b32.xlu1 %v4980_v14, %s6051_s29  ;;  %v5033_v14 = vrot.slane %v8717_v11, 4  ;;  %v3605_v54 = vrot.slane %v9029_v12, 4  ;;  %v4982_v55 = vsel %vm209_vm0, 0.0, %v4981_v50  ;;  %v3905_v24 = vrot.slane %v8594_v15, 4 }
 0x924   : > { %v5183_v63 = vpop.permute.xlu0 %5182  ;;  %v5181_v44 = vpop.permute.xlu2 %5180  ;;  %v5038_v38 = vsel %vm209_vm0, 0.0, %v5037_v36  ;;  %v4189_v0 = vsel %vm209_vm0, 0.0, %v4188_v16  ;;  %v3663_v50 = vrot.slane %v9043_v13, 4 }
 0x925   : > { %v5215_v6 = vsel %vm209_vm0, %v5214_v39, %v5183_v63  ;;  %v5216_v21 = vrot.slane %v5183_v63, 4  ;;  %v5185_v20 = vpop.permute.xlu1 %5184  ;;  %v5034_v31 = vsel %vm209_vm0, 0.0, %v5033_v14  ;;  %v3893_v63 = vrot.slane %v8552_v9, 4 }
 0x926   : > { %v9038_v22 = vsel %vm209_vm0, %v5270_v58, %v5185_v20  ;;  %v5272_v57 = vrot.slane %v5185_v20, 4  ;;  %v9054_v58 = vperm.slane %v3572_v5, %v10299_v37  ;;  %v9070_v16 = vperm.slane %v5215_v6, %v10299_v37 }
 0x927   : > { %v9047_v39 = vsel %vm209_vm0, %v8916_v62, %v5216_v21  ;;  %v3595_v62 = vrot.slane %v8704_v17, 4  ;;  %v3648_v21 = vperm.slane %v3640_v18, %v10299_v37  ;;  %v5260_v36 = vrot.slane %v5181_v44, 4 }
 0x928   : > { %v5273_v11 = vsel %vm209_vm0, %v5193_v52, %v5272_v57  ;;  %v5552_v9 = vperm.slane %v8930_v7, %v10299_v37  ;;  %v5202_v17 = vrot.slane %v8991_v43, 4  ;;  %v3606_v5 = vsel %vm209_vm0, %v3605_v54, %v9054_v58 }
 0x929   : > { %v9063_v52 = vperm.slane %v5273_v11, %v10299_v37  ;;  %v3596_v15 = vsel %vm209_vm0, %v8661_v60, %v3595_v62  ;;  %v5559_v57 = vrot.slane %v5540_v56, 4  ;;  %v5571_v6 = vrot.slane %v8968_v26, 4 }
 0x92a   : > { %5064 = vrot.lane.b32.xlu0 %v4982_v55, %s6052_s30  ;;  %4271 = vrot.lane.b32.xlu2 %v4189_v0, %s6052_s30  ;;  %v3894_v54 = vsel %vm209_vm0, %v8621_v53, %v3893_v63  ;;  %v5226_v60 = vrot.slane %v9070_v16, 4  ;;  %v5500_v53 = vperm.slane %v8934_v25, %v10299_v37 }
 0x92b   : > { %5092 = vrot.lane.b32.xlu1 %v5038_v38, %s6052_s30  ;;  %v5294_v7 = vrot.slane %v9063_v52, 4  ;;  %v9124_v25 = vsel %vm209_vm0, %v5552_v9, %v5559_v57  ;;  %v10333_v57 = vld [vmem:[#allocation55_spill] sm:$0xff] }
 0x92c   : > { %v5189_v20 = vpop.permute.xlu0 %5188  ;;  %v9076_v14 = vpop.permute.xlu2 %3479 }
 0x92d   : > { %v5258_v18 = vrot.slane %v5189_v20, 4  ;;  %v5261_v11 = vsel %vm209_vm0, %v5189_v20, %v5260_v36  ;;  %v5179_v55 = vpop.permute.xlu1 %5178  ;;  %v5557_v36 = vrot.slane %v5552_v9, 4 }
 0x92e   : > { %v9086_v38 = vperm.slane %v5261_v11, %v10299_v37  ;;  %v5203_v0 = vsel %vm209_vm0, %v5202_v17, %v5179_v55  ;;  %v5204_v29 = vrot.slane %v5179_v55, 4  ;;  %v9103_v17 = vperm.slane %v3606_v5, %v10300_v8 }
 0x92f   : > { %v5259_v62 = vsel %vm209_vm0, %v5258_v18, %v5181_v44  ;;  %v9094_v26 = vperm.slane %v5203_v0, %v10299_v37  ;;  %v5488_v44 = vperm.slane %v9007_v41, %v10299_v37  ;;  %v9114_v18 = vperm.slane %v3596_v15, %v10300_v8 }
 0x930   : > { %v9098_v20 = vsel %vm209_vm0, %v5294_v7, %v9086_v38  ;;  %v5205_v11 = vsel %vm209_vm0, %v8991_v43, %v5204_v29  ;;  %v9121_v43 = vsel %vm209_vm0, %v8951_v27, %v5571_v6  ;;  %v9127_v29 = vsel %vm209_vm0, %v5557_v36, %v5540_v56 }
 0x931   : > { %v9111_v63 = vsel %vm209_vm0, %v5226_v60, %v9094_v26  ;;  %10332 = vst [vmem:[#allocation16_spill] sm:$0xff] %v9127_v29  ;;  %v3661_v41 = vrot.slane %v3648_v21, 4  ;;  %v5503_v5 = vrot.slane %v9004_v49, 4  ;;  %v3906_v27 = vsel %vm209_vm0, %v8590_v30, %v3905_v24 }
 0x932   : > { %10331 = vst [vmem:[#allocation44_spill] sm:$0xff] %v9111_v63  ;;  %5076 = vrot.lane.b32.xlu2 %v5034_v31, %s6053_s4  ;;  %3694 = vrot.lane.b32.xlu0 %v9103_v17, %s6055_s6  ;;  %v3902_v6 = vperm.slane %v3894_v54, %v10299_v37  ;;  %v5035_v56 = vrot.slane %v10333_v57, 4  ;;  %v3664_v55 = vsel %vm209_vm0, %v3648_v21, %v3663_v50  ;;  %v5513_v7 = vrot.slane %v5500_v53, 4 }
 0x933   : > { %3686 = vrot.lane.b32.xlu1 %v9114_v18, %s6056_s7  ;;  %v5515_v0 = vrot.slane %v5488_v44, 4  ;;  %v3662_v49 = vsel %vm209_vm0, %v3661_v41, %v9043_v13  ;;  %v3914_v60 = vperm.slane %v3906_v27, %v10299_v37  ;;  %v9147_v36 = vperm.slane %v3664_v55, %v10300_v8 }
 0x934   : > { %v9132_v31 = vpop.permute.xlu0 %3471  ;;  %v9134_v15 = vpop.permute.xlu2 %3515  ;;  %v9151_v30 = vsel %vm209_vm0, %v8987_v32, %v5503_v5  ;;  %v9154_v24 = vsel %vm209_vm0, %v5513_v7, %v5488_v44  ;;  %v3929_v54 = vrot.slane %v3902_v6, 4  ;;  %v5036_v21 = vsel %vm209_vm0, 0.0, %v5035_v56 }
 0x935   : > { %v9139_v9 = vpop.permute.xlu1 %3487  ;;  %v9158_v50 = vperm.slane %v3662_v49, %v10300_v8  ;;  %v9164_v13 = vsel %vm209_vm0, %v5500_v53, %v5515_v0  ;;  %v3607_v32 = vrot.slane %v9054_v58, 4  ;;  %v3927_v44 = vrot.slane %v3914_v60, 4  ;;  %v10334_v58 = vld [vmem:[#allocation27_spill] sm:$0xff] }
 0x936   : > { %v4411_v27 = vrot.slane %v8775_v3, 4  ;;  %v3930_v53 = vsel %vm209_vm0, %v3914_v60, %v3929_v54  ;;  %v3651_v7 = vrot.slane %v10334_v58, 4  ;;  %v3949_v0 = vrot.slane %v8592_v10, 4 }
 0x937   : > { %v3608_v56 = vsel %vm209_vm0, %v9029_v12, %v3607_v32  ;;  %v3928_v55 = vsel %vm209_vm0, %v3927_v44, %v3902_v6  ;;  %v4435_v63 = vrot.slane %v8871_v48, 4  ;;  %v5277_v12 = vperm.slane %v9038_v22, %v10299_v37  ;;  %v10337_v48 = vld [vmem:[#allocation9_spill] sm:$0xff]  ;;  %v10338_v44 = vld [vmem:[#allocation47_spill] sm:$0xff] }
 0x938   : > { %v9183_v49 = vperm.slane %v3608_v56, %v10300_v8  ;;  %v4412_v3 = vsel %vm209_vm0, %v8682_v28, %v4411_v27  ;;  %v9194_v6 = vperm.slane %v3928_v55, %v10300_v8  ;;  %v3973_v60 = vrot.slane %v8817_v2, 4  ;;  %v10339_v56 = vld [vmem:[#allocation49_spill] sm:$0xff] }
 0x939   : > { %v5225_v10 = vperm.slane %v9047_v39, %v10299_v37  ;;  %v5265_v54 = vperm.slane %v5259_v62, %v10299_v37  ;;  %v5213_v32 = vperm.slane %v5205_v11, %v10299_v37  ;;  %v3961_v28 = vrot.slane %v8570_v46, 4 }
 0x93a   : > { %5084 = vrot.lane.b32.xlu2 %v5036_v21, %s6051_s29  ;;  %3730 = vrot.lane.b32.xlu0 %v9147_v36, %s6054_s5  ;;  %v9186_v21 = vperm.slane %v3930_v53, %v10300_v8  ;;  %10336 = vst [vmem:[#allocation36_spill] sm:$0xff] %v9194_v6  ;;  %v3950_v22 = vsel %vm209_vm0, %v10337_v48, %v3949_v0  ;;  %v5296_v2 = vrot.slane %v9086_v38, 4  ;;  %v5228_v39 = vrot.slane %v9094_v26, 4  ;;  %v10340_v53 = vld [vmem:[#allocation15_spill] sm:$0xff] }
 0x93b   : > { %3722 = vrot.lane.b32.xlu1 %v9158_v50, %s6055_s6  ;;  %v3652_v27 = vsel %vm209_vm0, %v10338_v44, %v3651_v7  ;;  %v3974_v46 = vsel %vm209_vm0, %v10339_v56, %v3973_v60  ;;  %v3962_v55 = vsel %vm209_vm0, %v10340_v53, %v3961_v28  ;;  %v4423_v58 = vrot.slane %v8731_v19, 4  ;;  %v10341_v60 = vld [vmem:[#allocation52_spill] sm:$0xff]  ;;  %v10344_v53 = vld [vmem:[#allocation29_spill] sm:$0xff] }
 0x93c   : > { %v9169_v41 = vpop.permute.xlu0 %3507  ;;  %v9171_v5 = vpop.permute.xlu2 %4251  ;;  %10335 = vst [vmem:[#allocation34_spill] sm:$0xff] %v9186_v21  ;;  %v9224_v0 = vperm.slane %v4412_v3, %v10299_v37  ;;  %v4436_v26 = vsel %vm209_vm0, %v8861_v33, %v4435_v63  ;;  %v5238_v48 = vrot.slane %v5225_v10, 4  ;;  %v5282_v29 = vrot.slane %v5277_v12, 4 }
 0x93d   : > { %v9174_v57 = vpop.permute.xlu1 %3499  ;;  %v5240_v7 = vrot.slane %v5213_v32, 4  ;;  %v3958_v44 = vperm.slane %v3950_v22, %v10299_v37  ;;  %v4479_v56 = vrot.slane %v10341_v60, 4  ;;  %v9233_v28 = vperm.slane %v3652_v27, %v10300_v8 }
 0x93e   : > { %v9236_v19 = vperm.slane %v3974_v46, %v10300_v8  ;;  %v9240_v3 = vsel %vm209_vm0, %v9070_v16, %v5228_v39  ;;  %v9243_v33 = vsel %vm209_vm0, %v5238_v48, %v5213_v32  ;;  %v9246_v63 = vsel %vm209_vm0, %v5282_v29, %v5265_v54  ;;  %v10345_v46 = vld [vmem:[#allocation45_spill] sm:$0xff] }
 0x93f   : > { %10342 = vst [vmem:[#allocation11_spill] sm:$0xff] %v9246_v63  ;;  %v9250_v22 = vsel %vm209_vm0, %v9063_v52, %v5296_v2  ;;  %v3917_v27 = vrot.slane %v10344_v53, 4  ;;  %v3970_v60 = vperm.slane %v3962_v55, %v10299_v37  ;;  %v9257_v16 = vperm.slane %v4436_v26, %v10300_v8  ;;  %v10346_v55 = vld [vmem:[#allocation12_spill] sm:$0xff]  ;;  %v10348_v53 = vld [vmem:[#allocation13_spill] sm:$0xff] }
 0x940   : > { %10343 = vst [vmem:[#allocation22_spill] sm:$0xff] %v9250_v22  ;;  %v4447_v32 = vrot.slane %v9224_v0, 4  ;;  %v9265_v52 = vsel %vm209_vm0, %v5225_v10, %v5240_v7  ;;  %v4467_v39 = vrot.slane %v8733_v61, 4  ;;  %v10347_v7 = vld [vmem:[#allocation38_spill] sm:$0xff] }
 0x941   : > { %v3983_v22 = vrot.slane %v3970_v60, 4 }
 0x942   : > { %3702 = vrot.lane.b32.xlu2 %v9183_v49, %s6054_s5  ;;  %4024 = vrot.lane.b32.xlu0 %v9186_v21, %s6054_s5  ;;  %v5284_v21 = vrot.slane %v5265_v54, 4  ;;  %v3985_v54 = vrot.slane %v3958_v44, 4 }
 0x943   : > { %4016 = vrot.lane.b32.xlu1 %v9194_v6, %s6055_s6  ;;  %v4424_v6 = vsel %vm209_vm0, %v10345_v46, %v4423_v58  ;;  %v4480_v58 = vsel %vm209_vm0, %v10346_v55, %v4479_v56  ;;  %v4468_v46 = vsel %vm209_vm0, %v10348_v53, %v4467_v39 }
 0x944   : > { %v9212_v62 = vpop.permute.xlu2 %4287  ;;  %v9214_v11 = vpop.permute.xlu0 %4279  ;;  %v9268_v29 = vsel %vm209_vm0, %v5277_v12, %v5284_v21  ;;  %v4432_v2 = vperm.slane %v4424_v6, %v10299_v37  ;;  %v3918_v21 = vsel %vm209_vm0, %v10347_v7, %v3917_v27  ;;  %v3986_v12 = vsel %vm209_vm0, %v3970_v60, %v3985_v54 }
 0x945   : > { %v9226_v38 = vpop.permute.xlu1 %4259  ;;  %v9289_v61 = vperm.slane %v4480_v58, %v10299_v37  ;;  %v9292_v56 = vperm.slane %v3918_v21, %v10300_v8  ;;  %v9295_v55 = vperm.slane %v3986_v12, %v10300_v8  ;;  %v9298_v63 = vperm.slane %v4468_v46, %v10299_v37  ;;  %v10351_v12 = vld [vmem:[#allocation37_spill] sm:$0xff] }
 0x946   : > { %v4448_v6 = vsel %vm209_vm0, %v4432_v2, %v4447_v32  ;;  %v4766_v54 = vrot.slane %v8891_v23, 4  ;;  %v3984_v7 = vsel %vm209_vm0, %v3983_v22, %v3958_v44  ;;  %v4754_v53 = vrot.slane %v10351_v12, 4 }
 0x947   : > { %10349 = vst [vmem:[#allocation21_spill] sm:$0xff] %v9295_v55  ;;  %v9301_v27 = vperm.slane %v4448_v6, %v10300_v8  ;;  %v4501_v32 = vrot.slane %v9289_v61, 4  ;;  %v9324_v46 = vperm.slane %v3984_v7, %v10300_v8 }
 0x948   : > { %v4767_v21 = vsel %vm209_vm0, %v8874_v35, %v4766_v54  ;;  %v10354_v35 = vld [vmem:[#allocation10_spill] sm:$0xff] }
 0x949   : > { %10350 = vst [vmem:[#allocation53_spill] sm:$0xff] %v9301_v27  ;;  %v4502_v23 = vsel %vm209_vm0, %v4501_v32, %v9298_v63  ;;  %v9332_v44 = vperm.slane %v4767_v21, %v10300_v8  ;;  %v4755_v22 = vsel %vm209_vm0, %v10354_v35, %v4754_v53  ;;  %v10356_v53 = vld [vmem:[#allocation43_spill] sm:$0xff] }
 0x94a   : > { %3714 = vrot.lane.b32.xlu2 %v9233_v28, %s6056_s7  ;;  %4036 = vrot.lane.b32.xlu0 %v9236_v19, %s6056_s7  ;;  %v9327_v6 = vperm.slane %v4502_v23, %v10300_v8  ;;  %v4763_v23 = vperm.slane %v4755_v22, %v10299_v37  ;;  %v4751_v35 = vperm.slane %v10356_v53, %v10299_v37 }
 0x94b   : > { %4526 = vrot.lane.b32.xlu1 %v9257_v16, %s6056_s7  ;;  %10353 = vst [vmem:[#allocation33_spill] sm:$0xff] %v9332_v44 }
 0x94c   : > { %v9276_v26 = vpop.permute.xlu2 %4295  ;;  %v9278_v48 = vpop.permute.xlu0 %5044  ;;  %10352 = vst [vmem:[#allocation32_spill] sm:$0xff] %v9327_v6 }
 0x94d   : > { %v9280_v10 = vpop.permute.xlu1 %4267 }
 0x952   : > { %4008 = vrot.lane.b32.xlu2 %v9292_v56, %s6056_s7  ;;  %4052 = vrot.lane.b32.xlu0 %v9295_v55, %s6054_s5  ;;  %v4710_v55 = vrot.slane %v8977_v1, 4 }
 0x953   : > { %4542 = vrot.lane.b32.xlu1 %v9301_v27, %s6054_s5  ;;  %v4491_v27 = vrot.slane %v8898_v42, 4 }
 0x954   : > { %v9311_v60 = vpop.permute.xlu2 %5060  ;;  %v9313_v39 = vpop.permute.xlu0 %5052  ;;  %v4711_v7 = vsel %vm209_vm0, %v8963_v40, %v4710_v55  ;;  %v4445_v40 = vrot.slane %v4432_v2, 4  ;;  %v4776_v55 = vrot.slane %v4763_v23, 4 }
 0x955   : > { %v9315_v58 = vpop.permute.xlu1 %5072  ;;  %v4492_v1 = vsel %vm209_vm0, %v8885_v59, %v4491_v27  ;;  %v9355_v12 = vperm.slane %v4711_v7, %v10300_v8 }
 0x956   : > { %v9352_v21 = vperm.slane %v4492_v1, %v10300_v8 }
 0x957   : > { %10355 = vst [vmem:[#allocation41_spill] sm:$0xff] %v9355_v12 }
 0x95a   : > { %4044 = vrot.lane.b32.xlu2 %v9324_v46, %s6055_s6  ;;  %4562 = vrot.lane.b32.xlu0 %v9327_v6, %s6055_s6  ;;  %v10358_v6 = vld [vmem:[#allocation31_spill] sm:$0xff] }
 0x95b   : > { %4829 = vrot.lane.b32.xlu1 %v9332_v44, %s6056_s7  ;;  %v9361_v44 = vperm.slane %v9151_v30, %v10300_v8 }
 0x95c   : > { %v3468_v54 = vpop.permute.xlu2 %3467  ;;  %v9342_v32 = vpop.permute.xlu0 %5088 }
 0x95d   : > { %v9344_v42 = vpop.permute.xlu1 %5080  ;;  %10357 = vst [vmem:[#allocation48_spill] sm:$0xff] %v9361_v44  ;;  %v3522_v59 = vsel %vm767_vm8, %v10358_v6, %v3468_v54  ;;  %v4446_v6 = vsel %vm209_vm0, %v4445_v40, %v9224_v0  ;;  %v4777_v54 = vsel %vm209_vm0, %v4776_v55, %v4751_v35  ;;  %v9389_v0 = vperm.slane %v9154_v24, %v10300_v8 }
 0x95e   : > { %v3523_v30 = vsel %vm769_vm9, %v3522_v59, %v9132_v31  ;;  %v4503_v31 = vrot.slane %v9298_v63, 4  ;;  %v4778_v59 = vrot.slane %v4751_v35, 4  ;;  %v4686_v55 = vrot.slane %v8877_v45, 4  ;;  %v10361_v35 = vld [vmem:[#allocation51_spill] sm:$0xff] }
 0x962   : > { %4554 = vrot.lane.b32.xlu2 %v9352_v21, %s6056_s7  ;;  %4801 = vrot.lane.b32.xlu0 %v9355_v12, %s6056_s7  ;;  %v9384_v12 = vperm.slane %v4777_v54, %v10300_v8 }
 0x963   : > { %5594 = vrot.lane.b32.xlu1 %v9361_v44, %s6056_s7  ;;  %v9381_v44 = vperm.slane %v4446_v6, %v10300_v8 }
 0x964   : > { %v3492_v27 = vpop.permute.xlu2 %3491  ;;  %v3484_v22 = vpop.permute.xlu0 %3483 }
 0x965   : > { %v3476_v1 = vpop.permute.xlu1 %3475 }
 0x966   : > { %v3524_v7 = vsel %vm771_vm10, %v3523_v30, %v3476_v1  ;;  %v4504_v30 = vsel %vm209_vm0, %v9289_v61, %v4503_v31  ;;  %v4779_v1 = vsel %vm209_vm0, %v4763_v23, %v4778_v59 }
 0x967   : > { %v3525_v2 = vsel %vm773_vm11, %v3524_v7, %v9076_v14  ;;  %v4698_v14 = vrot.slane %v8770_v34, 4  ;;  %v9422_v61 = vperm.slane %v4779_v1, %v10300_v8 }
 0x968   : > { %v3526_v53 = vsel %vm775_vm12, %v3525_v2, %v3484_v22  ;;  %v9419_v2 = vperm.slane %v4504_v30, %v10300_v8 }
 0x969   : > { %v3527_v40 = vsel %vm10359_vm1, %v3526_v53, %v9139_v9  ;;  %v4699_v9 = vsel %vm209_vm0, %v8805_v4, %v4698_v14 }
 0x96a   : > { %4534 = vrot.lane.b32.xlu2 %v9381_v44, %s6055_s6  ;;  %4837 = vrot.lane.b32.xlu0 %v9384_v12, %s6055_s6  ;;  %v3528_v63 = vsel %vm10360_vm3, %v3527_v40, %v3492_v27  ;;  %v4687_v27 = vsel %vm209_vm0, %v8846_v47, %v4686_v55  ;;  %v4707_v54 = vperm.slane %v4699_v9, %v10299_v37  ;;  %vm10375_vm3 = vmmov %vm10373_vm2 }
 0x96b   : > { %5602 = vrot.lane.b32.xlu1 %v9389_v0, %s6055_s6  ;;  %5884 = vmatpush.msk.msrb.mxu0 %vm1009_vm15, %v3528_v63  ;;  %v4695_v23 = vperm.slane %v4687_v27, %v10299_v37  ;;  %v9446_v55 = vperm.slane %v9164_v13, %v10300_v8  ;;  %v9450_v9 = vperm.slane %v9121_v43, %v10300_v8 }
 0x96c   : > { %v3504_v24 = vpop.permute.xlu2 %3503  ;;  %v3496_v34 = vpop.permute.xlu0 %3495 }
 0x96d   : > { %v3529_v45 = vsel %vm767_vm8, %v10361_v35, %v3496_v34  ;;  %v3512_v22 = vpop.permute.xlu1 %3511  ;;  %v4722_v63 = vrot.slane %v4695_v23, 4  ;;  %v10365_v35 = vld [vmem:[#allocation30_spill] sm:$0xff] }
 0x96e   : > { %v3530_v6 = vsel %vm769_vm9, %v3529_v45, %v9174_v57  ;;  %v9428_v57 = vperm.slane %v9240_v3, %v10300_v8 }
 0x96f   : > { %v3531_v4 = vsel %vm771_vm10, %v3530_v6, %v3504_v24  ;;  %v4723_v1 = vsel %vm209_vm0, %v4707_v54, %v4722_v63  ;;  %v9514_v63 = vperm.slane %v9265_v52, %v10300_v8 }
 0x970   : > { %v3532_v7 = vsel %vm773_vm11, %v3531_v4, %v9169_v41  ;;  %v4720_v41 = vrot.slane %v4707_v54, 4  ;;  %v9484_v54 = vperm.slane %v9098_v20, %v10300_v8 }
 0x971   : > { %v3533_v47 = vsel %vm775_vm12, %v3532_v7, %v3512_v22 }
 0x972   : > { %4570 = vrot.lane.b32.xlu2 %v9419_v2, %s6054_s5  ;;  %4845 = vrot.lane.b32.xlu0 %v9422_v61, %s6054_s5  ;;  %v3534_v37 = vsel %vm10362_vm4, %v3533_v47, %v9134_v15  ;;  %v4721_v3 = vsel %vm209_vm0, %v4720_v41, %v4695_v23  ;;  %v10364_v15 = vld [vmem:[#allocation42_spill] sm:$0xff]  ;;  %v9475_v23 = vperm.slane %v4723_v1, %v10300_v8  ;;  %vm10376_vm4 = vmmov %vm10373_vm2 }
 0x973   : > { %5319 = vrot.lane.b32.xlu1 %v9428_v57, %s6056_s7  ;;  %v9442_v14 = vperm.slane %v4721_v3, %v10300_v8 }
 0x974   : > { %v3520_v53 = vpop.permute.xlu0 %3519  ;;  %v4276_v31 = vpop.permute.xlu2 %4275 }
 0x975   : > { %v3535_v59 = vsel %vm10363_vm5, %v3534_v37, %v3520_v53  ;;  %v4248_v40 = vpop.permute.xlu1 %4247  ;;  %v4309_v24 = vsel %vm767_vm8, %v10364_v15, %v4276_v31  ;;  %v10370_v15 = vld [vmem:[#allocation17_spill] sm:$0xff]  ;;  %vm10398_vm5 = vmmov %vm10359_vm1 }
 0x976   : > { %5886 = vmatpush.msk.msrb.mxu1 %vm1009_vm15, %v3535_v59  ;;  %v4302_v45 = vsel %vm767_vm8, %v10365_v35, %v4248_v40  ;;  %v4310_v22 = vsel %vm769_vm9, %v4309_v24, %v9214_v11  ;;  %v3621_v35 = vrot.slane %v9103_v17, 4 }
 0x977   : > { %v4303_v7 = vsel %vm769_vm9, %v4302_v45, %v9171_v5 }
 0x978   : > { %v3622_v17 = vsel %vm209_vm0, 0.0, %v3621_v35 }
 0x97a   : > { %4809 = vrot.lane.b32.xlu2 %v9442_v14, %s6055_s6  ;;  %5610 = vrot.lane.b32.xlu0 %v9446_v55, %s6054_s5 }
 0x97b   : > { %5638 = vrot.lane.b32.xlu1 %v9450_v9, %s6054_s5 }
 0x97c   : > { %v4256_v34 = vpop.permute.xlu0 %4255  ;;  %v5041_v13 = vpop.permute.xlu2 %5040 }
 0x97d   : > { %v5095_v43 = vsel %vm767_vm8, %v8974_v51, %v5041_v13  ;;  %v4284_v30 = vpop.permute.xlu1 %4283  ;;  %v9479_v51 = vperm.slane %v9243_v33, %v10300_v8  ;;  %v4304_v11 = vsel %vm771_vm10, %v4303_v7, %v4256_v34  ;;  %v3623_v34 = vrot.slane %v9183_v49, 4 }
 0x97e   : > { %v4311_v27 = vsel %vm771_vm10, %v4310_v22, %v4284_v30  ;;  %v5096_v6 = vsel %vm769_vm9, %v5095_v43, %v9278_v48  ;;  %v10366_v48 = vld [vmem:[#allocation50_spill] sm:$0xff] }
 0x97f   : > { %v4312_v4 = vsel %vm773_vm11, %v4311_v27, %v9212_v62  ;;  %v9488_v47 = vperm.slane %v10366_v48, %v10300_v8  ;;  %v4305_v62 = vsel %vm773_vm11, %v4304_v11, %v9226_v38  ;;  %v9509_v38 = vperm.slane %v9124_v25, %v10300_v8  ;;  %v10371_v22 = vld [vmem:[#allocation26_spill] sm:$0xff] }
 0x980   : > { %v9533_v30 = vperm.slane %v10371_v22, %v10300_v8  ;;  %v3624_v49 = vsel %vm209_vm0, 0.0, %v3623_v34  ;;  %v3675_v11 = vrot.slane %v9233_v28, 4  ;;  %v3999_v34 = vrot.slane %v9324_v46, 4 }
 0x981   : > { %v3617_v53 = vrot.slane %v9488_v47, 4 }
 0x982   : > { %4817 = vrot.lane.b32.xlu2 %v9475_v23, %s6054_s5  ;;  %5327 = vrot.lane.b32.xlu0 %v9479_v51, %s6055_s6  ;;  %v4000_v35 = vsel %vm209_vm0, 0.0, %v3999_v34 }
 0x983   : > { %5355 = vrot.lane.b32.xlu1 %v9484_v54, %s6055_s6  ;;  %v3618_v3 = vsel %vm209_vm0, 0.0, %v3617_v53 }
 0x984   : > { %v4264_v5 = vpop.permute.xlu0 %4263  ;;  %v4272_v33 = vpop.permute.xlu2 %4271 }
 0x985   : > { %v4306_v20 = vsel %vm775_vm12, %v4305_v62, %v4264_v5  ;;  %v4292_v41 = vpop.permute.xlu1 %4291 }
 0x986   : > { %v4307_v37 = vsel %vm10367_vm6, %v4306_v20, %v9280_v10  ;;  %v4313_v31 = vsel %vm775_vm12, %v4312_v4, %v4292_v41  ;;  %v9559_v20 = vperm.slane %v9268_v29, %v10300_v8  ;;  %v3676_v41 = vsel %vm209_vm0, 0.0, %v3675_v11  ;;  %vm10399_vm6 = vmmov %vm10373_vm2 }
 0x987   : > { %v4308_v59 = vsel %vm10368_vm7, %v4307_v37, %v4272_v33  ;;  %v4314_v40 = vsel %vm10369_vm14, %v4313_v31, %v9276_v26  ;;  %v3619_v29 = vrot.slane %v9114_v18, 4  ;;  %v3941_v31 = vrot.slane %v9292_v56, 4  ;;  %vm10401_vm14 = vmmov %vm10359_vm1 }
 0x988   : > { %5894 = vmatpush.msk.msra.mxu0 %vm1009_vm15, %v4308_v59  ;;  %vm10400_vm7 = vcmask 31744  }
 0x98a   : > { %5622 = vrot.lane.b32.xlu2 %v9509_v38, %s6056_s7  ;;  %3682 = vrot.lane.b32.xlu0 %v3618_v3, %s6057_s8  ;;  %v3620_v3 = vsel %vm209_vm0, 0.0, %v3619_v29 }
 0x98b   : > { %5335 = vrot.lane.b32.xlu1 %v9514_v63, %s6054_s5 }
 0x98c   : > { %v5069_v26 = vpop.permute.xlu0 %5068  ;;  %v5077_v10 = vpop.permute.xlu2 %5076 }
 0x98d   : > { %v5102_v25 = vsel %vm767_vm8, %v10370_v15, %v5069_v26  ;;  %v5049_v24 = vpop.permute.xlu1 %5048  ;;  %v3942_v26 = vsel %vm209_vm0, 0.0, %v3941_v31  ;;  %v10377_v15 = vld [vmem:[#allocation25_spill] sm:$0xff]  ;;  %v10382_v31 = vld [vmem:[#allocation39_spill] sm:$0xff] }
 0x98e   : > { %v5103_v52 = vsel %vm769_vm9, %v5102_v25, %v9315_v58  ;;  %v5097_v13 = vsel %vm771_vm10, %v5096_v6, %v5049_v24  ;;  %v10372_v58 = vld [vmem:[#allocation54_spill] sm:$0xff]  ;;  %v9585_v18 = vperm.slane %v10377_v15, %v10300_v8  ;;  %v3677_v24 = vrot.slane %v9158_v50, 4 }
 0x98f   : > { %v5104_v45 = vsel %vm771_vm10, %v5103_v52, %v5077_v10  ;;  %v5098_v43 = vsel %vm773_vm11, %v5097_v13, %v9313_v39  ;;  %v9544_v27 = vperm.slane %v10372_v58, %v10300_v8  ;;  %v4461_v15 = vrot.slane %v9381_v44, 4  ;;  %v10384_v44 = vld [vmem:[#allocation53_spill] sm:$0xff] }
 0x990   : > { %v5105_v1 = vsel %vm773_vm11, %v5104_v45, %v9344_v42  ;;  %v3939_v52 = vrot.slane %v9585_v18, 4  ;;  %v3678_v13 = vsel %vm209_vm0, 0.0, %v3677_v24  ;;  %v10378_v45 = vld [vmem:[#allocation24_spill] sm:$0xff]  ;;  %v10383_v24 = vld [vmem:[#allocation21_spill] sm:$0xff] }
 0x991   : > { %v3673_v5 = vrot.slane %v9544_v27, 4  ;;  %v4001_v34 = vrot.slane %v10383_v24, 4  ;;  %v10388_v24 = vld [vmem:[#allocation23_spill] sm:$0xff] }
 0x992   : > { %5630 = vrot.lane.b32.xlu2 %v9533_v30, %s6055_s6  ;;  %3706 = vrot.lane.b32.xlu0 %v3624_v49, %s6052_s30  ;;  %v3940_v22 = vsel %vm209_vm0, 0.0, %v3939_v52  ;;  %v10379_v49 = vld [vmem:[#allocation36_spill] sm:$0xff]  ;;  %s161_s6 = sand.u32 1, %s6041_s13  }
 0x993   : > { %3698 = vrot.lane.b32.xlu1 %v3622_v17, %s6051_s29  ;;  %v3674_v28 = vsel %vm209_vm0, 0.0, %v3673_v5  ;;  %v3943_v17 = vrot.slane %v10379_v49, 4 }
 0x994   : > { %v4300_v39 = vpop.permute.xlu0 %4299  ;;  %v5085_v6 = vpop.permute.xlu2 %5084 }
 0x995   : > { %v4315_v4 = vsel %vm10373_vm2, %v4314_v40, %v4300_v39  ;;  %v5106_v42 = vsel %vm775_vm12, %v5105_v1, %v5085_v6  ;;  %v5057_v7 = vpop.permute.xlu1 %5056  ;;  %v3679_v40 = vrot.slane %v9147_v36, 4  ;;  %v10380_v39 = vld [vmem:[#allocation34_spill] sm:$0xff] }
 0x996   : > { %v5099_v48 = vsel %vm775_vm12, %v5098_v43, %v5057_v7  ;;  %5896 = vmatpush.msk.msra.mxu1 %vm1009_vm15, %v4315_v4  ;;  %v5107_v62 = vsel %vm10374_vm13, %v5106_v42, %v9342_v32  ;;  %v9601_v43 = vperm.slane %v10378_v45, %v10300_v8  ;;  %v3945_v6 = vrot.slane %v10380_v39, 4  ;;  %v10381_v7 = vld [vmem:[#allocation18_spill] sm:$0xff]  ;;  %vm10403_vm13 = vmmov %vm10359_vm1 }
 0x997   : > { %v5100_v33 = vsel %vm10359_vm1, %v5099_v48, %v9311_v60  ;;  %v3680_v10 = vsel %vm209_vm0, 0.0, %v3679_v40  ;;  %v3944_v4 = vsel %vm209_vm0, 0.0, %v3943_v17  ;;  %v9620_v11 = vperm.slane %v10381_v7, %v10300_v8  ;;  %vm10404_vm1 = vmmov %vm10373_vm2 }
 0x998   : > { %v4513_v58 = vrot.slane %v9601_v43, 4  ;;  %v3946_v48 = vsel %vm209_vm0, 0.0, %v3945_v6  ;;  %v9639_v40 = vperm.slane %v10382_v31, %v10300_v8  ;;  %v4463_v17 = vrot.slane %v10384_v44, 4  ;;  %v10387_v31 = vld [vmem:[#allocation32_spill] sm:$0xff] }
 0x999   : > { %v4515_v39 = vrot.slane %v9352_v21, 4 }
 0x99a   : > { %5347 = vrot.lane.b32.xlu2 %v9559_v20, %s6056_s7  ;;  %3718 = vrot.lane.b32.xlu0 %v3676_v41, %s6053_s4  ;;  %v4514_v42 = vsel %vm209_vm0, 0.0, %v4513_v58  ;;  %v3995_v41 = vrot.slane %v9620_v11, 4  ;;  %v4519_v58 = vrot.slane %v9419_v2, 4  ;;  %v4464_v6 = vsel %vm209_vm0, 0.0, %v4463_v17  ;;  %v10389_v17 = vld [vmem:[#allocation33_spill] sm:$0xff] }
 0x99b   : > { %3710 = vrot.lane.b32.xlu1 %v3674_v28, %s6057_s8  ;;  %v4459_v28 = vrot.slane %v9257_v16, 4  ;;  %v4516_v2 = vsel %vm209_vm0, 0.0, %v4515_v39 }
 0x99c   : > { %v5065_v53 = vpop.permute.xlu0 %5064  ;;  %v9567_v32 = vpop.permute.xlu2 %3702 }
 0x99d   : > { %v9570_v60 = vsel %vm10375_vm3, %v5100_v33, %v5065_v53  ;;  %v5093_v37 = vpop.permute.xlu1 %5092  ;;  %v3997_v53 = vrot.slane %v9236_v19, 4  ;;  %v4460_v29 = vsel %vm209_vm0, 0.0, %v4459_v28 }
 0x99e   : > { %v9575_v59 = vsel %vm10376_vm4, %v5107_v62, %v5093_v37  ;;  %v3996_v37 = vsel %vm209_vm0, 0.0, %v3995_v41  ;;  %vm10406_vm4 = vmmov %vm10398_vm5 }
 0x9a2   : > { %3690 = vrot.lane.b32.xlu2 %v3620_v3, %s6053_s4  ;;  %4012 = vrot.lane.b32.xlu0 %v3942_v26, %s6053_s4  ;;  %v3998_v3 = vsel %vm209_vm0, 0.0, %v3997_v53 }
 0x9a3   : > { %3734 = vrot.lane.b32.xlu1 %v3680_v10, %s6052_s30  ;;  %v4457_v10 = vrot.slane %v9639_v40, 4 }
 0x9a4   : > { %v9588_v56 = vpop.permute.xlu2 %3714  ;;  %v9590_v25 = vpop.permute.xlu0 %3694 }
 0x9a5   : > { %v9592_v36 = vpop.permute.xlu1 %3686  ;;  %v4458_v52 = vsel %vm209_vm0, 0.0, %v4457_v10 }
 0x9aa   : > { %3726 = vrot.lane.b32.xlu2 %v3678_v13, %s6051_s29  ;;  %4048 = vrot.lane.b32.xlu0 %v4000_v35, %s6051_s29  ;;  %v4462_v13 = vsel %vm209_vm0, 0.0, %v4461_v15  ;;  %v4002_v35 = vsel %vm209_vm0, 0.0, %v4001_v34  ;;  %v9696_v34 = vperm.slane %v10388_v24, %v10300_v8 }
 0x9ab   : > { %4004 = vrot.lane.b32.xlu1 %v3940_v22, %s6057_s8 }
 0x9ac   : > { %v9607_v50 = vpop.permute.xlu0 %3730  ;;  %v9609_v46 = vpop.permute.xlu2 %4008  ;;  %v5525_v39 = vrot.slane %v9696_v34, 4 }
 0x9ad   : > { %v9611_v1 = vpop.permute.xlu1 %3722 }
 0x9b2   : > { %4020 = vrot.lane.b32.xlu2 %v3944_v4, %s6051_s29  ;;  %4550 = vrot.lane.b32.xlu0 %v4514_v42, %s6057_s8  ;;  %v4520_v4 = vsel %vm209_vm0, 0.0, %v4519_v58  ;;  %v10385_v42 = vld [vmem:[#allocation19_spill] sm:$0xff]  ;;  %v4790_v58 = vrot.slane %v10389_v17, 4 }
 0x9b3   : > { %4028 = vrot.lane.b32.xlu1 %v3946_v48, %s6052_s30  ;;  %v9673_v7 = vperm.slane %v10385_v42, %v10300_v8  ;;  %v10386_v48 = vld [vmem:[#allocation28_spill] sm:$0xff] }
 0x9b4   : > { %v9626_v5 = vpop.permute.xlu0 %4024  ;;  %v9628_v62 = vpop.permute.xlu2 %4044  ;;  %v9677_v41 = vperm.slane %v10386_v48, %v10300_v8  ;;  %v4791_v42 = vsel %vm209_vm0, 0.0, %v4790_v58  ;;  %v5526_v48 = vsel %vm209_vm0, 0.0, %v5525_v39  ;;  %v10391_v58 = vld [vmem:[#allocation16_spill] sm:$0xff] }
 0x9b5   : > { %v9630_v33 = vpop.permute.xlu1 %4016  ;;  %v9733_v39 = vperm.slane %v10391_v58, %v10300_v8  ;;  %v5529_v58 = vrot.slane %v9389_v0, 4 }
 0x9ba   : > { %4032 = vrot.lane.b32.xlu2 %v3996_v37, %s6057_s8  ;;  %4530 = vrot.lane.b32.xlu0 %v4460_v29, %s6053_s4  ;;  %v4732_v37 = vrot.slane %v9673_v7, 4  ;;  %v4788_v29 = vrot.slane %v9677_v41, 4 }
 0x9bb   : > { %4040 = vrot.lane.b32.xlu1 %v3998_v3, %s6053_s4  ;;  %v4517_v3 = vrot.slane %v10387_v31, 4 }
 0x9bc   : > { %v9645_v26 = vpop.permute.xlu0 %4036  ;;  %v9647_v16 = vpop.permute.xlu2 %4554  ;;  %v4733_v10 = vsel %vm209_vm0, 0.0, %v4732_v37  ;;  %v4789_v15 = vsel %vm209_vm0, 0.0, %v4788_v29 }
 0x9bd   : > { %v9649_v19 = vpop.permute.xlu1 %4526 }
 0x9c2   : > { %4522 = vrot.lane.b32.xlu2 %v4458_v52, %s6057_s8  ;;  %4538 = vrot.lane.b32.xlu0 %v4462_v13, %s6051_s29  ;;  %v4518_v52 = vsel %vm209_vm0, 0.0, %v4517_v3  ;;  %v4792_v3 = vrot.slane %v9384_v12, 4 }
 0x9c3   : > { %4056 = vrot.lane.b32.xlu1 %v4002_v35, %s6052_s30 }
 0x9c4   : > { %v9660_v45 = vpop.permute.xlu0 %4052  ;;  %v9662_v22 = vpop.permute.xlu2 %4534  ;;  %v4793_v24 = vsel %vm209_vm0, 0.0, %v4792_v3 }
 0x9c5   : > { %v9664_v49 = vpop.permute.xlu1 %4542 }
 0x9ca   : > { %4546 = vrot.lane.b32.xlu2 %v4464_v6, %s6052_s30  ;;  %4574 = vrot.lane.b32.xlu0 %v4520_v4, %s6052_s30  ;;  %v10390_v6 = vld [vmem:[#allocation41_spill] sm:$0xff] }
 0x9cb   : > { %4558 = vrot.lane.b32.xlu1 %v4516_v2, %s6053_s4  ;;  %v4734_v4 = vrot.slane %v10390_v6, 4  ;;  %v10392_v6 = vld [vmem:[#allocation48_spill] sm:$0xff] }
 0x9cc   : > { %v9683_v21 = vpop.permute.xlu0 %4562  ;;  %v9685_v28 = vpop.permute.xlu2 %4570 }
 0x9cd   : > { %v9687_v53 = vpop.permute.xlu1 %4829  ;;  %v4735_v2 = vsel %vm209_vm0, 0.0, %v4734_v4  ;;  %v5527_v4 = vrot.slane %v10392_v6, 4 }
 0x9d2   : > { %4797 = vrot.lane.b32.xlu2 %v4733_v10, %s6057_s8  ;;  %4825 = vrot.lane.b32.xlu0 %v4789_v15, %s6057_s8  ;;  %v4738_v10 = vrot.slane %v9475_v23, 4  ;;  %v4736_v15 = vrot.slane %v9442_v14, 4 }
 0x9d3   : > { %4566 = vrot.lane.b32.xlu1 %v4518_v52, %s6051_s29 }
 0x9d4   : > { %v9702_v13 = vpop.permute.xlu2 %4809  ;;  %v9704_v35 = vpop.permute.xlu0 %4801  ;;  %v4739_v52 = vsel %vm209_vm0, 0.0, %v4738_v10  ;;  %v4737_v17 = vsel %vm209_vm0, 0.0, %v4736_v15  ;;  %v10393_v10 = vld [vmem:[#allocation44_spill] sm:$0xff] }
 0x9d5   : > { %v9706_v44 = vpop.permute.xlu1 %5594  ;;  %v9749_v15 = vperm.slane %v10393_v10, %v10300_v8 }
 0x9d7   : > { %v5250_v6 = vrot.slane %v9749_v15, 4 }
 0x9da   : > { %4833 = vrot.lane.b32.xlu2 %v4791_v42, %s6053_s4  ;;  %5590 = vrot.lane.b32.xlu0 %v5526_v48, %s6057_s8  ;;  %v5583_v42 = vrot.slane %v9509_v38, 4  ;;  %v5581_v48 = vrot.slane %v9733_v39, 4 }
 0x9db   : > { %4805 = vrot.lane.b32.xlu1 %v4735_v2, %s6053_s4  ;;  %v5528_v2 = vsel %vm209_vm0, 0.0, %v5527_v4  ;;  %v4794_v4 = vrot.slane %v9422_v61, 4 }
 0x9dc   : > { %v9717_v37 = vpop.permute.xlu2 %4817  ;;  %v9719_v29 = vpop.permute.xlu0 %4837  ;;  %v5584_v3 = vsel %vm209_vm0, 0.0, %v5583_v42  ;;  %v5530_v42 = vsel %vm209_vm0, 0.0, %v5529_v58  ;;  %v5252_v58 = vrot.slane %v9428_v57, 4 }
 0x9dd   : > { %v9721_v31 = vpop.permute.xlu1 %5602 }
 0x9e2   : > { %4841 = vrot.lane.b32.xlu2 %v4793_v24, %s6051_s29  ;;  %4821 = vrot.lane.b32.xlu0 %v4739_v52, %s6052_s30  ;;  %v5582_v24 = vsel %vm209_vm0, 0.0, %v5581_v48  ;;  %v4795_v48 = vsel %vm209_vm0, 0.0, %v4794_v4 }
 0x9e3   : > { %4813 = vrot.lane.b32.xlu1 %v4737_v17, %s6051_s29 }
 0x9e4   : > { %v9736_v12 = vpop.permute.xlu0 %4845  ;;  %v9738_v23 = vpop.permute.xlu2 %5622 }
 0x9e5   : > { %v9740_v14 = vpop.permute.xlu1 %5319 }
 0x9ea   : > { %5598 = vrot.lane.b32.xlu2 %v5528_v2, %s6053_s4  ;;  %5626 = vrot.lane.b32.xlu0 %v5584_v3, %s6053_s4  ;;  %v5251_v2 = vsel %vm209_vm0, 0.0, %v5250_v6  ;;  %v10394_v3 = vld [vmem:[#allocation11_spill] sm:$0xff]  ;;  %v5585_v6 = vrot.slane %v9533_v30, 4 }
 0x9eb   : > { %5618 = vrot.lane.b32.xlu1 %v5582_v24, %s6057_s8  ;;  %v9771_v10 = vperm.slane %v10394_v3, %v10300_v8 }
 0x9ec   : > { %v9755_v52 = vpop.permute.xlu2 %5630  ;;  %v9757_v38 = vpop.permute.xlu0 %5610 }
 0x9ed   : > { %v9759_v17 = vpop.permute.xlu1 %5638  ;;  %v5306_v4 = vrot.slane %v9771_v10, 4 }
 0x9ef   : > { %v5307_v3 = vsel %vm209_vm0, 0.0, %v5306_v4 }
 0x9f2   : > { %5606 = vrot.lane.b32.xlu2 %v5530_v42, %s6051_s29  ;;  %5315 = vrot.lane.b32.xlu0 %v5251_v2, %s6057_s8  ;;  %v5253_v42 = vsel %vm209_vm0, 0.0, %v5252_v58  ;;  %v5586_v2 = vsel %vm209_vm0, 0.0, %v5585_v6  ;;  %v5308_v58 = vrot.slane %v9559_v20, 4  ;;  %v5531_v6 = vrot.slane %v9446_v55, 4 }
 0x9f3   : > { %4849 = vrot.lane.b32.xlu1 %v4795_v48, %s6052_s30 }
 0x9f4   : > { %v9774_v0 = vpop.permute.xlu2 %5347  ;;  %v9776_v24 = vpop.permute.xlu0 %5327 }
 0x9f5   : > { %10395 = vst [vmem:[#allocation20_spill] sm:$0xff] %v9776_v24  ;;  %v9778_v61 = vpop.permute.xlu1 %5355 }
 0x9f6   : > { %10396 = vst [vmem:[#allocation40_spill] sm:$0xff] %v9778_v61  ;;  %v5587_v61 = vrot.slane %v9450_v9, 4  ;;  %v10397_v9 = vld [vmem:[#allocation22_spill] sm:$0xff] }
 0x9f7   : > { %v5305_v20 = vperm.slane %v10397_v9, %v10300_v8 }
 0x9fa   : > { %5323 = vrot.lane.b32.xlu2 %v5253_v42, %s6053_s4  ;;  %5634 = vrot.lane.b32.xlu0 %v5586_v2, %s6051_s29  ;;  %v5588_v42 = vsel %vm209_vm0, 0.0, %v5587_v61  ;;  %v5309_v2 = vsel %vm209_vm0, 0.0, %v5308_v58  ;;  %v5310_v58 = vrot.slane %v9484_v54, 4 }
 0x9fb   : > { %5343 = vrot.lane.b32.xlu1 %v5307_v3, %s6057_s8  ;;  %v5532_v3 = vsel %vm209_vm0, 0.0, %v5531_v6 }
 0x9fc   : > { %v3691_v48 = vpop.permute.xlu2 %3690  ;;  %v3683_v24 = vpop.permute.xlu0 %3682 }
 0x9fd   : > { %v3737_v57 = vsel %vm767_vm8, %v9488_v47, %v3683_v24  ;;  %v9791_v30 = vpop.permute.xlu1 %5335 }
 0x9fe   : > { %v3738_v4 = vsel %vm769_vm9, %v3737_v57, %v9592_v36  ;;  %v5254_v57 = vrot.slane %v9479_v51, 4 }
 0x9ff   : > { %v3739_v47 = vsel %vm771_vm10, %v3738_v4, %v3691_v48 }
 0xa00   : > { %v3740_v36 = vsel %vm773_vm11, %v3739_v47, %v9590_v25  ;;  %v5255_v4 = vsel %vm209_vm0, 0.0, %v5254_v57 }
 0xa02   : > { %5642 = vrot.lane.b32.xlu2 %v5588_v42, %s6052_s30  ;;  %5351 = vrot.lane.b32.xlu0 %v5309_v2, %s6053_s4  ;;  %v5312_v42 = vrot.slane %v5305_v20, 4  ;;  %v5311_v2 = vsel %vm209_vm0, 0.0, %v5310_v58 }
 0xa03   : > { %5614 = vrot.lane.b32.xlu1 %v5532_v3, %s6052_s30 }
 0xa04   : > { %v3727_v55 = vpop.permute.xlu2 %3726  ;;  %v3707_v24 = vpop.permute.xlu0 %3706  ;;  %v5313_v25 = vsel %vm209_vm0, 0.0, %v5312_v42 }
 0xa05   : > { %v3699_v61 = vpop.permute.xlu1 %3698 }
 0xa06   : > { %v3741_v6 = vsel %vm775_vm12, %v3740_v36, %v3699_v61 }
 0xa07   : > { %v3742_v48 = vsel %vm10398_vm5, %v3741_v6, %v9567_v32  ;;  %v5256_v32 = vrot.slane %v9514_v63, 4  ;;  %vm10407_vm5 = vmmov %vm10406_vm4 }
 0xa08   : > { %v3743_v8 = vsel %vm10399_vm6, %v3742_v48, %v3707_v24  ;;  %v5879_v24 = vld [vmem:[%s10046_s2 + $0x4] sm:$0xf]  ;;  %vm10408_vm6 = vmmov %vm10404_vm1 }
 0xa09   : > { %5880 = vmatpush.msk.msra.mxu2 %vm1009_vm15, %v3743_v8  ;;  %v5257_v61 = vsel %vm209_vm0, 0.0, %v5256_v32  ;;  %vm10402_vm0 = vmmov %vm10400_vm7 }
 0xa0a   : > { %5331 = vrot.lane.b32.xlu2 %v5255_v4, %s6051_s29  ;;  %5359 = vrot.lane.b32.xlu0 %v5311_v2, %s6051_s29  ;;  %vm10405_vm3 = vmmov %vm10402_vm0  ;;  %s5828_s29 = sshll.u32 %s161_s6, 3 }
 0xa0b   : > { %5367 = vrot.lane.b32.xlu1 %v5313_v25, %s6052_s30  ;;  %5881 = vmatmul.msk.f32.vlgmr.msra.gmra.mxu2 %vm10400_vm7, %v5879_v24  ;;  %vm10409_vm7 = vmmov %vm10404_vm1  ;;  %s163_s9 = scalar_lea.vmem [#allocation3], %s5828_s29 }
 0xa0c   : > { %v4021_v51 = vpop.permute.xlu2 %4020  ;;  %v3719_v54 = vpop.permute.xlu0 %3718  ;;  %s5762_s10 = sshll.u32 %s163_s9, 4  ;;  %s5763_s10 = int_to_ptr.vmem [resolvable:$true] %s5762_s10 }
 0xa0d   : > { %v3711_v3 = vpop.permute.xlu1 %3710 }
 0xa0e   : > { %v3744_v47 = vsel %vm767_vm8, %v9544_v27, %v3711_v3 }
 0xa0f   : > { %v3745_v9 = vsel %vm769_vm9, %v3744_v47, %v9588_v56 }
 0xa10   : > { %v3746_v36 = vsel %vm771_vm10, %v3745_v9, %v3719_v54 }
 0xa11   : > { %v3747_v57 = vsel %vm773_vm11, %v3746_v36, %v9611_v1 }
 0xa12   : > { %5363 = vrot.lane.b32.xlu2 %v5305_v20, %s6054_s5  ;;  %5339 = vrot.lane.b32.xlu0 %v5257_v61, %s6052_s30  ;;  %v3748_v63 = vsel %vm775_vm12, %v3747_v57, %v3727_v55  ;;  %s5929_s30 = sshll.u32 %s6105_s16, 3  ;;  %s5749_s16 = scalar_lea.sflag [#allocation4], %s161_s6 }
 0xa13   : > { %v3749_v58 = vsel %vm10401_vm14, %v3748_v63, %v9607_v50  ;;  %vm10410_vm14 = vmmov %vm10402_vm0  ;;  %s5760_s8 = scalar_lea.hbm %s10047_s3, %s5929_s30 }
 0xa14   : > { %v4033_v27 = vpop.permute.xlu2 %4032  ;;  %v4013_v56 = vpop.permute.xlu0 %4012  ;;  %s5764_s11 = sshll.u32 %s5760_s8, 4  ;;  %s5765_s11 = int_to_ptr.hbm [resolvable:$true] %s5764_s11 }
 0xa15   : > { %v3735_v6 = vpop.permute.xlu1 %3734  ;;  %s6001_s17 = sshra.s32 %s5765_s11, 4  ;;  %s6002_s17 = int_to_ptr.hbm [resolvable:$true] %s6001_s17 }
 0xa16   : > { %v3750_v42 = vsel %vm10373_vm2, %v3749_v58, %v3735_v6  ;;  %vm10411_vm2 = vmmov %vm10402_vm0  ;;  %s6003_s19 = scalar_lea.hbm %s6002_s17, 8  ;;  %p6008_p0 = scmp.lt.s32.totalorder %s6002_s17, %s10047_s3 }
 0xa17   : > { %5882 = vmatpush.msk.msra.mxu3 %vm1009_vm15, %v3750_v42  ;;  %p6004_p11 = scmp.ne.s32.totalorder %s6002_s17, %s6003_s19  ;;  %p6009_p1 = scmp.lt.s32.totalorder %s6007_s25, %s6003_s19 }
 0xa18   : > { %5883 = vmatmul.msk.f32.vlgmr.msra.gmra.mxu3 %vm10402_vm0, %v5879_v24 }
 0xa19   : > { %p6005_p12 = pnand %p6004_p11, %p6122_p5  ;;  %p6010_p2 = por %p6009_p1, %p6008_p0 }
 0xa1b   : > { %p6006_p13 = pneg %p6005_p12 }
 0xa1c   : > { %v4523_v48 = vpop.permute.xlu2 %4522  ;;  %v4049_v1 = vpop.permute.xlu0 %4048 }
 0xa1d   : > { %v4005_v8 = vpop.permute.xlu1 %4004  ;;  %p6011_p3 = pnand %p6010_p2, %p6006_p13 }
 0xa1e   : > { %v4059_v20 = vsel %vm767_vm8, %v9585_v18, %v4005_v8  ;;  %v5888_v18 = vld [vmem:[%s10046_s2 + $0x8] sm:$0xf] }
 0xa1f   : > { %v4060_v55 = vsel %vm769_vm9, %v4059_v20, %v9609_v46  ;;  %v4066_v46 = vsel %vm767_vm8, %v9620_v11, %v4033_v27 }
 0xa20   : > { %v4061_v4 = vsel %vm771_vm10, %v4060_v55, %v4013_v56 }
 0xa21   : > { %v4062_v50 = vsel %vm773_vm11, %v4061_v4, %v9630_v33 }
 0xa22   : > { %v4063_v2 = vsel %vm775_vm12, %v4062_v50, %v4021_v51  ;;  %v4577_v51 = vsel %vm767_vm8, %v9639_v40, %v4523_v48 }
 0xa23   : > { %v4064_v3 = vsel %vm10403_vm13, %v4063_v2, %v9626_v5  ;;  %v4067_v5 = vsel %vm769_vm9, %v4066_v46, %v9645_v26  ;;  %v4578_v57 = vsel %vm769_vm9, %v4577_v51, %v9649_v19  ;;  %vm10412_vm13 = vmmov %vm10406_vm4 }
 0xa24   : > { %v4547_v25 = vpop.permute.xlu2 %4546  ;;  %v4551_v54 = vpop.permute.xlu0 %4550 }
 0xa25   : > { %v4029_v32 = vpop.permute.xlu1 %4028  ;;  %v4584_v48 = vsel %vm767_vm8, %v9601_v43, %v4551_v54 }
 0xa26   : > { %v4065_v47 = vsel %vm10404_vm1, %v4064_v3, %v4029_v32  ;;  %v4585_v8 = vsel %vm769_vm9, %v4584_v48, %v9647_v16 }
 0xa27   : > { %5889 = vmatpush.msk.msrb.mxu2 %vm1009_vm15, %v4065_v47 }
 0xa28   : > { %5890 = vmatmul.msk.f32.vlgmr.msrb.gmra.mxu2 %vm10405_vm3, %v5888_v18  ;;  %vm10413_vm3 = vmmov %vm10402_vm0 }
 0xa2c   : > { %v4531_v33 = vpop.permute.xlu0 %4530  ;;  %v4798_v9 = vpop.permute.xlu2 %4797 }
 0xa2d   : > { %v4041_v24 = vpop.permute.xlu1 %4040  ;;  %v4579_v63 = vsel %vm771_vm10, %v4578_v57, %v4531_v33  ;;  %v4852_v3 = vsel %vm767_vm8, %v9673_v7, %v4798_v9  ;;  %v5908_v33 = vld [vmem:[%s10046_s2 + $0x18] sm:$0xf] }
 0xa2e   : > { %v4068_v36 = vsel %vm771_vm10, %v4067_v5, %v4041_v24  ;;  %v4580_v40 = vsel %vm773_vm11, %v4579_v63, %v9662_v22  ;;  %v3536_v22 = vld [vmem:[%s10046_s2] sm:$0xf] }
 0xa2f   : > { %v4069_v61 = vsel %vm773_vm11, %v4068_v36, %v9628_v62  ;;  %5885 = vmatmul.msk.f32.vlgmr.msrb.gmra.mxu0 %vm10411_vm2, %v3536_v22  ;;  %5887 = vmatmul.msk.f32.vlgmr.msrb.gmra.mxu1 %vm10402_vm0, %v3536_v22  ;;  %vm10419_vm2 = vmmov %vm10402_vm0  ;;  %v5918_v22 = vld [vmem:[%s10046_s2 + $0x20] sm:$0xf] }
 0xa30   : > { %v4070_v11 = vsel %vm775_vm12, %v4069_v61, %v4049_v1 }
 0xa31   : > { %v4071_v26 = vsel %vm10406_vm4, %v4070_v11, %v9660_v45  ;;  %vm10414_vm4 = vmmov %vm10402_vm0 }
 0xa34   : > { %v4539_v27 = vpop.permute.xlu0 %4538  ;;  %v4834_v19 = vpop.permute.xlu2 %4833 }
 0xa35   : > { %v4581_v56 = vsel %vm775_vm12, %v4580_v40, %v4539_v27  ;;  %v4057_v58 = vpop.permute.xlu1 %4056 }
 0xa36   : > { %v4582_v62 = vsel %vm10407_vm5, %v4581_v56, %v9664_v49  ;;  %v4072_v6 = vsel %vm10408_vm6, %v4071_v26, %v4057_v58  ;;  %vm10415_vm5 = vmmov %vm10402_vm0 }
 0xa37   : > { %5891 = vmatpush.msk.msrb.mxu3 %vm1009_vm15, %v4072_v6  ;;  %v4583_v42 = vsel %vm10409_vm7, %v4582_v62, %v4547_v25  ;;  %vm10416_vm6 = vmmov %vm10402_vm0 }
 0xa38   : > { %5899 = vmatpush.msk.msra.mxu2 %vm1009_vm15, %v4583_v42  ;;  %5892 = vmatmul.msk.f32.vlgmr.msrb.gmra.mxu3 %vm10410_vm14, %v5888_v18  ;;  %vm10417_vm7 = vmmov %vm10412_vm13 }
 0xa39   : > { %vm10418_vm14 = vmmov %vm10402_vm0 }
 0xa3a   : > { %5909 = vmatpush.msk.msrb.mxu2 %vm1009_vm15, %v9570_v60  ;;  %vm10420_vm0 = vmmov %vm10404_vm1 }
 0xa3c   : > { %v4575_v45 = vpop.permute.xlu0 %4574  ;;  %v4842_v1 = vpop.permute.xlu2 %4841 }
 0xa3d   : > { %v4559_v49 = vpop.permute.xlu1 %4558 }
 0xa3e   : > { %v4586_v20 = vsel %vm771_vm10, %v4585_v8, %v4559_v49 }
 0xa3f   : > { %v4587_v4 = vsel %vm773_vm11, %v4586_v20, %v9683_v21  ;;  %v5898_v21 = vld [vmem:[%s10046_s2 + $0x10] sm:$0xf] }
 0xa40   : > { %5900 = vmatmul.msk.f32.vlgmr.msra.gmra.mxu2 %vm10413_vm3, %v5898_v21  ;;  %vm10423_vm3 = vmmov %vm10420_vm0 }
 0xa44   : > { %v4826_v55 = vpop.permute.xlu0 %4825  ;;  %v5599_v43 = vpop.permute.xlu2 %5598 }
 0xa45   : > { %v4567_v60 = vpop.permute.xlu1 %4566  ;;  %v4859_v51 = vsel %vm767_vm8, %v9677_v41, %v4826_v55 }
 0xa46   : > { %v4588_v50 = vsel %vm775_vm12, %v4587_v4, %v4567_v60  ;;  %v4860_v24 = vsel %vm769_vm9, %v4859_v51, %v9687_v53 }
 0xa47   : > { %v4589_v2 = vsel %vm10412_vm13, %v4588_v50, %v9685_v28  ;;  %v5893_v28 = vld [vmem:[%s10046_s2 + $0xc] sm:$0xf]  ;;  %vm10421_vm13 = vmmov %vm10419_vm2  ;;  %v4861_v41 = vsel %vm771_vm10, %v4860_v24, %v4834_v19 }
 0xa48   : > { %v4590_v25 = vsel %vm10404_vm1, %v4589_v2, %v4575_v45  ;;  %5895 = vmatmul.msk.f32.vlgmr.msra.gmra.mxu0 %vm10415_vm5, %v5893_v28  ;;  %5897 = vmatmul.msk.f32.vlgmr.msra.gmra.mxu1 %vm10416_vm6, %v5893_v28  ;;  %v4862_v57 = vsel %vm773_vm11, %v4861_v41, %v9719_v29  ;;  %vm10422_vm1 = vmmov %vm10417_vm7  ;;  %v10431_v50 = vld [vmem:[#allocation40_spill] sm:$0xff] }
 0xa49   : > { %5901 = vmatpush.msk.msra.mxu3 %vm1009_vm15, %v4590_v25  ;;  %5910 = vmatmul.msk.f32.vlgmr.msrb.gmra.mxu2 %vm10418_vm14, %v5908_v33  ;;  %v4863_v63 = vsel %vm775_vm12, %v4862_v57, %v4842_v1  ;;  %vm10425_vm5 = vmmov %vm10422_vm1 }
 0xa4a   : > { %5902 = vmatmul.msk.f32.vlgmr.msra.gmra.mxu3 %vm10414_vm4, %v5898_v21  ;;  %v4864_v53 = vsel %vm10422_vm1, %v4863_v63, %v9736_v12  ;;  %vm10424_vm4 = vmmov %vm10419_vm2 }
 0xa4b   : > { %5911 = vmatpush.msk.msrb.mxu3 %vm1009_vm15, %v9575_v59  ;;  %v4853_v59 = vsel %vm769_vm9, %v4852_v3, %v9704_v35  ;;  %vm10426_vm6 = vmmov %vm10420_vm0 }
 0xa4c   : > { %v5591_v16 = vpop.permute.xlu0 %5590  ;;  %v5607_v18 = vpop.permute.xlu2 %5606  ;;  %vm10428_vm14 = vmmov %vm10422_vm1 }
 0xa4d   : > { %v4806_v54 = vpop.permute.xlu1 %4805  ;;  %v5645_v56 = vsel %vm767_vm8, %v9696_v34, %v5591_v16 }
 0xa4e   : > { %v4854_v7 = vsel %vm771_vm10, %v4853_v59, %v4806_v54  ;;  %v5646_v29 = vsel %vm769_vm9, %v5645_v56, %v9706_v44 }
 0xa4f   : > { %v4855_v47 = vsel %vm773_vm11, %v4854_v7, %v9702_v13  ;;  %v5903_v13 = vld [vmem:[%s10046_s2 + $0x14] sm:$0xf]  ;;  %v5647_v12 = vsel %vm771_vm10, %v5646_v29, %v5599_v43 }
 0xa50   : > { %v5648_v45 = vsel %vm773_vm11, %v5647_v12, %v9721_v31 }
 0xa52   : > { %5912 = vmatmul.msk.f32.vlgmr.msrb.gmra.mxu3 %vm10419_vm2, %v5908_v33 }
 0xa54   : > { %v4822_v32 = vpop.permute.xlu0 %4821  ;;  %v5324_v61 = vpop.permute.xlu2 %5323 }
 0xa55   : > { %v4814_v46 = vpop.permute.xlu1 %4813 }
 0xa56   : > { %v4856_v9 = vsel %vm775_vm12, %v4855_v47, %v4814_v46 }
 0xa57   : > { %v4857_v35 = vsel %vm10417_vm7, %v4856_v9, %v9717_v37  ;;  %vm10427_vm7 = vmmov %vm10419_vm2 }
 0xa58   : > { %v4858_v5 = vsel %vm10420_vm0, %v4857_v35, %v4822_v32  ;;  %vm10429_vm2 = vmmov %vm10420_vm0 }
 0xa59   : > { %5904 = vmatpush.msk.msrb.mxu0 %vm1009_vm15, %v4858_v5  ;;  %vm10430_vm0 = vmmov %vm10424_vm4 }
 0xa5a   : > { %5905 = vmatmul.msk.f32.vlgmr.msrb.gmra.mxu0 %vm10421_vm13, %v5903_v13  ;;  %vm10436_vm13 = vmmov %vm10422_vm1 }
 0xa5c   : > { %v5627_v37 = vpop.permute.xlu0 %5626 }
 0xa5d   : > { %v5619_v36 = vpop.permute.xlu1 %5618 }
 0xa5e   : > { %v5652_v11 = vsel %vm767_vm8, %v9733_v39, %v5619_v36  ;;  %v5643_v39 = vpop.permute.xlu2 %5642 }
 0xa5f   : > { %v5653_v26 = vsel %vm769_vm9, %v5652_v11, %v9738_v23 }
 0xa60   : > { %v5654_v62 = vsel %vm771_vm10, %v5653_v26, %v5627_v37 }
 0xa61   : > { %v5655_v34 = vsel %vm773_vm11, %v5654_v62, %v9755_v52  ;;  %v5649_v52 = vsel %vm775_vm12, %v5648_v45, %v5607_v18 }
 0xa62   : > { %v5650_v8 = vsel %vm10428_vm14, %v5649_v52, %v9757_v38 }
 0xa64   : > { %v5316_v27 = vpop.permute.xlu0 %5315 }
 0xa65   : > { %v4850_v40 = vpop.permute.xlu1 %4849 }
 0xa66   : > { %v4865_v58 = vsel %vm10423_vm3, %v4864_v53, %v4850_v40  ;;  %v5332_v49 = vpop.permute.xlu2 %5331  ;;  %vm10438_vm3 = vmmov %vm10430_vm0 }
 0xa67   : > { %5906 = vmatpush.msk.msrb.mxu1 %vm1009_vm15, %v4865_v58 }
 0xa68   : > { %5907 = vmatmul.msk.f32.vlgmr.msrb.gmra.mxu1 %vm10424_vm4, %v5903_v13 }
 0xa6c   : > { %v5635_v6 = vpop.permute.xlu0 %5634 }
 0xa6d   : > { %v5656_v23 = vsel %vm775_vm12, %v5655_v34, %v5635_v6  ;;  %v5344_v19 = vpop.permute.xlu1 %5343 }
 0xa6e   : > { %v5657_v42 = vsel %vm10425_vm5, %v5656_v23, %v9759_v17  ;;  %v5370_v17 = vsel %vm767_vm8, %v9749_v15, %v5316_v27  ;;  %v5377_v1 = vsel %vm767_vm8, %v9771_v10, %v5344_v19  ;;  %v5364_v2 = vpop.permute.xlu2 %5363  ;;  %vm10432_vm8 = vmmov %vm10422_vm1 }
 0xa6f   : > { %v5658_v44 = vsel %vm10426_vm6, %v5657_v42, %v5643_v39  ;;  %v5371_v55 = vsel %vm769_vm9, %v5370_v17, %v9740_v14  ;;  %v5378_v4 = vsel %vm769_vm9, %v5377_v1, %v9774_v0  ;;  %v5913_v14 = vld [vmem:[%s10046_s2 + $0x1c] sm:$0xf]  ;;  %v10433_v0 = vld [vmem:[#allocation20_spill] sm:$0xff]  ;;  %vm10434_vm9 = vmmov %vm10429_vm2 }
 0xa70   : > { %5921 = vmatpush.msk.msra.mxu3 %vm1009_vm15, %v5658_v44  ;;  %v5372_v10 = vsel %vm771_vm10, %v5371_v55, %v5324_v61  ;;  %vm10437_vm1 = vmmov %vm10429_vm2 }
 0xa71   : > { %5922 = vmatmul.msk.f32.vlgmr.msra.gmra.mxu3 %vm10427_vm7, %v5918_v22  ;;  %v5373_v54 = vsel %vm773_vm11, %v5372_v10, %v10433_v0 }
 0xa72   : > { %v5374_v21 = vsel %vm775_vm12, %v5373_v54, %v5332_v49 }
 0xa73   : > { %v5375_v59 = vsel %vm10436_vm13, %v5374_v21, %v9791_v30  ;;  %v5986_v21 = vld [vmem:[%s6137_s28] sm:$0xff] }
 0xa74   : > { %v5352_v48 = vpop.permute.xlu0 %5351 }
 0xa75   : > { %v5615_v20 = vpop.permute.xlu1 %5614  ;;  %v5379_v15 = vsel %vm771_vm10, %v5378_v4, %v5352_v48  ;;  %vm10435_vm10 = vmmov %vm10430_vm0 }
 0xa76   : > { %v5651_v31 = vsel %vm10429_vm2, %v5650_v8, %v5615_v20  ;;  %v5380_v38 = vsel %vm773_vm11, %v5379_v15, %v10431_v50 }
 0xa77   : > { %5919 = vmatpush.msk.msra.mxu2 %vm1009_vm15, %v5651_v31 }
 0xa78   : > { %5920 = vmatmul.msk.f32.vlgmr.msra.gmra.mxu2 %vm10430_vm0, %v5918_v22 }
 0xa7c   : > { %v5360_v60 = vpop.permute.xlu0 %5359 }
 0xa7d   : > { %v5381_v25 = vsel %vm775_vm12, %v5380_v38, %v5360_v60  ;;  %v5368_v16 = vpop.permute.xlu1 %5367 }
 0xa7e   : > { %v5382_v43 = vsel %vm10432_vm8, %v5381_v25, %v5364_v2 }
 0xa7f   : > { %v5383_v3 = vsel %vm10434_vm9, %v5382_v43, %v5368_v16 }
 0xa80   : > { %5916 = vmatpush.msk.msra.mxu1 %vm1009_vm15, %v5383_v3 }
 0xa81   : > { %5917 = vmatmul.msk.f32.vlgmr.msra.gmra.mxu1 %vm10435_vm10, %v5913_v14 }
 0xa84   : > { %v5340_v28 = vpop.permute.xlu0 %5339 }
 0xa85   : > { %v5376_v7 = vsel %vm10437_vm1, %v5375_v59, %v5340_v28 }
 0xa86   : > { %5914 = vmatpush.msk.msra.mxu0 %vm1009_vm15, %v5376_v7 }
 0xa87   : > { %5915 = vmatmul.msk.f32.vlgmr.msra.gmra.mxu0 %vm10438_vm3, %v5913_v14 }
 0xa8e   : > { %v3779_v18 = vpop.f32.mrf.mxu2 }
 0xa9b   : > { %v3799_v32 = vpop.f32.mrf.mxu3 }
 0xaab   : > { %v4101_v51 = vpop.f32.mrf.mxu2 }
 0xaac   : > { %v3848_v47 = vpop.f32.mrf.mxu1  ;;  %v3828_v33 = vpop.f32.mrf.mxu0 }
 0xaad   : > { %v3849_v9 = vadd.f32 %v3848_v47, %v3799_v32  ;;  %v3829_v13 = vadd.f32 %v3828_v33, %v3779_v18 }
 0xaaf   : > { %v4124_v30 = vadd.f32 %v4101_v51, %v3829_v13 }
 0xabb   : > { %v4121_v46 = vpop.f32.mrf.mxu3 }
 0xabc   : > { %v4125_v5 = vadd.f32 %v4121_v46, %v3849_v9 }
 0xac3   : > { %v4619_v37 = vpop.f32.mrf.mxu2 }
 0xac5   : > { %v4364_v35 = vpop.f32.mrf.mxu1  ;;  %v4344_v41 = vpop.f32.mrf.mxu0 }
 0xac6   : > { %v4368_v36 = vadd.f32 %v4364_v35, %v4125_v5  ;;  %v4367_v57 = vadd.f32 %v4344_v41, %v4124_v30 }
 0xac8   : > { %v4642_v27 = vadd.f32 %v4619_v37, %v4367_v57 }
 0xacc   : > { %v5137_v56 = vpop.f32.mrf.mxu2 }
 0xacd   : > { %v4639_v24 = vpop.f32.mrf.mxu3 }
 0xace   : > { %v4643_v63 = vadd.f32 %v4639_v24, %v4368_v36 }
 0xad5   : > { %v5157_v11 = vpop.f32.mrf.mxu3 }
 0xad7   : > { %v4894_v40 = vpop.f32.mrf.mxu0 }
 0xad8   : > { %v4917_v58 = vadd.f32 %v4894_v40, %v4642_v27 }
 0xada   : > { %v5160_v12 = vadd.f32 %v5137_v56, %v4917_v58 }
 0xae5   : > { %v4914_v61 = vpop.f32.mrf.mxu1 }
 0xae6   : > { %v4918_v53 = vadd.f32 %v4914_v61, %v4643_v63 }
 0xae8   : > { %v5161_v29 = vadd.f32 %v5157_v11, %v4918_v53 }
 0xaf4   : > { %v5707_v62 = vpop.f32.mrf.mxu3 }
 0xafb   : > { %v5687_v34 = vpop.f32.mrf.mxu2 }
 0xafe   : > { %v5432_v26 = vpop.f32.mrf.mxu1 }
 0xaff   : > { %v5436_v39 = vadd.f32 %v5432_v26, %v5161_v29 }
 0xb01   : > { %v5711_v23 = vadd.f32 %v5707_v62, %v5436_v39 }
 0xb03   : > { %v5713_v22 = vsel %vm1009_vm15, %v5711_v23, 0.0 }
 0xb04   : > { %v5412_v6 = vpop.f32.mrf.mxu0 }
 0xb05   : > { %v5435_v19 = vadd.f32 %v5412_v6, %v5160_v12 }
 0xb07   : > { %v5710_v42 = vadd.f32 %v5687_v34, %v5435_v19 }
 0xb09   : > { %v5712_v44 = vsel %vm1009_vm15, %v5710_v42, 0.0 }
 0xb0a   : > { %v5714_v45 = vadd.f32 %v5713_v22, %v5712_v44 }
 0xb0c   : > { %5715 = vadd.xlane.f32.xlu2 %v5714_v45 }
 0xb7f   : > { %v5716_v52 = vpop.xlane.xlu2 %5715 }
 0xb80   : > { %v5717_v49 = vmul.f32 0.00390625, %v5716_v52 }
 0xb82   : > { %v5718_v48 = vsub.f32 %v5710_v42, %v5717_v49  ;;  %v5719_v17 = vsub.f32 %v5711_v23, %v5717_v49 }
 0xb84   : > { %v5720_v1 = vmul.f32 %v5718_v48, %v5718_v48  ;;  %v5721_v8 = vmul.f32 %v5719_v17, %v5719_v17 }
 0xb86   : > { %v5722_v20 = vsel %vm1009_vm15, %v5720_v1, 0.0  ;;  %v5723_v31 = vsel %vm1009_vm15, %v5721_v8, 0.0 }
 0xb87   : > { %v5724_v55 = vadd.f32 %v5723_v31, %v5722_v20 }
 0xb89   : > { %5725 = vadd.xlane.f32.xlu0 %v5724_v55 }
 0xbfc   : > { %v5726_v4 = vpop.xlane.xlu0 %5725 }
 0xbfd   : > { %v5727_v15 = vmul.f32 0.00390625, %v5726_v4 }
 0xbff   : > { %v5728_v10 = vadd.f32 1e-05, %v5727_v15 }
 0xc01   : > { %5984 = vrsqrt.f32 %v5728_v10  ;;  %vm5735_vm12 = vweird.f32 %v5728_v10 }
 0xc07   : > { %v5985_v60 = vpop.eup %5984 }
 0xc08   : > { %v5730_v50 = vmul.f32 %v5985_v60, %v5728_v10  ;;  %vm5736_vm11 = vweird.f32 %v5985_v60 }
 0xc09   : > { %vm5737_vm4 = vmor %vm5735_vm12, %vm5736_vm11 }
 0xc0a   : > { %v5731_v38 = vmul.f32 %v5985_v60, %v5730_v50 }
 0xc0c   : > { %v5732_v2 = vmul.f32 0.5, %v5731_v38 }
 0xc0e   : > { %v5733_v25 = vsub.f32 1.5, %v5732_v2 }
 0xc10   : > { %v5734_v43 = vmul.f32 %v5985_v60, %v5733_v25 }
 0xc12   : > { %v5738_v16 = vsel %vm5737_vm4, %v5985_v60, %v5734_v43 }
 0xc13   : > { %v5740_v14 = vmul.f32 %v5738_v16, %v5719_v17  ;;  %v5739_v0 = vmul.f32 %v5738_v16, %v5718_v48 }
 0xc15   : > { %v5743_v54 = vrot.slane %v5740_v14, 4 }
 0xc17   : > { %v5744_v3 = vsel %vm1009_vm15, %v5739_v0, %v5743_v54 }
 0xc18   : > { %v5746_v28 = vadd.f32 %v5986_v21, %v5744_v3 }
 0xc1a   : > { %5747 = vst [vmem:[%s163_s9] sm:$0xff] %v5746_v28 }
 0xc1b   : > { %6014 = shalt.err (!%p6011_p3)
}
 0xc1c   : > { %5930 = dma.vmem_to_hbm [thread:$0]  (%p6122_p5), %s5763_s10, 128, %s5765_s11, %s5749_s16  }
 0xc1d PF: > { %p5936_p4 = scmp.ge.s32.totalorder %s6049_s15, 2  ;;  %s5776_s28 = sand.u32 1, %s6037_s12  }
 0xc1e   : > { %s5777_s4 = scalar_lea.sflag [#allocation4], %s5776_s28 }
 0xc1f   : > { %p5933_p7 = pnand %p5936_p4, %p6126_p6 }
 0xc21   : > { %p5934_p8 = pneg %p5933_p7 }
 0xc23   : > { %6032 = dma.done.wait (%p5934_p8), %s5777_s4, 128  }
 0xc24   : > { %6034 = vsyncadd (%p5934_p8), %s5777_s4, 4294967168  ;;  %p13_p9 = scmp.ge.s32.totalorder %s6109_s18, 4   ;;  %s10439_s12 = smov %s6041_s13 }
 0xc25   : > { %s10440_s13 = smov %s6045_s14  ;;  %s10441_s14 = smov %s6120_s21 }
 0xc26   : > { %s10442_s15 = smov %s6109_s18  ;;  %15 = sbr.rel (!%p13_p9) target bundleno = 3 (0x3), region = 90 }
 0xc2b   :  { %5783 = vsyncpa [#allocation4], 1 }
 0xc2c   :  { %5785 = vsyncpa [#allocation4 + $0x1], 1 }

</bundles_post_ra>
